<compile_context>
chip_gen: v6e
topology: v6e:2x2x1
jax: 0.10.0
libtpu: 0.0.40
codegen_flags: <defaults>
</compile_context>

<pallas_src>
import functools

import jax
import jax.numpy as jnp
from jax.experimental import pallas as pl
from jax.experimental.pallas import tpu as pltpu

# ---- model hyper-parameters (fc sizes fixed by the PyTorch module) ----------
FEAT_DIM = 2048      # fc1 input
HID = 256            # fc1 out / lstm hidden / fc2 out
VOCAB = 256          # vocabulary_size  (lane aligned)
EMB = 128            # embedding_dim    (lane aligned)
BATCH = 8
SEQ = 8


def _sigmoid(x):
    # One EUP push (tanh) instead of exp + reciprocal.
    return 0.5 * jnp.tanh(0.5 * x) + 0.5


def caption_kernel(feat_ref, xemb_ref, w1_hbm,
                   b1_ref, wih_ref, whh_ref, bl_ref,
                   w2a_ref, w2b_ref, b2_ref,
                   w3_ref, b3_ref,
                   out_ref,
                   w1_vmem, gx_vmem, w1_sem):
    """Fused forward pass.  Everything except w1 is resident in VMEM (<1.5 MiB);
    w1 (1 MiB) is streamed HBM->VMEM behind the recurrence."""
    f32 = jnp.float32
    bf16 = jnp.bfloat16
    H = HID
    B = feat_ref.shape[0]
    T = xemb_ref.shape[0] // B

    # ---- kick off the fc1 weight DMA immediately; it is not needed until
    # after the recurrence, so the copy is hidden behind the serial loop -----
    w1_copy = pltpu.make_async_copy(w1_hbm, w1_vmem, w1_sem)
    w1_copy.start()

    # ---- LSTM input projection, hoisted off the serial critical path -------
    # xemb is time-major bf16: row t*B + b  <->  (timestep t, batch b).
    gx_vmem[...] = (jnp.dot(xemb_ref[...], wih_ref[...],
                            preferred_element_type=f32)
                    + bl_ref[...])                                   # (T*B, 4H) f32

    # ---- LSTM recurrence, fully unrolled (PyTorch gate order i, f, g, o) ---
    whh = whh_ref[...]                                               # (H, 4H) bf16
    h = jnp.zeros((B, H), f32)
    c = jnp.zeros((B, H), f32)
    for t in range(T):                                               # static unroll
        gates = (gx_vmem[t * B:(t + 1) * B, :]
                 + jnp.dot(h.astype(bf16), whh,
                           preferred_element_type=f32))              # (B, 4H) f32
        i = _sigmoid(gates[:, 0 * H:1 * H])
        f = _sigmoid(gates[:, 1 * H:2 * H])
        g = jnp.tanh(gates[:, 2 * H:3 * H])
        o = _sigmoid(gates[:, 3 * H:4 * H])
        c = f * c + i * g
        h = o * jnp.tanh(c)

    # ---- fc1 + relu, after the recurrence (w1 DMA has had T steps to land) -
    w1_copy.wait()
    x1 = jnp.maximum(
        jnp.dot(feat_ref[...], w1_vmem[...], preferred_element_type=f32)
        + b1_ref[...], 0.0)                                          # (B, H)

    # ---- fc2 + relu over concat([x1, h]) via split weights -----------------
    x = jnp.maximum(
        jnp.dot(x1.astype(bf16), w2a_ref[...], preferred_element_type=f32)
        + jnp.dot(h.astype(bf16), w2b_ref[...], preferred_element_type=f32)
        + b2_ref[...], 0.0)                                          # (B, H)

    # ---- fc3 ----------------------------------------------------------------
    out_ref[...] = (jnp.dot(x.astype(bf16), w3_ref[...],
                            preferred_element_type=f32)
                    + b3_ref[...])                                   # (B, V)


def init_params(key):
    """Master f32 parameters, PyTorch layout."""
    ks = jax.random.split(key, 10)
    s = 0.05
    emb = jax.random.normal(ks[0], (VOCAB, EMB), jnp.float32) * s
    emb = emb.at[0].set(0.0)  # padding_idx=0 row zeroed (as in nn.Embedding)
    return {
        "embedding": emb,
        "w1": jax.random.normal(ks[1], (HID, FEAT_DIM), jnp.float32) * s,   # fc1
        "b1": jax.random.normal(ks[2], (HID,), jnp.float32) * s,
        "w_ih": jax.random.normal(ks[3], (4 * HID, EMB), jnp.float32) * s,  # lstm
        "w_hh": jax.random.normal(ks[4], (4 * HID, HID), jnp.float32) * s,
        "b_ih": jax.random.normal(ks[5], (4 * HID,), jnp.float32) * s,
        "b_hh": jax.random.normal(ks[6], (4 * HID,), jnp.float32) * s,
        "w2": jax.random.normal(ks[7], (HID, 2 * HID), jnp.float32) * s,    # fc2
        "b2": jax.random.normal(ks[8], (HID,), jnp.float32) * s,
        "w3": jax.random.normal(ks[9], (VOCAB, HID), jnp.float32) * s,      # fc3
        "b3": jnp.zeros((VOCAB,), jnp.float32),
    }


def prepare_params(p):
    """One-time (outside jit) weight transform: transpose, split W2, combine
    LSTM biases, cast weight matrices to bf16 (native MXU operand dtype)."""
    bf16 = jnp.bfloat16
    f32 = jnp.float32
    return {
        "embedding": p["embedding"].astype(f32),              # (V, E) for gather
        "w1": p["w1"].T.astype(bf16),                         # (2048, 256)
        "b1": p["b1"][None, :].astype(f32),                   # (1, 256)
        "w_ih": p["w_ih"].T.astype(bf16),                     # (E, 4H)
        "w_hh": p["w_hh"].T.astype(bf16),                     # (H, 4H)
        "b_lstm": (p["b_ih"] + p["b_hh"])[None, :].astype(f32),   # (1, 4H)
        "w2a": p["w2"][:, :HID].T.astype(bf16),               # (256, 256)  x1 half
        "w2b": p["w2"][:, HID:].T.astype(bf16),               # (256, 256)  lstm half
        "b2": p["b2"][None, :].astype(f32),                   # (1, 256)
        "w3": p["w3"].T.astype(bf16),                         # (256, V)
        "b3": p["b3"][None, :].astype(f32),                   # (1, V)
    }


@jax.jit
def image_captioning_forward(input_1, input_2, prep):
    B, T = input_2.shape
    # Time-major token ids -> gather directly yields (T*B, E): no large transpose.
    tok_tm = jnp.transpose(input_2).reshape(T * B)
    x_emb = jnp.take(prep["embedding"], tok_tm, axis=0).astype(jnp.bfloat16)  # (T*B, E)
    feat = input_1.astype(jnp.bfloat16)                                       # (B, 2048)

    args = (feat, x_emb, prep["w1"],
            prep["b1"], prep["w_ih"], prep["w_hh"], prep["b_lstm"],
            prep["w2a"], prep["w2b"], prep["b2"],
            prep["w3"], prep["b3"])

    flops = (2 * B * FEAT_DIM * HID          # fc1
             + 2 * (B * T) * EMB * 4 * HID   # lstm input projection (hoisted)
             + T * 2 * B * HID * 4 * HID     # recurrent matmuls
             + 2 * 2 * B * HID * HID         # fc2 (two halves)
             + 2 * B * HID * VOCAB)          # fc3
    transcendentals = T * 5 * B * HID        # 5 tanh per step (3 sigmoid-as-tanh + 2 tanh)
    bytes_accessed = (sum(int(a.size) * a.dtype.itemsize for a in args)
                      + B * VOCAB * 4)

    vmem = pl.BlockSpec(memory_space=pltpu.MemorySpace.VMEM)
    hbm = pl.BlockSpec(memory_space=pl.ANY)          # w1: manual DMA inside kernel
    in_specs = [vmem, vmem, hbm] + [vmem] * 9

    return pl.pallas_call(
        caption_kernel,
        out_shape=jax.ShapeDtypeStruct((B, VOCAB), jnp.float32),
        in_specs=in_specs,
        out_specs=vmem,
        scratch_shapes=[
            pltpu.VMEM((FEAT_DIM, HID), jnp.bfloat16),   # w1 landing buffer (1 MiB)
            pltpu.VMEM((T * B, 4 * HID), jnp.float32),   # gx scratch (256 KiB)
            pltpu.SemaphoreType.DMA,                     # w1 copy semaphore
        ],
        cost_estimate=pl.CostEstimate(flops=flops,
                                      transcendentals=transcendentals,
                                      bytes_accessed=bytes_accessed),
    )(*args)


def reference_forward(input_1, input_2, params):
    """Plain-JAX mirror of the PyTorch forward (dropout = identity), quantizing
    matmul operands (weights AND activations) to bf16 exactly as the kernel
    does, with f32 accumulation and f32 gate/cell math.  Precision is the only
    intentional deviation from the fp32 PyTorch module (per the perf review)."""
    f32, bf16 = jnp.float32, jnp.bfloat16
    dot = lambda a, w: jnp.dot(a.astype(bf16), w.astype(bf16),
                               preferred_element_type=f32)

    x1 = jax.nn.relu(dot(input_1, params["w1"].T) + params["b1"])
    x2 = jnp.take(params["embedding"], input_2, axis=0)          # (B, T, E) f32
    B, T, _ = x2.shape
    b_lstm = params["b_ih"] + params["b_hh"]
    h = jnp.zeros((B, HID), f32)
    c = jnp.zeros((B, HID), f32)
    for t in range(T):
        gates = (dot(x2[:, t, :], params["w_ih"].T) + b_lstm
                 + dot(h, params["w_hh"].T))
        i = _sigmoid(gates[:, 0 * HID:1 * HID])
        f = _sigmoid(gates[:, 1 * HID:2 * HID])
        g = jnp.tanh(gates[:, 2 * HID:3 * HID])
        o = _sigmoid(gates[:, 3 * HID:4 * HID])
        c = f * c + i * g
        h = o * jnp.tanh(c)
    x = jax.nn.relu(dot(x1, params["w2"][:, :HID].T)
                    + dot(h, params["w2"][:, HID:].T)
                    + params["b2"])
    return dot(x, params["w3"].T) + params["b3"]


if __name__ == "__main__":
    key = jax.random.PRNGKey(0)
    k_param, k_feat, k_tok = jax.random.split(key, 3)

    params = init_params(k_param)
    prep = prepare_params(params)     # one-time, outside jit

    input_1 = jax.random.normal(k_feat, (BATCH, FEAT_DIM), jnp.float32)      # image features
    input_2 = jax.random.randint(k_tok, (BATCH, SEQ), 0, VOCAB, jnp.int32)   # token ids

    out = image_captioning_forward(input_1, input_2, prep)
    out = jax.block_until_ready(out)
    assert out.shape == (BATCH, VOCAB), out.shape

    ref = reference_forward(input_1, input_2, params)
    err = float(jnp.max(jnp.abs(out - ref)))
    assert jnp.allclose(out, ref, atol=1e-2, rtol=1e-2), err

    print("KERNEL_OK")
</pallas_src>

<mosaic_0001>
module attributes {stable_mosaic.version = 11 : i64} {
  func.func @caption_kernel(%arg0: memref<8x2048xbf16, #tpu.memory_space<vmem>>, %arg1: memref<64x128xbf16, #tpu.memory_space<vmem>>, %arg2: memref<2048x256xbf16, #tpu.memory_space<any>>, %arg3: memref<1x256xf32, #tpu.memory_space<vmem>>, %arg4: memref<128x1024xbf16, #tpu.memory_space<vmem>>, %arg5: memref<256x1024xbf16, #tpu.memory_space<vmem>>, %arg6: memref<1x1024xf32, #tpu.memory_space<vmem>>, %arg7: memref<256x256xbf16, #tpu.memory_space<vmem>>, %arg8: memref<256x256xbf16, #tpu.memory_space<vmem>>, %arg9: memref<1x256xf32, #tpu.memory_space<vmem>>, %arg10: memref<256x256xbf16, #tpu.memory_space<vmem>>, %arg11: memref<1x256xf32, #tpu.memory_space<vmem>>, %arg12: memref<8x256xf32, #tpu.memory_space<vmem>>, %arg13: memref<2048x256xbf16, #tpu.memory_space<vmem>>, %arg14: memref<64x1024xf32, #tpu.memory_space<vmem>>, %arg15: memref<!tpu.dma_semaphore, #tpu.memory_space<semaphore_mem>>) attributes {dimension_semantics = [], scalar_prefetch = 0 : i64, scratch_operands = 3 : i64, tpu.core_type = #tpu.core_type<tc>} {
    tpu.enqueue_dma source(%arg2 : memref<2048x256xbf16, #tpu.memory_space<any>>) target(%arg13 : memref<2048x256xbf16, #tpu.memory_space<vmem>>) target_semaphore(%arg15 : memref<!tpu.dma_semaphore, #tpu.memory_space<semaphore_mem>>)
    %c0 = arith.constant 0 : index
    %c0_0 = arith.constant 0 : index
    %0 = vector.load %arg1[%c0, %c0_0] : memref<64x128xbf16, #tpu.memory_space<vmem>>, vector<64x128xbf16>
    %c0_1 = arith.constant 0 : index
    %c0_2 = arith.constant 0 : index
    %1 = vector.load %arg4[%c0_1, %c0_2] : memref<128x1024xbf16, #tpu.memory_space<vmem>>, vector<128x1024xbf16>
    %cst = arith.constant dense<0.000000e+00> : vector<64x1024xf32>
    %2 = tpu.matmul %0, %1, %cst {dimension_numbers = #tpu.dot_dimension_numbers<[1], [0], [0], [1], [0, 0, 1, 1], [], []>} : vector<64x128xbf16>, vector<128x1024xbf16>, vector<64x1024xf32> -> vector<64x1024xf32>
    %c0_3 = arith.constant 0 : index
    %c0_4 = arith.constant 0 : index
    %3 = vector.load %arg6[%c0_3, %c0_4] : memref<1x1024xf32, #tpu.memory_space<vmem>>, vector<1x1024xf32>
    %4 = vector.broadcast %3 : vector<1x1024xf32> to vector<64x1024xf32>
    %5 = arith.addf %2, %4 : vector<64x1024xf32>
    %c0_5 = arith.constant 0 : index
    %c0_6 = arith.constant 0 : index
    %6 = vector.load %arg14[%c0_5, %c0_6] : memref<64x1024xf32, #tpu.memory_space<vmem>>, vector<64x1024xf32>
    tpu.vector_store %arg14[%c0_5, %c0_6], %5 {strides = array<i32>} : memref<64x1024xf32, #tpu.memory_space<vmem>>, vector<64x1024xf32>,
    %c0_7 = arith.constant 0 : index
    %c0_8 = arith.constant 0 : index
    %7 = vector.load %arg5[%c0_7, %c0_8] : memref<256x1024xbf16, #tpu.memory_space<vmem>>, vector<256x1024xbf16>
    %cst_9 = arith.constant 0.000000e+00 : f32
    %8 = vector.broadcast %cst_9 : f32 to vector<8x256xf32>
    %cst_10 = arith.constant 0.000000e+00 : f32
    %9 = vector.broadcast %cst_10 : f32 to vector<8x256xf32>
    %c0_11 = arith.constant 0 : index
    %c0_12 = arith.constant 0 : index
    %10 = vector.load %arg14[%c0_11, %c0_12] : memref<64x1024xf32, #tpu.memory_space<vmem>>, vector<8x1024xf32>
    %11 = arith.truncf %8 : vector<8x256xf32> to vector<8x256xbf16>
    %cst_13 = arith.constant dense<0.000000e+00> : vector<8x1024xf32>
    %12 = tpu.matmul %11, %7, %cst_13 {dimension_numbers = #tpu.dot_dimension_numbers<[1], [0], [0], [1], [0, 0, 1, 1], [], []>} : vector<8x256xbf16>, vector<256x1024xbf16>, vector<8x1024xf32> -> vector<8x1024xf32>
    %13 = arith.addf %10, %12 : vector<8x1024xf32>
    %14 = vector.extract_strided_slice %13 {offsets = [0, 0], sizes = [8, 256], strides = [1, 1]} : vector<8x1024xf32> to vector<8x256xf32>
    %cst_14 = arith.constant 5.000000e-01 : f32
    %15 = vector.broadcast %cst_14 : f32 to vector<8x256xf32>
    %16 = arith.mulf %15, %14 : vector<8x256xf32>
    %17 = math.tanh %16 : vector<8x256xf32>
    %cst_15 = arith.constant 5.000000e-01 : f32
    %18 = vector.broadcast %cst_15 : f32 to vector<8x256xf32>
    %19 = arith.mulf %18, %17 : vector<8x256xf32>
    %cst_16 = arith.constant 5.000000e-01 : f32
    %20 = vector.broadcast %cst_16 : f32 to vector<8x256xf32>
    %21 = arith.addf %19, %20 : vector<8x256xf32>
    %22 = vector.extract_strided_slice %13 {offsets = [0, 256], sizes = [8, 256], strides = [1, 1]} : vector<8x1024xf32> to vector<8x256xf32>
    %cst_17 = arith.constant 5.000000e-01 : f32
    %23 = vector.broadcast %cst_17 : f32 to vector<8x256xf32>
    %24 = arith.mulf %23, %22 : vector<8x256xf32>
    %25 = math.tanh %24 : vector<8x256xf32>
    %cst_18 = arith.constant 5.000000e-01 : f32
    %26 = vector.broadcast %cst_18 : f32 to vector<8x256xf32>
    %27 = arith.mulf %26, %25 : vector<8x256xf32>
    %cst_19 = arith.constant 5.000000e-01 : f32
    %28 = vector.broadcast %cst_19 : f32 to vector<8x256xf32>
    %29 = arith.addf %27, %28 : vector<8x256xf32>
    %30 = vector.extract_strided_slice %13 {offsets = [0, 512], sizes = [8, 256], strides = [1, 1]} : vector<8x1024xf32> to vector<8x256xf32>
    %31 = math.tanh %30 : vector<8x256xf32>
    %32 = vector.extract_strided_slice %13 {offsets = [0, 768], sizes = [8, 256], strides = [1, 1]} : vector<8x1024xf32> to vector<8x256xf32>
    %cst_20 = arith.constant 5.000000e-01 : f32
    %33 = vector.broadcast %cst_20 : f32 to vector<8x256xf32>
    %34 = arith.mulf %33, %32 : vector<8x256xf32>
    %35 = math.tanh %34 : vector<8x256xf32>
    %cst_21 = arith.constant 5.000000e-01 : f32
    %36 = vector.broadcast %cst_21 : f32 to vector<8x256xf32>
    %37 = arith.mulf %36, %35 : vector<8x256xf32>
    %cst_22 = arith.constant 5.000000e-01 : f32
    %38 = vector.broadcast %cst_22 : f32 to vector<8x256xf32>
    %39 = arith.addf %37, %38 : vector<8x256xf32>
    %40 = arith.mulf %29, %9 : vector<8x256xf32>
    %41 = arith.mulf %21, %31 : vector<8x256xf32>
    %42 = arith.addf %40, %41 : vector<8x256xf32>
    %43 = math.tanh %42 : vector<8x256xf32>
    %44 = arith.mulf %39, %43 : vector<8x256xf32>
    %c8 = arith.constant 8 : index
    %c0_23 = arith.constant 0 : index
    %45 = vector.load %arg14[%c8, %c0_23] : memref<64x1024xf32, #tpu.memory_space<vmem>>, vector<8x1024xf32>
    %46 = arith.truncf %44 : vector<8x256xf32> to vector<8x256xbf16>
    %cst_24 = arith.constant dense<0.000000e+00> : vector<8x1024xf32>
    %47 = tpu.matmul %46, %7, %cst_24 {dimension_numbers = #tpu.dot_dimension_numbers<[1], [0], [0], [1], [0, 0, 1, 1], [], []>} : vector<8x256xbf16>, vector<256x1024xbf16>, vector<8x1024xf32> -> vector<8x1024xf32>
    %48 = arith.addf %45, %47 : vector<8x1024xf32>
    %49 = vector.extract_strided_slice %48 {offsets = [0, 0], sizes = [8, 256], strides = [1, 1]} : vector<8x1024xf32> to vector<8x256xf32>
    %cst_25 = arith.constant 5.000000e-01 : f32
    %50 = vector.broadcast %cst_25 : f32 to vector<8x256xf32>
    %51 = arith.mulf %50, %49 : vector<8x256xf32>
    %52 = math.tanh %51 : vector<8x256xf32>
    %cst_26 = arith.constant 5.000000e-01 : f32
    %53 = vector.broadcast %cst_26 : f32 to vector<8x256xf32>
    %54 = arith.mulf %53, %52 : vector<8x256xf32>
    %cst_27 = arith.constant 5.000000e-01 : f32
    %55 = vector.broadcast %cst_27 : f32 to vector<8x256xf32>
    %56 = arith.addf %54, %55 : vector<8x256xf32>
    %57 = vector.extract_strided_slice %48 {offsets = [0, 256], sizes = [8, 256], strides = [1, 1]} : vector<8x1024xf32> to vector<8x256xf32>
    %cst_28 = arith.constant 5.000000e-01 : f32
    %58 = vector.broadcast %cst_28 : f32 to vector<8x256xf32>
    %59 = arith.mulf %58, %57 : vector<8x256xf32>
    %60 = math.tanh %59 : vector<8x256xf32>
    %cst_29 = arith.constant 5.000000e-01 : f32
    %61 = vector.broadcast %cst_29 : f32 to vector<8x256xf32>
    %62 = arith.mulf %61, %60 : vector<8x256xf32>
    %cst_30 = arith.constant 5.000000e-01 : f32
    %63 = vector.broadcast %cst_30 : f32 to vector<8x256xf32>
    %64 = arith.addf %62, %63 : vector<8x256xf32>
    %65 = vector.extract_strided_slice %48 {offsets = [0, 512], sizes = [8, 256], strides = [1, 1]} : vector<8x1024xf32> to vector<8x256xf32>
    %66 = math.tanh %65 : vector<8x256xf32>
    %67 = vector.extract_strided_slice %48 {offsets = [0, 768], sizes = [8, 256], strides = [1, 1]} : vector<8x1024xf32> to vector<8x256xf32>
    %cst_31 = arith.constant 5.000000e-01 : f32
    %68 = vector.broadcast %cst_31 : f32 to vector<8x256xf32>
    %69 = arith.mulf %68, %67 : vector<8x256xf32>
    %70 = math.tanh %69 : vector<8x256xf32>
    %cst_32 = arith.constant 5.000000e-01 : f32
    %71 = vector.broadcast %cst_32 : f32 to vector<8x256xf32>
    %72 = arith.mulf %71, %70 : vector<8x256xf32>
    %cst_33 = arith.constant 5.000000e-01 : f32
    %73 = vector.broadcast %cst_33 : f32 to vector<8x256xf32>
    %74 = arith.addf %72, %73 : vector<8x256xf32>
    %75 = arith.mulf %64, %42 : vector<8x256xf32>
    %76 = arith.mulf %56, %66 : vector<8x256xf32>
    %77 = arith.addf %75, %76 : vector<8x256xf32>
    %78 = math.tanh %77 : vector<8x256xf32>
    %79 = arith.mulf %74, %78 : vector<8x256xf32>
    %c16 = arith.constant 16 : index
    %c0_34 = arith.constant 0 : index
    %80 = vector.load %arg14[%c16, %c0_34] : memref<64x1024xf32, #tpu.memory_space<vmem>>, vector<8x1024xf32>
    %81 = arith.truncf %79 : vector<8x256xf32> to vector<8x256xbf16>
    %cst_35 = arith.constant dense<0.000000e+00> : vector<8x1024xf32>
    %82 = tpu.matmul %81, %7, %cst_35 {dimension_numbers = #tpu.dot_dimension_numbers<[1], [0], [0], [1], [0, 0, 1, 1], [], []>} : vector<8x256xbf16>, vector<256x1024xbf16>, vector<8x1024xf32> -> vector<8x1024xf32>
    %83 = arith.addf %80, %82 : vector<8x1024xf32>
    %84 = vector.extract_strided_slice %83 {offsets = [0, 0], sizes = [8, 256], strides = [1, 1]} : vector<8x1024xf32> to vector<8x256xf32>
    %cst_36 = arith.constant 5.000000e-01 : f32
    %85 = vector.broadcast %cst_36 : f32 to vector<8x256xf32>
    %86 = arith.mulf %85, %84 : vector<8x256xf32>
    %87 = math.tanh %86 : vector<8x256xf32>
    %cst_37 = arith.constant 5.000000e-01 : f32
    %88 = vector.broadcast %cst_37 : f32 to vector<8x256xf32>
    %89 = arith.mulf %88, %87 : vector<8x256xf32>
    %cst_38 = arith.constant 5.000000e-01 : f32
    %90 = vector.broadcast %cst_38 : f32 to vector<8x256xf32>
    %91 = arith.addf %89, %90 : vector<8x256xf32>
    %92 = vector.extract_strided_slice %83 {offsets = [0, 256], sizes = [8, 256], strides = [1, 1]} : vector<8x1024xf32> to vector<8x256xf32>
    %cst_39 = arith.constant 5.000000e-01 : f32
    %93 = vector.broadcast %cst_39 : f32 to vector<8x256xf32>
    %94 = arith.mulf %93, %92 : vector<8x256xf32>
    %95 = math.tanh %94 : vector<8x256xf32>
    %cst_40 = arith.constant 5.000000e-01 : f32
    %96 = vector.broadcast %cst_40 : f32 to vector<8x256xf32>
    %97 = arith.mulf %96, %95 : vector<8x256xf32>
    %cst_41 = arith.constant 5.000000e-01 : f32
    %98 = vector.broadcast %cst_41 : f32 to vector<8x256xf32>
    %99 = arith.addf %97, %98 : vector<8x256xf32>
    %100 = vector.extract_strided_slice %83 {offsets = [0, 512], sizes = [8, 256], strides = [1, 1]} : vector<8x1024xf32> to vector<8x256xf32>
    %101 = math.tanh %100 : vector<8x256xf32>
    %102 = vector.extract_strided_slice %83 {offsets = [0, 768], sizes = [8, 256], strides = [1, 1]} : vector<8x1024xf32> to vector<8x256xf32>
    %cst_42 = arith.constant 5.000000e-01 : f32
    %103 = vector.broadcast %cst_42 : f32 to vector<8x256xf32>
    %104 = arith.mulf %103, %102 : vector<8x256xf32>
    %105 = math.tanh %104 : vector<8x256xf32>
    %cst_43 = arith.constant 5.000000e-01 : f32
    %106 = vector.broadcast %cst_43 : f32 to vector<8x256xf32>
    %107 = arith.mulf %106, %105 : vector<8x256xf32>
    %cst_44 = arith.constant 5.000000e-01 : f32
    %108 = vector.broadcast %cst_44 : f32 to vector<8x256xf32>
    %109 = arith.addf %107, %108 : vector<8x256xf32>
    %110 = arith.mulf %99, %77 : vector<8x256xf32>
    %111 = arith.mulf %91, %101 : vector<8x256xf32>
    %112 = arith.addf %110, %111 : vector<8x256xf32>
    %113 = math.tanh %112 : vector<8x256xf32>
    %114 = arith.mulf %109, %113 : vector<8x256xf32>
    %c24 = arith.constant 24 : index
    %c0_45 = arith.constant 0 : index
    %115 = vector.load %arg14[%c24, %c0_45] : memref<64x1024xf32, #tpu.memory_space<vmem>>, vector<8x1024xf32>
    %116 = arith.truncf %114 : vector<8x256xf32> to vector<8x256xbf16>
    %cst_46 = arith.constant dense<0.000000e+00> : vector<8x1024xf32>
    %117 = tpu.matmul %116, %7, %cst_46 {dimension_numbers = #tpu.dot_dimension_numbers<[1], [0], [0], [1], [0, 0, 1, 1], [], []>} : vector<8x256xbf16>, vector<256x1024xbf16>, vector<8x1024xf32> -> vector<8x1024xf32>
    %118 = arith.addf %115, %117 : vector<8x1024xf32>
    %119 = vector.extract_strided_slice %118 {offsets = [0, 0], sizes = [8, 256], strides = [1, 1]} : vector<8x1024xf32> to vector<8x256xf32>
    %cst_47 = arith.constant 5.000000e-01 : f32
    %120 = vector.broadcast %cst_47 : f32 to vector<8x256xf32>
    %121 = arith.mulf %120, %119 : vector<8x256xf32>
    %122 = math.tanh %121 : vector<8x256xf32>
    %cst_48 = arith.constant 5.000000e-01 : f32
    %123 = vector.broadcast %cst_48 : f32 to vector<8x256xf32>
    %124 = arith.mulf %123, %122 : vector<8x256xf32>
    %cst_49 = arith.constant 5.000000e-01 : f32
    %125 = vector.broadcast %cst_49 : f32 to vector<8x256xf32>
    %126 = arith.addf %124, %125 : vector<8x256xf32>
    %127 = vector.extract_strided_slice %118 {offsets = [0, 256], sizes = [8, 256], strides = [1, 1]} : vector<8x1024xf32> to vector<8x256xf32>
    %cst_50 = arith.constant 5.000000e-01 : f32
    %128 = vector.broadcast %cst_50 : f32 to vector<8x256xf32>
    %129 = arith.mulf %128, %127 : vector<8x256xf32>
    %130 = math.tanh %129 : vector<8x256xf32>
    %cst_51 = arith.constant 5.000000e-01 : f32
    %131 = vector.broadcast %cst_51 : f32 to vector<8x256xf32>
    %132 = arith.mulf %131, %130 : vector<8x256xf32>
    %cst_52 = arith.constant 5.000000e-01 : f32
    %133 = vector.broadcast %cst_52 : f32 to vector<8x256xf32>
    %134 = arith.addf %132, %133 : vector<8x256xf32>
    %135 = vector.extract_strided_slice %118 {offsets = [0, 512], sizes = [8, 256], strides = [1, 1]} : vector<8x1024xf32> to vector<8x256xf32>
    %136 = math.tanh %135 : vector<8x256xf32>
    %137 = vector.extract_strided_slice %118 {offsets = [0, 768], sizes = [8, 256], strides = [1, 1]} : vector<8x1024xf32> to vector<8x256xf32>
    %cst_53 = arith.constant 5.000000e-01 : f32
    %138 = vector.broadcast %cst_53 : f32 to vector<8x256xf32>
    %139 = arith.mulf %138, %137 : vector<8x256xf32>
    %140 = math.tanh %139 : vector<8x256xf32>
    %cst_54 = arith.constant 5.000000e-01 : f32
    %141 = vector.broadcast %cst_54 : f32 to vector<8x256xf32>
    %142 = arith.mulf %141, %140 : vector<8x256xf32>
    %cst_55 = arith.constant 5.000000e-01 : f32
    %143 = vector.broadcast %cst_55 : f32 to vector<8x256xf32>
    %144 = arith.addf %142, %143 : vector<8x256xf32>
    %145 = arith.mulf %134, %112 : vector<8x256xf32>
    %146 = arith.mulf %126, %136 : vector<8x256xf32>
    %147 = arith.addf %145, %146 : vector<8x256xf32>
    %148 = math.tanh %147 : vector<8x256xf32>
    %149 = arith.mulf %144, %148 : vector<8x256xf32>
    %c32 = arith.constant 32 : index
    %c0_56 = arith.constant 0 : index
    %150 = vector.load %arg14[%c32, %c0_56] : memref<64x1024xf32, #tpu.memory_space<vmem>>, vector<8x1024xf32>
    %151 = arith.truncf %149 : vector<8x256xf32> to vector<8x256xbf16>
    %cst_57 = arith.constant dense<0.000000e+00> : vector<8x1024xf32>
    %152 = tpu.matmul %151, %7, %cst_57 {dimension_numbers = #tpu.dot_dimension_numbers<[1], [0], [0], [1], [0, 0, 1, 1], [], []>} : vector<8x256xbf16>, vector<256x1024xbf16>, vector<8x1024xf32> -> vector<8x1024xf32>
    %153 = arith.addf %150, %152 : vector<8x1024xf32>
    %154 = vector.extract_strided_slice %153 {offsets = [0, 0], sizes = [8, 256], strides = [1, 1]} : vector<8x1024xf32> to vector<8x256xf32>
    %cst_58 = arith.constant 5.000000e-01 : f32
    %155 = vector.broadcast %cst_58 : f32 to vector<8x256xf32>
    %156 = arith.mulf %155, %154 : vector<8x256xf32>
    %157 = math.tanh %156 : vector<8x256xf32>
    %cst_59 = arith.constant 5.000000e-01 : f32
    %158 = vector.broadcast %cst_59 : f32 to vector<8x256xf32>
    %159 = arith.mulf %158, %157 : vector<8x256xf32>
    %cst_60 = arith.constant 5.000000e-01 : f32
    %160 = vector.broadcast %cst_60 : f32 to vector<8x256xf32>
    %161 = arith.addf %159, %160 : vector<8x256xf32>
    %162 = vector.extract_strided_slice %153 {offsets = [0, 256], sizes = [8, 256], strides = [1, 1]} : vector<8x1024xf32> to vector<8x256xf32>
    %cst_61 = arith.constant 5.000000e-01 : f32
    %163 = vector.broadcast %cst_61 : f32 to vector<8x256xf32>
    %164 = arith.mulf %163, %162 : vector<8x256xf32>
    %165 = math.tanh %164 : vector<8x256xf32>
    %cst_62 = arith.constant 5.000000e-01 : f32
    %166 = vector.broadcast %cst_62 : f32 to vector<8x256xf32>
    %167 = arith.mulf %166, %165 : vector<8x256xf32>
    %cst_63 = arith.constant 5.000000e-01 : f32
    %168 = vector.broadcast %cst_63 : f32 to vector<8x256xf32>
    %169 = arith.addf %167, %168 : vector<8x256xf32>
    %170 = vector.extract_strided_slice %153 {offsets = [0, 512], sizes = [8, 256], strides = [1, 1]} : vector<8x1024xf32> to vector<8x256xf32>
    %171 = math.tanh %170 : vector<8x256xf32>
    %172 = vector.extract_strided_slice %153 {offsets = [0, 768], sizes = [8, 256], strides = [1, 1]} : vector<8x1024xf32> to vector<8x256xf32>
    %cst_64 = arith.constant 5.000000e-01 : f32
    %173 = vector.broadcast %cst_64 : f32 to vector<8x256xf32>
    %174 = arith.mulf %173, %172 : vector<8x256xf32>
    %175 = math.tanh %174 : vector<8x256xf32>
    %cst_65 = arith.constant 5.000000e-01 : f32
    %176 = vector.broadcast %cst_65 : f32 to vector<8x256xf32>
    %177 = arith.mulf %176, %175 : vector<8x256xf32>
    %cst_66 = arith.constant 5.000000e-01 : f32
    %178 = vector.broadcast %cst_66 : f32 to vector<8x256xf32>
    %179 = arith.addf %177, %178 : vector<8x256xf32>
    %180 = arith.mulf %169, %147 : vector<8x256xf32>
    %181 = arith.mulf %161, %171 : vector<8x256xf32>
    %182 = arith.addf %180, %181 : vector<8x256xf32>
    %183 = math.tanh %182 : vector<8x256xf32>
    %184 = arith.mulf %179, %183 : vector<8x256xf32>
    %c40 = arith.constant 40 : index
    %c0_67 = arith.constant 0 : index
    %185 = vector.load %arg14[%c40, %c0_67] : memref<64x1024xf32, #tpu.memory_space<vmem>>, vector<8x1024xf32>
    %186 = arith.truncf %184 : vector<8x256xf32> to vector<8x256xbf16>
    %cst_68 = arith.constant dense<0.000000e+00> : vector<8x1024xf32>
    %187 = tpu.matmul %186, %7, %cst_68 {dimension_numbers = #tpu.dot_dimension_numbers<[1], [0], [0], [1], [0, 0, 1, 1], [], []>} : vector<8x256xbf16>, vector<256x1024xbf16>, vector<8x1024xf32> -> vector<8x1024xf32>
    %188 = arith.addf %185, %187 : vector<8x1024xf32>
    %189 = vector.extract_strided_slice %188 {offsets = [0, 0], sizes = [8, 256], strides = [1, 1]} : vector<8x1024xf32> to vector<8x256xf32>
    %cst_69 = arith.constant 5.000000e-01 : f32
    %190 = vector.broadcast %cst_69 : f32 to vector<8x256xf32>
    %191 = arith.mulf %190, %189 : vector<8x256xf32>
    %192 = math.tanh %191 : vector<8x256xf32>
    %cst_70 = arith.constant 5.000000e-01 : f32
    %193 = vector.broadcast %cst_70 : f32 to vector<8x256xf32>
    %194 = arith.mulf %193, %192 : vector<8x256xf32>
    %cst_71 = arith.constant 5.000000e-01 : f32
    %195 = vector.broadcast %cst_71 : f32 to vector<8x256xf32>
    %196 = arith.addf %194, %195 : vector<8x256xf32>
    %197 = vector.extract_strided_slice %188 {offsets = [0, 256], sizes = [8, 256], strides = [1, 1]} : vector<8x1024xf32> to vector<8x256xf32>
    %cst_72 = arith.constant 5.000000e-01 : f32
    %198 = vector.broadcast %cst_72 : f32 to vector<8x256xf32>
    %199 = arith.mulf %198, %197 : vector<8x256xf32>
    %200 = math.tanh %199 : vector<8x256xf32>
    %cst_73 = arith.constant 5.000000e-01 : f32
    %201 = vector.broadcast %cst_73 : f32 to vector<8x256xf32>
    %202 = arith.mulf %201, %200 : vector<8x256xf32>
    %cst_74 = arith.constant 5.000000e-01 : f32
    %203 = vector.broadcast %cst_74 : f32 to vector<8x256xf32>
    %204 = arith.addf %202, %203 : vector<8x256xf32>
    %205 = vector.extract_strided_slice %188 {offsets = [0, 512], sizes = [8, 256], strides = [1, 1]} : vector<8x1024xf32> to vector<8x256xf32>
    %206 = math.tanh %205 : vector<8x256xf32>
    %207 = vector.extract_strided_slice %188 {offsets = [0, 768], sizes = [8, 256], strides = [1, 1]} : vector<8x1024xf32> to vector<8x256xf32>
    %cst_75 = arith.constant 5.000000e-01 : f32
    %208 = vector.broadcast %cst_75 : f32 to vector<8x256xf32>
    %209 = arith.mulf %208, %207 : vector<8x256xf32>
    %210 = math.tanh %209 : vector<8x256xf32>
    %cst_76 = arith.constant 5.000000e-01 : f32
    %211 = vector.broadcast %cst_76 : f32 to vector<8x256xf32>
    %212 = arith.mulf %211, %210 : vector<8x256xf32>
    %cst_77 = arith.constant 5.000000e-01 : f32
    %213 = vector.broadcast %cst_77 : f32 to vector<8x256xf32>
    %214 = arith.addf %212, %213 : vector<8x256xf32>
    %215 = arith.mulf %204, %182 : vector<8x256xf32>
    %216 = arith.mulf %196, %206 : vector<8x256xf32>
    %217 = arith.addf %215, %216 : vector<8x256xf32>
    %218 = math.tanh %217 : vector<8x256xf32>
    %219 = arith.mulf %214, %218 : vector<8x256xf32>
    %c48 = arith.constant 48 : index
    %c0_78 = arith.constant 0 : index
    %220 = vector.load %arg14[%c48, %c0_78] : memref<64x1024xf32, #tpu.memory_space<vmem>>, vector<8x1024xf32>
    %221 = arith.truncf %219 : vector<8x256xf32> to vector<8x256xbf16>
    %cst_79 = arith.constant dense<0.000000e+00> : vector<8x1024xf32>
    %222 = tpu.matmul %221, %7, %cst_79 {dimension_numbers = #tpu.dot_dimension_numbers<[1], [0], [0], [1], [0, 0, 1, 1], [], []>} : vector<8x256xbf16>, vector<256x1024xbf16>, vector<8x1024xf32> -> vector<8x1024xf32>
    %223 = arith.addf %220, %222 : vector<8x1024xf32>
    %224 = vector.extract_strided_slice %223 {offsets = [0, 0], sizes = [8, 256], strides = [1, 1]} : vector<8x1024xf32> to vector<8x256xf32>
    %cst_80 = arith.constant 5.000000e-01 : f32
    %225 = vector.broadcast %cst_80 : f32 to vector<8x256xf32>
    %226 = arith.mulf %225, %224 : vector<8x256xf32>
    %227 = math.tanh %226 : vector<8x256xf32>
    %cst_81 = arith.constant 5.000000e-01 : f32
    %228 = vector.broadcast %cst_81 : f32 to vector<8x256xf32>
    %229 = arith.mulf %228, %227 : vector<8x256xf32>
    %cst_82 = arith.constant 5.000000e-01 : f32
    %230 = vector.broadcast %cst_82 : f32 to vector<8x256xf32>
    %231 = arith.addf %229, %230 : vector<8x256xf32>
    %232 = vector.extract_strided_slice %223 {offsets = [0, 256], sizes = [8, 256], strides = [1, 1]} : vector<8x1024xf32> to vector<8x256xf32>
    %cst_83 = arith.constant 5.000000e-01 : f32
    %233 = vector.broadcast %cst_83 : f32 to vector<8x256xf32>
    %234 = arith.mulf %233, %232 : vector<8x256xf32>
    %235 = math.tanh %234 : vector<8x256xf32>
    %cst_84 = arith.constant 5.000000e-01 : f32
    %236 = vector.broadcast %cst_84 : f32 to vector<8x256xf32>
    %237 = arith.mulf %236, %235 : vector<8x256xf32>
    %cst_85 = arith.constant 5.000000e-01 : f32
    %238 = vector.broadcast %cst_85 : f32 to vector<8x256xf32>
    %239 = arith.addf %237, %238 : vector<8x256xf32>
    %240 = vector.extract_strided_slice %223 {offsets = [0, 512], sizes = [8, 256], strides = [1, 1]} : vector<8x1024xf32> to vector<8x256xf32>
    %241 = math.tanh %240 : vector<8x256xf32>
    %242 = vector.extract_strided_slice %223 {offsets = [0, 768], sizes = [8, 256], strides = [1, 1]} : vector<8x1024xf32> to vector<8x256xf32>
    %cst_86 = arith.constant 5.000000e-01 : f32
    %243 = vector.broadcast %cst_86 : f32 to vector<8x256xf32>
    %244 = arith.mulf %243, %242 : vector<8x256xf32>
    %245 = math.tanh %244 : vector<8x256xf32>
    %cst_87 = arith.constant 5.000000e-01 : f32
    %246 = vector.broadcast %cst_87 : f32 to vector<8x256xf32>
    %247 = arith.mulf %246, %245 : vector<8x256xf32>
    %cst_88 = arith.constant 5.000000e-01 : f32
    %248 = vector.broadcast %cst_88 : f32 to vector<8x256xf32>
    %249 = arith.addf %247, %248 : vector<8x256xf32>
    %250 = arith.mulf %239, %217 : vector<8x256xf32>
    %251 = arith.mulf %231, %241 : vector<8x256xf32>
    %252 = arith.addf %250, %251 : vector<8x256xf32>
    %253 = math.tanh %252 : vector<8x256xf32>
    %254 = arith.mulf %249, %253 : vector<8x256xf32>
    %c56 = arith.constant 56 : index
    %c0_89 = arith.constant 0 : index
    %255 = vector.load %arg14[%c56, %c0_89] : memref<64x1024xf32, #tpu.memory_space<vmem>>, vector<8x1024xf32>
    %256 = arith.truncf %254 : vector<8x256xf32> to vector<8x256xbf16>
    %cst_90 = arith.constant dense<0.000000e+00> : vector<8x1024xf32>
    %257 = tpu.matmul %256, %7, %cst_90 {dimension_numbers = #tpu.dot_dimension_numbers<[1], [0], [0], [1], [0, 0, 1, 1], [], []>} : vector<8x256xbf16>, vector<256x1024xbf16>, vector<8x1024xf32> -> vector<8x1024xf32>
    %258 = arith.addf %255, %257 : vector<8x1024xf32>
    %259 = vector.extract_strided_slice %258 {offsets = [0, 0], sizes = [8, 256], strides = [1, 1]} : vector<8x1024xf32> to vector<8x256xf32>
    %cst_91 = arith.constant 5.000000e-01 : f32
    %260 = vector.broadcast %cst_91 : f32 to vector<8x256xf32>
    %261 = arith.mulf %260, %259 : vector<8x256xf32>
    %262 = math.tanh %261 : vector<8x256xf32>
    %cst_92 = arith.constant 5.000000e-01 : f32
    %263 = vector.broadcast %cst_92 : f32 to vector<8x256xf32>
    %264 = arith.mulf %263, %262 : vector<8x256xf32>
    %cst_93 = arith.constant 5.000000e-01 : f32
    %265 = vector.broadcast %cst_93 : f32 to vector<8x256xf32>
    %266 = arith.addf %264, %265 : vector<8x256xf32>
    %267 = vector.extract_strided_slice %258 {offsets = [0, 256], sizes = [8, 256], strides = [1, 1]} : vector<8x1024xf32> to vector<8x256xf32>
    %cst_94 = arith.constant 5.000000e-01 : f32
    %268 = vector.broadcast %cst_94 : f32 to vector<8x256xf32>
    %269 = arith.mulf %268, %267 : vector<8x256xf32>
    %270 = math.tanh %269 : vector<8x256xf32>
    %cst_95 = arith.constant 5.000000e-01 : f32
    %271 = vector.broadcast %cst_95 : f32 to vector<8x256xf32>
    %272 = arith.mulf %271, %270 : vector<8x256xf32>
    %cst_96 = arith.constant 5.000000e-01 : f32
    %273 = vector.broadcast %cst_96 : f32 to vector<8x256xf32>
    %274 = arith.addf %272, %273 : vector<8x256xf32>
    %275 = vector.extract_strided_slice %258 {offsets = [0, 512], sizes = [8, 256], strides = [1, 1]} : vector<8x1024xf32> to vector<8x256xf32>
    %276 = math.tanh %275 : vector<8x256xf32>
    %277 = vector.extract_strided_slice %258 {offsets = [0, 768], sizes = [8, 256], strides = [1, 1]} : vector<8x1024xf32> to vector<8x256xf32>
    %cst_97 = arith.constant 5.000000e-01 : f32
    %278 = vector.broadcast %cst_97 : f32 to vector<8x256xf32>
    %279 = arith.mulf %278, %277 : vector<8x256xf32>
    %280 = math.tanh %279 : vector<8x256xf32>
    %cst_98 = arith.constant 5.000000e-01 : f32
    %281 = vector.broadcast %cst_98 : f32 to vector<8x256xf32>
    %282 = arith.mulf %281, %280 : vector<8x256xf32>
    %cst_99 = arith.constant 5.000000e-01 : f32
    %283 = vector.broadcast %cst_99 : f32 to vector<8x256xf32>
    %284 = arith.addf %282, %283 : vector<8x256xf32>
    %285 = arith.mulf %274, %252 : vector<8x256xf32>
    %286 = arith.mulf %266, %276 : vector<8x256xf32>
    %287 = arith.addf %285, %286 : vector<8x256xf32>
    %288 = math.tanh %287 : vector<8x256xf32>
    %289 = arith.mulf %284, %288 : vector<8x256xf32>
    tpu.wait_dma2 semaphore(%arg15 : memref<!tpu.dma_semaphore, #tpu.memory_space<semaphore_mem>>) src(%arg2 : memref<2048x256xbf16, #tpu.memory_space<any>>) dst(%arg13 : memref<2048x256xbf16, #tpu.memory_space<vmem>>)
    %c0_100 = arith.constant 0 : index
    %c0_101 = arith.constant 0 : index
    %290 = vector.load %arg0[%c0_100, %c0_101] : memref<8x2048xbf16, #tpu.memory_space<vmem>>, vector<8x2048xbf16>
    %c0_102 = arith.constant 0 : index
    %c0_103 = arith.constant 0 : index
    %291 = vector.load %arg13[%c0_102, %c0_103] : memref<2048x256xbf16, #tpu.memory_space<vmem>>, vector<2048x256xbf16>
    %cst_104 = arith.constant dense<0.000000e+00> : vector<8x256xf32>
    %292 = tpu.matmul %290, %291, %cst_104 {dimension_numbers = #tpu.dot_dimension_numbers<[1], [0], [0], [1], [0, 0, 1, 1], [], []>} : vector<8x2048xbf16>, vector<2048x256xbf16>, vector<8x256xf32> -> vector<8x256xf32>
    %c0_105 = arith.constant 0 : index
    %c0_106 = arith.constant 0 : index
    %293 = vector.load %arg3[%c0_105, %c0_106] : memref<1x256xf32, #tpu.memory_space<vmem>>, vector<1x256xf32>
    %294 = vector.broadcast %293 : vector<1x256xf32> to vector<8x256xf32>
    %295 = arith.addf %292, %294 : vector<8x256xf32>
    %cst_107 = arith.constant 0.000000e+00 : f32
    %296 = vector.broadcast %cst_107 : f32 to vector<8x256xf32>
    %297 = arith.maximumf %295, %296 : vector<8x256xf32>
    %298 = arith.truncf %297 : vector<8x256xf32> to vector<8x256xbf16>
    %c0_108 = arith.constant 0 : index
    %c0_109 = arith.constant 0 : index
    %299 = vector.load %arg7[%c0_108, %c0_109] : memref<256x256xbf16, #tpu.memory_space<vmem>>, vector<256x256xbf16>
    %cst_110 = arith.constant dense<0.000000e+00> : vector<8x256xf32>
    %300 = tpu.matmul %298, %299, %cst_110 {dimension_numbers = #tpu.dot_dimension_numbers<[1], [0], [0], [1], [0, 0, 1, 1], [], []>} : vector<8x256xbf16>, vector<256x256xbf16>, vector<8x256xf32> -> vector<8x256xf32>
    %301 = arith.truncf %289 : vector<8x256xf32> to vector<8x256xbf16>
    %c0_111 = arith.constant 0 : index
    %c0_112 = arith.constant 0 : index
    %302 = vector.load %arg8[%c0_111, %c0_112] : memref<256x256xbf16, #tpu.memory_space<vmem>>, vector<256x256xbf16>
    %cst_113 = arith.constant dense<0.000000e+00> : vector<8x256xf32>
    %303 = tpu.matmul %301, %302, %cst_113 {dimension_numbers = #tpu.dot_dimension_numbers<[1], [0], [0], [1], [0, 0, 1, 1], [], []>} : vector<8x256xbf16>, vector<256x256xbf16>, vector<8x256xf32> -> vector<8x256xf32>
    %304 = arith.addf %300, %303 : vector<8x256xf32>
    %c0_114 = arith.constant 0 : index
    %c0_115 = arith.constant 0 : index
    %305 = vector.load %arg9[%c0_114, %c0_115] : memref<1x256xf32, #tpu.memory_space<vmem>>, vector<1x256xf32>
    %306 = vector.broadcast %305 : vector<1x256xf32> to vector<8x256xf32>
    %307 = arith.addf %304, %306 : vector<8x256xf32>
    %cst_116 = arith.constant 0.000000e+00 : f32
    %308 = vector.broadcast %cst_116 : f32 to vector<8x256xf32>
    %309 = arith.maximumf %307, %308 : vector<8x256xf32>
    %310 = arith.truncf %309 : vector<8x256xf32> to vector<8x256xbf16>
    %c0_117 = arith.constant 0 : index
    %c0_118 = arith.constant 0 : index
    %311 = vector.load %arg10[%c0_117, %c0_118] : memref<256x256xbf16, #tpu.memory_space<vmem>>, vector<256x256xbf16>
    %cst_119 = arith.constant dense<0.000000e+00> : vector<8x256xf32>
    %312 = tpu.matmul %310, %311, %cst_119 {dimension_numbers = #tpu.dot_dimension_numbers<[1], [0], [0], [1], [0, 0, 1, 1], [], []>} : vector<8x256xbf16>, vector<256x256xbf16>, vector<8x256xf32> -> vector<8x256xf32>
    %c0_120 = arith.constant 0 : index
    %c0_121 = arith.constant 0 : index
    %313 = vector.load %arg11[%c0_120, %c0_121] : memref<1x256xf32, #tpu.memory_space<vmem>>, vector<1x256xf32>
    %314 = vector.broadcast %313 : vector<1x256xf32> to vector<8x256xf32>
    %315 = arith.addf %312, %314 : vector<8x256xf32>
    %c0_122 = arith.constant 0 : index
    %c0_123 = arith.constant 0 : index
    %316 = vector.load %arg12[%c0_122, %c0_123] : memref<8x256xf32, #tpu.memory_space<vmem>>, vector<8x256xf32>
    tpu.vector_store %arg12[%c0_122, %c0_123], %315 {strides = array<i32>} : memref<8x256xf32, #tpu.memory_space<vmem>>, vector<8x256xf32>,
    return
  }
}

</mosaic_0001>

<bundles_post_ra>
// kernel: image_captioning_forward.1
= control target key start
LH: loop header
LB: loop body
LE: loop exit
PB: predicated region body
PF: predicated region fallthrough
CT: control target
= control target key end

     0   :  { %17 = vsyncpa [#allocation6], 0  ;;  %s9678_s0 = inlined_call_operand.vmem [shape: bf16[8,2048], index: 0, kind: input, shape index: {}]   ;;  %s9679_s1 = inlined_call_operand.vmem [shape: bf16[64,128], index: 1, kind: input, shape index: {}]   ;;  %s9680_s2 = inlined_call_operand.hbm [shape: bf16[2048,256], index: 2, kind: input, shape index: {}]   ;;  %s9681_s3 = inlined_call_operand.vmem [shape: f32[1,256], index: 3, kind: input, shape index: {}]   ;;  %s9682_s4 = inlined_call_operand.vmem [shape: bf16[128,1024], index: 4, kind: input, shape index: {}]   ;;  %s9683_s5 = inlined_call_operand.hbm [shape: bf16[256,1024], index: 5, kind: input, shape index: {}]   ;;  %s9684_s6 = inlined_call_operand.vmem [shape: f32[1,1024], index: 6, kind: input, shape index: {}]   ;;  %s9685_s7 = inlined_call_operand.hbm [shape: bf16[256,256], index: 7, kind: input, shape index: {}]   ;;  %s9686_s8 = inlined_call_operand.hbm [shape: bf16[256,256], index: 8, kind: input, shape index: {}]   ;;  %s9687_s9 = inlined_call_operand.vmem [shape: f32[1,256], index: 9, kind: input, shape index: {}]   ;;  %s9688_s10 = inlined_call_operand.hbm [shape: bf16[256,256], index: 10, kind: input, shape index: {}]   ;;  %s9689_s11 = inlined_call_operand.vmem [shape: f32[1,256], index: 11, kind: input, shape index: {}]   ;;  %s9690_s12 = inlined_call_operand.hbm [shape: f32[8,256], index: 12, kind: output, shape index: {}]  }
   0x1   :  { %18 = vsyncpa [#allocation9], 0 }
   0x2   :  { %19 = vsyncpa [#allocation12], 0 }
   0x3   :  { %20 = vsyncpa [#allocation7], 0  ;;  %s7549_s21 = smov [#allocation8]  }
   0x4   :  { %s48_s22 = sshll.u32 %s7549_s21, 4  ;;  %s49_s22 = int_to_ptr.vmem [resolvable:$true] %s48_s22 }
   0x5   :  { %s7427_s23 = scalar_lea.vmem %s49_s22, 4096  ;;  %p7432_p1 = scmp.lt.s32.totalorder %s49_s22, %s49_s22 }
   0x6   :  { %p7428_p0 = scmp.ne.s32.totalorder %s49_s22, %s7427_s23  ;;  %p7433_p2 = scmp.lt.s32.totalorder %s7427_s23, %s7427_s23 }
   0x8   :  { %p7434_p3 = por %p7433_p2, %p7432_p1 }
   0xa   :  { %p7435_p4 = pnand %p7434_p3, %p7428_p0 }
   0xc   :  { %7438 = shalt.err (!%p7435_p4)
}
   0xd   :  { %s7550_s24 = smov 128   ;;  %s7551_s25 = smov 8  }
   0xe   :  { %54 = dma.hbm_to_vmem [thread:$0]  %s9685_s7, 4096, %s49_s22, [#allocation9], %s7550_s24, %s7550_s24, %s7551_s25  }
   0xf   :  { %s7552_s28 = smov [#allocation5]  }
  0x10   :  { %s34_s29 = sshll.u32 %s7552_s28, 4  ;;  %s35_s29 = int_to_ptr.vmem [resolvable:$true] %s34_s29 }
  0x11   :  { %s7447_s30 = scalar_lea.vmem %s35_s29, 16384  ;;  %p7452_p6 = scmp.lt.s32.totalorder %s35_s29, %s35_s29 }
  0x12   :  { %p7448_p5 = scmp.ne.s32.totalorder %s35_s29, %s7447_s30  ;;  %p7453_p7 = scmp.lt.s32.totalorder %s7447_s30, %s7447_s30 }
  0x14   :  { %p7454_p8 = por %p7453_p7, %p7452_p6 }
  0x16   :  { %p7455_p9 = pnand %p7454_p8, %p7448_p5 }
  0x18   :  { %7458 = shalt.err (!%p7455_p9)
}
  0x19   :  { %s7553_s13 = smov 512   ;;  %s7554_s14 = smov 32  }
  0x1a   :  { %40 = dma.hbm_to_vmem [thread:$0]  %s9683_s5, 16384, %s35_s29, [#allocation6], %s7553_s13, %s7553_s13, %s7554_s14  }
  0x1b   :  { %s7555_s17 = smov [#allocation10]   ;;  %s7556_s19 = smov [#allocation11]  }
  0x1c   :  { %s60_s18 = sshll.u32 %s7555_s17, 4  ;;  %s74_s7 = sshll.u32 %s7556_s19, 4  ;;  %s61_s18 = int_to_ptr.vmem [resolvable:$true] %s60_s18  ;;  %s75_s7 = int_to_ptr.vmem [resolvable:$true] %s74_s7 }
  0x1d   :  { %s7467_s20 = scalar_lea.vmem %s61_s18, 4096  ;;  %p7472_p11 = scmp.lt.s32.totalorder %s61_s18, %s61_s18 }
  0x1e   :  { %p7468_p10 = scmp.ne.s32.totalorder %s61_s18, %s7467_s20  ;;  %p7473_p12 = scmp.lt.s32.totalorder %s7467_s20, %s7467_s20 }
  0x20   :  { %p7474_p13 = por %p7473_p12, %p7472_p11 }
  0x22   :  { %p7475_p0 = pnand %p7474_p13, %p7468_p10 }
  0x24   :  { %7478 = shalt.err (!%p7475_p0)
}
  0x25   :  { %66 = dma.hbm_to_vmem [thread:$0]  %s9686_s8, 4096, %s61_s18, [#allocation9], %s7550_s24, %s7550_s24, %s7551_s25  }
  0x26   :  { %s7487_s5 = scalar_lea.vmem %s75_s7, 4096  ;;  %p7492_p2 = scmp.lt.s32.totalorder %s75_s7, %s75_s7 }
  0x27   :  { %p7488_p1 = scmp.ne.s32.totalorder %s75_s7, %s7487_s5  ;;  %p7493_p3 = scmp.lt.s32.totalorder %s7487_s5, %s7487_s5 }
  0x29   :  { %p7494_p4 = por %p7493_p3, %p7492_p2 }
  0x2b   :  { %p7495_p5 = pnand %p7494_p4, %p7488_p1 }
  0x2d   :  { %7498 = shalt.err (!%p7495_p5)
}
  0x2e   :  { %80 = dma.hbm_to_vmem [thread:$0]  %s9688_s10, 4096, %s75_s7, [#allocation12], %s7550_s24, %s7550_s24, %s7551_s25  }
  0x2f   :  { %7539 = dma.done.wait [#allocation6], 16384  }
  0x30   :  { %7540 = vsyncadd [#allocation6], 4294950912 }
  0x31   :  { %7541 = dma.done.wait [#allocation9], 8192  }
  0x32   :  { %7542 = vsyncadd [#allocation9], 4294959104 }
  0x33   :  { %7543 = dma.done.wait [#allocation12], 4096  }
  0x34   :  { %7544 = vsyncadd [#allocation12], 4294963200  ;;  %v9693_v0 = vmov 0   ;;  %v171_v1 = vld [vmem:[%s9682_s4 + $0x1c0] sm:$0xff]  ;;  %v173_v3 = vld [vmem:[%s9682_s4 + $0x1d0] sm:$0xff] }
  0x35   :  { %597 = vmatprep.mubr.bf16.mxu1 %v9693_v0  ;;  %743 = vmatprep.mubr.bf16.mxu0 %v9693_v0  ;;  %v175_v2 = vld [vmem:[%s9682_s4 + $0x1e0] sm:$0xff]  ;;  %v177_v5 = vld [vmem:[%s9682_s4 + $0x1f0] sm:$0xff]  ;;  %v172_v63 = vld [vmem:[%s9682_s4 + $0x1c8] sm:$0xff] }
  0x36   :  { %v6196_v4 = vcombine.high %v171_v1, %v175_v2  ;;  %v6195_v6 = vcombine.low %v171_v1, %v175_v2  ;;  %v163_v7 = vld [vmem:[%s9682_s4 + $0x180] sm:$0xff]  ;;  %v6200_v9 = vcombine.high %v173_v3, %v177_v5  ;;  %v6199_v10 = vcombine.low %v173_v3, %v177_v5  ;;  %v165_v12 = vld [vmem:[%s9682_s4 + $0x190] sm:$0xff]  ;;  %v176_v1 = vld [vmem:[%s9682_s4 + $0x1e8] sm:$0xff] }
  0x37   :  { %v167_v8 = vld [vmem:[%s9682_s4 + $0x1a0] sm:$0xff]  ;;  %v169_v13 = vld [vmem:[%s9682_s4 + $0x1b0] sm:$0xff] }
  0x38   :  { %v6188_v11 = vcombine.high %v163_v7, %v167_v8  ;;  %v155_v14 = vld [vmem:[%s9682_s4 + $0x140] sm:$0xff]  ;;  %565 = vmatprep.subr.bf16.mxu1 %v6196_v4  ;;  %v6192_v15 = vcombine.high %v165_v12, %v169_v13  ;;  %v157_v17 = vld [vmem:[%s9682_s4 + $0x150] sm:$0xff]  ;;  %711 = vmatprep.subr.bf16.mxu0 %v6200_v9  ;;  %v6187_v19 = vcombine.low %v163_v7, %v167_v8  ;;  %v164_v8 = vld [vmem:[%s9682_s4 + $0x188] sm:$0xff] }
  0x39   :  { %v159_v16 = vld [vmem:[%s9682_s4 + $0x160] sm:$0xff]  ;;  %v161_v18 = vld [vmem:[%s9682_s4 + $0x170] sm:$0xff]  ;;  %566 = vmatpush1.bf16.msra.mxu1 %v6195_v6  ;;  %712 = vmatpush1.bf16.msra.mxu0 %v6199_v10  ;;  %v6191_v20 = vcombine.low %v165_v12, %v169_v13  ;;  %v6198_v6 = vcombine.high %v172_v63, %v176_v1  ;;  %v168_v9 = vld [vmem:[%s9682_s4 + $0x1a8] sm:$0xff]  ;;  %v6197_v13 = vcombine.low %v172_v63, %v176_v1 }
  0x3a   :  { %567 = vmatprep.subr.bf16.mxu1 %v6188_v11  ;;  %v6180_v21 = vcombine.high %v155_v14, %v159_v16  ;;  %713 = vmatprep.subr.bf16.mxu0 %v6192_v15  ;;  %v6184_v22 = vcombine.high %v157_v17, %v161_v18  ;;  %v147_v23 = vld [vmem:[%s9682_s4 + $0x100] sm:$0xff]  ;;  %v149_v25 = vld [vmem:[%s9682_s4 + $0x110] sm:$0xff]  ;;  %v6179_v27 = vcombine.low %v155_v14, %v159_v16 }
  0x3b   :  { %v151_v24 = vld [vmem:[%s9682_s4 + $0x120] sm:$0xff]  ;;  %v153_v26 = vld [vmem:[%s9682_s4 + $0x130] sm:$0xff]  ;;  %v6183_v28 = vcombine.low %v157_v17, %v161_v18  ;;  %v6190_v15 = vcombine.high %v164_v8, %v168_v9  ;;  %v156_v17 = vld [vmem:[%s9682_s4 + $0x148] sm:$0xff] }
  0x3c   :  { %v6172_v29 = vcombine.high %v147_v23, %v151_v24  ;;  %v6176_v30 = vcombine.high %v149_v25, %v153_v26  ;;  %v139_v31 = vld [vmem:[%s9682_s4 + $0xc0] sm:$0xff]  ;;  %v141_v33 = vld [vmem:[%s9682_s4 + $0xd0] sm:$0xff]  ;;  %v6171_v35 = vcombine.low %v147_v23, %v151_v24  ;;  %v6175_v36 = vcombine.low %v149_v25, %v153_v26  ;;  %v160_v18 = vld [vmem:[%s9682_s4 + $0x168] sm:$0xff] }
  0x3d   :  { %568 = vmatpush1.bf16.msra.mxu1 %v6187_v19  ;;  %714 = vmatpush1.bf16.msra.mxu0 %v6191_v20  ;;  %v143_v32 = vld [vmem:[%s9682_s4 + $0xe0] sm:$0xff]  ;;  %v145_v34 = vld [vmem:[%s9682_s4 + $0xf0] sm:$0xff]  ;;  %v6182_v23 = vcombine.high %v156_v17, %v160_v18  ;;  %v148_v25 = vld [vmem:[%s9682_s4 + $0x108] sm:$0xff] }
  0x3e   :  { %569 = vmatprep.subr.bf16.mxu1 %v6180_v21  ;;  %715 = vmatprep.subr.bf16.mxu0 %v6184_v22  ;;  %v6164_v37 = vcombine.high %v139_v31, %v143_v32  ;;  %v131_v38 = vld [vmem:[%s9682_s4 + $0x80] sm:$0xff]  ;;  %v6168_v39 = vcombine.high %v141_v33, %v145_v34  ;;  %v133_v41 = vld [vmem:[%s9682_s4 + $0x90] sm:$0xff]  ;;  %v6163_v43 = vcombine.low %v139_v31, %v143_v32  ;;  %v152_v26 = vld [vmem:[%s9682_s4 + $0x128] sm:$0xff] }
  0x3f   :  { %v135_v40 = vld [vmem:[%s9682_s4 + $0xa0] sm:$0xff]  ;;  %v137_v42 = vld [vmem:[%s9682_s4 + $0xb0] sm:$0xff]  ;;  %v6167_v44 = vcombine.low %v141_v33, %v145_v34  ;;  %v6189_v21 = vcombine.low %v164_v8, %v168_v9  ;;  %v6174_v32 = vcombine.high %v148_v25, %v152_v26  ;;  %v140_v34 = vld [vmem:[%s9682_s4 + $0xc8] sm:$0xff] }
  0x40   :  { %v6156_v45 = vcombine.high %v131_v38, %v135_v40  ;;  %v123_v46 = vld [vmem:[%s9682_s4 + $0x40] sm:$0xff]  ;;  %v6160_v47 = vcombine.high %v133_v41, %v137_v42  ;;  %v125_v49 = vld [vmem:[%s9682_s4 + $0x50] sm:$0xff]  ;;  %v6155_v51 = vcombine.low %v131_v38, %v135_v40  ;;  %v6159_v52 = vcombine.low %v133_v41, %v137_v42  ;;  %v132_v42 = vld [vmem:[%s9682_s4 + $0x88] sm:$0xff] }
  0x41   :  { %570 = vmatpush1.bf16.msra.mxu1 %v6179_v27  ;;  %716 = vmatpush1.bf16.msra.mxu0 %v6183_v28  ;;  %v127_v48 = vld [vmem:[%s9682_s4 + $0x60] sm:$0xff]  ;;  %v129_v50 = vld [vmem:[%s9682_s4 + $0x70] sm:$0xff]  ;;  %v7792_v27 = vld [vmem:[%s9679_s1 + $0x8] sm:$0xff]   ;;  %v6173_v38 = vcombine.low %v148_v25, %v152_v26 }
  0x42   :  { %571 = vmatprep.subr.bf16.mxu1 %v6172_v29  ;;  %717 = vmatprep.subr.bf16.mxu0 %v6176_v30  ;;  %v6148_v53 = vcombine.high %v123_v46, %v127_v48  ;;  %v6152_v54 = vcombine.high %v125_v49, %v129_v50  ;;  %v115_v55 = vld [vmem:[%s9682_s4] sm:$0xff]  ;;  %v117_v57 = vld [vmem:[%s9682_s4 + $0x10] sm:$0xff]  ;;  %v6147_v59 = vcombine.low %v123_v46, %v127_v48 }
  0x43   :  { %v119_v56 = vld [vmem:[%s9682_s4 + $0x20] sm:$0xff]  ;;  %v121_v58 = vld [vmem:[%s9682_s4 + $0x30] sm:$0xff]  ;;  %v6151_v60 = vcombine.low %v125_v49, %v129_v50  ;;  %v6181_v30 = vcombine.low %v156_v17, %v160_v18  ;;  %v166_v17 = vld [vmem:[%s9682_s4 + $0x198] sm:$0xff] }
  0x44   :  { %v6140_v61 = vcombine.high %v115_v55, %v119_v56  ;;  %v6144_v62 = vcombine.high %v117_v57, %v121_v58  ;;  %v977_v2 = vld [vmem:[#allocation5 + $0x1c0] sm:$0xff]  ;;  %v6139_v4 = vcombine.low %v115_v55, %v119_v56  ;;  %v6143_v5 = vcombine.low %v117_v57, %v121_v58  ;;  %v170_v18 = vld [vmem:[%s9682_s4 + $0x1b8] sm:$0xff] }
  0x45   :  { %572 = vmatpush1.bf16.msra.mxu1 %v6171_v35  ;;  %718 = vmatpush1.bf16.msra.mxu0 %v6175_v36  ;;  %v981_v3 = vld [vmem:[#allocation5 + $0x1e0] sm:$0xff]  ;;  %v144_v35 = vld [vmem:[%s9682_s4 + $0xe8] sm:$0xff]  ;;  %v6194_v25 = vcombine.high %v166_v17, %v170_v18 }
  0x46   :  { %573 = vmatprep.subr.bf16.mxu1 %v6164_v37  ;;  %719 = vmatprep.subr.bf16.mxu0 %v6168_v39  ;;  %v7750_v7 = vcombine.high %v977_v2, %v981_v3  ;;  %v7761_v10 = vld [vmem:[%s9679_s1] sm:$0xff]   ;;  %v7763_v14 = vcombine.low %v977_v2, %v981_v3  ;;  %v6166_v40 = vcombine.high %v140_v34, %v144_v35 }
  0x47   :  { %v969_v11 = vld [vmem:[#allocation5 + $0x180] sm:$0xff] }
  0x48   :  { %9923 = vst [vmem:[#allocation23_spill] sm:$0xff] %v7750_v7  ;;  %v973_v12 = vld [vmem:[#allocation5 + $0x1a0] sm:$0xff]  ;;  %9924 = vst [vmem:[#allocation24_spill] sm:$0xff] %v7763_v14 }
  0x49   :  { %574 = vmatpush1.bf16.msra.mxu1 %v6163_v43  ;;  %720 = vmatpush1.bf16.msra.mxu0 %v6167_v44  ;;  %v7766_v16 = vcombine.high %v969_v11, %v973_v12  ;;  %v961_v19 = vld [vmem:[#allocation5 + $0x140] sm:$0xff]  ;;  %v7777_v22 = vcombine.low %v969_v11, %v973_v12  ;;  %v136_v43 = vld [vmem:[%s9682_s4 + $0xa8] sm:$0xff]  ;;  %v7825_v44 = vld [vmem:[%s9679_s1 + $0x10] sm:$0xff]  }
  0x4a   :  { %575 = vmatprep.subr.bf16.mxu1 %v6156_v45  ;;  %721 = vmatprep.subr.bf16.mxu0 %v6160_v47  ;;  %v965_v20 = vld [vmem:[#allocation5 + $0x160] sm:$0xff]  ;;  %v6165_v47 = vcombine.low %v140_v34, %v144_v35  ;;  %v6158_v49 = vcombine.high %v132_v42, %v136_v43  ;;  %v6157_v55 = vcombine.low %v132_v42, %v136_v43 }
  0x4b   :  { %9925 = vst [vmem:[#allocation25_spill] sm:$0xff] %v7766_v16  ;;  %9926 = vst [vmem:[#allocation26_spill] sm:$0xff] %v7777_v22  ;;  %v7781_v24 = vcombine.high %v961_v19, %v965_v20  ;;  %v953_v28 = vld [vmem:[#allocation5 + $0x100] sm:$0xff]  ;;  %v7796_v31 = vcombine.low %v961_v19, %v965_v20  ;;  %v6193_v34 = vcombine.low %v166_v17, %v170_v18 }
  0x4c   :  { %v957_v29 = vld [vmem:[#allocation5 + $0x120] sm:$0xff] }
  0x4d   :  { %576 = vmatpush1.bf16.msra.mxu1 %v6155_v51  ;;  %722 = vmatpush1.bf16.msra.mxu0 %v6159_v52  ;;  %9927 = vst [vmem:[#allocation27_spill] sm:$0xff] %v7781_v24  ;;  %9928 = vst [vmem:[#allocation28_spill] sm:$0xff] %v7796_v31  ;;  %v7799_v33 = vcombine.high %v953_v28, %v957_v29  ;;  %v945_v36 = vld [vmem:[#allocation5 + $0xc0] sm:$0xff]  ;;  %v7810_v39 = vcombine.low %v953_v28, %v957_v29  ;;  %v124_v51 = vld [vmem:[%s9682_s4 + $0x48] sm:$0xff] }
  0x4e   :  { %577 = vmatprep.subr.bf16.mxu1 %v6148_v53  ;;  %723 = vmatprep.subr.bf16.mxu0 %v6152_v54  ;;  %v949_v37 = vld [vmem:[#allocation5 + $0xe0] sm:$0xff]  ;;  %v128_v52 = vld [vmem:[%s9682_s4 + $0x68] sm:$0xff]  ;;  %v158_v28 = vld [vmem:[%s9682_s4 + $0x158] sm:$0xff] }
  0x4f   :  { %9929 = vst [vmem:[#allocation29_spill] sm:$0xff] %v7799_v33  ;;  %9930 = vst [vmem:[#allocation30_spill] sm:$0xff] %v7810_v39  ;;  %v7813_v41 = vcombine.high %v945_v36, %v949_v37  ;;  %v937_v45 = vld [vmem:[#allocation5 + $0x80] sm:$0xff]  ;;  %v7829_v48 = vcombine.low %v945_v36, %v949_v37  ;;  %v6150_v57 = vcombine.high %v124_v51, %v128_v52  ;;  %v162_v29 = vld [vmem:[%s9682_s4 + $0x178] sm:$0xff] }
  0x50   :  { %v941_v46 = vld [vmem:[#allocation5 + $0xa0] sm:$0xff]  ;;  %v6149_v1 = vcombine.low %v124_v51, %v128_v52  ;;  %v6186_v36 = vcombine.high %v158_v28, %v162_v29  ;;  %v142_v51 = vld [vmem:[%s9682_s4 + $0xd8] sm:$0xff] }
  0x51   :  { %578 = vmatpush1.bf16.msra.mxu1 %v6147_v59  ;;  %724 = vmatpush1.bf16.msra.mxu0 %v6151_v60  ;;  %9931 = vst [vmem:[#allocation31_spill] sm:$0xff] %v7813_v41  ;;  %9932 = vst [vmem:[#allocation32_spill] sm:$0xff] %v7829_v48  ;;  %v7832_v50 = vcombine.high %v937_v45, %v941_v46  ;;  %v929_v53 = vld [vmem:[#allocation5 + $0x40] sm:$0xff]  ;;  %v7843_v56 = vcombine.low %v937_v45, %v941_v46  ;;  %v116_v59 = vld [vmem:[%s9682_s4 + $0x8] sm:$0xff] }
  0x52   :  { %579 = vmatprep.subr.bf16.mxu1 %v6140_v61  ;;  %725 = vmatprep.subr.bf16.mxu0 %v6144_v62  ;;  %v933_v54 = vld [vmem:[#allocation5 + $0x60] sm:$0xff]  ;;  %v120_v60 = vld [vmem:[%s9682_s4 + $0x28] sm:$0xff]  ;;  %v7858_v61 = vld [vmem:[%s9679_s1 + $0x18] sm:$0xff]   ;;  %v6185_v45 = vcombine.low %v158_v28, %v162_v29 }
  0x53   :  { %9933 = vst [vmem:[#allocation33_spill] sm:$0xff] %v7832_v50  ;;  %9934 = vst [vmem:[#allocation34_spill] sm:$0xff] %v7843_v56  ;;  %v7846_v58 = vcombine.high %v929_v53, %v933_v54  ;;  %v921_v62 = vld [vmem:[#allocation5] sm:$0xff]  ;;  %v7862_v2 = vcombine.low %v929_v53, %v933_v54  ;;  %v6142_v3 = vcombine.high %v116_v59, %v120_v60  ;;  %v146_v52 = vld [vmem:[%s9682_s4 + $0xf8] sm:$0xff] }
  0x54   :  { %v925_v63 = vld [vmem:[#allocation5 + $0x20] sm:$0xff]  ;;  %v6141_v11 = vcombine.low %v116_v59, %v120_v60  ;;  %v6170_v59 = vcombine.high %v142_v51, %v146_v52  ;;  %v118_v28 = vld [vmem:[%s9682_s4 + $0x18] sm:$0xff] }
  0x55   :  { %580 = vmatpush1.bf16.msra.mxu1 %v6139_v4  ;;  %726 = vmatpush1.bf16.msra.mxu0 %v6143_v5  ;;  %9935 = vst [vmem:[#allocation35_spill] sm:$0xff] %v7846_v58  ;;  %9936 = vst [vmem:[#allocation36_spill] sm:$0xff] %v7862_v2  ;;  %v7865_v4 = vcombine.high %v921_v62, %v925_v63  ;;  %v174_v5 = vld [vmem:[%s9682_s4 + $0x1d8] sm:$0xff]  ;;  %v1041_v8 = vld [vmem:[#allocation5 + $0x3c0] sm:$0xff]  ;;  %v7876_v12 = vcombine.low %v921_v62, %v925_v63 }
  0x56   :  { %638 = vmatprep.subr.bf16.mxu1 %v6198_v6  ;;  %1697 = vmatprep.subr.bf16.mxu0 %v7750_v7  ;;  %v178_v6 = vld [vmem:[%s9682_s4 + $0x1f8] sm:$0xff]  ;;  %v1045_v9 = vld [vmem:[#allocation5 + $0x3e0] sm:$0xff] }
  0x57   :  { %9937 = vst [vmem:[#allocation37_spill] sm:$0xff] %v7865_v4  ;;  %9938 = vst [vmem:[#allocation38_spill] sm:$0xff] %v7876_v12  ;;  %v1033_v19 = vld [vmem:[#allocation5 + $0x380] sm:$0xff]  ;;  %v134_v62 = vld [vmem:[%s9682_s4 + $0x98] sm:$0xff] }
  0x58   :  { %598 = vmatmul.mubr.bf16.vlgmr.msra.gmra.mxu1 %v7761_v10  ;;  %744 = vmatmul.mubr.bf16.vlgmr.msra.gmra.mxu0 %v7761_v10  ;;  %v1037_v20 = vld [vmem:[#allocation5 + $0x3a0] sm:$0xff]  ;;  %v138_v63 = vld [vmem:[%s9682_s4 + $0xb8] sm:$0xff] }
  0x59   :  { %639 = vmatpush1.bf16.msra.mxu1 %v6197_v13  ;;  %1698 = vmatpush1.bf16.msra.mxu0 %v7763_v14  ;;  %v6202_v13 = vcombine.high %v174_v5, %v178_v6  ;;  %v7893_v26 = vcombine.high %v1033_v19, %v1037_v20  ;;  %v7904_v35 = vcombine.low %v1033_v19, %v1037_v20  ;;  %v1017_v42 = vld [vmem:[#allocation5 + $0x300] sm:$0xff]  ;;  %v122_v29 = vld [vmem:[%s9682_s4 + $0x38] sm:$0xff] }
  0x5a   :  { %640 = vmatprep.subr.bf16.mxu1 %v6190_v15  ;;  %1699 = vmatprep.subr.bf16.mxu0 %v7766_v16  ;;  %v7879_v15 = vcombine.high %v1041_v8, %v1045_v9  ;;  %v1021_v43 = vld [vmem:[#allocation5 + $0x320] sm:$0xff]  ;;  %v6161_v19 = vcombine.low %v134_v62, %v138_v63 }
  0x5b   :  { %607 = vmatprep.mubr.bf16.mxu1 %v9693_v0  ;;  %753 = vmatprep.mubr.bf16.mxu0 %v9693_v0  ;;  %9941 = vst [vmem:[#allocation41_spill] sm:$0xff] %v7893_v26  ;;  %9942 = vst [vmem:[#allocation42_spill] sm:$0xff] %v7904_v35  ;;  %v1009_v53 = vld [vmem:[#allocation5 + $0x2c0] sm:$0xff] }
  0x5c   :  { %9939 = vst [vmem:[#allocation39_spill] sm:$0xff] %v7879_v15  ;;  %v1013_v54 = vld [vmem:[#allocation5 + $0x2e0] sm:$0xff] }
  0x5d   :  { %641 = vmatpush1.bf16.msra.mxu1 %v6189_v21  ;;  %1700 = vmatpush1.bf16.msra.mxu0 %v7777_v22  ;;  %v6201_v21 = vcombine.low %v174_v5, %v178_v6  ;;  %v7933_v60 = vcombine.high %v1009_v53, %v1013_v54  ;;  %v6169_v5 = vcombine.low %v142_v51, %v146_v52  ;;  %v993_v17 = vld [vmem:[#allocation5 + $0x240] sm:$0xff] }
  0x5e   :  { %642 = vmatprep.subr.bf16.mxu1 %v6182_v23  ;;  %1701 = vmatprep.subr.bf16.mxu0 %v7781_v24  ;;  %v7890_v23 = vcombine.low %v1041_v8, %v1045_v9  ;;  %v7942_v6 = vcombine.low %v1009_v53, %v1013_v54  ;;  %v6162_v8 = vcombine.high %v134_v62, %v138_v63  ;;  %v997_v18 = vld [vmem:[#allocation5 + $0x260] sm:$0xff]  ;;  %v971_v62 = vld [vmem:[#allocation5 + $0x190] sm:$0xff] }
  0x5f   :  { %9947 = vst [vmem:[#allocation47_spill] sm:$0xff] %v7933_v60  ;;  %v6145_v51 = vcombine.low %v118_v28, %v122_v29  ;;  %v975_v63 = vld [vmem:[#allocation5 + $0x1b0] sm:$0xff] }
  0x60   :  { %608 = vmatmul.mubr.bf16.gmra.mxu1 %v7792_v27  ;;  %754 = vmatmul.mubr.bf16.gmra.mxu0 %v7792_v27  ;;  %9940 = vst [vmem:[#allocation40_spill] sm:$0xff] %v7890_v23  ;;  %9948 = vst [vmem:[#allocation48_spill] sm:$0xff] %v7942_v6 }
  0x61   :  { %643 = vmatpush1.bf16.msra.mxu1 %v6181_v30  ;;  %617 = vmatprep.mubr.bf16.mxu1 %v9693_v0  ;;  %v1025_v30 = vld [vmem:[#allocation5 + $0x340] sm:$0xff] }
  0x62   :  { %1702 = vmatpush1.bf16.msra.mxu0 %v7796_v31  ;;  %644 = vmatprep.subr.bf16.mxu1 %v6174_v32  ;;  %v1029_v32 = vld [vmem:[#allocation5 + $0x360] sm:$0xff] }
  0x63   :  { %1703 = vmatprep.subr.bf16.mxu0 %v7799_v33  ;;  %763 = vmatprep.mubr.bf16.mxu0 %v9693_v0  ;;  %v7907_v37 = vcombine.high %v1025_v30, %v1029_v32  ;;  %v7916_v46 = vcombine.low %v1025_v30, %v1029_v32  ;;  %v985_v30 = vld [vmem:[#allocation5 + $0x200] sm:$0xff] }
  0x64   :  { %v989_v32 = vld [vmem:[#allocation5 + $0x220] sm:$0xff] }
  0x65   :  { %645 = vmatpush1.bf16.msra.mxu1 %v6173_v38  ;;  %9943 = vst [vmem:[#allocation43_spill] sm:$0xff] %v7907_v37  ;;  %v150_v38 = vld [vmem:[%s9682_s4 + $0x118] sm:$0xff]  ;;  %9944 = vst [vmem:[#allocation44_spill] sm:$0xff] %v7916_v46  ;;  %v7976_v52 = vcombine.low %v985_v30, %v989_v32 }
  0x66   :  { %1704 = vmatpush1.bf16.msra.mxu0 %v7810_v39  ;;  %646 = vmatprep.subr.bf16.mxu1 %v6166_v40  ;;  %v154_v40 = vld [vmem:[%s9682_s4 + $0x138] sm:$0xff] }
  0x67   :  { %1705 = vmatprep.subr.bf16.mxu0 %v7813_v41  ;;  %9954 = vst [vmem:[#allocation54_spill] sm:$0xff] %v7976_v52 }
  0x68   :  { %618 = vmatmul.mubr.bf16.gmra.mxu1 %v7825_v44  ;;  %764 = vmatmul.mubr.bf16.gmra.mxu0 %v7825_v44 }
  0x69   :  { %647 = vmatpush1.bf16.msra.mxu1 %v6165_v47  ;;  %627 = vmatprep.mubr.bf16.mxu1 %v9693_v0  ;;  %v6178_v47 = vcombine.high %v150_v38, %v154_v40 }
  0x6a   :  { %1706 = vmatpush1.bf16.msra.mxu0 %v7829_v48  ;;  %648 = vmatprep.subr.bf16.mxu1 %v6158_v49  ;;  %v7919_v49 = vcombine.high %v1017_v42, %v1021_v43 }
  0x6b   :  { %1707 = vmatprep.subr.bf16.mxu0 %v7832_v50  ;;  %773 = vmatprep.mubr.bf16.mxu0 %v9693_v0 }
  0x6c   :  { %9945 = vst [vmem:[#allocation45_spill] sm:$0xff] %v7919_v49 }
  0x6d   :  { %649 = vmatpush1.bf16.msra.mxu1 %v6157_v55  ;;  %v6177_v55 = vcombine.low %v150_v38, %v154_v40  ;;  %v6146_v38 = vcombine.high %v118_v28, %v122_v29  ;;  %v7971_v40 = vcombine.high %v985_v30, %v989_v32  ;;  %v958_v30 = vld [vmem:[#allocation5 + $0x128] sm:$0xff]  ;;  %v955_v32 = vld [vmem:[#allocation5 + $0x110] sm:$0xff] }
  0x6e   :  { %1708 = vmatpush1.bf16.msra.mxu0 %v7843_v56  ;;  %650 = vmatprep.subr.bf16.mxu1 %v6150_v57  ;;  %v7930_v57 = vcombine.low %v1017_v42, %v1021_v43  ;;  %v978_v42 = vld [vmem:[#allocation5 + $0x1c8] sm:$0xff] }
  0x6f   :  { %1709 = vmatprep.subr.bf16.mxu0 %v7846_v58  ;;  %9953 = vst [vmem:[#allocation53_spill] sm:$0xff] %v7971_v40  ;;  %v982_v43 = vld [vmem:[#allocation5 + $0x1e8] sm:$0xff] }
  0x70   :  { %628 = vmatmul.mubr.bf16.gmra.mxu1 %v7858_v61  ;;  %774 = vmatmul.mubr.bf16.gmra.mxu0 %v7858_v61  ;;  %9946 = vst [vmem:[#allocation46_spill] sm:$0xff] %v7930_v57  ;;  %v7978_v53 = vcombine.high %v978_v42, %v982_v43 }
  0x71   :  { %651 = vmatpush1.bf16.msra.mxu1 %v6149_v1  ;;  %670 = vmatprep.mubr.bf16.mxu1 %v9693_v0  ;;  %v1001_v1 = vld [vmem:[#allocation5 + $0x280] sm:$0xff] }
  0x72   :  { %1710 = vmatpush1.bf16.msra.mxu0 %v7862_v2  ;;  %652 = vmatprep.subr.bf16.mxu1 %v6142_v3  ;;  %v1005_v3 = vld [vmem:[#allocation5 + $0x2a0] sm:$0xff]  ;;  %9955 = vst [vmem:[#allocation55_spill] sm:$0xff] %v7978_v53 }
  0x73   :  { %1711 = vmatprep.subr.bf16.mxu0 %v7865_v4  ;;  %1729 = vmatprep.mubr.bf16.mxu0 %v9693_v0  ;;  %v7945_v9 = vcombine.high %v1001_v1, %v1005_v3  ;;  %v7956_v20 = vcombine.low %v1001_v1, %v1005_v3  ;;  %v7983_v1 = vcombine.low %v978_v42, %v982_v43 }
  0x75   :  { %653 = vmatpush1.bf16.msra.mxu1 %v6141_v11  ;;  %9949 = vst [vmem:[#allocation49_spill] sm:$0xff] %v7945_v9  ;;  %v126_v11 = vld [vmem:[%s9682_s4 + $0x58] sm:$0xff]  ;;  %9950 = vst [vmem:[#allocation50_spill] sm:$0xff] %v7956_v20 }
  0x76   :  { %1712 = vmatpush1.bf16.msra.mxu0 %v7876_v12  ;;  %784 = vmatprep.subr.bf16.mxu1 %v6202_v13  ;;  %v130_v13 = vld [vmem:[%s9682_s4 + $0x78] sm:$0xff]  ;;  %9957 = vst [vmem:[#allocation57_spill] sm:$0xff] %v7983_v1 }
  0x77   :  { %1713 = vmatprep.subr.bf16.mxu0 %v7879_v15 }
  0x78   :  { %671 = vmatmul.mubr.bf16.vlgmr.msra.gmra.mxu1 %v7761_v10 }
  0x79   :  { %785 = vmatpush1.bf16.msra.mxu1 %v6201_v21  ;;  %680 = vmatprep.mubr.bf16.mxu1 %v9693_v0  ;;  %v6154_v21 = vcombine.high %v126_v11, %v130_v13 }
  0x7a   :  { %1714 = vmatpush2.bf16.msra.mxu0 %v7890_v23  ;;  %786 = vmatprep.subr.bf16.mxu1 %v6194_v25  ;;  %v7959_v25 = vcombine.high %v993_v17, %v997_v18 }
  0x7b   :  { %1715 = vmatprep.subr.bf16.mxu0 %v7893_v26 }
  0x7c   :  { %9951 = vst [vmem:[#allocation51_spill] sm:$0xff] %v7959_v25 }
  0x7d   :  { %787 = vmatpush1.bf16.msra.mxu1 %v6193_v34  ;;  %v6153_v34 = vcombine.low %v126_v11, %v130_v13  ;;  %v962_v11 = vld [vmem:[#allocation5 + $0x148] sm:$0xff] }
  0x7e   :  { %1716 = vmatpush2.bf16.msra.mxu0 %v7904_v35  ;;  %788 = vmatprep.subr.bf16.mxu1 %v6186_v36  ;;  %v7968_v36 = vcombine.low %v993_v17, %v997_v18  ;;  %v966_v13 = vld [vmem:[#allocation5 + $0x168] sm:$0xff]  ;;  %v963_v17 = vld [vmem:[#allocation5 + $0x150] sm:$0xff] }
  0x7f   :  { %1717 = vmatprep.subr.bf16.mxu0 %v7907_v37  ;;  %v967_v18 = vld [vmem:[#allocation5 + $0x170] sm:$0xff]  ;;  %v8003_v28 = vcombine.high %v962_v11, %v966_v13 }
  0x80   :  { %681 = vmatmul.mubr.bf16.gmra.mxu1 %v7792_v27  ;;  %9952 = vst [vmem:[#allocation52_spill] sm:$0xff] %v7968_v36  ;;  %v8006_v29 = vcombine.high %v963_v17, %v967_v18  ;;  %v8015_v42 = vcombine.low %v963_v17, %v967_v18  ;;  %v938_v17 = vld [vmem:[#allocation5 + $0x88] sm:$0xff]  ;;  %v939_v18 = vld [vmem:[#allocation5 + $0x90] sm:$0xff] }
  0x81   :  { %789 = vmatpush1.bf16.msra.mxu1 %v6185_v45  ;;  %690 = vmatprep.mubr.bf16.mxu1 %v9693_v0  ;;  %v979_v45 = vld [vmem:[#allocation5 + $0x1d0] sm:$0xff]  ;;  %9963 = vst [vmem:[#allocation63_spill] sm:$0xff] %v8003_v28 }
  0x82   :  { %1718 = vmatpush2.bf16.msra.mxu0 %v7916_v46  ;;  %790 = vmatprep.subr.bf16.mxu1 %v6178_v47  ;;  %v983_v47 = vld [vmem:[#allocation5 + $0x1f0] sm:$0xff]  ;;  %9964 = vst [vmem:[#allocation64_spill] sm:$0xff] %v8006_v29  ;;  %9966 = vst [vmem:[#allocation66_spill] sm:$0xff] %v8015_v42 }
  0x83   :  { %1719 = vmatprep.subr.bf16.mxu0 %v7919_v49  ;;  %v7981_v54 = vcombine.high %v979_v45, %v983_v47  ;;  %v7987_v3 = vcombine.low %v979_v45, %v983_v47  ;;  %v946_v47 = vld [vmem:[#allocation5 + $0xc8] sm:$0xff] }
  0x85   :  { %791 = vmatpush1.bf16.msra.mxu1 %v6177_v55  ;;  %9956 = vst [vmem:[#allocation56_spill] sm:$0xff] %v7981_v54  ;;  %v970_v55 = vld [vmem:[#allocation5 + $0x188] sm:$0xff]  ;;  %9958 = vst [vmem:[#allocation58_spill] sm:$0xff] %v7987_v3 }
  0x86   :  { %1720 = vmatpush2.bf16.msra.mxu0 %v7930_v57  ;;  %792 = vmatprep.subr.bf16.mxu1 %v6170_v59  ;;  %v974_v59 = vld [vmem:[#allocation5 + $0x1a8] sm:$0xff] }
  0x87   :  { %1721 = vmatprep.subr.bf16.mxu0 %v7933_v60 }
  0x88   :  { %691 = vmatmul.mubr.bf16.gmra.mxu1 %v7825_v44 }
  0x89   :  { %793 = vmatpush1.bf16.msra.mxu1 %v6169_v5  ;;  %700 = vmatprep.mubr.bf16.mxu1 %v9693_v0  ;;  %v7989_v5 = vcombine.high %v970_v55, %v974_v59 }
  0x8a   :  { %1722 = vmatpush2.bf16.msra.mxu0 %v7942_v6  ;;  %794 = vmatprep.subr.bf16.mxu1 %v6162_v8  ;;  %v7992_v8 = vcombine.high %v971_v62, %v975_v63 }
  0x8b   :  { %1723 = vmatprep.subr.bf16.mxu0 %v7945_v9  ;;  %9959 = vst [vmem:[#allocation59_spill] sm:$0xff] %v7989_v5 }
  0x8c   :  { %9960 = vst [vmem:[#allocation60_spill] sm:$0xff] %v7992_v8 }
  0x8d   :  { %795 = vmatpush1.bf16.msra.mxu1 %v6161_v19  ;;  %v7997_v19 = vcombine.low %v970_v55, %v974_v59  ;;  %v947_v55 = vld [vmem:[#allocation5 + $0xd0] sm:$0xff] }
  0x8e   :  { %1724 = vmatpush2.bf16.msra.mxu0 %v7956_v20  ;;  %796 = vmatprep.subr.bf16.mxu1 %v6154_v21  ;;  %v8001_v21 = vcombine.low %v971_v62, %v975_v63  ;;  %v951_v59 = vld [vmem:[#allocation5 + $0xf0] sm:$0xff] }
  0x8f   :  { %1725 = vmatprep.subr.bf16.mxu0 %v7959_v25  ;;  %9961 = vst [vmem:[#allocation61_spill] sm:$0xff] %v7997_v19 }
  0x90   :  { %701 = vmatmul.mubr.bf16.gmra.mxu1 %v7858_v61  ;;  %9962 = vst [vmem:[#allocation62_spill] sm:$0xff] %v8001_v21 }
  0x91   :  { %797 = vmatpush1.bf16.msra.mxu1 %v6153_v34  ;;  %816 = vmatprep.mubr.bf16.mxu1 %v9693_v0  ;;  %v959_v34 = vld [vmem:[#allocation5 + $0x130] sm:$0xff] }
  0x92   :  { %1726 = vmatpush2.bf16.msra.mxu0 %v7968_v36  ;;  %798 = vmatprep.subr.bf16.mxu1 %v6146_v38  ;;  %v8011_v38 = vcombine.low %v962_v11, %v966_v13  ;;  %v8020_v45 = vcombine.high %v955_v32, %v959_v34  ;;  %v8029_v63 = vcombine.low %v955_v32, %v959_v34 }
  0x93   :  { %1727 = vmatprep.subr.bf16.mxu0 %v7971_v40  ;;  %v8034_v13 = vcombine.high %v947_v55, %v951_v59 }
  0x94   :  { %9965 = vst [vmem:[#allocation65_spill] sm:$0xff] %v8011_v38  ;;  %9968 = vst [vmem:[#allocation68_spill] sm:$0xff] %v8020_v45 }
  0x95   :  { %799 = vmatpush1.bf16.msra.mxu1 %v6145_v51  ;;  %v950_v51 = vld [vmem:[#allocation5 + $0xe8] sm:$0xff]  ;;  %9970 = vst [vmem:[#allocation70_spill] sm:$0xff] %v8029_v63  ;;  %9972 = vst [vmem:[#allocation72_spill] sm:$0xff] %v8034_v13 }
  0x96   :  { %1728 = vmatpush2.bf16.msra.mxu0 %v7976_v52  ;;  %1738 = vmatprep.subr.bf16.mxu1 %v7978_v53  ;;  %v8031_v11 = vcombine.high %v946_v47, %v950_v51 }
  0x97   :  { %1779 = vmatprep.subr.bf16.mxu0 %v7981_v54 }
  0x98   :  { %817 = vmatmul.mubr.bf16.vlgmr.msra.gmra.mxu1 %v7761_v10  ;;  %v954_v10 = vld [vmem:[#allocation5 + $0x108] sm:$0xff]  ;;  %9971 = vst [vmem:[#allocation71_spill] sm:$0xff] %v8031_v11 }
  0x99   :  { %1730 = vmatmul.mubr.bf16.vlgmr.msra.gmra.mxu0 %v9693_v0  ;;  %1739 = vmatpush1.bf16.msra.mxu1 %v7983_v1  ;;  %v8017_v43 = vcombine.high %v954_v10, %v958_v30  ;;  %v8024_v62 = vcombine.low %v954_v10, %v958_v30  ;;  %v8037_v10 = vcombine.low %v946_v47, %v950_v51  ;;  %v9978_v51 = vmov 0  }
  0x9a   :  { %1780 = vmatpush1.bf16.msra.mxu0 %v7987_v3  ;;  %1740 = vmatprep.subr.bf16.mxu1 %v7989_v5  ;;  %v8041_v30 = vcombine.low %v947_v55, %v951_v59  ;;  %v927_v3 = vld [vmem:[#allocation5 + $0x30] sm:$0xff] }
  0x9b   :  { %1781 = vmatprep.subr.bf16.mxu0 %v7992_v8  ;;  %826 = vmatprep.mubr.bf16.mxu1 %v9693_v0  ;;  %9967 = vst [vmem:[#allocation67_spill] sm:$0xff] %v8017_v43  ;;  %9969 = vst [vmem:[#allocation69_spill] sm:$0xff] %v8024_v62  ;;  %v923_v8 = vld [vmem:[#allocation5 + $0x10] sm:$0xff] }
  0x9c   :  { %1811 = vmatprep.mubr.bf16.mxu0 %v9693_v0  ;;  %9973 = vst [vmem:[#allocation73_spill] sm:$0xff] %v8037_v10  ;;  %9974 = vst [vmem:[#allocation74_spill] sm:$0xff] %v8041_v30 }
  0x9d   :  { %1741 = vmatpush1.bf16.msra.mxu1 %v7997_v19 }
  0x9e   :  { %1782 = vmatpush1.bf16.msra.mxu0 %v8001_v21  ;;  %1742 = vmatprep.subr.bf16.mxu1 %v8003_v28  ;;  %v935_v21 = vld [vmem:[#allocation5 + $0x70] sm:$0xff] }
  0x9f   :  { %1783 = vmatprep.subr.bf16.mxu0 %v8006_v29  ;;  %v943_v29 = vld [vmem:[#allocation5 + $0xb0] sm:$0xff] }
  0xa0   :  { %827 = vmatmul.mubr.bf16.gmra.mxu1 %v7792_v27  ;;  %v942_v27 = vld [vmem:[#allocation5 + $0xa8] sm:$0xff]  ;;  %v8046_v34 = vcombine.high %v939_v18, %v943_v29  ;;  %v8055_v55 = vcombine.low %v939_v18, %v943_v29  ;;  %v8072_v18 = vcombine.high %v923_v8, %v927_v3 }
  0xa1   :  { %1743 = vmatpush1.bf16.msra.mxu1 %v8011_v38  ;;  %836 = vmatprep.mubr.bf16.mxu1 %v9693_v0  ;;  %v8043_v32 = vcombine.high %v938_v17, %v942_v27  ;;  %v930_v0 = vld [vmem:[#allocation5 + $0x48] sm:$0xff]  ;;  %v8050_v47 = vcombine.low %v938_v17, %v942_v27 }
  0xa2   :  { %1784 = vmatpush1.bf16.msra.mxu0 %v8015_v42  ;;  %1744 = vmatprep.subr.bf16.mxu1 %v8017_v43  ;;  %9976 = vst [vmem:[#allocation76_spill] sm:$0xff] %v8046_v34  ;;  %v931_v42 = vld [vmem:[#allocation5 + $0x50] sm:$0xff]  ;;  %9979 = vst [vmem:[#allocation78_spill] sm:$0xff] %v8055_v55 }
  0xa3   :  { %1785 = vmatprep.subr.bf16.mxu0 %v8020_v45  ;;  %9975 = vst [vmem:[#allocation75_spill] sm:$0xff] %v8043_v32  ;;  %v934_v45 = vld [vmem:[#allocation5 + $0x68] sm:$0xff]  ;;  %9977 = vst [vmem:[#allocation77_spill] sm:$0xff] %v8050_v47  ;;  %v8067_v29 = vcombine.low %v931_v42, %v935_v21 }
  0xa4   :  { %v8057_v59 = vcombine.high %v930_v0, %v934_v45  ;;  %v8063_v17 = vcombine.low %v930_v0, %v934_v45  ;;  %9985 = vst [vmem:[#allocation84_spill] sm:$0xff] %v8072_v18 }
  0xa5   :  { %1745 = vmatpush1.bf16.msra.mxu1 %v8024_v62  ;;  %9983 = vst [vmem:[#allocation82_spill] sm:$0xff] %v8067_v29 }
  0xa6   :  { %1786 = vmatpush1.bf16.msra.mxu0 %v8029_v63  ;;  %1746 = vmatprep.subr.bf16.mxu1 %v8031_v11  ;;  %9980 = vst [vmem:[#allocation79_spill] sm:$0xff] %v8057_v59  ;;  %v922_v63 = vld [vmem:[#allocation5 + $0x8] sm:$0xff]  ;;  %9982 = vst [vmem:[#allocation81_spill] sm:$0xff] %v8063_v17 }
  0xa7   :  { %1787 = vmatprep.subr.bf16.mxu0 %v8034_v13  ;;  %v8060_v13 = vcombine.high %v931_v42, %v935_v21  ;;  %v8081_v21 = vcombine.low %v923_v8, %v927_v3 }
  0xa8   :  { %837 = vmatmul.mubr.bf16.gmra.mxu1 %v7825_v44  ;;  %v926_v44 = vld [vmem:[#allocation5 + $0x28] sm:$0xff] }
  0xa9   :  { %1747 = vmatpush1.bf16.msra.mxu1 %v8037_v10  ;;  %846 = vmatprep.mubr.bf16.mxu1 %v9978_v51  ;;  %9981 = vst [vmem:[#allocation80_spill] sm:$0xff] %v8060_v13  ;;  %v8069_v27 = vcombine.high %v922_v63, %v926_v44  ;;  %v1047_v10 = vld [vmem:[#allocation5 + $0x3f0] sm:$0xff]  ;;  %v8076_v0 = vcombine.low %v922_v63, %v926_v44  ;;  %9987 = vst [vmem:[#allocation86_spill] sm:$0xff] %v8081_v21 }
  0xaa   :  { %1788 = vmatpush1.bf16.msra.mxu0 %v8041_v30  ;;  %1748 = vmatprep.subr.bf16.mxu1 %v8043_v32  ;;  %v1046_v30 = vld [vmem:[#allocation5 + $0x3e8] sm:$0xff]  ;;  %v1043_v32 = vld [vmem:[#allocation5 + $0x3d0] sm:$0xff] }
  0xab   :  { %1789 = vmatprep.subr.bf16.mxu0 %v8046_v34  ;;  %9984 = vst [vmem:[#allocation83_spill] sm:$0xff] %v8069_v27  ;;  %v1042_v34 = vld [vmem:[#allocation5 + $0x3c8] sm:$0xff]  ;;  %9986 = vst [vmem:[#allocation85_spill] sm:$0xff] %v8076_v0  ;;  %v8086_v45 = vcombine.high %v1043_v32, %v1047_v10  ;;  %v8093_v3 = vcombine.low %v1043_v32, %v1047_v10 }
  0xac   :  { %v8083_v42 = vcombine.high %v1042_v34, %v1046_v30  ;;  %v8089_v63 = vcombine.low %v1042_v34, %v1046_v30 }
  0xad   :  { %1749 = vmatpush1.bf16.msra.mxu1 %v8050_v47  ;;  %9989 = vst [vmem:[#allocation88_spill] sm:$0xff] %v8086_v45  ;;  %9991 = vst [vmem:[#allocation90_spill] sm:$0xff] %v8093_v3 }
  0xae   :  { %1790 = vmatpush1.bf16.msra.mxu0 %v8055_v55  ;;  %1750 = vmatprep.subr.bf16.mxu1 %v8057_v59  ;;  %9988 = vst [vmem:[#allocation87_spill] sm:$0xff] %v8083_v42  ;;  %v1035_v55 = vld [vmem:[#allocation5 + $0x390] sm:$0xff]  ;;  %9990 = vst [vmem:[#allocation89_spill] sm:$0xff] %v8089_v63 }
  0xaf   :  { %1791 = vmatprep.subr.bf16.mxu0 %v8060_v13  ;;  %v1034_v13 = vld [vmem:[#allocation5 + $0x388] sm:$0xff]  ;;  %v1031_v59 = vld [vmem:[#allocation5 + $0x370] sm:$0xff] }
  0xb0   :  { %847 = vmatmul.mubr.bf16.gmra.mxu1 %v7858_v61  ;;  %v1038_v61 = vld [vmem:[#allocation5 + $0x3a8] sm:$0xff] }
  0xb1   :  { %1751 = vmatpush1.bf16.msra.mxu1 %v8063_v17  ;;  %1770 = vmatprep.mubr.bf16.mxu1 %v9978_v51  ;;  %v1039_v17 = vld [vmem:[#allocation5 + $0x3b0] sm:$0xff]  ;;  %v8095_v8 = vcombine.high %v1034_v13, %v1038_v61  ;;  %v8101_v30 = vcombine.low %v1034_v13, %v1038_v61 }
  0xb2   :  { %1792 = vmatpush1.bf16.msra.mxu0 %v8067_v29  ;;  %1752 = vmatprep.subr.bf16.mxu1 %v8069_v27  ;;  %v8098_v44 = vcombine.high %v1035_v55, %v1039_v17  ;;  %v1030_v29 = vld [vmem:[#allocation5 + $0x368] sm:$0xff]  ;;  %v1027_v27 = vld [vmem:[#allocation5 + $0x350] sm:$0xff]  ;;  %v8105_v10 = vcombine.low %v1035_v55, %v1039_v17 }
  0xb3   :  { %1793 = vmatprep.subr.bf16.mxu0 %v8072_v18  ;;  %9992 = vst [vmem:[#allocation91_spill] sm:$0xff] %v8095_v8  ;;  %v1026_v18 = vld [vmem:[#allocation5 + $0x348] sm:$0xff]  ;;  %9994 = vst [vmem:[#allocation93_spill] sm:$0xff] %v8101_v30  ;;  %v8110_v34 = vcombine.high %v1027_v27, %v1031_v59  ;;  %v8117_v55 = vcombine.low %v1027_v27, %v1031_v59 }
  0xb4   :  { %9993 = vst [vmem:[#allocation92_spill] sm:$0xff] %v8098_v44  ;;  %9995 = vst [vmem:[#allocation94_spill] sm:$0xff] %v8105_v10  ;;  %v8107_v32 = vcombine.high %v1026_v18, %v1030_v29  ;;  %v8113_v13 = vcombine.low %v1026_v18, %v1030_v29 }
  0xb5   :  { %1753 = vmatpush1.bf16.msra.mxu1 %v8076_v0  ;;  %9997 = vst [vmem:[#allocation96_spill] sm:$0xff] %v8110_v34  ;;  %v1023_v0 = vld [vmem:[#allocation5 + $0x330] sm:$0xff]  ;;  %9999 = vst [vmem:[#allocation98_spill] sm:$0xff] %v8117_v55 }
  0xb6   :  { %1794 = vmatpush1.bf16.msra.mxu0 %v8081_v21  ;;  %1754 = vmatprep.subr.bf16.mxu1 %v8083_v42  ;;  %9996 = vst [vmem:[#allocation95_spill] sm:$0xff] %v8107_v32  ;;  %v1022_v21 = vld [vmem:[#allocation5 + $0x328] sm:$0xff]  ;;  %v1019_v42 = vld [vmem:[#allocation5 + $0x310] sm:$0xff]  ;;  %9998 = vst [vmem:[#allocation97_spill] sm:$0xff] %v8113_v13 }
  0xb7   :  { %1795 = vmatprep.subr.bf16.mxu0 %v8086_v45  ;;  %v1018_v45 = vld [vmem:[#allocation5 + $0x308] sm:$0xff]  ;;  %v8122_v61 = vcombine.high %v1019_v42, %v1023_v0  ;;  %v8129_v59 = vcombine.low %v1019_v42, %v1023_v0 }
  0xb8   :  { %v8119_v17 = vcombine.high %v1018_v45, %v1022_v21  ;;  %v8125_v29 = vcombine.low %v1018_v45, %v1022_v21 }
  0xb9   :  { %1755 = vmatpush2.bf16.msra.mxu1 %v8089_v63  ;;  %10001 = vst [vmem:[#allocation100_spill] sm:$0xff] %v8122_v61  ;;  %v1015_v63 = vld [vmem:[#allocation5 + $0x2f0] sm:$0xff]  ;;  %10003 = vst [vmem:[#allocation102_spill] sm:$0xff] %v8129_v59 }
  0xba   :  { %1796 = vmatpush2.bf16.msra.mxu0 %v8093_v3  ;;  %1756 = vmatprep.subr.bf16.mxu1 %v8095_v8  ;;  %10000 = vst [vmem:[#allocation99_spill] sm:$0xff] %v8119_v17  ;;  %v1014_v3 = vld [vmem:[#allocation5 + $0x2e8] sm:$0xff]  ;;  %v1011_v8 = vld [vmem:[#allocation5 + $0x2d0] sm:$0xff]  ;;  %10002 = vst [vmem:[#allocation101_spill] sm:$0xff] %v8125_v29 }
  0xbb   :  { %1797 = vmatprep.subr.bf16.mxu0 %v8098_v44  ;;  %v1010_v44 = vld [vmem:[#allocation5 + $0x2c8] sm:$0xff]  ;;  %v8134_v18 = vcombine.high %v1011_v8, %v1015_v63  ;;  %v8141_v0 = vcombine.low %v1011_v8, %v1015_v63 }
  0xbc   :  { %v8131_v27 = vcombine.high %v1010_v44, %v1014_v3  ;;  %v8137_v21 = vcombine.low %v1010_v44, %v1014_v3 }
  0xbd   :  { %1757 = vmatpush2.bf16.msra.mxu1 %v8101_v30  ;;  %10005 = vst [vmem:[#allocation104_spill] sm:$0xff] %v8134_v18  ;;  %v1007_v30 = vld [vmem:[#allocation5 + $0x2b0] sm:$0xff]  ;;  %10007 = vst [vmem:[#allocation106_spill] sm:$0xff] %v8141_v0 }
  0xbe   :  { %1798 = vmatpush2.bf16.msra.mxu0 %v8105_v10  ;;  %1758 = vmatprep.subr.bf16.mxu1 %v8107_v32  ;;  %10004 = vst [vmem:[#allocation103_spill] sm:$0xff] %v8131_v27  ;;  %v1006_v10 = vld [vmem:[#allocation5 + $0x2a8] sm:$0xff]  ;;  %v1003_v32 = vld [vmem:[#allocation5 + $0x290] sm:$0xff]  ;;  %10006 = vst [vmem:[#allocation105_spill] sm:$0xff] %v8137_v21 }
  0xbf   :  { %1799 = vmatprep.subr.bf16.mxu0 %v8110_v34  ;;  %v1002_v34 = vld [vmem:[#allocation5 + $0x288] sm:$0xff]  ;;  %v8146_v45 = vcombine.high %v1003_v32, %v1007_v30  ;;  %v8153_v63 = vcombine.low %v1003_v32, %v1007_v30 }
  0xc0   :  { %v8143_v42 = vcombine.high %v1002_v34, %v1006_v10  ;;  %v8149_v3 = vcombine.low %v1002_v34, %v1006_v10 }
  0xc1   :  { %1759 = vmatpush2.bf16.msra.mxu1 %v8113_v13  ;;  %10009 = vst [vmem:[#allocation108_spill] sm:$0xff] %v8146_v45  ;;  %v999_v13 = vld [vmem:[#allocation5 + $0x270] sm:$0xff]  ;;  %10011 = vst [vmem:[#allocation110_spill] sm:$0xff] %v8153_v63 }
  0xc2   :  { %1800 = vmatpush2.bf16.msra.mxu0 %v8117_v55  ;;  %1760 = vmatprep.subr.bf16.mxu1 %v8119_v17  ;;  %10008 = vst [vmem:[#allocation107_spill] sm:$0xff] %v8143_v42  ;;  %v998_v55 = vld [vmem:[#allocation5 + $0x268] sm:$0xff]  ;;  %v995_v17 = vld [vmem:[#allocation5 + $0x250] sm:$0xff]  ;;  %10010 = vst [vmem:[#allocation109_spill] sm:$0xff] %v8149_v3 }
  0xc3   :  { %1801 = vmatprep.subr.bf16.mxu0 %v8122_v61  ;;  %v994_v61 = vld [vmem:[#allocation5 + $0x248] sm:$0xff]  ;;  %v8158_v44 = vcombine.high %v995_v17, %v999_v13  ;;  %v8165_v30 = vcombine.low %v995_v17, %v999_v13  ;;  %v972_v17 = vld [vmem:[#allocation5 + $0x198] sm:$0xff] }
  0xc4   :  { %v8155_v8 = vcombine.high %v994_v61, %v998_v55  ;;  %v8161_v10 = vcombine.low %v994_v61, %v998_v55  ;;  %v976_v61 = vld [vmem:[#allocation5 + $0x1b8] sm:$0xff] }
  0xc5   :  { %1761 = vmatpush2.bf16.msra.mxu1 %v8125_v29  ;;  %10013 = vst [vmem:[#allocation112_spill] sm:$0xff] %v8158_v44  ;;  %v991_v29 = vld [vmem:[#allocation5 + $0x230] sm:$0xff]  ;;  %10015 = vst [vmem:[#allocation114_spill] sm:$0xff] %v8165_v30 }
  0xc6   :  { %1802 = vmatpush2.bf16.msra.mxu0 %v8129_v59  ;;  %1762 = vmatprep.subr.bf16.mxu1 %v8131_v27  ;;  %10012 = vst [vmem:[#allocation111_spill] sm:$0xff] %v8155_v8  ;;  %v990_v59 = vld [vmem:[#allocation5 + $0x228] sm:$0xff]  ;;  %v987_v27 = vld [vmem:[#allocation5 + $0x210] sm:$0xff]  ;;  %10014 = vst [vmem:[#allocation113_spill] sm:$0xff] %v8161_v10 }
  0xc7   :  { %1803 = vmatprep.subr.bf16.mxu0 %v8134_v18  ;;  %v986_v18 = vld [vmem:[#allocation5 + $0x208] sm:$0xff]  ;;  %v8170_v34 = vcombine.high %v987_v27, %v991_v29  ;;  %v8177_v55 = vcombine.low %v987_v27, %v991_v29  ;;  %v8193_v29 = vcombine.low %v972_v17, %v976_v61 }
  0xc8   :  { %v8167_v32 = vcombine.high %v986_v18, %v990_v59 }
  0xc9   :  { %1763 = vmatpush2.bf16.msra.mxu1 %v8137_v21  ;;  %10017 = vst [vmem:[#allocation116_spill] sm:$0xff] %v8170_v34  ;;  %10019 = vst [vmem:[#allocation118_spill] sm:$0xff] %v8177_v55 }
  0xca   :  { %1804 = vmatpush2.bf16.msra.mxu0 %v8141_v0  ;;  %1764 = vmatprep.subr.bf16.mxu1 %v8143_v42  ;;  %10016 = vst [vmem:[#allocation115_spill] sm:$0xff] %v8167_v32  ;;  %v984_v0 = vld [vmem:[#allocation5 + $0x1f8] sm:$0xff]  ;;  %v8173_v42 = vcombine.low %v986_v18, %v990_v59  ;;  %v8187_v59 = vcombine.high %v972_v17, %v976_v61 }
  0xcb   :  { %1805 = vmatprep.subr.bf16.mxu0 %v8146_v45  ;;  %v980_v45 = vld [vmem:[#allocation5 + $0x1d8] sm:$0xff] }
  0xcc   :  { %10018 = vst [vmem:[#allocation117_spill] sm:$0xff] %v8173_v42  ;;  %v8179_v13 = vcombine.high %v980_v45, %v984_v0  ;;  %v964_v18 = vld [vmem:[#allocation5 + $0x158] sm:$0xff] }
  0xcd   :  { %1765 = vmatpush2.bf16.msra.mxu1 %v8149_v3  ;;  %v948_v61 = vld [vmem:[#allocation5 + $0xd8] sm:$0xff] }
  0xce   :  { %1806 = vmatpush2.bf16.msra.mxu0 %v8153_v63  ;;  %1766 = vmatprep.subr.bf16.mxu1 %v8155_v8  ;;  %10020 = vst [vmem:[#allocation119_spill] sm:$0xff] %v8179_v13 }
  0xcf   :  { %1807 = vmatprep.subr.bf16.mxu0 %v8158_v44  ;;  %v8183_v44 = vcombine.low %v980_v45, %v984_v0  ;;  %v956_v0 = vld [vmem:[#allocation5 + $0x118] sm:$0xff] }
  0xd0   :  { %v960_v45 = vld [vmem:[#allocation5 + $0x138] sm:$0xff] }
  0xd1   :  { %1767 = vmatpush2.bf16.msra.mxu1 %v8161_v10  ;;  %v8205_v17 = vcombine.high %v956_v0, %v960_v45 }
  0xd2   :  { %1808 = vmatpush2.bf16.msra.mxu0 %v8165_v30  ;;  %1768 = vmatprep.subr.bf16.mxu1 %v8167_v32  ;;  %v968_v30 = vld [vmem:[#allocation5 + $0x178] sm:$0xff] }
  0xd3   :  { %1809 = vmatprep.subr.bf16.mxu0 %v8170_v34  ;;  %v8196_v27 = vcombine.high %v964_v18, %v968_v30  ;;  %v8210_v34 = vcombine.low %v956_v0, %v960_v45  ;;  %v932_v0 = vld [vmem:[#allocation5 + $0x58] sm:$0xff] }
  0xd4   :  { %v936_v45 = vld [vmem:[#allocation5 + $0x78] sm:$0xff] }
  0xd5   :  { %1769 = vmatpush2.bf16.msra.mxu1 %v8173_v42 }
  0xd6   :  { %1810 = vmatpush2.bf16.msra.mxu0 %v8177_v55  ;;  %1820 = vmatprep.subr.bf16.mxu1 %v8179_v13  ;;  %v952_v55 = vld [vmem:[#allocation5 + $0xf8] sm:$0xff] }
  0xd7   :  { %1915 = vmatprep.subr.bf16.mxu0 %v7750_v7  ;;  %v8202_v7 = vcombine.low %v964_v18, %v968_v30  ;;  %v940_v30 = vld [vmem:[#allocation5 + $0x98] sm:$0xff] }
  0xd8   :  { %1771 = vmatmul.mubr.bf16.vlgmr.msra.gmra.mxu1 %v9978_v51  ;;  %v944_v18 = vld [vmem:[#allocation5 + $0xb8] sm:$0xff] }
  0xd9   :  { %1812 = vmatmul.mubr.bf16.vlgmr.msra.gmra.mxu0 %v9978_v51  ;;  %1821 = vmatpush1.bf16.msra.mxu1 %v8183_v44 }
  0xda   :  { %1822 = vmatprep.subr.bf16.mxu1 %v8187_v59  ;;  %1852 = vmatprep.mubr.bf16.mxu1 %v9978_v51 }
  0xdb   :  { %1916 = vmatpush1.bf16.msra.mxu0 %v7763_v14  ;;  %v8218_v14 = vcombine.low %v948_v61, %v952_v55 }
  0xdc   :  { %1917 = vmatprep.subr.bf16.mxu0 %v7766_v16  ;;  %v8213_v16 = vcombine.high %v948_v61, %v952_v55  ;;  %v924_v55 = vld [vmem:[#allocation5 + $0x18] sm:$0xff] }
  0xdd   :  { %1823 = vmatpush1.bf16.msra.mxu1 %v8193_v29  ;;  %v928_v61 = vld [vmem:[#allocation5 + $0x38] sm:$0xff] }
  0xde   :  { %1824 = vmatprep.subr.bf16.mxu1 %v8196_v27 }
  0xdf   :  { %1918 = vmatpush1.bf16.msra.mxu0 %v7777_v22  ;;  %v8226_v22 = vcombine.low %v940_v30, %v944_v18 }
  0xe0   :  { %1919 = vmatprep.subr.bf16.mxu0 %v7781_v24  ;;  %v8221_v24 = vcombine.high %v940_v30, %v944_v18  ;;  %v1044_v30 = vld [vmem:[#allocation5 + $0x3d8] sm:$0xff] }
  0xe1   :  { %1825 = vmatpush1.bf16.msra.mxu1 %v8202_v7  ;;  %v1048_v18 = vld [vmem:[#allocation5 + $0x3f8] sm:$0xff] }
  0xe2   :  { %1826 = vmatprep.subr.bf16.mxu1 %v8205_v17 }
  0xe3   :  { %1920 = vmatpush1.bf16.msra.mxu0 %v7796_v31  ;;  %v8234_v31 = vcombine.low %v932_v0, %v936_v45 }
  0xe4   :  { %1921 = vmatprep.subr.bf16.mxu0 %v7799_v33  ;;  %v8229_v33 = vcombine.high %v932_v0, %v936_v45  ;;  %v1036_v0 = vld [vmem:[#allocation5 + $0x398] sm:$0xff] }
  0xe5   :  { %1827 = vmatpush1.bf16.msra.mxu1 %v8210_v34  ;;  %v1040_v45 = vld [vmem:[#allocation5 + $0x3b8] sm:$0xff] }
  0xe6   :  { %1828 = vmatprep.subr.bf16.mxu1 %v8213_v16 }
  0xe7   :  { %1922 = vmatpush1.bf16.msra.mxu0 %v7810_v39  ;;  %v8242_v39 = vcombine.low %v924_v55, %v928_v61 }
  0xe8   :  { %1923 = vmatprep.subr.bf16.mxu0 %v7813_v41  ;;  %v8237_v41 = vcombine.high %v924_v55, %v928_v61  ;;  %v1028_v55 = vld [vmem:[#allocation5 + $0x358] sm:$0xff] }
  0xe9   :  { %1829 = vmatpush1.bf16.msra.mxu1 %v8218_v14  ;;  %v1032_v61 = vld [vmem:[#allocation5 + $0x378] sm:$0xff] }
  0xea   :  { %1830 = vmatprep.subr.bf16.mxu1 %v8221_v24 }
  0xeb   :  { %1924 = vmatpush1.bf16.msra.mxu0 %v7829_v48  ;;  %v8250_v48 = vcombine.low %v1044_v30, %v1048_v18 }
  0xec   :  { %1925 = vmatprep.subr.bf16.mxu0 %v7832_v50  ;;  %v8245_v50 = vcombine.high %v1044_v30, %v1048_v18  ;;  %v1020_v30 = vld [vmem:[#allocation5 + $0x318] sm:$0xff] }
  0xed   :  { %1831 = vmatpush1.bf16.msra.mxu1 %v8226_v22  ;;  %v1024_v18 = vld [vmem:[#allocation5 + $0x338] sm:$0xff] }
  0xee   :  { %1832 = vmatprep.subr.bf16.mxu1 %v8229_v33 }
  0xef   :  { %1926 = vmatpush1.bf16.msra.mxu0 %v7843_v56  ;;  %v8258_v56 = vcombine.low %v1036_v0, %v1040_v45 }
  0xf0   :  { %1927 = vmatprep.subr.bf16.mxu0 %v7846_v58  ;;  %v8253_v58 = vcombine.high %v1036_v0, %v1040_v45  ;;  %v1012_v0 = vld [vmem:[#allocation5 + $0x2d8] sm:$0xff] }
  0xf1   :  { %1833 = vmatpush1.bf16.msra.mxu1 %v8234_v31  ;;  %10022 = vst [vmem:[#allocation121_spill] sm:$0xff] %v8258_v56  ;;  %v1016_v45 = vld [vmem:[#allocation5 + $0x2f8] sm:$0xff] }
  0xf2   :  { %1834 = vmatprep.subr.bf16.mxu1 %v8237_v41  ;;  %10021 = vst [vmem:[#allocation120_spill] sm:$0xff] %v8253_v58 }
  0xf3   :  { %1928 = vmatpush1.bf16.msra.mxu0 %v7862_v2  ;;  %v8266_v2 = vcombine.low %v1028_v55, %v1032_v61 }
  0xf4   :  { %1929 = vmatprep.subr.bf16.mxu0 %v7865_v4  ;;  %v8261_v4 = vcombine.high %v1028_v55, %v1032_v61  ;;  %v1004_v55 = vld [vmem:[#allocation5 + $0x298] sm:$0xff] }
  0xf5   :  { %1835 = vmatpush1.bf16.msra.mxu1 %v8242_v39  ;;  %10024 = vst [vmem:[#allocation123_spill] sm:$0xff] %v8266_v2  ;;  %v1008_v61 = vld [vmem:[#allocation5 + $0x2b8] sm:$0xff] }
  0xf6   :  { %1836 = vmatprep.subr.bf16.mxu1 %v8245_v50  ;;  %10023 = vst [vmem:[#allocation122_spill] sm:$0xff] %v8261_v4 }
  0xf7   :  { %1930 = vmatpush1.bf16.msra.mxu0 %v7876_v12  ;;  %v8274_v12 = vcombine.low %v1020_v30, %v1024_v18 }
  0xf8   :  { %1931 = vmatprep.subr.bf16.mxu0 %v7879_v15  ;;  %v8269_v15 = vcombine.high %v1020_v30, %v1024_v18  ;;  %v996_v30 = vld [vmem:[#allocation5 + $0x258] sm:$0xff] }
  0xf9   :  { %1837 = vmatpush2.bf16.msra.mxu1 %v8250_v48  ;;  %10026 = vst [vmem:[#allocation125_spill] sm:$0xff] %v8274_v12  ;;  %v1000_v18 = vld [vmem:[#allocation5 + $0x278] sm:$0xff] }
  0xfa   :  { %1838 = vmatprep.subr.bf16.mxu1 %v8253_v58  ;;  %10025 = vst [vmem:[#allocation124_spill] sm:$0xff] %v8269_v15 }
  0xfb   :  { %1932 = vmatpush2.bf16.msra.mxu0 %v7890_v23  ;;  %v8282_v23 = vcombine.low %v1012_v0, %v1016_v45 }
  0xfc   :  { %1933 = vmatprep.subr.bf16.mxu0 %v7893_v26  ;;  %v8277_v26 = vcombine.high %v1012_v0, %v1016_v45  ;;  %v988_v0 = vld [vmem:[#allocation5 + $0x218] sm:$0xff] }
  0xfd   :  { %1839 = vmatpush2.bf16.msra.mxu1 %v8258_v56  ;;  %10028 = vst [vmem:[#allocation127_spill] sm:$0xff] %v8282_v23  ;;  %v992_v45 = vld [vmem:[#allocation5 + $0x238] sm:$0xff] }
  0xfe   :  { %1840 = vmatprep.subr.bf16.mxu1 %v8261_v4  ;;  %10027 = vst [vmem:[#allocation126_spill] sm:$0xff] %v8277_v26 }
  0xff   :  { %1934 = vmatpush2.bf16.msra.mxu0 %v7904_v35  ;;  %v8290_v35 = vcombine.low %v1004_v55, %v1008_v61 }
 0x100   :  { %1935 = vmatprep.subr.bf16.mxu0 %v7907_v37  ;;  %v8285_v37 = vcombine.high %v1004_v55, %v1008_v61  ;;  %v181_v55 = vlaneseq  ;;  %v8306_v61 = vcombine.low %v988_v0, %v992_v45 }
 0x101   :  { %1841 = vmatpush2.bf16.msra.mxu1 %v8266_v2  ;;  %10030 = vst [vmem:[#allocation129_spill] sm:$0xff] %v8290_v35 }
 0x102   :  { %1842 = vmatprep.subr.bf16.mxu1 %v8269_v15  ;;  %10029 = vst [vmem:[#allocation128_spill] sm:$0xff] %v8285_v37  ;;  %10034 = vst [vmem:[#allocation133_spill] sm:$0xff] %v8306_v61 }
 0x103   :  { %1936 = vmatpush2.bf16.msra.mxu0 %v7916_v46  ;;  %v8298_v46 = vcombine.low %v996_v30, %v1000_v18 }
 0x104   :  { %1937 = vmatprep.subr.bf16.mxu0 %v7919_v49  ;;  %v8293_v49 = vcombine.high %v996_v30, %v1000_v18 }
 0x105   :  { %1843 = vmatpush2.bf16.msra.mxu1 %v8274_v12  ;;  %10032 = vst [vmem:[#allocation131_spill] sm:$0xff] %v8298_v46 }
 0x106   :  { %1844 = vmatprep.subr.bf16.mxu1 %v8277_v26  ;;  %10031 = vst [vmem:[#allocation130_spill] sm:$0xff] %v8293_v49 }
 0x107   :  { %1938 = vmatpush2.bf16.msra.mxu0 %v7930_v57 }
 0x108   :  { %1939 = vmatprep.subr.bf16.mxu0 %v7933_v60  ;;  %v8301_v60 = vcombine.high %v988_v0, %v992_v45  ;;  %v8323_v0 = vld [vmem:[%s9684_s6] sm:$0xff]  ;;  %s7558_s6 = smov [#allocation2]  }
 0x109   :  { %1845 = vmatpush2.bf16.msra.mxu1 %v8282_v23  ;;  %s103_s29 = sshll.u32 %s7558_s6, 4  ;;  %s104_s29 = int_to_ptr.vmem [resolvable:$true] %s103_s29 }
 0x10a   :  { %1846 = vmatprep.subr.bf16.mxu1 %v8285_v37  ;;  %10033 = vst [vmem:[#allocation132_spill] sm:$0xff] %v8301_v60  ;;  %s7507_s10 = scalar_lea.vmem %s104_s29, 32768  ;;  %p7512_p7 = scmp.lt.s32.totalorder %s104_s29, %s104_s29 }
 0x10b   :  { %1940 = vmatpush2.bf16.msra.mxu0 %v7942_v6  ;;  %p7508_p6 = scmp.ne.s32.totalorder %s104_s29, %s7507_s10  ;;  %p7513_p8 = scmp.lt.s32.totalorder %s7507_s10, %s7507_s10 }
 0x10c   :  { %1941 = vmatprep.subr.bf16.mxu0 %v7945_v9  ;;  %v8309_v9 = vshrl.u32 %v181_v55, 7 }
 0x10d   :  { %1847 = vmatpush2.bf16.msra.mxu1 %v8290_v35  ;;  %p7514_p9 = por %p7513_p8, %p7512_p7 }
 0x10e   :  { %1848 = vmatprep.subr.bf16.mxu1 %v8293_v49  ;;  %v199_v30 = vsub.s32 4, %v8309_v9  ;;  %v8317_v18 = vsub.s32 0, %v8309_v9  ;;  %v203_v55 = vsub.s32 5, %v8309_v9 }
 0x10f   :  { %1942 = vmatpush2.bf16.msra.mxu0 %v7956_v20  ;;  %p7515_p10 = pnand %p7514_p9, %p7508_p6 }
 0x110   :  { %1943 = vmatprep.subr.bf16.mxu0 %v7959_v25  ;;  %10035 = vst [vmem:[#allocation134_spill] sm:$0xff] %v8317_v18  ;;  %v8339_v25 = vrot.slane %v8323_v0, %v199_v30  ;;  %v8349_v6 = vrot.slane %v8323_v0, %v203_v55 }
 0x111   :  { %1849 = vmatpush2.bf16.msra.mxu1 %v8298_v46 }
 0x112   :  { %1850 = vmatprep.subr.bf16.mxu1 %v8301_v60 }
 0x113   :  { %1944 = vmatpush2.bf16.msra.mxu0 %v7968_v36 }
 0x114   :  { %1945 = vmatprep.subr.bf16.mxu0 %v7971_v40  ;;  %v8331_v40 = vsub.s32 1, %v8309_v9 }
 0x115   :  { %1851 = vmatpush2.bf16.msra.mxu1 %v8306_v61 }
 0x116   :  { %1956 = vmatprep.subr.bf16.mxu1 %v7978_v53  ;;  %10036 = vst [vmem:[#allocation135_spill] sm:$0xff] %v8331_v40  ;;  %v8353_v57 = vrot.slane %v8323_v0, %v8331_v40 }
 0x117   :  { %1946 = vmatpush2.bf16.msra.mxu0 %v7976_v52 }
 0x118   :  { %v8325_v45 = vpop.f32.mrf.mxu1  ;;  %1853 = vmatmul.mubr.bf16.vlgmr.msra.gmra.mxu1 %v9978_v51  ;;  %1997 = vmatprep.subr.bf16.mxu0 %v7981_v54  ;;  %v8333_v36 = vpop.f32.mrf.mxu0  ;;  %v8344_v51 = vrot.slane %v8323_v0, %v8317_v18 }
 0x119   :  { %1957 = vmatpush1.bf16.msra.mxu1 %v7983_v1 }
 0x11a   :  { %v8336_v52 = vpop.f32.mrf.mxu1  ;;  %1958 = vmatprep.subr.bf16.mxu1 %v7989_v5  ;;  %v8346_v20 = vpop.f32.mrf.mxu0 }
 0x11c   :  { %v603_v54 = vpop.f32.mrf.mxu1  ;;  %v749_v30 = vpop.f32.mrf.mxu0 }
 0x11d   :  { %v8356_v1 = vadd.f32 %v603_v54, %v8344_v51  ;;  %1959 = vmatpush1.bf16.msra.mxu1 %v7997_v19  ;;  %v8360_v18 = vadd.f32 %v749_v30, %v8339_v25 }
 0x11e   :  { %v605_v5 = vpop.f32.mrf.mxu1  ;;  %1960 = vmatprep.subr.bf16.mxu1 %v8003_v28  ;;  %v751_v55 = vpop.f32.mrf.mxu0 }
 0x11f   :  { %10037 = vst [vmem:[#allocation136_spill] sm:$0xff] %v8356_v1  ;;  %10038 = vst [vmem:[#allocation137_spill] sm:$0xff] %v8360_v18  ;;  %v8364_v53 = vadd.f32 %v605_v5, %v8353_v57  ;;  %v8367_v40 = vadd.f32 %v751_v55, %v8349_v6 }
 0x120   :  { %v609_v61 = vpop.f32.mrf.mxu1  ;;  %v755_v18 = vpop.f32.mrf.mxu0 }
 0x121   :  { %10039 = vst [vmem:[#allocation138_spill] sm:$0xff] %v8364_v53  ;;  %10040 = vst [vmem:[#allocation139_spill] sm:$0xff] %v8367_v40  ;;  %v8370_v54 = vadd.f32 %v609_v61, %v8344_v51  ;;  %1961 = vmatpush1.bf16.msra.mxu1 %v8011_v38  ;;  %v8378_v5 = vadd.f32 %v755_v18, %v8339_v25 }
 0x122   :  { %v611_v1 = vpop.f32.mrf.mxu1  ;;  %1962 = vmatprep.subr.bf16.mxu1 %v8017_v43  ;;  %v757_v55 = vpop.f32.mrf.mxu0  ;;  %v10076_v43 = vld [vmem:[#allocation95_spill] sm:$0xff] }
 0x123   :  { %10041 = vst [vmem:[#allocation140_spill] sm:$0xff] %v8370_v54  ;;  %v8375_v30 = vadd.f32 %v611_v1, %v8353_v57  ;;  %10043 = vst [vmem:[#allocation142_spill] sm:$0xff] %v8378_v5  ;;  %v8385_v54 = vadd.f32 %v757_v55, %v8349_v6  ;;  %v10049_v5 = vld [vmem:[#allocation73_spill] sm:$0xff] }
 0x124   :  { %v613_v28 = vpop.f32.mrf.mxu1 }
 0x125   :  { %10042 = vst [vmem:[#allocation141_spill] sm:$0xff] %v8375_v30  ;;  %v8381_v53 = vadd.f32 %v613_v28, %v8344_v51  ;;  %1963 = vmatpush1.bf16.msra.mxu1 %v8024_v62  ;;  %10045 = vst [vmem:[#allocation144_spill] sm:$0xff] %v8385_v54  ;;  %v759_v30 = vpop.f32.mrf.mxu0  ;;  %v10051_v54 = vld [vmem:[#allocation75_spill] sm:$0xff] }
 0x126   :  { %v615_v61 = vpop.f32.mrf.mxu1  ;;  %1964 = vmatprep.subr.bf16.mxu1 %v8031_v11  ;;  %v8392_v18 = vadd.f32 %v759_v30, %v8339_v25 }
 0x127   :  { %10044 = vst [vmem:[#allocation143_spill] sm:$0xff] %v8381_v53  ;;  %v8389_v1 = vadd.f32 %v615_v61, %v8353_v57  ;;  %v761_v53 = vpop.f32.mrf.mxu0 }
 0x128   :  { %v619_v40 = vpop.f32.mrf.mxu1  ;;  %10047 = vst [vmem:[#allocation146_spill] sm:$0xff] %v8392_v18  ;;  %v8399_v55 = vadd.f32 %v761_v53, %v8349_v6 }
 0x129   :  { %10046 = vst [vmem:[#allocation145_spill] sm:$0xff] %v8389_v1  ;;  %v8395_v28 = vadd.f32 %v619_v40, %v8344_v51  ;;  %1965 = vmatpush1.bf16.msra.mxu1 %v10049_v5  ;;  %v765_v1 = vpop.f32.mrf.mxu0 }
 0x12a   :  { %v621_v62 = vpop.f32.mrf.mxu1  ;;  %10050 = vst [vmem:[#allocation148_spill] sm:$0xff] %v8399_v55  ;;  %1966 = vmatprep.subr.bf16.mxu1 %v10051_v54  ;;  %v8406_v30 = vadd.f32 %v765_v1, %v8339_v25  ;;  %v10056_v55 = vld [vmem:[#allocation79_spill] sm:$0xff] }
 0x12b   :  { %10048 = vst [vmem:[#allocation147_spill] sm:$0xff] %v8395_v28  ;;  %v8403_v61 = vadd.f32 %v621_v62, %v8353_v57  ;;  %v767_v28 = vpop.f32.mrf.mxu0 }
 0x12c   :  { %v623_v11 = vpop.f32.mrf.mxu1  ;;  %10053 = vst [vmem:[#allocation150_spill] sm:$0xff] %v8406_v30  ;;  %v8413_v53 = vadd.f32 %v767_v28, %v8349_v6  ;;  %v10060_v30 = vld [vmem:[#allocation81_spill] sm:$0xff] }
 0x12d   :  { %10052 = vst [vmem:[#allocation149_spill] sm:$0xff] %v8403_v61  ;;  %v8409_v40 = vadd.f32 %v623_v11, %v8344_v51  ;;  %1967 = vmatpush1.bf16.msra.mxu1 %v8050_v47  ;;  %v769_v61 = vpop.f32.mrf.mxu0 }
 0x12e   :  { %v625_v18 = vpop.f32.mrf.mxu1  ;;  %10055 = vst [vmem:[#allocation152_spill] sm:$0xff] %v8413_v53  ;;  %1968 = vmatprep.subr.bf16.mxu1 %v10056_v55  ;;  %v8420_v1 = vadd.f32 %v769_v61, %v8339_v25  ;;  %v10062_v53 = vld [vmem:[#allocation83_spill] sm:$0xff] }
 0x12f   :  { %10054 = vst [vmem:[#allocation151_spill] sm:$0xff] %v8409_v40  ;;  %v8417_v62 = vadd.f32 %v625_v18, %v8353_v57  ;;  %v771_v40 = vpop.f32.mrf.mxu0 }
 0x130   :  { %v629_v54 = vpop.f32.mrf.mxu1  ;;  %10058 = vst [vmem:[#allocation154_spill] sm:$0xff] %v8420_v1  ;;  %v8427_v28 = vadd.f32 %v771_v40, %v8349_v6  ;;  %v10066_v1 = vld [vmem:[#allocation85_spill] sm:$0xff] }
 0x131   :  { %10057 = vst [vmem:[#allocation153_spill] sm:$0xff] %v8417_v62  ;;  %v8423_v11 = vadd.f32 %v629_v54, %v8344_v51  ;;  %1969 = vmatpush1.bf16.msra.mxu1 %v10060_v30  ;;  %v775_v62 = vpop.f32.mrf.mxu0 }
 0x132   :  { %v631_v47 = vpop.f32.mrf.mxu1  ;;  %10061 = vst [vmem:[#allocation156_spill] sm:$0xff] %v8427_v28  ;;  %1970 = vmatprep.subr.bf16.mxu1 %v10062_v53  ;;  %v8434_v61 = vadd.f32 %v775_v62, %v8339_v25  ;;  %v10068_v28 = vld [vmem:[#allocation87_spill] sm:$0xff] }
 0x133   :  { %10059 = vst [vmem:[#allocation155_spill] sm:$0xff] %v8423_v11  ;;  %v8431_v18 = vadd.f32 %v631_v47, %v8353_v57  ;;  %v777_v11 = vpop.f32.mrf.mxu0 }
 0x134   :  { %v633_v55 = vpop.f32.mrf.mxu1  ;;  %10064 = vst [vmem:[#allocation158_spill] sm:$0xff] %v8434_v61  ;;  %v8441_v40 = vadd.f32 %v777_v11, %v8349_v6 }
 0x135   :  { %10063 = vst [vmem:[#allocation157_spill] sm:$0xff] %v8431_v18  ;;  %v8437_v54 = vadd.f32 %v633_v55, %v8344_v51  ;;  %1971 = vmatpush1.bf16.msra.mxu1 %v10066_v1  ;;  %v191_v18 = vsub.s32 2, %v8309_v9  ;;  %v779_v53 = vpop.f32.mrf.mxu0  ;;  %v10071_v1 = vld [vmem:[#allocation89_spill] sm:$0xff] }
 0x136   :  { %v635_v30 = vpop.f32.mrf.mxu1  ;;  %10067 = vst [vmem:[#allocation160_spill] sm:$0xff] %v8441_v40  ;;  %1972 = vmatprep.subr.bf16.mxu1 %v10068_v28  ;;  %v8451_v55 = vadd.f32 %v779_v53, %v8339_v25 }
 0x137   :  { %10065 = vst [vmem:[#allocation159_spill] sm:$0xff] %v8437_v54  ;;  %v8445_v47 = vadd.f32 %v635_v30, %v8353_v57  ;;  %v195_v54 = vsub.s32 3, %v8309_v9  ;;  %v781_v61 = vpop.f32.mrf.mxu0  ;;  %v10073_v30 = vld [vmem:[#allocation91_spill] sm:$0xff] }
 0x138   :  { %v8448_v62 = vpop.f32.mrf.mxu1  ;;  %10070 = vst [vmem:[#allocation162_spill] sm:$0xff] %v8451_v55  ;;  %v8458_v40 = vadd.f32 %v781_v61, %v8349_v6  ;;  %v10075_v55 = vld [vmem:[#allocation93_spill] sm:$0xff] }
 0x139   :  { %10069 = vst [vmem:[#allocation161_spill] sm:$0xff] %v8445_v47  ;;  %1973 = vmatpush2.bf16.msra.mxu1 %v10071_v1  ;;  %v8462_v47 = vrot.slane %v8323_v0, %v191_v18  ;;  %v8465_v5 = vrot.slane %v8323_v0, %v195_v54  ;;  %v10079_v18 = vld [vmem:[#allocation97_spill] sm:$0xff]  ;;  %v10080_v54 = vld [vmem:[#allocation99_spill] sm:$0xff] }
 0x13a   :  { %v8455_v11 = vpop.f32.mrf.mxu1  ;;  %10072 = vst [vmem:[#allocation163_spill] sm:$0xff] %v8458_v40  ;;  %1974 = vmatprep.subr.bf16.mxu1 %v10073_v30 }
 0x13c   :  { %v676_v28 = vpop.f32.mrf.mxu1 }
 0x13d   :  { %v8468_v53 = vadd.f32 %v676_v28, %v8462_v47  ;;  %1975 = vmatpush2.bf16.msra.mxu1 %v10075_v55 }
 0x13e   :  { %v678_v1 = vpop.f32.mrf.mxu1  ;;  %1976 = vmatprep.subr.bf16.mxu1 %v10076_v43  ;;  %v10083_v43 = vld [vmem:[#allocation101_spill] sm:$0xff] }
 0x13f   :  { %10074 = vst [vmem:[#allocation164_spill] sm:$0xff] %v8468_v53  ;;  %v8473_v61 = vadd.f32 %v678_v1, %v8465_v5 }
 0x140   :  { %v682_v40 = vpop.f32.mrf.mxu1 }
 0x141   :  { %10077 = vst [vmem:[#allocation165_spill] sm:$0xff] %v8473_v61  ;;  %v8476_v30 = vadd.f32 %v682_v40, %v8462_v47  ;;  %1977 = vmatpush2.bf16.msra.mxu1 %v10079_v18  ;;  %v10084_v61 = vld [vmem:[#allocation103_spill] sm:$0xff] }
 0x142   :  { %v684_v38 = vpop.f32.mrf.mxu1  ;;  %1978 = vmatprep.subr.bf16.mxu1 %v10080_v54 }
 0x143   :  { %10078 = vst [vmem:[#allocation166_spill] sm:$0xff] %v8476_v30  ;;  %v8481_v28 = vadd.f32 %v684_v38, %v8465_v5 }
 0x144   :  { %v686_v53 = vpop.f32.mrf.mxu1 }
 0x145   :  { %10081 = vst [vmem:[#allocation167_spill] sm:$0xff] %v8481_v28  ;;  %v8484_v55 = vadd.f32 %v686_v53, %v8462_v47  ;;  %1979 = vmatpush2.bf16.msra.mxu1 %v10083_v43  ;;  %v10087_v28 = vld [vmem:[#allocation107_spill] sm:$0xff] }
 0x146   :  { %v688_v1 = vpop.f32.mrf.mxu1  ;;  %1980 = vmatprep.subr.bf16.mxu1 %v10084_v61 }
 0x147   :  { %10082 = vst [vmem:[#allocation168_spill] sm:$0xff] %v8484_v55  ;;  %v8489_v40 = vadd.f32 %v688_v1, %v8465_v5 }
 0x148   :  { %v692_v30 = vpop.f32.mrf.mxu1 }
 0x149   :  { %10085 = vst [vmem:[#allocation169_spill] sm:$0xff] %v8489_v40  ;;  %v8492_v18 = vadd.f32 %v692_v30, %v8462_v47  ;;  %1981 = vmatpush2.bf16.msra.mxu1 %v8137_v21 }
 0x14a   :  { %v694_v38 = vpop.f32.mrf.mxu1  ;;  %1982 = vmatprep.subr.bf16.mxu1 %v10087_v28 }
 0x14b   :  { %10086 = vst [vmem:[#allocation170_spill] sm:$0xff] %v8492_v18  ;;  %v8497_v53 = vadd.f32 %v694_v38, %v8465_v5 }
 0x14c   :  { %v696_v55 = vpop.f32.mrf.mxu1 }
 0x14d   :  { %10088 = vst [vmem:[#allocation171_spill] sm:$0xff] %v8497_v53  ;;  %v8500_v43 = vadd.f32 %v696_v55, %v8462_v47  ;;  %1983 = vmatpush2.bf16.msra.mxu1 %v8149_v3 }
 0x14e   :  { %v698_v1 = vpop.f32.mrf.mxu1  ;;  %1984 = vmatprep.subr.bf16.mxu1 %v8155_v8 }
 0x14f   :  { %10089 = vst [vmem:[#allocation172_spill] sm:$0xff] %v8500_v43  ;;  %v8505_v30 = vadd.f32 %v698_v1, %v8465_v5 }
 0x150   :  { %v702_v18 = vpop.f32.mrf.mxu1 }
 0x151   :  { %10090 = vst [vmem:[#allocation173_spill] sm:$0xff] %v8505_v30  ;;  %v8508_v40 = vadd.f32 %v702_v18, %v8462_v47  ;;  %1985 = vmatpush2.bf16.msra.mxu1 %v8161_v10  ;;  %v600_v30 = vadd.f32 %v8325_v45, %v8344_v51 }
 0x152   :  { %v704_v38 = vpop.f32.mrf.mxu1  ;;  %1986 = vmatprep.subr.bf16.mxu1 %v8167_v32 }
 0x153   :  { %10091 = vst [vmem:[#allocation174_spill] sm:$0xff] %v8508_v40  ;;  %v8513_v55 = vadd.f32 %v704_v38, %v8465_v5  ;;  %v207_v40 = vsub.s32 6, %v8309_v9 }
 0x154   :  { %v706_v43 = vpop.f32.mrf.mxu1 }
 0x155   :  { %10092 = vst [vmem:[#allocation175_spill] sm:$0xff] %v8513_v55  ;;  %v8516_v53 = vadd.f32 %v706_v43, %v8462_v47  ;;  %1987 = vmatpush2.bf16.msra.mxu1 %v8173_v42  ;;  %v211_v55 = vsub.s32 7, %v8309_v9  ;;  %v602_v43 = vadd.f32 %v8336_v52, %v8353_v57 }
 0x156   :  { %v708_v1 = vpop.f32.mrf.mxu1  ;;  %2038 = vmatprep.subr.bf16.mxu1 %v8179_v13  ;;  %v8534_v13 = vrot.slane %v8323_v0, %v207_v40 }
 0x157   :  { %10093 = vst [vmem:[#allocation176_spill] sm:$0xff] %v8516_v53  ;;  %v8521_v18 = vadd.f32 %v708_v1, %v8465_v5  ;;  %v8537_v8 = vrot.slane %v8323_v0, %v211_v55 }
 0x158   :  { %v8526_v32 = vpop.f32.mrf.mxu1 }
 0x159   :  { %10094 = vst [vmem:[#allocation177_spill] sm:$0xff] %v8521_v18  ;;  %v1731_v38 = vpop.f32.mrf.mxu0 }
 0x15a   :  { %v1861_v53 = vadd.f32 %v1731_v38, %v600_v30  ;;  %v8531_v42 = vpop.f32.mrf.mxu1 }
 0x15b   :  { %v1733_v1 = vpop.f32.mrf.mxu0 }
 0x15c   :  { %v1862_v18 = vadd.f32 %v1733_v1, %v602_v43  ;;  %v822_v10 = vpop.f32.mrf.mxu1 }
 0x15d   :  { %v8540_v45 = vadd.f32 %v822_v10, %v8534_v13  ;;  %v1735_v51 = vpop.f32.mrf.mxu0 }
 0x15e   :  { %v824_v9 = vpop.f32.mrf.mxu1 }
 0x15f   :  { %v8543_v3 = vadd.f32 %v824_v9, %v8537_v8  ;;  %v1736_v57 = vpop.f32.mrf.mxu0 }
 0x160   :  { %v828_v52 = vpop.f32.mrf.mxu1 }
 0x161   :  { %v8546_v30 = vadd.f32 %v828_v52, %v8534_v13 }
 0x162   :  { %v830_v40 = vpop.f32.mrf.mxu1 }
 0x163   :  { %10095 = vst [vmem:[#allocation178_spill] sm:$0xff] %v8546_v30  ;;  %v8549_v38 = vadd.f32 %v830_v40, %v8537_v8  ;;  %v1870_v30 = vmul.f32 0.5, %v1862_v18 }
 0x164   :  { %v832_v43 = vpop.f32.mrf.mxu1 }
 0x165   :  { %10096 = vst [vmem:[#allocation179_spill] sm:$0xff] %v8549_v38  ;;  %v8552_v0 = vadd.f32 %v832_v43, %v8534_v13 }
 0x166   :  { %v834_v10 = vpop.f32.mrf.mxu1 }
 0x167   :  { %10097 = vst [vmem:[#allocation180_spill] sm:$0xff] %v8552_v0  ;;  %v8555_v55 = vadd.f32 %v834_v10, %v8537_v8 }
 0x168   :  { %v838_v1 = vpop.f32.mrf.mxu1 }
 0x169   :  { %10098 = vst [vmem:[#allocation181_spill] sm:$0xff] %v8555_v55  ;;  %v8558_v51 = vadd.f32 %v838_v1, %v8534_v13 }
 0x16a   :  { %v840_v9 = vpop.f32.mrf.mxu1 }
 0x16b   :  { %10099 = vst [vmem:[#allocation182_spill] sm:$0xff] %v8558_v51  ;;  %v8561_v57 = vadd.f32 %v840_v9, %v8537_v8 }
 0x16c   :  { %v842_v52 = vpop.f32.mrf.mxu1 }
 0x16d   :  { %10100 = vst [vmem:[#allocation183_spill] sm:$0xff] %v8561_v57  ;;  %v8564_v40 = vadd.f32 %v842_v52, %v8534_v13 }
 0x16e   :  { %v844_v38 = vpop.f32.mrf.mxu1 }
 0x16f   :  { %10101 = vst [vmem:[#allocation184_spill] sm:$0xff] %v8564_v40  ;;  %v8567_v43 = vadd.f32 %v844_v38, %v8537_v8  ;;  %v1869_v40 = vmul.f32 0.5, %v1861_v53  ;;  %v673_v38 = vadd.f32 %v8448_v62, %v8462_v47 }
 0x170   :  { %v848_v0 = vpop.f32.mrf.mxu1 }
 0x171   :  { %10102 = vst [vmem:[#allocation185_spill] sm:$0xff] %v8567_v43  ;;  %v8570_v10 = vadd.f32 %v848_v0, %v8534_v13  ;;  %6715 = vtanh.f32 %v1869_v40  ;;  %v746_v0 = vadd.f32 %v8333_v36, %v8339_v25 }
 0x172   :  { %v850_v55 = vpop.f32.mrf.mxu1  ;;  %6717 = vtanh.f32 %v1870_v30 }
 0x173   :  { %10103 = vst [vmem:[#allocation186_spill] sm:$0xff] %v8570_v10  ;;  %v8573_v1 = vadd.f32 %v850_v55, %v8537_v8 }
 0x174   :  { %v852_v51 = vpop.f32.mrf.mxu1 }
 0x175   :  { %10104 = vst [vmem:[#allocation187_spill] sm:$0xff] %v8573_v1  ;;  %v8576_v9 = vadd.f32 %v852_v51, %v8534_v13  ;;  %v675_v1 = vadd.f32 %v8455_v11, %v8465_v5 }
 0x176   :  { %v854_v57 = vpop.f32.mrf.mxu1 }
 0x177   :  { %10105 = vst [vmem:[#allocation188_spill] sm:$0xff] %v8576_v9  ;;  %v8579_v52 = vadd.f32 %v854_v57, %v8537_v8  ;;  %v748_v57 = vadd.f32 %v8346_v20, %v8349_v6 }
 0x179   :  { %10106 = vst [vmem:[#allocation189_spill] sm:$0xff] %v8579_v52 }
 0x17e   :  { %v6716_v11 = vpop.eup %6715 }
 0x198   :  { %v1772_v55 = vpop.f32.mrf.mxu1 }
 0x199   :  { %v1863_v51 = vadd.f32 %v1772_v55, %v673_v38  ;;  %v1813_v9 = vpop.f32.mrf.mxu0  ;;  %v6718_v38 = vpop.eup %6717  ;;  %v1873_v55 = vmul.f32 0.5, %v6716_v11 }
 0x19a   :  { %v1865_v52 = vadd.f32 %v1813_v9, %v746_v0  ;;  %v1774_v53 = vpop.f32.mrf.mxu1  ;;  %v1874_v43 = vmul.f32 0.5, %v6718_v38 }
 0x19b   :  { %v1877_v18 = vmul.f32 0.5, %v1863_v51  ;;  %v1864_v40 = vadd.f32 %v1774_v53, %v675_v1  ;;  %v1815_v30 = vpop.f32.mrf.mxu0  ;;  %v1875_v6 = vadd.f32 0.5, %v1873_v55 }
 0x19c   :  { %6719 = vtanh.f32 %v1865_v52  ;;  %v1866_v10 = vadd.f32 %v1815_v30, %v748_v57  ;;  %v1776_v47 = vpop.f32.mrf.mxu1  ;;  %v1876_v0 = vadd.f32 0.5, %v1874_v43  ;;  %v821_v43 = vadd.f32 %v8531_v42, %v8537_v8 }
 0x19d   :  { %6721 = vtanh.f32 %v1877_v18  ;;  %v1878_v62 = vmul.f32 0.5, %v1864_v40  ;;  %v1817_v25 = vpop.f32.mrf.mxu0 }
 0x19e   :  { %6723 = vtanh.f32 %v1866_v10  ;;  %v1777_v36 = vpop.f32.mrf.mxu1 }
 0x19f   :  { %6725 = vtanh.f32 %v1878_v62  ;;  %v1818_v5 = vpop.f32.mrf.mxu0  ;;  %v819_v36 = vadd.f32 %v8526_v32, %v8534_v13 }
 0x1a9   :  { %v6720_v20 = vpop.eup %6719 }
 0x1aa   :  { %v6722_v9 = vpop.eup %6721  ;;  %v1897_v1 = vmul.f32 %v6720_v20, %v1875_v6 }
 0x1ab   :  { %v6724_v51 = vpop.eup %6723  ;;  %v1881_v52 = vmul.f32 0.5, %v6722_v9 }
 0x1ac   :  { %v6726_v57 = vpop.eup %6725  ;;  %v1898_v53 = vmul.f32 %v6724_v51, %v1876_v0 }
 0x1ad   :  { %v1883_v18 = vadd.f32 0.5, %v1881_v52  ;;  %v1882_v40 = vmul.f32 0.5, %v6726_v57 }
 0x1af   :  { %v1895_v30 = vmul.f32 0.0, %v1883_v18  ;;  %v1884_v10 = vadd.f32 0.5, %v1882_v40 }
 0x1b1   :  { %v8589_v47 = vadd.f32 %v1897_v1, %v1895_v30  ;;  %v1896_v62 = vmul.f32 0.0, %v1884_v10  ;;  %v10107_v10 = vld [vmem:[#allocation58_spill] sm:$0xff] }
 0x1b3   :  { %v8591_v25 = vadd.f32 %v1898_v53, %v1896_v62  ;;  %v10108_v62 = vld [vmem:[#allocation60_spill] sm:$0xff] }
 0x1d8   :  { %v1854_v5 = vpop.f32.mrf.mxu1 }
 0x1d9   :  { %v1867_v11 = vadd.f32 %v1854_v5, %v819_v36  ;;  %v10109_v36 = vld [vmem:[#allocation62_spill] sm:$0xff]  ;;  %v10110_v5 = vld [vmem:[#allocation64_spill] sm:$0xff] }
 0x1da   :  { %v1856_v38 = vpop.f32.mrf.mxu1 }
 0x1db   :  { %v1887_v55 = vmul.f32 0.5, %v1867_v11  ;;  %v1868_v6 = vadd.f32 %v1856_v38, %v821_v43  ;;  %v10111_v43 = vld [vmem:[#allocation66_spill] sm:$0xff]  ;;  %v10112_v11 = vld [vmem:[#allocation68_spill] sm:$0xff] }
 0x1dc   :  { %v1858_v20 = vpop.f32.mrf.mxu1  ;;  %v10113_v38 = vld [vmem:[#allocation70_spill] sm:$0xff] }
 0x1dd   :  { %6727 = vtanh.f32 %v1887_v55  ;;  %v1888_v9 = vmul.f32 0.5, %v1868_v6  ;;  %v10114_v55 = vld [vmem:[#allocation72_spill] sm:$0xff]  ;;  %v10115_v6 = vld [vmem:[#allocation74_spill] sm:$0xff] }
 0x1de   :  { %v1859_v0 = vpop.f32.mrf.mxu1  ;;  %v10116_v20 = vld [vmem:[#allocation76_spill] sm:$0xff] }
 0x1df   :  { %6729 = vtanh.f32 %v1888_v9  ;;  %v10117_v9 = vld [vmem:[#allocation78_spill] sm:$0xff]  ;;  %v10118_v0 = vld [vmem:[#allocation80_spill] sm:$0xff] }
 0x1e0   :  { %6731 = vtanh.f32 %v8589_v47 }
 0x1e1   :  { %6733 = vtanh.f32 %v8591_v25 }
 0x1ea   :  { %v6728_v1 = vpop.eup %6727 }
 0x1eb   :  { %v1891_v51 = vmul.f32 0.5, %v6728_v1  ;;  %v10119_v1 = vld [vmem:[#allocation82_spill] sm:$0xff] }
 0x1ec   :  { %v6730_v32 = vpop.eup %6729 }
 0x1ed   :  { %v1893_v13 = vadd.f32 0.5, %v1891_v51  ;;  %v1892_v52 = vmul.f32 0.5, %v6730_v32  ;;  %v6732_v57 = vpop.eup %6731  ;;  %v10120_v51 = vld [vmem:[#allocation84_spill] sm:$0xff]  ;;  %v10121_v32 = vld [vmem:[#allocation86_spill] sm:$0xff] }
 0x1ee   :  { %v6734_v8 = vpop.eup %6733 }
 0x1ef   :  { %v1894_v42 = vadd.f32 0.5, %v1892_v52  ;;  %v1903_v53 = vmul.f32 %v6732_v57, %v1893_v13  ;;  %v10122_v13 = vld [vmem:[#allocation88_spill] sm:$0xff]  ;;  %v10123_v52 = vld [vmem:[#allocation90_spill] sm:$0xff] }
 0x1f0   :  { %v10124_v57 = vld [vmem:[#allocation92_spill] sm:$0xff] }
 0x1f1   :  { %v1904_v18 = vmul.f32 %v6734_v8, %v1894_v42  ;;  %v8599_v30 = vpack.c.bf16 %v1903_v53, %v1903_v53  ;;  %v10125_v42 = vld [vmem:[#allocation94_spill] sm:$0xff]  ;;  %v10126_v8 = vld [vmem:[#allocation96_spill] sm:$0xff] }
 0x1f2   :  { %v10127_v53 = vld [vmem:[#allocation98_spill] sm:$0xff] }
 0x1f3   :  { %v1914_v40 = vpack.c.bf16 %v1904_v18, %v1904_v18  ;;  %v10128_v18 = vld [vmem:[#allocation100_spill] sm:$0xff] }
 0x1f5   :  { %1947 = vmatprep.mubr.bf16.mxu0 %v1914_v40  ;;  %1988 = vmatprep.mubr.bf16.mxu1 %v1914_v40 }
 0x1f6   :  { %1948 = vmatmul.mubr.bf16.vlgmr.msra.gmra.mxu0 %v8599_v30  ;;  %1989 = vmatmul.mubr.bf16.vlgmr.msra.gmra.mxu1 %v8599_v30 }
 0x1f7   :  { %1998 = vmatpush1.bf16.msra.mxu0 %v10107_v10  ;;  %2039 = vmatpush1.bf16.msra.mxu1 %v8183_v44 }
 0x1f8   :  { %2029 = vmatprep.mubr.bf16.mxu0 %v1914_v40  ;;  %2070 = vmatprep.mubr.bf16.mxu1 %v1914_v40  ;;  %v10129_v40 = vld [vmem:[#allocation102_spill] sm:$0xff] }
 0x1f9   :  { %1999 = vmatprep.subr.bf16.mxu0 %v10108_v62  ;;  %2040 = vmatprep.subr.bf16.mxu1 %v8187_v59 }
 0x1fb   :  { %2000 = vmatpush1.bf16.msra.mxu0 %v10109_v36  ;;  %2041 = vmatpush1.bf16.msra.mxu1 %v8193_v29 }
 0x1fc   :  { %2001 = vmatprep.subr.bf16.mxu0 %v10110_v5  ;;  %2042 = vmatprep.subr.bf16.mxu1 %v8196_v27 }
 0x1ff   :  { %2002 = vmatpush1.bf16.msra.mxu0 %v10111_v43  ;;  %2043 = vmatpush1.bf16.msra.mxu1 %v8202_v7 }
 0x200   :  { %2003 = vmatprep.subr.bf16.mxu0 %v10112_v11  ;;  %2044 = vmatprep.subr.bf16.mxu1 %v8205_v17 }
 0x203   :  { %2004 = vmatpush1.bf16.msra.mxu0 %v10113_v38  ;;  %2045 = vmatpush1.bf16.msra.mxu1 %v8210_v34 }
 0x204   :  { %2005 = vmatprep.subr.bf16.mxu0 %v10114_v55  ;;  %2046 = vmatprep.subr.bf16.mxu1 %v8213_v16 }
 0x207   :  { %2006 = vmatpush1.bf16.msra.mxu0 %v10115_v6  ;;  %2047 = vmatpush1.bf16.msra.mxu1 %v8218_v14 }
 0x208   :  { %2007 = vmatprep.subr.bf16.mxu0 %v10116_v20  ;;  %2048 = vmatprep.subr.bf16.mxu1 %v8221_v24 }
 0x20b   :  { %2008 = vmatpush1.bf16.msra.mxu0 %v10117_v9  ;;  %2049 = vmatpush1.bf16.msra.mxu1 %v8226_v22 }
 0x20c   :  { %2009 = vmatprep.subr.bf16.mxu0 %v10118_v0  ;;  %2050 = vmatprep.subr.bf16.mxu1 %v8229_v33 }
 0x20f   :  { %2010 = vmatpush1.bf16.msra.mxu0 %v10119_v1  ;;  %2051 = vmatpush1.bf16.msra.mxu1 %v8234_v31 }
 0x210   :  { %2011 = vmatprep.subr.bf16.mxu0 %v10120_v51  ;;  %2052 = vmatprep.subr.bf16.mxu1 %v8237_v41 }
 0x213   :  { %2012 = vmatpush1.bf16.msra.mxu0 %v10121_v32  ;;  %2053 = vmatpush1.bf16.msra.mxu1 %v8242_v39 }
 0x214   :  { %2013 = vmatprep.subr.bf16.mxu0 %v10122_v13  ;;  %2054 = vmatprep.subr.bf16.mxu1 %v8245_v50 }
 0x217   :  { %2014 = vmatpush2.bf16.msra.mxu0 %v10123_v52  ;;  %2055 = vmatpush2.bf16.msra.mxu1 %v8250_v48 }
 0x218   :  { %2015 = vmatprep.subr.bf16.mxu0 %v10124_v57  ;;  %2056 = vmatprep.subr.bf16.mxu1 %v8253_v58  ;;  %v10130_v58 = vld [vmem:[#allocation104_spill] sm:$0xff] }
 0x21b   :  { %2016 = vmatpush2.bf16.msra.mxu0 %v10125_v42  ;;  %2057 = vmatpush2.bf16.msra.mxu1 %v8258_v56  ;;  %v10131_v56 = vld [vmem:[#allocation106_spill] sm:$0xff] }
 0x21c   :  { %2017 = vmatprep.subr.bf16.mxu0 %v10126_v8  ;;  %2058 = vmatprep.subr.bf16.mxu1 %v8261_v4  ;;  %v10132_v4 = vld [vmem:[#allocation108_spill] sm:$0xff] }
 0x21f   :  { %2018 = vmatpush2.bf16.msra.mxu0 %v10127_v53  ;;  %2059 = vmatpush2.bf16.msra.mxu1 %v8266_v2 }
 0x220   :  { %2019 = vmatprep.subr.bf16.mxu0 %v10128_v18  ;;  %2060 = vmatprep.subr.bf16.mxu1 %v8269_v15  ;;  %v10133_v15 = vld [vmem:[#allocation112_spill] sm:$0xff] }
 0x223   :  { %2020 = vmatpush2.bf16.msra.mxu0 %v10129_v40  ;;  %2061 = vmatpush2.bf16.msra.mxu1 %v8274_v12  ;;  %v10134_v12 = vld [vmem:[#allocation114_spill] sm:$0xff] }
 0x224   :  { %2021 = vmatprep.subr.bf16.mxu0 %v10130_v58  ;;  %2062 = vmatprep.subr.bf16.mxu1 %v8277_v26  ;;  %v10135_v26 = vld [vmem:[#allocation116_spill] sm:$0xff] }
 0x227   :  { %2022 = vmatpush2.bf16.msra.mxu0 %v10131_v56  ;;  %2063 = vmatpush2.bf16.msra.mxu1 %v8282_v23  ;;  %v10136_v23 = vld [vmem:[#allocation118_spill] sm:$0xff] }
 0x228   :  { %2023 = vmatprep.subr.bf16.mxu0 %v10132_v4  ;;  %2064 = vmatprep.subr.bf16.mxu1 %v8285_v37  ;;  %v10137_v4 = vld [vmem:[#allocation133_spill] sm:$0xff]  ;;  %v10138_v37 = vld [vmem:[#allocation23_spill] sm:$0xff] }
 0x22b   :  { %2024 = vmatpush2.bf16.msra.mxu0 %v8153_v63  ;;  %2065 = vmatpush2.bf16.msra.mxu1 %v8290_v35  ;;  %v10139_v63 = vld [vmem:[#allocation55_spill] sm:$0xff]  ;;  %v10201_v35 = vld [vmem:[#allocation165_spill] sm:$0xff] }
 0x22c   :  { %2025 = vmatprep.subr.bf16.mxu0 %v10133_v15  ;;  %2066 = vmatprep.subr.bf16.mxu1 %v8293_v49  ;;  %v10140_v49 = vld [vmem:[#allocation24_spill] sm:$0xff] }
 0x22d   :  { %v10200_v15 = vld [vmem:[#allocation136_spill] sm:$0xff] }
 0x22f   :  { %2026 = vmatpush2.bf16.msra.mxu0 %v10134_v12  ;;  %2067 = vmatpush2.bf16.msra.mxu1 %v8298_v46  ;;  %v10141_v12 = vld [vmem:[#allocation57_spill] sm:$0xff] }
 0x230   :  { %2027 = vmatprep.subr.bf16.mxu0 %v10135_v26  ;;  %2068 = vmatprep.subr.bf16.mxu1 %v8301_v60  ;;  %v10142_v46 = vld [vmem:[#allocation25_spill] sm:$0xff]  ;;  %v10143_v26 = vld [vmem:[#allocation59_spill] sm:$0xff]  ;;  %v10144_v60 = vld [vmem:[#allocation26_spill] sm:$0xff] }
 0x233   :  { %2028 = vmatpush2.bf16.msra.mxu0 %v10136_v23  ;;  %2069 = vmatpush2.bf16.msra.mxu1 %v10137_v4  ;;  %v10145_v4 = vld [vmem:[#allocation27_spill] sm:$0xff]  ;;  %v10148_v23 = vld [vmem:[#allocation65_spill] sm:$0xff] }
 0x234   :  { %2133 = vmatprep.subr.bf16.mxu0 %v10138_v37  ;;  %2174 = vmatprep.subr.bf16.mxu1 %v10139_v63  ;;  %v10146_v37 = vld [vmem:[#allocation63_spill] sm:$0xff]  ;;  %v10147_v63 = vld [vmem:[#allocation28_spill] sm:$0xff] }
 0x236   :  { %2030 = vmatmul.mubr.bf16.vlgmr.msra.gmra.mxu0 %v8599_v30  ;;  %2071 = vmatmul.mubr.bf16.vlgmr.msra.gmra.mxu1 %v8599_v30  ;;  %v10149_v30 = vld [vmem:[#allocation29_spill] sm:$0xff] }
 0x237   :  { %2134 = vmatpush1.bf16.msra.mxu0 %v10140_v49  ;;  %2175 = vmatpush1.bf16.msra.mxu1 %v10141_v12  ;;  %v10150_v49 = vld [vmem:[#allocation67_spill] sm:$0xff]  ;;  %v10151_v12 = vld [vmem:[#allocation30_spill] sm:$0xff] }
 0x238   :  { %2135 = vmatprep.subr.bf16.mxu0 %v10142_v46  ;;  %2176 = vmatprep.subr.bf16.mxu1 %v10143_v26  ;;  %v10152_v46 = vld [vmem:[#allocation69_spill] sm:$0xff]  ;;  %v10153_v26 = vld [vmem:[#allocation31_spill] sm:$0xff] }
 0x23b   :  { %2136 = vmatpush1.bf16.msra.mxu0 %v10144_v60  ;;  %2177 = vmatpush1.bf16.msra.mxu1 %v7997_v19  ;;  %v10154_v60 = vld [vmem:[#allocation71_spill] sm:$0xff]  ;;  %v10155_v19 = vld [vmem:[#allocation32_spill] sm:$0xff] }
 0x23c   :  { %2137 = vmatprep.subr.bf16.mxu0 %v10145_v4  ;;  %2178 = vmatprep.subr.bf16.mxu1 %v10146_v37  ;;  %v10156_v4 = vld [vmem:[#allocation73_spill] sm:$0xff] }
 0x23d   :  { %v10157_v37 = vld [vmem:[#allocation33_spill] sm:$0xff] }
 0x23f   :  { %2138 = vmatpush1.bf16.msra.mxu0 %v10147_v63  ;;  %2179 = vmatpush1.bf16.msra.mxu1 %v10148_v23  ;;  %v10158_v63 = vld [vmem:[#allocation75_spill] sm:$0xff]  ;;  %v10159_v23 = vld [vmem:[#allocation34_spill] sm:$0xff] }
 0x240   :  { %2139 = vmatprep.subr.bf16.mxu0 %v10149_v30  ;;  %2180 = vmatprep.subr.bf16.mxu1 %v10150_v49  ;;  %v10160_v30 = vld [vmem:[#allocation77_spill] sm:$0xff]  ;;  %v10161_v49 = vld [vmem:[#allocation35_spill] sm:$0xff] }
 0x243   :  { %2140 = vmatpush1.bf16.msra.mxu0 %v10151_v12  ;;  %2181 = vmatpush1.bf16.msra.mxu1 %v10152_v46  ;;  %v10162_v12 = vld [vmem:[#allocation79_spill] sm:$0xff]  ;;  %v10163_v46 = vld [vmem:[#allocation36_spill] sm:$0xff] }
 0x244   :  { %2141 = vmatprep.subr.bf16.mxu0 %v10153_v26  ;;  %2182 = vmatprep.subr.bf16.mxu1 %v10154_v60  ;;  %v10164_v26 = vld [vmem:[#allocation81_spill] sm:$0xff] }
 0x245   :  { %v10165_v60 = vld [vmem:[#allocation37_spill] sm:$0xff] }
 0x247   :  { %2142 = vmatpush1.bf16.msra.mxu0 %v10155_v19  ;;  %2183 = vmatpush1.bf16.msra.mxu1 %v10156_v4  ;;  %v10166_v19 = vld [vmem:[#allocation83_spill] sm:$0xff]  ;;  %v10167_v4 = vld [vmem:[#allocation38_spill] sm:$0xff] }
 0x248   :  { %2143 = vmatprep.subr.bf16.mxu0 %v10157_v37  ;;  %2184 = vmatprep.subr.bf16.mxu1 %v10158_v63  ;;  %v10168_v37 = vld [vmem:[#allocation85_spill] sm:$0xff]  ;;  %v10169_v63 = vld [vmem:[#allocation39_spill] sm:$0xff] }
 0x24b   :  { %2144 = vmatpush1.bf16.msra.mxu0 %v10159_v23  ;;  %2185 = vmatpush1.bf16.msra.mxu1 %v10160_v30  ;;  %v10170_v23 = vld [vmem:[#allocation87_spill] sm:$0xff]  ;;  %v10171_v30 = vld [vmem:[#allocation40_spill] sm:$0xff] }
 0x24c   :  { %2145 = vmatprep.subr.bf16.mxu0 %v10161_v49  ;;  %2186 = vmatprep.subr.bf16.mxu1 %v10162_v12  ;;  %v10172_v49 = vld [vmem:[#allocation89_spill] sm:$0xff] }
 0x24d   :  { %v10173_v12 = vld [vmem:[#allocation41_spill] sm:$0xff] }
 0x24f   :  { %2146 = vmatpush1.bf16.msra.mxu0 %v10163_v46  ;;  %2187 = vmatpush1.bf16.msra.mxu1 %v10164_v26  ;;  %v10174_v46 = vld [vmem:[#allocation91_spill] sm:$0xff]  ;;  %v10175_v26 = vld [vmem:[#allocation42_spill] sm:$0xff] }
 0x250   :  { %2147 = vmatprep.subr.bf16.mxu0 %v10165_v60  ;;  %2188 = vmatprep.subr.bf16.mxu1 %v10166_v19  ;;  %v10176_v60 = vld [vmem:[#allocation93_spill] sm:$0xff]  ;;  %v10177_v19 = vld [vmem:[#allocation43_spill] sm:$0xff] }
 0x253   :  { %2148 = vmatpush1.bf16.msra.mxu0 %v10167_v4  ;;  %2189 = vmatpush1.bf16.msra.mxu1 %v10168_v37  ;;  %v10178_v4 = vld [vmem:[#allocation95_spill] sm:$0xff]  ;;  %v10179_v37 = vld [vmem:[#allocation44_spill] sm:$0xff] }
 0x254   :  { %2149 = vmatprep.subr.bf16.mxu0 %v10169_v63  ;;  %2190 = vmatprep.subr.bf16.mxu1 %v10170_v23  ;;  %v10180_v63 = vld [vmem:[#allocation97_spill] sm:$0xff] }
 0x255   :  { %v10181_v23 = vld [vmem:[#allocation45_spill] sm:$0xff] }
 0x257   :  { %2150 = vmatpush2.bf16.msra.mxu0 %v10171_v30  ;;  %2191 = vmatpush2.bf16.msra.mxu1 %v10172_v49  ;;  %v10182_v49 = vld [vmem:[#allocation46_spill] sm:$0xff]  ;;  %v10199_v30 = vld [vmem:[#allocation164_spill] sm:$0xff] }
 0x258   :  { %2151 = vmatprep.subr.bf16.mxu0 %v10173_v12  ;;  %2192 = vmatprep.subr.bf16.mxu1 %v10174_v46  ;;  %v10183_v12 = vld [vmem:[#allocation101_spill] sm:$0xff]  ;;  %v10184_v46 = vld [vmem:[#allocation47_spill] sm:$0xff] }
 0x25b   :  { %2152 = vmatpush2.bf16.msra.mxu0 %v10175_v26  ;;  %2193 = vmatpush2.bf16.msra.mxu1 %v10176_v60  ;;  %v10185_v60 = vld [vmem:[#allocation48_spill] sm:$0xff] }
 0x25c   :  { %2153 = vmatprep.subr.bf16.mxu0 %v10177_v19  ;;  %2194 = vmatprep.subr.bf16.mxu1 %v10178_v4  ;;  %v10186_v4 = vld [vmem:[#allocation49_spill] sm:$0xff] }
 0x25f   :  { %2154 = vmatpush2.bf16.msra.mxu0 %v10179_v37  ;;  %2195 = vmatpush2.bf16.msra.mxu1 %v10180_v63  ;;  %v10187_v63 = vld [vmem:[#allocation50_spill] sm:$0xff] }
 0x260   :  { %2155 = vmatprep.subr.bf16.mxu0 %v10181_v23  ;;  %2196 = vmatprep.subr.bf16.mxu1 %v10080_v54  ;;  %v10188_v23 = vld [vmem:[#allocation109_spill] sm:$0xff]  ;;  %v10189_v54 = vld [vmem:[#allocation51_spill] sm:$0xff] }
 0x263   :  { %2156 = vmatpush2.bf16.msra.mxu0 %v10182_v49  ;;  %2197 = vmatpush2.bf16.msra.mxu1 %v10183_v12  ;;  %v10190_v49 = vld [vmem:[#allocation111_spill] sm:$0xff]  ;;  %v10191_v12 = vld [vmem:[#allocation52_spill] sm:$0xff] }
 0x264   :  { %2157 = vmatprep.subr.bf16.mxu0 %v10184_v46  ;;  %2198 = vmatprep.subr.bf16.mxu1 %v10084_v61  ;;  %v10192_v46 = vld [vmem:[#allocation113_spill] sm:$0xff] }
 0x265   :  { %v10193_v61 = vld [vmem:[#allocation53_spill] sm:$0xff] }
 0x267   :  { %2158 = vmatpush2.bf16.msra.mxu0 %v10185_v60  ;;  %2199 = vmatpush2.bf16.msra.mxu1 %v8137_v21  ;;  %v10194_v60 = vld [vmem:[#allocation115_spill] sm:$0xff]  ;;  %v10195_v21 = vld [vmem:[#allocation54_spill] sm:$0xff] }
 0x268   :  { %2159 = vmatprep.subr.bf16.mxu0 %v10186_v4  ;;  %2200 = vmatprep.subr.bf16.mxu1 %v10087_v28  ;;  %v10196_v4 = vld [vmem:[#allocation117_spill] sm:$0xff]  ;;  %v10197_v28 = vld [vmem:[#allocation56_spill] sm:$0xff] }
 0x26b   :  { %2160 = vmatpush2.bf16.msra.mxu0 %v10187_v63  ;;  %2201 = vmatpush2.bf16.msra.mxu1 %v10188_v23  ;;  %v10198_v63 = vld [vmem:[#allocation119_spill] sm:$0xff] }
 0x26c   :  { %2161 = vmatprep.subr.bf16.mxu0 %v10189_v54  ;;  %2202 = vmatprep.subr.bf16.mxu1 %v10190_v49 }
 0x26f   :  { %2162 = vmatpush2.bf16.msra.mxu0 %v10191_v12  ;;  %2203 = vmatpush2.bf16.msra.mxu1 %v10192_v46 }
 0x270   :  { %2163 = vmatprep.subr.bf16.mxu0 %v10193_v61  ;;  %2204 = vmatprep.subr.bf16.mxu1 %v10194_v60 }
 0x273   :  { %2164 = vmatpush2.bf16.msra.mxu0 %v10195_v21  ;;  %2205 = vmatpush2.bf16.msra.mxu1 %v10196_v4  ;;  %v10202_v4 = vld [vmem:[#allocation138_spill] sm:$0xff] }
 0x274   :  { %2215 = vmatprep.subr.bf16.mxu0 %v10197_v28  ;;  %2256 = vmatprep.subr.bf16.mxu1 %v10198_v63 }
 0x2b6   :  { %v1949_v23 = vpop.f32.mrf.mxu0  ;;  %v1990_v54 = vpop.f32.mrf.mxu1 }
 0x2b7   :  { %v2081_v61 = vadd.f32 %v1990_v54, %v10199_v30  ;;  %v2079_v60 = vadd.f32 %v1949_v23, %v10200_v15  ;;  %v10204_v15 = vld [vmem:[#allocation139_spill] sm:$0xff] }
 0x2b8   :  { %v1951_v37 = vpop.f32.mrf.mxu0  ;;  %v1992_v49 = vpop.f32.mrf.mxu1 }
 0x2b9   :  { %v2082_v21 = vadd.f32 %v1992_v49, %v10201_v35  ;;  %v2095_v56 = vmul.f32 0.5, %v2081_v61  ;;  %v2080_v58 = vadd.f32 %v1951_v37, %v10202_v4  ;;  %v2087_v28 = vmul.f32 0.5, %v2079_v60 }
 0x2ba   :  { %v1953_v19 = vpop.f32.mrf.mxu0  ;;  %v1994_v12 = vpop.f32.mrf.mxu1 }
 0x2bb   :  { %v2096_v40 = vmul.f32 0.5, %v2082_v21  ;;  %6735 = vtanh.f32 %v2095_v56  ;;  %v2088_v63 = vmul.f32 0.5, %v2080_v58 }
 0x2bc   :  { %v1954_v26 = vpop.f32.mrf.mxu0  ;;  %v1995_v46 = vpop.f32.mrf.mxu1  ;;  %6737 = vtanh.f32 %v2087_v28 }
 0x2bd   :  { %6739 = vtanh.f32 %v2096_v40  ;;  %v10203_v26 = vld [vmem:[#allocation137_spill] sm:$0xff] }
 0x2be   :  { %6741 = vtanh.f32 %v2088_v63 }
 0x2c8   :  { %v6736_v61 = vpop.eup %6735 }
 0x2c9   :  { %v6738_v58 = vpop.eup %6737  ;;  %v2099_v63 = vmul.f32 0.5, %v6736_v61 }
 0x2ca   :  { %v6740_v21 = vpop.eup %6739  ;;  %v2091_v40 = vmul.f32 0.5, %v6738_v58 }
 0x2cb   :  { %v6742_v28 = vpop.eup %6741 }
 0x2f6   :  { %v2031_v19 = vpop.f32.mrf.mxu0  ;;  %v2072_v12 = vpop.f32.mrf.mxu1 }
 0x2f7   :  { %v2083_v46 = vadd.f32 %v2031_v19, %v10203_v26  ;;  %v2085_v56 = vadd.f32 %v2072_v12, %v8540_v45  ;;  %v2100_v19 = vmul.f32 0.5, %v6740_v21 }
 0x2f8   :  { %v2033_v18 = vpop.f32.mrf.mxu0  ;;  %v2074_v54 = vpop.f32.mrf.mxu1 }
 0x2f9   :  { %6743 = vtanh.f32 %v2083_v46  ;;  %v2084_v23 = vadd.f32 %v2033_v18, %v10204_v15  ;;  %v2086_v60 = vadd.f32 %v2074_v54, %v8543_v3  ;;  %v2105_v30 = vmul.f32 0.5, %v2085_v56 }
 0x2fa   :  { %v2035_v35 = vpop.f32.mrf.mxu0  ;;  %v2076_v49 = vpop.f32.mrf.mxu1  ;;  %v2101_v46 = vadd.f32 0.5, %v2099_v63  ;;  %v2092_v18 = vmul.f32 0.5, %v6742_v28  ;;  %v2093_v15 = vadd.f32 0.5, %v2091_v40 }
 0x2fb   :  { %6745 = vtanh.f32 %v2084_v23  ;;  %v2106_v26 = vmul.f32 0.5, %v2086_v60  ;;  %v2102_v23 = vadd.f32 0.5, %v2100_v19 }
 0x2fc   :  { %v2036_v4 = vpop.f32.mrf.mxu0  ;;  %v2077_v37 = vpop.f32.mrf.mxu1  ;;  %6747 = vtanh.f32 %v2105_v30  ;;  %v2113_v49 = vmul.f32 %v2101_v46, %v8589_v47  ;;  %v2094_v12 = vadd.f32 0.5, %v2092_v18  ;;  %v10206_v18 = vld [vmem:[#allocation121_spill] sm:$0xff] }
 0x2fd   :  { %6749 = vtanh.f32 %v2106_v26  ;;  %v2114_v54 = vmul.f32 %v2102_v23, %v8591_v25  ;;  %v10205_v25 = vld [vmem:[#allocation120_spill] sm:$0xff] }
 0x2fe   :  { %v10209_v23 = vld [vmem:[#allocation124_spill] sm:$0xff] }
 0x306   :  { %v6744_v35 = vpop.eup %6743 }
 0x307   :  { %v2115_v45 = vmul.f32 %v6744_v35, %v2093_v15  ;;  %v10207_v15 = vld [vmem:[#allocation122_spill] sm:$0xff]  ;;  %v10208_v35 = vld [vmem:[#allocation100_spill] sm:$0xff] }
 0x308   :  { %v6746_v4 = vpop.eup %6745 }
 0x309   :  { %v8742_v3 = vadd.f32 %v2115_v45, %v2113_v49  ;;  %v2116_v61 = vmul.f32 %v6746_v4, %v2094_v12  ;;  %v6748_v56 = vpop.eup %6747  ;;  %v10210_v49 = vld [vmem:[#allocation102_spill] sm:$0xff]  ;;  %v10211_v45 = vld [vmem:[#allocation125_spill] sm:$0xff]  ;;  %v10212_v12 = vld [vmem:[#allocation104_spill] sm:$0xff] }
 0x30a   :  { %v6750_v58 = vpop.eup %6749  ;;  %v2109_v60 = vmul.f32 0.5, %v6748_v56  ;;  %v10213_v4 = vld [vmem:[#allocation126_spill] sm:$0xff]  ;;  %v10216_v56 = vld [vmem:[#allocation108_spill] sm:$0xff] }
 0x30b   :  { %6751 = vtanh.f32 %v8742_v3  ;;  %v8746_v37 = vadd.f32 %v2116_v61, %v2114_v54  ;;  %v2110_v21 = vmul.f32 0.5, %v6750_v58  ;;  %v10214_v54 = vld [vmem:[#allocation106_spill] sm:$0xff]  ;;  %v10215_v61 = vld [vmem:[#allocation127_spill] sm:$0xff]  ;;  %v10217_v58 = vld [vmem:[#allocation128_spill] sm:$0xff] }
 0x30c   :  { %v2111_v47 = vadd.f32 0.5, %v2109_v60  ;;  %v10218_v60 = vld [vmem:[#allocation110_spill] sm:$0xff] }
 0x30d   :  { %6753 = vtanh.f32 %v8746_v37  ;;  %v2112_v28 = vadd.f32 0.5, %v2110_v21  ;;  %v10219_v21 = vld [vmem:[#allocation129_spill] sm:$0xff] }
 0x318   :  { %v6752_v63 = vpop.eup %6751 }
 0x319   :  { %v2121_v30 = vmul.f32 %v6752_v63, %v2111_v47  ;;  %v10220_v63 = vld [vmem:[#allocation112_spill] sm:$0xff]  ;;  %v10221_v47 = vld [vmem:[#allocation130_spill] sm:$0xff] }
 0x31a   :  { %v6754_v40 = vpop.eup %6753 }
 0x31b   :  { %v2122_v19 = vmul.f32 %v6754_v40, %v2112_v28  ;;  %v8749_v46 = vpack.c.bf16 %v2121_v30, %v2121_v30  ;;  %v10222_v28 = vld [vmem:[#allocation114_spill] sm:$0xff]  ;;  %v10223_v40 = vld [vmem:[#allocation131_spill] sm:$0xff]  ;;  %v10224_v30 = vld [vmem:[#allocation116_spill] sm:$0xff] }
 0x31d   :  { %v2132_v26 = vpack.c.bf16 %v2122_v19, %v2122_v19  ;;  %v10225_v19 = vld [vmem:[#allocation132_spill] sm:$0xff] }
 0x31f   :  { %2165 = vmatprep.mubr.bf16.mxu0 %v2132_v26  ;;  %2206 = vmatprep.mubr.bf16.mxu1 %v2132_v26 }
 0x320   :  { %2166 = vmatmul.mubr.bf16.vlgmr.msra.gmra.mxu0 %v8749_v46  ;;  %2207 = vmatmul.mubr.bf16.vlgmr.msra.gmra.mxu1 %v8749_v46 }
 0x321   :  { %2216 = vmatpush1.bf16.msra.mxu0 %v10107_v10  ;;  %2257 = vmatpush1.bf16.msra.mxu1 %v8183_v44 }
 0x322   :  { %2247 = vmatprep.mubr.bf16.mxu0 %v2132_v26  ;;  %2288 = vmatprep.mubr.bf16.mxu1 %v2132_v26  ;;  %v10226_v26 = vld [vmem:[#allocation118_spill] sm:$0xff] }
 0x323   :  { %2217 = vmatprep.subr.bf16.mxu0 %v10108_v62  ;;  %2258 = vmatprep.subr.bf16.mxu1 %v8187_v59 }
 0x325   :  { %2218 = vmatpush1.bf16.msra.mxu0 %v10109_v36  ;;  %2259 = vmatpush1.bf16.msra.mxu1 %v8193_v29 }
 0x326   :  { %2219 = vmatprep.subr.bf16.mxu0 %v10110_v5  ;;  %2260 = vmatprep.subr.bf16.mxu1 %v8196_v27 }
 0x329   :  { %2220 = vmatpush1.bf16.msra.mxu0 %v10111_v43  ;;  %2261 = vmatpush1.bf16.msra.mxu1 %v8202_v7 }
 0x32a   :  { %2221 = vmatprep.subr.bf16.mxu0 %v10112_v11  ;;  %2262 = vmatprep.subr.bf16.mxu1 %v8205_v17 }
 0x32d   :  { %2222 = vmatpush1.bf16.msra.mxu0 %v10113_v38  ;;  %2263 = vmatpush1.bf16.msra.mxu1 %v8210_v34 }
 0x32e   :  { %2223 = vmatprep.subr.bf16.mxu0 %v10114_v55  ;;  %2264 = vmatprep.subr.bf16.mxu1 %v8213_v16 }
 0x331   :  { %2224 = vmatpush1.bf16.msra.mxu0 %v10115_v6  ;;  %2265 = vmatpush1.bf16.msra.mxu1 %v8218_v14 }
 0x332   :  { %2225 = vmatprep.subr.bf16.mxu0 %v10116_v20  ;;  %2266 = vmatprep.subr.bf16.mxu1 %v8221_v24 }
 0x335   :  { %2226 = vmatpush1.bf16.msra.mxu0 %v10117_v9  ;;  %2267 = vmatpush1.bf16.msra.mxu1 %v8226_v22 }
 0x336   :  { %2227 = vmatprep.subr.bf16.mxu0 %v10118_v0  ;;  %2268 = vmatprep.subr.bf16.mxu1 %v8229_v33 }
 0x339   :  { %2228 = vmatpush1.bf16.msra.mxu0 %v10119_v1  ;;  %2269 = vmatpush1.bf16.msra.mxu1 %v8234_v31 }
 0x33a   :  { %2229 = vmatprep.subr.bf16.mxu0 %v10120_v51  ;;  %2270 = vmatprep.subr.bf16.mxu1 %v8237_v41 }
 0x33d   :  { %2230 = vmatpush1.bf16.msra.mxu0 %v10121_v32  ;;  %2271 = vmatpush1.bf16.msra.mxu1 %v8242_v39 }
 0x33e   :  { %2231 = vmatprep.subr.bf16.mxu0 %v10122_v13  ;;  %2272 = vmatprep.subr.bf16.mxu1 %v8245_v50 }
 0x341   :  { %2232 = vmatpush2.bf16.msra.mxu0 %v10123_v52  ;;  %2273 = vmatpush2.bf16.msra.mxu1 %v8250_v48 }
 0x342   :  { %2233 = vmatprep.subr.bf16.mxu0 %v10124_v57  ;;  %2274 = vmatprep.subr.bf16.mxu1 %v10205_v25 }
 0x345   :  { %2234 = vmatpush2.bf16.msra.mxu0 %v10125_v42  ;;  %2275 = vmatpush2.bf16.msra.mxu1 %v10206_v18 }
 0x346   :  { %2235 = vmatprep.subr.bf16.mxu0 %v10126_v8  ;;  %2276 = vmatprep.subr.bf16.mxu1 %v10207_v15 }
 0x349   :  { %2236 = vmatpush2.bf16.msra.mxu0 %v10127_v53  ;;  %2277 = vmatpush2.bf16.msra.mxu1 %v8266_v2 }
 0x34a   :  { %2237 = vmatprep.subr.bf16.mxu0 %v10208_v35  ;;  %2278 = vmatprep.subr.bf16.mxu1 %v10209_v23 }
 0x34d   :  { %2238 = vmatpush2.bf16.msra.mxu0 %v10210_v49  ;;  %2279 = vmatpush2.bf16.msra.mxu1 %v10211_v45  ;;  %v10296_v45 = vld [vmem:[#allocation167_spill] sm:$0xff] }
 0x34e   :  { %2239 = vmatprep.subr.bf16.mxu0 %v10212_v12  ;;  %2280 = vmatprep.subr.bf16.mxu1 %v10213_v4  ;;  %v10294_v4 = vld [vmem:[#allocation166_spill] sm:$0xff]  ;;  %v10295_v12 = vld [vmem:[#allocation140_spill] sm:$0xff] }
 0x351   :  { %2240 = vmatpush2.bf16.msra.mxu0 %v10214_v54  ;;  %2281 = vmatpush2.bf16.msra.mxu1 %v10215_v61 }
 0x352   :  { %2241 = vmatprep.subr.bf16.mxu0 %v10216_v56  ;;  %2282 = vmatprep.subr.bf16.mxu1 %v10217_v58  ;;  %v10227_v56 = vld [vmem:[#allocation133_spill] sm:$0xff]  ;;  %v10228_v58 = vld [vmem:[#allocation23_spill] sm:$0xff] }
 0x355   :  { %2242 = vmatpush2.bf16.msra.mxu0 %v10218_v60  ;;  %2283 = vmatpush2.bf16.msra.mxu1 %v10219_v21  ;;  %v10229_v60 = vld [vmem:[#allocation55_spill] sm:$0xff] }
 0x356   :  { %2243 = vmatprep.subr.bf16.mxu0 %v10220_v63  ;;  %2284 = vmatprep.subr.bf16.mxu1 %v10221_v47  ;;  %v10230_v47 = vld [vmem:[#allocation24_spill] sm:$0xff]  ;;  %v10239_v63 = vld [vmem:[#allocation65_spill] sm:$0xff] }
 0x359   :  { %2244 = vmatpush2.bf16.msra.mxu0 %v10222_v28  ;;  %2285 = vmatpush2.bf16.msra.mxu1 %v10223_v40  ;;  %v10231_v28 = vld [vmem:[#allocation57_spill] sm:$0xff] }
 0x35a   :  { %2245 = vmatprep.subr.bf16.mxu0 %v10224_v30  ;;  %2286 = vmatprep.subr.bf16.mxu1 %v10225_v19  ;;  %v10232_v40 = vld [vmem:[#allocation25_spill] sm:$0xff]  ;;  %v10233_v30 = vld [vmem:[#allocation59_spill] sm:$0xff]  ;;  %v10234_v19 = vld [vmem:[#allocation26_spill] sm:$0xff] }
 0x35d   :  { %2246 = vmatpush2.bf16.msra.mxu0 %v10226_v26  ;;  %2287 = vmatpush2.bf16.msra.mxu1 %v10227_v56  ;;  %v10235_v26 = vld [vmem:[#allocation61_spill] sm:$0xff]  ;;  %v10236_v56 = vld [vmem:[#allocation27_spill] sm:$0xff] }
 0x35e   :  { %2351 = vmatprep.subr.bf16.mxu0 %v10228_v58  ;;  %2392 = vmatprep.subr.bf16.mxu1 %v10229_v60  ;;  %v10237_v58 = vld [vmem:[#allocation63_spill] sm:$0xff]  ;;  %v10238_v60 = vld [vmem:[#allocation28_spill] sm:$0xff] }
 0x360   :  { %2248 = vmatmul.mubr.bf16.vlgmr.msra.gmra.mxu0 %v8749_v46  ;;  %2289 = vmatmul.mubr.bf16.vlgmr.msra.gmra.mxu1 %v8749_v46  ;;  %v10240_v46 = vld [vmem:[#allocation29_spill] sm:$0xff] }
 0x361   :  { %2352 = vmatpush1.bf16.msra.mxu0 %v10230_v47  ;;  %2393 = vmatpush1.bf16.msra.mxu1 %v10231_v28  ;;  %v10241_v47 = vld [vmem:[#allocation67_spill] sm:$0xff]  ;;  %v10242_v28 = vld [vmem:[#allocation30_spill] sm:$0xff] }
 0x362   :  { %2353 = vmatprep.subr.bf16.mxu0 %v10232_v40  ;;  %2394 = vmatprep.subr.bf16.mxu1 %v10233_v30  ;;  %v10243_v40 = vld [vmem:[#allocation69_spill] sm:$0xff]  ;;  %v10244_v30 = vld [vmem:[#allocation31_spill] sm:$0xff] }
 0x365   :  { %2354 = vmatpush1.bf16.msra.mxu0 %v10234_v19  ;;  %2395 = vmatpush1.bf16.msra.mxu1 %v10235_v26  ;;  %v10245_v19 = vld [vmem:[#allocation71_spill] sm:$0xff]  ;;  %v10246_v26 = vld [vmem:[#allocation32_spill] sm:$0xff] }
 0x366   :  { %2355 = vmatprep.subr.bf16.mxu0 %v10236_v56  ;;  %2396 = vmatprep.subr.bf16.mxu1 %v10237_v58  ;;  %v10247_v56 = vld [vmem:[#allocation73_spill] sm:$0xff] }
 0x367   :  { %v10248_v58 = vld [vmem:[#allocation33_spill] sm:$0xff] }
 0x369   :  { %2356 = vmatpush1.bf16.msra.mxu0 %v10238_v60  ;;  %2397 = vmatpush1.bf16.msra.mxu1 %v10239_v63  ;;  %v10249_v60 = vld [vmem:[#allocation75_spill] sm:$0xff]  ;;  %v10250_v63 = vld [vmem:[#allocation34_spill] sm:$0xff] }
 0x36a   :  { %2357 = vmatprep.subr.bf16.mxu0 %v10240_v46  ;;  %2398 = vmatprep.subr.bf16.mxu1 %v10241_v47  ;;  %v10251_v46 = vld [vmem:[#allocation77_spill] sm:$0xff]  ;;  %v10252_v47 = vld [vmem:[#allocation35_spill] sm:$0xff] }
 0x36d   :  { %2358 = vmatpush1.bf16.msra.mxu0 %v10242_v28  ;;  %2399 = vmatpush1.bf16.msra.mxu1 %v10243_v40  ;;  %v10253_v28 = vld [vmem:[#allocation79_spill] sm:$0xff]  ;;  %v10254_v40 = vld [vmem:[#allocation36_spill] sm:$0xff] }
 0x36e   :  { %2359 = vmatprep.subr.bf16.mxu0 %v10244_v30  ;;  %2400 = vmatprep.subr.bf16.mxu1 %v10245_v19  ;;  %v10255_v30 = vld [vmem:[#allocation81_spill] sm:$0xff] }
 0x36f   :  { %v10256_v19 = vld [vmem:[#allocation37_spill] sm:$0xff] }
 0x371   :  { %2360 = vmatpush1.bf16.msra.mxu0 %v10246_v26  ;;  %2401 = vmatpush1.bf16.msra.mxu1 %v10247_v56  ;;  %v10257_v26 = vld [vmem:[#allocation83_spill] sm:$0xff]  ;;  %v10258_v56 = vld [vmem:[#allocation38_spill] sm:$0xff] }
 0x372   :  { %2361 = vmatprep.subr.bf16.mxu0 %v10248_v58  ;;  %2402 = vmatprep.subr.bf16.mxu1 %v10249_v60  ;;  %v10259_v58 = vld [vmem:[#allocation85_spill] sm:$0xff]  ;;  %v10260_v60 = vld [vmem:[#allocation39_spill] sm:$0xff] }
 0x375   :  { %2362 = vmatpush1.bf16.msra.mxu0 %v10250_v63  ;;  %2403 = vmatpush1.bf16.msra.mxu1 %v10251_v46  ;;  %v10261_v63 = vld [vmem:[#allocation87_spill] sm:$0xff]  ;;  %v10262_v46 = vld [vmem:[#allocation40_spill] sm:$0xff] }
 0x376   :  { %2363 = vmatprep.subr.bf16.mxu0 %v10252_v47  ;;  %2404 = vmatprep.subr.bf16.mxu1 %v10253_v28  ;;  %v10263_v47 = vld [vmem:[#allocation89_spill] sm:$0xff] }
 0x377   :  { %v10264_v28 = vld [vmem:[#allocation41_spill] sm:$0xff] }
 0x379   :  { %2364 = vmatpush1.bf16.msra.mxu0 %v10254_v40  ;;  %2405 = vmatpush1.bf16.msra.mxu1 %v10255_v30  ;;  %v10265_v40 = vld [vmem:[#allocation91_spill] sm:$0xff]  ;;  %v10266_v30 = vld [vmem:[#allocation42_spill] sm:$0xff] }
 0x37a   :  { %2365 = vmatprep.subr.bf16.mxu0 %v10256_v19  ;;  %2406 = vmatprep.subr.bf16.mxu1 %v10257_v26  ;;  %v10267_v19 = vld [vmem:[#allocation93_spill] sm:$0xff]  ;;  %v10268_v26 = vld [vmem:[#allocation43_spill] sm:$0xff] }
 0x37d   :  { %2366 = vmatpush1.bf16.msra.mxu0 %v10258_v56  ;;  %2407 = vmatpush1.bf16.msra.mxu1 %v10259_v58  ;;  %v10269_v56 = vld [vmem:[#allocation95_spill] sm:$0xff]  ;;  %v10270_v58 = vld [vmem:[#allocation44_spill] sm:$0xff] }
 0x37e   :  { %2367 = vmatprep.subr.bf16.mxu0 %v10260_v60  ;;  %2408 = vmatprep.subr.bf16.mxu1 %v10261_v63  ;;  %v10271_v60 = vld [vmem:[#allocation97_spill] sm:$0xff] }
 0x37f   :  { %v10272_v63 = vld [vmem:[#allocation45_spill] sm:$0xff] }
 0x381   :  { %2368 = vmatpush2.bf16.msra.mxu0 %v10262_v46  ;;  %2409 = vmatpush2.bf16.msra.mxu1 %v10263_v47  ;;  %v10273_v46 = vld [vmem:[#allocation99_spill] sm:$0xff]  ;;  %v10274_v47 = vld [vmem:[#allocation46_spill] sm:$0xff] }
 0x382   :  { %2369 = vmatprep.subr.bf16.mxu0 %v10264_v28  ;;  %2410 = vmatprep.subr.bf16.mxu1 %v10265_v40  ;;  %v10275_v28 = vld [vmem:[#allocation101_spill] sm:$0xff]  ;;  %v10276_v40 = vld [vmem:[#allocation47_spill] sm:$0xff] }
 0x385   :  { %2370 = vmatpush2.bf16.msra.mxu0 %v10266_v30  ;;  %2411 = vmatpush2.bf16.msra.mxu1 %v10267_v19  ;;  %v10277_v30 = vld [vmem:[#allocation103_spill] sm:$0xff]  ;;  %v10278_v19 = vld [vmem:[#allocation48_spill] sm:$0xff] }
 0x386   :  { %2371 = vmatprep.subr.bf16.mxu0 %v10268_v26  ;;  %2412 = vmatprep.subr.bf16.mxu1 %v10269_v56  ;;  %v10279_v26 = vld [vmem:[#allocation105_spill] sm:$0xff] }
 0x387   :  { %v10280_v56 = vld [vmem:[#allocation49_spill] sm:$0xff] }
 0x389   :  { %2372 = vmatpush2.bf16.msra.mxu0 %v10270_v58  ;;  %2413 = vmatpush2.bf16.msra.mxu1 %v10271_v60  ;;  %v10281_v58 = vld [vmem:[#allocation107_spill] sm:$0xff]  ;;  %v10282_v60 = vld [vmem:[#allocation50_spill] sm:$0xff] }
 0x38a   :  { %2373 = vmatprep.subr.bf16.mxu0 %v10272_v63  ;;  %2414 = vmatprep.subr.bf16.mxu1 %v10273_v46  ;;  %v10283_v63 = vld [vmem:[#allocation109_spill] sm:$0xff]  ;;  %v10284_v46 = vld [vmem:[#allocation51_spill] sm:$0xff] }
 0x38d   :  { %2374 = vmatpush2.bf16.msra.mxu0 %v10274_v47  ;;  %2415 = vmatpush2.bf16.msra.mxu1 %v10275_v28  ;;  %v10285_v47 = vld [vmem:[#allocation111_spill] sm:$0xff]  ;;  %v10286_v28 = vld [vmem:[#allocation52_spill] sm:$0xff] }
 0x38e   :  { %2375 = vmatprep.subr.bf16.mxu0 %v10276_v40  ;;  %2416 = vmatprep.subr.bf16.mxu1 %v10277_v30  ;;  %v10287_v40 = vld [vmem:[#allocation113_spill] sm:$0xff] }
 0x38f   :  { %v10288_v30 = vld [vmem:[#allocation53_spill] sm:$0xff] }
 0x391   :  { %2376 = vmatpush2.bf16.msra.mxu0 %v10278_v19  ;;  %2417 = vmatpush2.bf16.msra.mxu1 %v10279_v26  ;;  %v10289_v19 = vld [vmem:[#allocation115_spill] sm:$0xff]  ;;  %v10290_v26 = vld [vmem:[#allocation54_spill] sm:$0xff] }
 0x392   :  { %2377 = vmatprep.subr.bf16.mxu0 %v10280_v56  ;;  %2418 = vmatprep.subr.bf16.mxu1 %v10281_v58  ;;  %v10291_v56 = vld [vmem:[#allocation117_spill] sm:$0xff]  ;;  %v10292_v58 = vld [vmem:[#allocation56_spill] sm:$0xff] }
 0x395   :  { %2378 = vmatpush2.bf16.msra.mxu0 %v10282_v60  ;;  %2419 = vmatpush2.bf16.msra.mxu1 %v10283_v63  ;;  %v10293_v60 = vld [vmem:[#allocation119_spill] sm:$0xff] }
 0x396   :  { %2379 = vmatprep.subr.bf16.mxu0 %v10284_v46  ;;  %2420 = vmatprep.subr.bf16.mxu1 %v10285_v47 }
 0x399   :  { %2380 = vmatpush2.bf16.msra.mxu0 %v10286_v28  ;;  %2421 = vmatpush2.bf16.msra.mxu1 %v10287_v40 }
 0x39a   :  { %2381 = vmatprep.subr.bf16.mxu0 %v10288_v30  ;;  %2422 = vmatprep.subr.bf16.mxu1 %v10289_v19 }
 0x39d   :  { %2382 = vmatpush2.bf16.msra.mxu0 %v10290_v26  ;;  %2423 = vmatpush2.bf16.msra.mxu1 %v10291_v56  ;;  %v10297_v56 = vld [vmem:[#allocation141_spill] sm:$0xff] }
 0x39e   :  { %2433 = vmatprep.subr.bf16.mxu0 %v10292_v58  ;;  %2474 = vmatprep.subr.bf16.mxu1 %v10293_v60 }
 0x3e0   :  { %v2167_v63 = vpop.f32.mrf.mxu0  ;;  %v2208_v46 = vpop.f32.mrf.mxu1 }
 0x3e1   :  { %v2299_v30 = vadd.f32 %v2208_v46, %v10294_v4  ;;  %v2297_v19 = vadd.f32 %v2167_v63, %v10295_v12  ;;  %v10299_v12 = vld [vmem:[#allocation144_spill] sm:$0xff] }
 0x3e2   :  { %v2169_v21 = vpop.f32.mrf.mxu0  ;;  %v2210_v47 = vpop.f32.mrf.mxu1 }
 0x3e3   :  { %v2300_v26 = vadd.f32 %v2210_v47, %v10296_v45  ;;  %v2313_v49 = vmul.f32 0.5, %v2299_v30  ;;  %v2298_v23 = vadd.f32 %v2169_v21, %v10297_v56  ;;  %v2305_v58 = vmul.f32 0.5, %v2297_v19 }
 0x3e4   :  { %v2171_v61 = vpop.f32.mrf.mxu0  ;;  %v2212_v28 = vpop.f32.mrf.mxu1 }
 0x3e5   :  { %v2314_v35 = vmul.f32 0.5, %v2300_v26  ;;  %6755 = vtanh.f32 %v2313_v49  ;;  %v2306_v60 = vmul.f32 0.5, %v2298_v23  ;;  %v10300_v49 = vld [vmem:[#allocation178_spill] sm:$0xff] }
 0x3e6   :  { %v2172_v54 = vpop.f32.mrf.mxu0  ;;  %v2213_v40 = vpop.f32.mrf.mxu1  ;;  %6757 = vtanh.f32 %v2305_v58 }
 0x3e7   :  { %6759 = vtanh.f32 %v2314_v35  ;;  %v10298_v54 = vld [vmem:[#allocation142_spill] sm:$0xff]  ;;  %v10301_v35 = vld [vmem:[#allocation179_spill] sm:$0xff] }
 0x3e8   :  { %6761 = vtanh.f32 %v2306_v60 }
 0x3f2   :  { %v6756_v30 = vpop.eup %6755 }
 0x3f3   :  { %v6758_v58 = vpop.eup %6757  ;;  %v2317_v26 = vmul.f32 0.5, %v6756_v30 }
 0x3f4   :  { %v6760_v19 = vpop.eup %6759 }
 0x3f5   :  { %v6762_v46 = vpop.eup %6761  ;;  %v2318_v53 = vmul.f32 0.5, %v6760_v19  ;;  %v2319_v15 = vadd.f32 0.5, %v2317_v26 }
 0x420   :  { %v2249_v61 = vpop.f32.mrf.mxu0  ;;  %v2290_v28 = vpop.f32.mrf.mxu1 }
 0x421   :  { %v2301_v40 = vadd.f32 %v2249_v61, %v10298_v54  ;;  %v2303_v23 = vadd.f32 %v2290_v28, %v10300_v49  ;;  %v2309_v61 = vmul.f32 0.5, %v6758_v58 }
 0x422   :  { %v2251_v2 = vpop.f32.mrf.mxu0  ;;  %v2292_v4 = vpop.f32.mrf.mxu1 }
 0x423   :  { %6763 = vtanh.f32 %v2301_v40  ;;  %v2302_v63 = vadd.f32 %v2251_v2, %v10299_v12  ;;  %v2304_v60 = vadd.f32 %v2292_v4, %v10301_v35  ;;  %v2323_v54 = vmul.f32 0.5, %v2303_v23 }
 0x424   :  { %v2253_v45 = vpop.f32.mrf.mxu0  ;;  %v2294_v47 = vpop.f32.mrf.mxu1  ;;  %v2310_v2 = vmul.f32 0.5, %v6762_v46  ;;  %v2311_v12 = vadd.f32 0.5, %v2309_v61 }
 0x425   :  { %6765 = vtanh.f32 %v2302_v63  ;;  %v2324_v40 = vmul.f32 0.5, %v2304_v60  ;;  %v2320_v63 = vadd.f32 0.5, %v2318_v53  ;;  %v2331_v47 = vmul.f32 %v2319_v15, %v8742_v3 }
 0x426   :  { %v2254_v56 = vpop.f32.mrf.mxu0  ;;  %v2295_v21 = vpop.f32.mrf.mxu1  ;;  %6767 = vtanh.f32 %v2323_v54 }
 0x427   :  { %6769 = vtanh.f32 %v2324_v40  ;;  %v2312_v56 = vadd.f32 0.5, %v2310_v2  ;;  %v2332_v30 = vmul.f32 %v2320_v63, %v8746_v37  ;;  %v10302_v37 = vld [vmem:[#allocation122_spill] sm:$0xff]  ;;  %v10306_v63 = vld [vmem:[#allocation124_spill] sm:$0xff] }
 0x428   :  { %v10303_v2 = vld [vmem:[#allocation98_spill] sm:$0xff] }
 0x430   :  { %v6764_v45 = vpop.eup %6763 }
 0x431   :  { %v2333_v28 = vmul.f32 %v6764_v45, %v2311_v12  ;;  %v10304_v12 = vld [vmem:[#allocation123_spill] sm:$0xff]  ;;  %v10305_v45 = vld [vmem:[#allocation100_spill] sm:$0xff] }
 0x432   :  { %v6766_v21 = vpop.eup %6765 }
 0x433   :  { %v8892_v4 = vadd.f32 %v2333_v28, %v2331_v47  ;;  %v2334_v49 = vmul.f32 %v6766_v21, %v2312_v56  ;;  %v6768_v58 = vpop.eup %6767  ;;  %v10307_v47 = vld [vmem:[#allocation102_spill] sm:$0xff]  ;;  %v10308_v28 = vld [vmem:[#allocation125_spill] sm:$0xff]  ;;  %v10309_v56 = vld [vmem:[#allocation104_spill] sm:$0xff] }
 0x434   :  { %v6770_v35 = vpop.eup %6769  ;;  %v2327_v53 = vmul.f32 0.5, %v6768_v58  ;;  %v10310_v21 = vld [vmem:[#allocation126_spill] sm:$0xff]  ;;  %v10313_v58 = vld [vmem:[#allocation108_spill] sm:$0xff] }
 0x435   :  { %6771 = vtanh.f32 %v8892_v4  ;;  %v8896_v23 = vadd.f32 %v2334_v49, %v2332_v30  ;;  %v2328_v60 = vmul.f32 0.5, %v6770_v35  ;;  %v10311_v30 = vld [vmem:[#allocation106_spill] sm:$0xff]  ;;  %v10312_v49 = vld [vmem:[#allocation127_spill] sm:$0xff]  ;;  %v10314_v35 = vld [vmem:[#allocation128_spill] sm:$0xff] }
 0x436   :  { %v2329_v3 = vadd.f32 0.5, %v2327_v53  ;;  %v10315_v53 = vld [vmem:[#allocation110_spill] sm:$0xff] }
 0x437   :  { %6773 = vtanh.f32 %v8896_v23  ;;  %v2330_v15 = vadd.f32 0.5, %v2328_v60  ;;  %v10316_v60 = vld [vmem:[#allocation129_spill] sm:$0xff] }
 0x442   :  { %v6772_v19 = vpop.eup %6771 }
 0x443   :  { %v2339_v46 = vmul.f32 %v6772_v19, %v2329_v3  ;;  %v10317_v19 = vld [vmem:[#allocation112_spill] sm:$0xff]  ;;  %v10318_v3 = vld [vmem:[#allocation130_spill] sm:$0xff] }
 0x444   :  { %v6774_v26 = vpop.eup %6773 }
 0x445   :  { %v2340_v61 = vmul.f32 %v6774_v26, %v2330_v15  ;;  %v8899_v40 = vpack.c.bf16 %v2339_v46, %v2339_v46  ;;  %v10319_v15 = vld [vmem:[#allocation114_spill] sm:$0xff]  ;;  %v10320_v26 = vld [vmem:[#allocation131_spill] sm:$0xff]  ;;  %v10321_v46 = vld [vmem:[#allocation116_spill] sm:$0xff] }
 0x447   :  { %v2350_v54 = vpack.c.bf16 %v2340_v61, %v2340_v61  ;;  %v10322_v61 = vld [vmem:[#allocation132_spill] sm:$0xff] }
 0x449   :  { %2383 = vmatprep.mubr.bf16.mxu0 %v2350_v54  ;;  %2424 = vmatprep.mubr.bf16.mxu1 %v2350_v54 }
 0x44a   :  { %2384 = vmatmul.mubr.bf16.vlgmr.msra.gmra.mxu0 %v8899_v40  ;;  %2425 = vmatmul.mubr.bf16.vlgmr.msra.gmra.mxu1 %v8899_v40 }
 0x44b   :  { %2434 = vmatpush1.bf16.msra.mxu0 %v10107_v10  ;;  %2475 = vmatpush1.bf16.msra.mxu1 %v8183_v44 }
 0x44c   :  { %2465 = vmatprep.mubr.bf16.mxu0 %v2350_v54  ;;  %2506 = vmatprep.mubr.bf16.mxu1 %v2350_v54  ;;  %v10323_v54 = vld [vmem:[#allocation118_spill] sm:$0xff] }
 0x44d   :  { %2435 = vmatprep.subr.bf16.mxu0 %v10108_v62  ;;  %2476 = vmatprep.subr.bf16.mxu1 %v8187_v59 }
 0x44f   :  { %2436 = vmatpush1.bf16.msra.mxu0 %v10109_v36  ;;  %2477 = vmatpush1.bf16.msra.mxu1 %v8193_v29 }
 0x450   :  { %2437 = vmatprep.subr.bf16.mxu0 %v10110_v5  ;;  %2478 = vmatprep.subr.bf16.mxu1 %v8196_v27 }
 0x453   :  { %2438 = vmatpush1.bf16.msra.mxu0 %v10111_v43  ;;  %2479 = vmatpush1.bf16.msra.mxu1 %v8202_v7 }
 0x454   :  { %2439 = vmatprep.subr.bf16.mxu0 %v10112_v11  ;;  %2480 = vmatprep.subr.bf16.mxu1 %v8205_v17 }
 0x457   :  { %2440 = vmatpush1.bf16.msra.mxu0 %v10113_v38  ;;  %2481 = vmatpush1.bf16.msra.mxu1 %v8210_v34 }
 0x458   :  { %2441 = vmatprep.subr.bf16.mxu0 %v10114_v55  ;;  %2482 = vmatprep.subr.bf16.mxu1 %v8213_v16 }
 0x45b   :  { %2442 = vmatpush1.bf16.msra.mxu0 %v10115_v6  ;;  %2483 = vmatpush1.bf16.msra.mxu1 %v8218_v14 }
 0x45c   :  { %2443 = vmatprep.subr.bf16.mxu0 %v10116_v20  ;;  %2484 = vmatprep.subr.bf16.mxu1 %v8221_v24 }
 0x45f   :  { %2444 = vmatpush1.bf16.msra.mxu0 %v10117_v9  ;;  %2485 = vmatpush1.bf16.msra.mxu1 %v8226_v22 }
 0x460   :  { %2445 = vmatprep.subr.bf16.mxu0 %v10118_v0  ;;  %2486 = vmatprep.subr.bf16.mxu1 %v8229_v33 }
 0x463   :  { %2446 = vmatpush1.bf16.msra.mxu0 %v10119_v1  ;;  %2487 = vmatpush1.bf16.msra.mxu1 %v8234_v31 }
 0x464   :  { %2447 = vmatprep.subr.bf16.mxu0 %v10120_v51  ;;  %2488 = vmatprep.subr.bf16.mxu1 %v8237_v41 }
 0x467   :  { %2448 = vmatpush1.bf16.msra.mxu0 %v10121_v32  ;;  %2489 = vmatpush1.bf16.msra.mxu1 %v8242_v39 }
 0x468   :  { %2449 = vmatprep.subr.bf16.mxu0 %v10122_v13  ;;  %2490 = vmatprep.subr.bf16.mxu1 %v8245_v50 }
 0x46b   :  { %2450 = vmatpush2.bf16.msra.mxu0 %v10123_v52  ;;  %2491 = vmatpush2.bf16.msra.mxu1 %v8250_v48 }
 0x46c   :  { %2451 = vmatprep.subr.bf16.mxu0 %v10124_v57  ;;  %2492 = vmatprep.subr.bf16.mxu1 %v10205_v25 }
 0x46f   :  { %2452 = vmatpush2.bf16.msra.mxu0 %v10125_v42  ;;  %2493 = vmatpush2.bf16.msra.mxu1 %v10206_v18 }
 0x470   :  { %2453 = vmatprep.subr.bf16.mxu0 %v10126_v8  ;;  %2494 = vmatprep.subr.bf16.mxu1 %v10302_v37 }
 0x473   :  { %2454 = vmatpush2.bf16.msra.mxu0 %v10303_v2  ;;  %2495 = vmatpush2.bf16.msra.mxu1 %v10304_v12 }
 0x474   :  { %2455 = vmatprep.subr.bf16.mxu0 %v10305_v45  ;;  %2496 = vmatprep.subr.bf16.mxu1 %v10306_v63 }
 0x477   :  { %2456 = vmatpush2.bf16.msra.mxu0 %v10307_v47  ;;  %2497 = vmatpush2.bf16.msra.mxu1 %v10308_v28  ;;  %v10393_v28 = vld [vmem:[#allocation169_spill] sm:$0xff] }
 0x478   :  { %2457 = vmatprep.subr.bf16.mxu0 %v10309_v56  ;;  %2498 = vmatprep.subr.bf16.mxu1 %v10310_v21  ;;  %v10391_v21 = vld [vmem:[#allocation168_spill] sm:$0xff]  ;;  %v10392_v56 = vld [vmem:[#allocation143_spill] sm:$0xff] }
 0x47b   :  { %2458 = vmatpush2.bf16.msra.mxu0 %v10311_v30  ;;  %2499 = vmatpush2.bf16.msra.mxu1 %v10312_v49 }
 0x47c   :  { %2459 = vmatprep.subr.bf16.mxu0 %v10313_v58  ;;  %2500 = vmatprep.subr.bf16.mxu1 %v10314_v35  ;;  %v10324_v58 = vld [vmem:[#allocation133_spill] sm:$0xff]  ;;  %v10325_v35 = vld [vmem:[#allocation23_spill] sm:$0xff] }
 0x47f   :  { %2460 = vmatpush2.bf16.msra.mxu0 %v10315_v53  ;;  %2501 = vmatpush2.bf16.msra.mxu1 %v10316_v60  ;;  %v10326_v53 = vld [vmem:[#allocation55_spill] sm:$0xff] }
 0x480   :  { %2461 = vmatprep.subr.bf16.mxu0 %v10317_v19  ;;  %2502 = vmatprep.subr.bf16.mxu1 %v10318_v3  ;;  %v10327_v3 = vld [vmem:[#allocation24_spill] sm:$0xff]  ;;  %v10336_v19 = vld [vmem:[#allocation65_spill] sm:$0xff] }
 0x483   :  { %2462 = vmatpush2.bf16.msra.mxu0 %v10319_v15  ;;  %2503 = vmatpush2.bf16.msra.mxu1 %v10320_v26  ;;  %v10328_v15 = vld [vmem:[#allocation57_spill] sm:$0xff] }
 0x484   :  { %2463 = vmatprep.subr.bf16.mxu0 %v10321_v46  ;;  %2504 = vmatprep.subr.bf16.mxu1 %v10322_v61  ;;  %v10329_v26 = vld [vmem:[#allocation25_spill] sm:$0xff]  ;;  %v10330_v46 = vld [vmem:[#allocation59_spill] sm:$0xff]  ;;  %v10331_v61 = vld [vmem:[#allocation26_spill] sm:$0xff] }
 0x487   :  { %2464 = vmatpush2.bf16.msra.mxu0 %v10323_v54  ;;  %2505 = vmatpush2.bf16.msra.mxu1 %v10324_v58  ;;  %v10332_v54 = vld [vmem:[#allocation61_spill] sm:$0xff]  ;;  %v10333_v58 = vld [vmem:[#allocation27_spill] sm:$0xff] }
 0x488   :  { %2569 = vmatprep.subr.bf16.mxu0 %v10325_v35  ;;  %2610 = vmatprep.subr.bf16.mxu1 %v10326_v53  ;;  %v10334_v35 = vld [vmem:[#allocation63_spill] sm:$0xff]  ;;  %v10335_v53 = vld [vmem:[#allocation28_spill] sm:$0xff] }
 0x48a   :  { %2466 = vmatmul.mubr.bf16.vlgmr.msra.gmra.mxu0 %v8899_v40  ;;  %2507 = vmatmul.mubr.bf16.vlgmr.msra.gmra.mxu1 %v8899_v40  ;;  %v10337_v40 = vld [vmem:[#allocation29_spill] sm:$0xff] }
 0x48b   :  { %2570 = vmatpush1.bf16.msra.mxu0 %v10327_v3  ;;  %2611 = vmatpush1.bf16.msra.mxu1 %v10328_v15  ;;  %v10338_v3 = vld [vmem:[#allocation67_spill] sm:$0xff]  ;;  %v10339_v15 = vld [vmem:[#allocation30_spill] sm:$0xff] }
 0x48c   :  { %2571 = vmatprep.subr.bf16.mxu0 %v10329_v26  ;;  %2612 = vmatprep.subr.bf16.mxu1 %v10330_v46  ;;  %v10340_v26 = vld [vmem:[#allocation69_spill] sm:$0xff]  ;;  %v10341_v46 = vld [vmem:[#allocation31_spill] sm:$0xff] }
 0x48f   :  { %2572 = vmatpush1.bf16.msra.mxu0 %v10331_v61  ;;  %2613 = vmatpush1.bf16.msra.mxu1 %v10332_v54  ;;  %v10342_v61 = vld [vmem:[#allocation71_spill] sm:$0xff]  ;;  %v10343_v54 = vld [vmem:[#allocation32_spill] sm:$0xff] }
 0x490   :  { %2573 = vmatprep.subr.bf16.mxu0 %v10333_v58  ;;  %2614 = vmatprep.subr.bf16.mxu1 %v10334_v35  ;;  %v10344_v58 = vld [vmem:[#allocation73_spill] sm:$0xff] }
 0x491   :  { %v10345_v35 = vld [vmem:[#allocation33_spill] sm:$0xff] }
 0x493   :  { %2574 = vmatpush1.bf16.msra.mxu0 %v10335_v53  ;;  %2615 = vmatpush1.bf16.msra.mxu1 %v10336_v19  ;;  %v10346_v53 = vld [vmem:[#allocation75_spill] sm:$0xff]  ;;  %v10347_v19 = vld [vmem:[#allocation34_spill] sm:$0xff] }
 0x494   :  { %2575 = vmatprep.subr.bf16.mxu0 %v10337_v40  ;;  %2616 = vmatprep.subr.bf16.mxu1 %v10338_v3  ;;  %v10348_v40 = vld [vmem:[#allocation77_spill] sm:$0xff]  ;;  %v10349_v3 = vld [vmem:[#allocation35_spill] sm:$0xff] }
 0x497   :  { %2576 = vmatpush1.bf16.msra.mxu0 %v10339_v15  ;;  %2617 = vmatpush1.bf16.msra.mxu1 %v10340_v26  ;;  %v10350_v15 = vld [vmem:[#allocation79_spill] sm:$0xff]  ;;  %v10351_v26 = vld [vmem:[#allocation36_spill] sm:$0xff] }
 0x498   :  { %2577 = vmatprep.subr.bf16.mxu0 %v10341_v46  ;;  %2618 = vmatprep.subr.bf16.mxu1 %v10342_v61  ;;  %v10352_v46 = vld [vmem:[#allocation81_spill] sm:$0xff] }
 0x499   :  { %v10353_v61 = vld [vmem:[#allocation37_spill] sm:$0xff] }
 0x49b   :  { %2578 = vmatpush1.bf16.msra.mxu0 %v10343_v54  ;;  %2619 = vmatpush1.bf16.msra.mxu1 %v10344_v58  ;;  %v10354_v54 = vld [vmem:[#allocation83_spill] sm:$0xff]  ;;  %v10355_v58 = vld [vmem:[#allocation38_spill] sm:$0xff] }
 0x49c   :  { %2579 = vmatprep.subr.bf16.mxu0 %v10345_v35  ;;  %2620 = vmatprep.subr.bf16.mxu1 %v10346_v53  ;;  %v10356_v35 = vld [vmem:[#allocation85_spill] sm:$0xff]  ;;  %v10357_v53 = vld [vmem:[#allocation39_spill] sm:$0xff] }
 0x49f   :  { %2580 = vmatpush1.bf16.msra.mxu0 %v10347_v19  ;;  %2621 = vmatpush1.bf16.msra.mxu1 %v10348_v40  ;;  %v10358_v19 = vld [vmem:[#allocation87_spill] sm:$0xff]  ;;  %v10359_v40 = vld [vmem:[#allocation40_spill] sm:$0xff] }
 0x4a0   :  { %2581 = vmatprep.subr.bf16.mxu0 %v10349_v3  ;;  %2622 = vmatprep.subr.bf16.mxu1 %v10350_v15  ;;  %v10360_v3 = vld [vmem:[#allocation89_spill] sm:$0xff] }
 0x4a1   :  { %v10361_v15 = vld [vmem:[#allocation41_spill] sm:$0xff] }
 0x4a3   :  { %2582 = vmatpush1.bf16.msra.mxu0 %v10351_v26  ;;  %2623 = vmatpush1.bf16.msra.mxu1 %v10352_v46  ;;  %v10362_v26 = vld [vmem:[#allocation91_spill] sm:$0xff]  ;;  %v10363_v46 = vld [vmem:[#allocation42_spill] sm:$0xff] }
 0x4a4   :  { %2583 = vmatprep.subr.bf16.mxu0 %v10353_v61  ;;  %2624 = vmatprep.subr.bf16.mxu1 %v10354_v54  ;;  %v10364_v61 = vld [vmem:[#allocation93_spill] sm:$0xff]  ;;  %v10365_v54 = vld [vmem:[#allocation43_spill] sm:$0xff] }
 0x4a7   :  { %2584 = vmatpush1.bf16.msra.mxu0 %v10355_v58  ;;  %2625 = vmatpush1.bf16.msra.mxu1 %v10356_v35  ;;  %v10366_v58 = vld [vmem:[#allocation95_spill] sm:$0xff]  ;;  %v10367_v35 = vld [vmem:[#allocation44_spill] sm:$0xff] }
 0x4a8   :  { %2585 = vmatprep.subr.bf16.mxu0 %v10357_v53  ;;  %2626 = vmatprep.subr.bf16.mxu1 %v10358_v19  ;;  %v10368_v53 = vld [vmem:[#allocation97_spill] sm:$0xff] }
 0x4a9   :  { %v10369_v19 = vld [vmem:[#allocation45_spill] sm:$0xff] }
 0x4ab   :  { %2586 = vmatpush2.bf16.msra.mxu0 %v10359_v40  ;;  %2627 = vmatpush2.bf16.msra.mxu1 %v10360_v3  ;;  %v10370_v40 = vld [vmem:[#allocation99_spill] sm:$0xff]  ;;  %v10371_v3 = vld [vmem:[#allocation46_spill] sm:$0xff] }
 0x4ac   :  { %2587 = vmatprep.subr.bf16.mxu0 %v10361_v15  ;;  %2628 = vmatprep.subr.bf16.mxu1 %v10362_v26  ;;  %v10372_v15 = vld [vmem:[#allocation101_spill] sm:$0xff]  ;;  %v10373_v26 = vld [vmem:[#allocation47_spill] sm:$0xff] }
 0x4af   :  { %2588 = vmatpush2.bf16.msra.mxu0 %v10363_v46  ;;  %2629 = vmatpush2.bf16.msra.mxu1 %v10364_v61  ;;  %v10374_v46 = vld [vmem:[#allocation103_spill] sm:$0xff]  ;;  %v10375_v61 = vld [vmem:[#allocation48_spill] sm:$0xff] }
 0x4b0   :  { %2589 = vmatprep.subr.bf16.mxu0 %v10365_v54  ;;  %2630 = vmatprep.subr.bf16.mxu1 %v10366_v58  ;;  %v10376_v54 = vld [vmem:[#allocation105_spill] sm:$0xff] }
 0x4b1   :  { %v10377_v58 = vld [vmem:[#allocation49_spill] sm:$0xff] }
 0x4b3   :  { %2590 = vmatpush2.bf16.msra.mxu0 %v10367_v35  ;;  %2631 = vmatpush2.bf16.msra.mxu1 %v10368_v53  ;;  %v10378_v35 = vld [vmem:[#allocation107_spill] sm:$0xff]  ;;  %v10379_v53 = vld [vmem:[#allocation50_spill] sm:$0xff] }
 0x4b4   :  { %2591 = vmatprep.subr.bf16.mxu0 %v10369_v19  ;;  %2632 = vmatprep.subr.bf16.mxu1 %v10370_v40  ;;  %v10380_v19 = vld [vmem:[#allocation109_spill] sm:$0xff]  ;;  %v10381_v40 = vld [vmem:[#allocation51_spill] sm:$0xff] }
 0x4b7   :  { %2592 = vmatpush2.bf16.msra.mxu0 %v10371_v3  ;;  %2633 = vmatpush2.bf16.msra.mxu1 %v10372_v15  ;;  %v10382_v3 = vld [vmem:[#allocation111_spill] sm:$0xff]  ;;  %v10383_v15 = vld [vmem:[#allocation52_spill] sm:$0xff] }
 0x4b8   :  { %2593 = vmatprep.subr.bf16.mxu0 %v10373_v26  ;;  %2634 = vmatprep.subr.bf16.mxu1 %v10374_v46  ;;  %v10384_v26 = vld [vmem:[#allocation113_spill] sm:$0xff] }
 0x4b9   :  { %v10385_v46 = vld [vmem:[#allocation53_spill] sm:$0xff] }
 0x4bb   :  { %2594 = vmatpush2.bf16.msra.mxu0 %v10375_v61  ;;  %2635 = vmatpush2.bf16.msra.mxu1 %v10376_v54  ;;  %v10386_v61 = vld [vmem:[#allocation115_spill] sm:$0xff]  ;;  %v10387_v54 = vld [vmem:[#allocation54_spill] sm:$0xff] }
 0x4bc   :  { %2595 = vmatprep.subr.bf16.mxu0 %v10377_v58  ;;  %2636 = vmatprep.subr.bf16.mxu1 %v10378_v35  ;;  %v10388_v58 = vld [vmem:[#allocation117_spill] sm:$0xff]  ;;  %v10389_v35 = vld [vmem:[#allocation56_spill] sm:$0xff] }
 0x4bf   :  { %2596 = vmatpush2.bf16.msra.mxu0 %v10379_v53  ;;  %2637 = vmatpush2.bf16.msra.mxu1 %v10380_v19  ;;  %v10390_v53 = vld [vmem:[#allocation119_spill] sm:$0xff] }
 0x4c0   :  { %2597 = vmatprep.subr.bf16.mxu0 %v10381_v40  ;;  %2638 = vmatprep.subr.bf16.mxu1 %v10382_v3 }
 0x4c3   :  { %2598 = vmatpush2.bf16.msra.mxu0 %v10383_v15  ;;  %2639 = vmatpush2.bf16.msra.mxu1 %v10384_v26 }
 0x4c4   :  { %2599 = vmatprep.subr.bf16.mxu0 %v10385_v46  ;;  %2640 = vmatprep.subr.bf16.mxu1 %v10386_v61 }
 0x4c7   :  { %2600 = vmatpush2.bf16.msra.mxu0 %v10387_v54  ;;  %2641 = vmatpush2.bf16.msra.mxu1 %v10388_v58  ;;  %v10394_v58 = vld [vmem:[#allocation145_spill] sm:$0xff] }
 0x4c8   :  { %2651 = vmatprep.subr.bf16.mxu0 %v10389_v35  ;;  %2692 = vmatprep.subr.bf16.mxu1 %v10390_v53 }
 0x50a   :  { %v2385_v19 = vpop.f32.mrf.mxu0  ;;  %v2426_v40 = vpop.f32.mrf.mxu1 }
 0x50b   :  { %v2517_v46 = vadd.f32 %v2426_v40, %v10391_v21  ;;  %v2515_v61 = vadd.f32 %v2385_v19, %v10392_v56  ;;  %v10396_v56 = vld [vmem:[#allocation148_spill] sm:$0xff] }
 0x50c   :  { %v2387_v60 = vpop.f32.mrf.mxu0  ;;  %v2428_v3 = vpop.f32.mrf.mxu1 }
 0x50d   :  { %v2518_v54 = vadd.f32 %v2428_v3, %v10393_v28  ;;  %v2531_v47 = vmul.f32 0.5, %v2517_v46  ;;  %v2516_v63 = vadd.f32 %v2387_v60, %v10394_v58  ;;  %v2523_v35 = vmul.f32 0.5, %v2515_v61 }
 0x50e   :  { %v2389_v49 = vpop.f32.mrf.mxu0  ;;  %v2430_v15 = vpop.f32.mrf.mxu1 }
 0x50f   :  { %v2532_v45 = vmul.f32 0.5, %v2518_v54  ;;  %6775 = vtanh.f32 %v2531_v47  ;;  %v2524_v53 = vmul.f32 0.5, %v2516_v63  ;;  %v10397_v47 = vld [vmem:[#allocation180_spill] sm:$0xff] }
 0x510   :  { %v2390_v30 = vpop.f32.mrf.mxu0  ;;  %v2431_v26 = vpop.f32.mrf.mxu1  ;;  %6777 = vtanh.f32 %v2523_v35 }
 0x511   :  { %6779 = vtanh.f32 %v2532_v45  ;;  %v10395_v30 = vld [vmem:[#allocation146_spill] sm:$0xff]  ;;  %v10398_v45 = vld [vmem:[#allocation181_spill] sm:$0xff] }
 0x512   :  { %6781 = vtanh.f32 %v2524_v53 }
 0x51c   :  { %v6776_v46 = vpop.eup %6775 }
 0x51d   :  { %v6778_v35 = vpop.eup %6777  ;;  %v2535_v54 = vmul.f32 0.5, %v6776_v46 }
 0x51e   :  { %v6780_v61 = vpop.eup %6779 }
 0x51f   :  { %v6782_v40 = vpop.eup %6781  ;;  %v2536_v2 = vmul.f32 0.5, %v6780_v61  ;;  %v2537_v37 = vadd.f32 0.5, %v2535_v54 }
 0x54a   :  { %v2467_v49 = vpop.f32.mrf.mxu0  ;;  %v2508_v15 = vpop.f32.mrf.mxu1 }
 0x54b   :  { %v2519_v26 = vadd.f32 %v2467_v49, %v10395_v30  ;;  %v2521_v63 = vadd.f32 %v2508_v15, %v10397_v47  ;;  %v2527_v49 = vmul.f32 0.5, %v6778_v35 }
 0x54c   :  { %v2469_v12 = vpop.f32.mrf.mxu0  ;;  %v2510_v21 = vpop.f32.mrf.mxu1 }
 0x54d   :  { %6783 = vtanh.f32 %v2519_v26  ;;  %v2520_v19 = vadd.f32 %v2469_v12, %v10396_v56  ;;  %v2522_v53 = vadd.f32 %v2510_v21, %v10398_v45  ;;  %v2541_v30 = vmul.f32 0.5, %v2521_v63 }
 0x54e   :  { %v2471_v28 = vpop.f32.mrf.mxu0  ;;  %v2512_v3 = vpop.f32.mrf.mxu1  ;;  %v2528_v12 = vmul.f32 0.5, %v6782_v40  ;;  %v2529_v56 = vadd.f32 0.5, %v2527_v49 }
 0x54f   :  { %6785 = vtanh.f32 %v2520_v19  ;;  %v2542_v26 = vmul.f32 0.5, %v2522_v53  ;;  %v2538_v19 = vadd.f32 0.5, %v2536_v2  ;;  %v2549_v3 = vmul.f32 %v2537_v37, %v8892_v4 }
 0x550   :  { %v2472_v58 = vpop.f32.mrf.mxu0  ;;  %v2513_v60 = vpop.f32.mrf.mxu1  ;;  %6787 = vtanh.f32 %v2541_v30 }
 0x551   :  { %6789 = vtanh.f32 %v2542_v26  ;;  %v2530_v58 = vadd.f32 0.5, %v2528_v12  ;;  %v2550_v46 = vmul.f32 %v2538_v19, %v8896_v23  ;;  %v10399_v23 = vld [vmem:[#allocation122_spill] sm:$0xff]  ;;  %v10403_v19 = vld [vmem:[#allocation124_spill] sm:$0xff] }
 0x552   :  { %v10400_v12 = vld [vmem:[#allocation98_spill] sm:$0xff] }
 0x55a   :  { %v6784_v28 = vpop.eup %6783 }
 0x55b   :  { %v2551_v15 = vmul.f32 %v6784_v28, %v2529_v56  ;;  %v10401_v56 = vld [vmem:[#allocation123_spill] sm:$0xff]  ;;  %v10402_v28 = vld [vmem:[#allocation100_spill] sm:$0xff] }
 0x55c   :  { %v6786_v60 = vpop.eup %6785 }
 0x55d   :  { %v9042_v21 = vadd.f32 %v2551_v15, %v2549_v3  ;;  %v2552_v47 = vmul.f32 %v6786_v60, %v2530_v58  ;;  %v6788_v35 = vpop.eup %6787  ;;  %v10404_v3 = vld [vmem:[#allocation102_spill] sm:$0xff]  ;;  %v10405_v15 = vld [vmem:[#allocation125_spill] sm:$0xff]  ;;  %v10406_v58 = vld [vmem:[#allocation104_spill] sm:$0xff] }
 0x55e   :  { %v6790_v45 = vpop.eup %6789  ;;  %v2545_v2 = vmul.f32 0.5, %v6788_v35  ;;  %v10407_v60 = vld [vmem:[#allocation126_spill] sm:$0xff]  ;;  %v10410_v35 = vld [vmem:[#allocation108_spill] sm:$0xff] }
 0x55f   :  { %6791 = vtanh.f32 %v9042_v21  ;;  %v9046_v63 = vadd.f32 %v2552_v47, %v2550_v46  ;;  %v2546_v53 = vmul.f32 0.5, %v6790_v45  ;;  %v10408_v46 = vld [vmem:[#allocation106_spill] sm:$0xff]  ;;  %v10409_v47 = vld [vmem:[#allocation127_spill] sm:$0xff]  ;;  %v10411_v45 = vld [vmem:[#allocation128_spill] sm:$0xff] }
 0x560   :  { %v2547_v4 = vadd.f32 0.5, %v2545_v2  ;;  %v10412_v2 = vld [vmem:[#allocation110_spill] sm:$0xff] }
 0x561   :  { %6793 = vtanh.f32 %v9046_v63  ;;  %v2548_v37 = vadd.f32 0.5, %v2546_v53  ;;  %v10413_v53 = vld [vmem:[#allocation129_spill] sm:$0xff] }
 0x56c   :  { %v6792_v61 = vpop.eup %6791 }
 0x56d   :  { %v2557_v40 = vmul.f32 %v6792_v61, %v2547_v4  ;;  %v10414_v61 = vld [vmem:[#allocation112_spill] sm:$0xff]  ;;  %v10415_v4 = vld [vmem:[#allocation130_spill] sm:$0xff] }
 0x56e   :  { %v6794_v54 = vpop.eup %6793 }
 0x56f   :  { %v2558_v49 = vmul.f32 %v6794_v54, %v2548_v37  ;;  %v9049_v26 = vpack.c.bf16 %v2557_v40, %v2557_v40  ;;  %v10416_v37 = vld [vmem:[#allocation114_spill] sm:$0xff]  ;;  %v10417_v54 = vld [vmem:[#allocation131_spill] sm:$0xff]  ;;  %v10418_v40 = vld [vmem:[#allocation116_spill] sm:$0xff] }
 0x571   :  { %v2568_v30 = vpack.c.bf16 %v2558_v49, %v2558_v49  ;;  %v10419_v49 = vld [vmem:[#allocation132_spill] sm:$0xff] }
 0x573   :  { %2601 = vmatprep.mubr.bf16.mxu0 %v2568_v30  ;;  %2642 = vmatprep.mubr.bf16.mxu1 %v2568_v30 }
 0x574   :  { %2602 = vmatmul.mubr.bf16.vlgmr.msra.gmra.mxu0 %v9049_v26  ;;  %2643 = vmatmul.mubr.bf16.vlgmr.msra.gmra.mxu1 %v9049_v26 }
 0x575   :  { %2652 = vmatpush1.bf16.msra.mxu0 %v10107_v10  ;;  %2693 = vmatpush1.bf16.msra.mxu1 %v8183_v44 }
 0x576   :  { %2683 = vmatprep.mubr.bf16.mxu0 %v2568_v30  ;;  %2724 = vmatprep.mubr.bf16.mxu1 %v2568_v30  ;;  %v10420_v30 = vld [vmem:[#allocation118_spill] sm:$0xff] }
 0x577   :  { %2653 = vmatprep.subr.bf16.mxu0 %v10108_v62  ;;  %2694 = vmatprep.subr.bf16.mxu1 %v8187_v59 }
 0x579   :  { %2654 = vmatpush1.bf16.msra.mxu0 %v10109_v36  ;;  %2695 = vmatpush1.bf16.msra.mxu1 %v8193_v29 }
 0x57a   :  { %2655 = vmatprep.subr.bf16.mxu0 %v10110_v5  ;;  %2696 = vmatprep.subr.bf16.mxu1 %v8196_v27 }
 0x57d   :  { %2656 = vmatpush1.bf16.msra.mxu0 %v10111_v43  ;;  %2697 = vmatpush1.bf16.msra.mxu1 %v8202_v7 }
 0x57e   :  { %2657 = vmatprep.subr.bf16.mxu0 %v10112_v11  ;;  %2698 = vmatprep.subr.bf16.mxu1 %v8205_v17 }
 0x581   :  { %2658 = vmatpush1.bf16.msra.mxu0 %v10113_v38  ;;  %2699 = vmatpush1.bf16.msra.mxu1 %v8210_v34 }
 0x582   :  { %2659 = vmatprep.subr.bf16.mxu0 %v10114_v55  ;;  %2700 = vmatprep.subr.bf16.mxu1 %v8213_v16 }
 0x585   :  { %2660 = vmatpush1.bf16.msra.mxu0 %v10115_v6  ;;  %2701 = vmatpush1.bf16.msra.mxu1 %v8218_v14 }
 0x586   :  { %2661 = vmatprep.subr.bf16.mxu0 %v10116_v20  ;;  %2702 = vmatprep.subr.bf16.mxu1 %v8221_v24 }
 0x589   :  { %2662 = vmatpush1.bf16.msra.mxu0 %v10117_v9  ;;  %2703 = vmatpush1.bf16.msra.mxu1 %v8226_v22 }
 0x58a   :  { %2663 = vmatprep.subr.bf16.mxu0 %v10118_v0  ;;  %2704 = vmatprep.subr.bf16.mxu1 %v8229_v33 }
 0x58d   :  { %2664 = vmatpush1.bf16.msra.mxu0 %v10119_v1  ;;  %2705 = vmatpush1.bf16.msra.mxu1 %v8234_v31 }
 0x58e   :  { %2665 = vmatprep.subr.bf16.mxu0 %v10120_v51  ;;  %2706 = vmatprep.subr.bf16.mxu1 %v8237_v41 }
 0x591   :  { %2666 = vmatpush1.bf16.msra.mxu0 %v10121_v32  ;;  %2707 = vmatpush1.bf16.msra.mxu1 %v8242_v39 }
 0x592   :  { %2667 = vmatprep.subr.bf16.mxu0 %v10122_v13  ;;  %2708 = vmatprep.subr.bf16.mxu1 %v8245_v50 }
 0x595   :  { %2668 = vmatpush2.bf16.msra.mxu0 %v10123_v52  ;;  %2709 = vmatpush2.bf16.msra.mxu1 %v8250_v48 }
 0x596   :  { %2669 = vmatprep.subr.bf16.mxu0 %v10124_v57  ;;  %2710 = vmatprep.subr.bf16.mxu1 %v10205_v25 }
 0x599   :  { %2670 = vmatpush2.bf16.msra.mxu0 %v10125_v42  ;;  %2711 = vmatpush2.bf16.msra.mxu1 %v10206_v18 }
 0x59a   :  { %2671 = vmatprep.subr.bf16.mxu0 %v10126_v8  ;;  %2712 = vmatprep.subr.bf16.mxu1 %v10399_v23 }
 0x59d   :  { %2672 = vmatpush2.bf16.msra.mxu0 %v10400_v12  ;;  %2713 = vmatpush2.bf16.msra.mxu1 %v10401_v56 }
 0x59e   :  { %2673 = vmatprep.subr.bf16.mxu0 %v10402_v28  ;;  %2714 = vmatprep.subr.bf16.mxu1 %v10403_v19 }
 0x5a1   :  { %2674 = vmatpush2.bf16.msra.mxu0 %v10404_v3  ;;  %2715 = vmatpush2.bf16.msra.mxu1 %v10405_v15  ;;  %v10490_v15 = vld [vmem:[#allocation171_spill] sm:$0xff] }
 0x5a2   :  { %2675 = vmatprep.subr.bf16.mxu0 %v10406_v58  ;;  %2716 = vmatprep.subr.bf16.mxu1 %v10407_v60  ;;  %v10488_v60 = vld [vmem:[#allocation170_spill] sm:$0xff]  ;;  %v10489_v58 = vld [vmem:[#allocation147_spill] sm:$0xff] }
 0x5a5   :  { %2676 = vmatpush2.bf16.msra.mxu0 %v10408_v46  ;;  %2717 = vmatpush2.bf16.msra.mxu1 %v10409_v47 }
 0x5a6   :  { %2677 = vmatprep.subr.bf16.mxu0 %v10410_v35  ;;  %2718 = vmatprep.subr.bf16.mxu1 %v10411_v45  ;;  %v10421_v35 = vld [vmem:[#allocation133_spill] sm:$0xff]  ;;  %v10422_v45 = vld [vmem:[#allocation23_spill] sm:$0xff] }
 0x5a9   :  { %2678 = vmatpush2.bf16.msra.mxu0 %v10412_v2  ;;  %2719 = vmatpush2.bf16.msra.mxu1 %v10413_v53  ;;  %v10423_v2 = vld [vmem:[#allocation55_spill] sm:$0xff] }
 0x5aa   :  { %2679 = vmatprep.subr.bf16.mxu0 %v10414_v61  ;;  %2720 = vmatprep.subr.bf16.mxu1 %v10415_v4  ;;  %v10424_v4 = vld [vmem:[#allocation24_spill] sm:$0xff]  ;;  %v10433_v61 = vld [vmem:[#allocation65_spill] sm:$0xff] }
 0x5ad   :  { %2680 = vmatpush2.bf16.msra.mxu0 %v10416_v37  ;;  %2721 = vmatpush2.bf16.msra.mxu1 %v10417_v54  ;;  %v10425_v37 = vld [vmem:[#allocation57_spill] sm:$0xff] }
 0x5ae   :  { %2681 = vmatprep.subr.bf16.mxu0 %v10418_v40  ;;  %2722 = vmatprep.subr.bf16.mxu1 %v10419_v49  ;;  %v10426_v54 = vld [vmem:[#allocation25_spill] sm:$0xff]  ;;  %v10427_v40 = vld [vmem:[#allocation59_spill] sm:$0xff]  ;;  %v10428_v49 = vld [vmem:[#allocation26_spill] sm:$0xff] }
 0x5b1   :  { %2682 = vmatpush2.bf16.msra.mxu0 %v10420_v30  ;;  %2723 = vmatpush2.bf16.msra.mxu1 %v10421_v35  ;;  %v10429_v30 = vld [vmem:[#allocation61_spill] sm:$0xff]  ;;  %v10430_v35 = vld [vmem:[#allocation27_spill] sm:$0xff] }
 0x5b2   :  { %2787 = vmatprep.subr.bf16.mxu0 %v10422_v45  ;;  %2828 = vmatprep.subr.bf16.mxu1 %v10423_v2  ;;  %v10431_v45 = vld [vmem:[#allocation63_spill] sm:$0xff]  ;;  %v10432_v2 = vld [vmem:[#allocation28_spill] sm:$0xff] }
 0x5b4   :  { %2684 = vmatmul.mubr.bf16.vlgmr.msra.gmra.mxu0 %v9049_v26  ;;  %2725 = vmatmul.mubr.bf16.vlgmr.msra.gmra.mxu1 %v9049_v26  ;;  %v10434_v26 = vld [vmem:[#allocation29_spill] sm:$0xff] }
 0x5b5   :  { %2788 = vmatpush1.bf16.msra.mxu0 %v10424_v4  ;;  %2829 = vmatpush1.bf16.msra.mxu1 %v10425_v37  ;;  %v10435_v4 = vld [vmem:[#allocation67_spill] sm:$0xff]  ;;  %v10436_v37 = vld [vmem:[#allocation30_spill] sm:$0xff] }
 0x5b6   :  { %2789 = vmatprep.subr.bf16.mxu0 %v10426_v54  ;;  %2830 = vmatprep.subr.bf16.mxu1 %v10427_v40  ;;  %v10437_v54 = vld [vmem:[#allocation69_spill] sm:$0xff]  ;;  %v10438_v40 = vld [vmem:[#allocation31_spill] sm:$0xff] }
 0x5b9   :  { %2790 = vmatpush1.bf16.msra.mxu0 %v10428_v49  ;;  %2831 = vmatpush1.bf16.msra.mxu1 %v10429_v30  ;;  %v10439_v49 = vld [vmem:[#allocation71_spill] sm:$0xff]  ;;  %v10440_v30 = vld [vmem:[#allocation32_spill] sm:$0xff] }
 0x5ba   :  { %2791 = vmatprep.subr.bf16.mxu0 %v10430_v35  ;;  %2832 = vmatprep.subr.bf16.mxu1 %v10431_v45  ;;  %v10441_v35 = vld [vmem:[#allocation73_spill] sm:$0xff] }
 0x5bb   :  { %v10442_v45 = vld [vmem:[#allocation33_spill] sm:$0xff] }
 0x5bd   :  { %2792 = vmatpush1.bf16.msra.mxu0 %v10432_v2  ;;  %2833 = vmatpush1.bf16.msra.mxu1 %v10433_v61  ;;  %v10443_v2 = vld [vmem:[#allocation75_spill] sm:$0xff]  ;;  %v10444_v61 = vld [vmem:[#allocation34_spill] sm:$0xff] }
 0x5be   :  { %2793 = vmatprep.subr.bf16.mxu0 %v10434_v26  ;;  %2834 = vmatprep.subr.bf16.mxu1 %v10435_v4  ;;  %v10445_v26 = vld [vmem:[#allocation77_spill] sm:$0xff]  ;;  %v10446_v4 = vld [vmem:[#allocation35_spill] sm:$0xff] }
 0x5c1   :  { %2794 = vmatpush1.bf16.msra.mxu0 %v10436_v37  ;;  %2835 = vmatpush1.bf16.msra.mxu1 %v10437_v54  ;;  %v10447_v37 = vld [vmem:[#allocation79_spill] sm:$0xff]  ;;  %v10448_v54 = vld [vmem:[#allocation36_spill] sm:$0xff] }
 0x5c2   :  { %2795 = vmatprep.subr.bf16.mxu0 %v10438_v40  ;;  %2836 = vmatprep.subr.bf16.mxu1 %v10439_v49  ;;  %v10449_v40 = vld [vmem:[#allocation81_spill] sm:$0xff] }
 0x5c3   :  { %v10450_v49 = vld [vmem:[#allocation37_spill] sm:$0xff] }
 0x5c5   :  { %2796 = vmatpush1.bf16.msra.mxu0 %v10440_v30  ;;  %2837 = vmatpush1.bf16.msra.mxu1 %v10441_v35  ;;  %v10451_v30 = vld [vmem:[#allocation83_spill] sm:$0xff]  ;;  %v10452_v35 = vld [vmem:[#allocation38_spill] sm:$0xff] }
 0x5c6   :  { %2797 = vmatprep.subr.bf16.mxu0 %v10442_v45  ;;  %2838 = vmatprep.subr.bf16.mxu1 %v10443_v2  ;;  %v10453_v45 = vld [vmem:[#allocation85_spill] sm:$0xff]  ;;  %v10454_v2 = vld [vmem:[#allocation39_spill] sm:$0xff] }
 0x5c9   :  { %2798 = vmatpush1.bf16.msra.mxu0 %v10444_v61  ;;  %2839 = vmatpush1.bf16.msra.mxu1 %v10445_v26  ;;  %v10455_v61 = vld [vmem:[#allocation87_spill] sm:$0xff]  ;;  %v10456_v26 = vld [vmem:[#allocation40_spill] sm:$0xff] }
 0x5ca   :  { %2799 = vmatprep.subr.bf16.mxu0 %v10446_v4  ;;  %2840 = vmatprep.subr.bf16.mxu1 %v10447_v37  ;;  %v10457_v4 = vld [vmem:[#allocation89_spill] sm:$0xff] }
 0x5cb   :  { %v10458_v37 = vld [vmem:[#allocation41_spill] sm:$0xff] }
 0x5cd   :  { %2800 = vmatpush1.bf16.msra.mxu0 %v10448_v54  ;;  %2841 = vmatpush1.bf16.msra.mxu1 %v10449_v40  ;;  %v10459_v54 = vld [vmem:[#allocation91_spill] sm:$0xff]  ;;  %v10460_v40 = vld [vmem:[#allocation42_spill] sm:$0xff] }
 0x5ce   :  { %2801 = vmatprep.subr.bf16.mxu0 %v10450_v49  ;;  %2842 = vmatprep.subr.bf16.mxu1 %v10451_v30  ;;  %v10461_v49 = vld [vmem:[#allocation93_spill] sm:$0xff]  ;;  %v10462_v30 = vld [vmem:[#allocation43_spill] sm:$0xff] }
 0x5d1   :  { %2802 = vmatpush1.bf16.msra.mxu0 %v10452_v35  ;;  %2843 = vmatpush1.bf16.msra.mxu1 %v10453_v45  ;;  %v10463_v35 = vld [vmem:[#allocation95_spill] sm:$0xff]  ;;  %v10464_v45 = vld [vmem:[#allocation44_spill] sm:$0xff] }
 0x5d2   :  { %2803 = vmatprep.subr.bf16.mxu0 %v10454_v2  ;;  %2844 = vmatprep.subr.bf16.mxu1 %v10455_v61  ;;  %v10465_v2 = vld [vmem:[#allocation97_spill] sm:$0xff] }
 0x5d3   :  { %v10466_v61 = vld [vmem:[#allocation45_spill] sm:$0xff] }
 0x5d5   :  { %2804 = vmatpush2.bf16.msra.mxu0 %v10456_v26  ;;  %2845 = vmatpush2.bf16.msra.mxu1 %v10457_v4  ;;  %v10467_v26 = vld [vmem:[#allocation99_spill] sm:$0xff]  ;;  %v10468_v4 = vld [vmem:[#allocation46_spill] sm:$0xff] }
 0x5d6   :  { %2805 = vmatprep.subr.bf16.mxu0 %v10458_v37  ;;  %2846 = vmatprep.subr.bf16.mxu1 %v10459_v54  ;;  %v10469_v37 = vld [vmem:[#allocation101_spill] sm:$0xff]  ;;  %v10470_v54 = vld [vmem:[#allocation47_spill] sm:$0xff] }
 0x5d9   :  { %2806 = vmatpush2.bf16.msra.mxu0 %v10460_v40  ;;  %2847 = vmatpush2.bf16.msra.mxu1 %v10461_v49  ;;  %v10471_v40 = vld [vmem:[#allocation103_spill] sm:$0xff]  ;;  %v10472_v49 = vld [vmem:[#allocation48_spill] sm:$0xff] }
 0x5da   :  { %2807 = vmatprep.subr.bf16.mxu0 %v10462_v30  ;;  %2848 = vmatprep.subr.bf16.mxu1 %v10463_v35  ;;  %v10473_v30 = vld [vmem:[#allocation105_spill] sm:$0xff] }
 0x5db   :  { %v10474_v35 = vld [vmem:[#allocation49_spill] sm:$0xff] }
 0x5dd   :  { %2808 = vmatpush2.bf16.msra.mxu0 %v10464_v45  ;;  %2849 = vmatpush2.bf16.msra.mxu1 %v10465_v2  ;;  %v10475_v45 = vld [vmem:[#allocation107_spill] sm:$0xff]  ;;  %v10476_v2 = vld [vmem:[#allocation50_spill] sm:$0xff] }
 0x5de   :  { %2809 = vmatprep.subr.bf16.mxu0 %v10466_v61  ;;  %2850 = vmatprep.subr.bf16.mxu1 %v10467_v26  ;;  %v10477_v61 = vld [vmem:[#allocation109_spill] sm:$0xff]  ;;  %v10478_v26 = vld [vmem:[#allocation51_spill] sm:$0xff] }
 0x5e1   :  { %2810 = vmatpush2.bf16.msra.mxu0 %v10468_v4  ;;  %2851 = vmatpush2.bf16.msra.mxu1 %v10469_v37  ;;  %v10479_v4 = vld [vmem:[#allocation111_spill] sm:$0xff]  ;;  %v10480_v37 = vld [vmem:[#allocation52_spill] sm:$0xff] }
 0x5e2   :  { %2811 = vmatprep.subr.bf16.mxu0 %v10470_v54  ;;  %2852 = vmatprep.subr.bf16.mxu1 %v10471_v40  ;;  %v10481_v54 = vld [vmem:[#allocation113_spill] sm:$0xff] }
 0x5e3   :  { %v10482_v40 = vld [vmem:[#allocation53_spill] sm:$0xff] }
 0x5e5   :  { %2812 = vmatpush2.bf16.msra.mxu0 %v10472_v49  ;;  %2853 = vmatpush2.bf16.msra.mxu1 %v10473_v30  ;;  %v10483_v49 = vld [vmem:[#allocation115_spill] sm:$0xff]  ;;  %v10484_v30 = vld [vmem:[#allocation54_spill] sm:$0xff] }
 0x5e6   :  { %2813 = vmatprep.subr.bf16.mxu0 %v10474_v35  ;;  %2854 = vmatprep.subr.bf16.mxu1 %v10475_v45  ;;  %v10485_v35 = vld [vmem:[#allocation117_spill] sm:$0xff]  ;;  %v10486_v45 = vld [vmem:[#allocation56_spill] sm:$0xff] }
 0x5e9   :  { %2814 = vmatpush2.bf16.msra.mxu0 %v10476_v2  ;;  %2855 = vmatpush2.bf16.msra.mxu1 %v10477_v61  ;;  %v10487_v2 = vld [vmem:[#allocation119_spill] sm:$0xff] }
 0x5ea   :  { %2815 = vmatprep.subr.bf16.mxu0 %v10478_v26  ;;  %2856 = vmatprep.subr.bf16.mxu1 %v10479_v4 }
 0x5ed   :  { %2816 = vmatpush2.bf16.msra.mxu0 %v10480_v37  ;;  %2857 = vmatpush2.bf16.msra.mxu1 %v10481_v54 }
 0x5ee   :  { %2817 = vmatprep.subr.bf16.mxu0 %v10482_v40  ;;  %2858 = vmatprep.subr.bf16.mxu1 %v10483_v49 }
 0x5f1   :  { %2818 = vmatpush2.bf16.msra.mxu0 %v10484_v30  ;;  %2859 = vmatpush2.bf16.msra.mxu1 %v10485_v35  ;;  %v10491_v35 = vld [vmem:[#allocation149_spill] sm:$0xff] }
 0x5f2   :  { %2869 = vmatprep.subr.bf16.mxu0 %v10486_v45  ;;  %2910 = vmatprep.subr.bf16.mxu1 %v10487_v2 }
 0x634   :  { %v2603_v61 = vpop.f32.mrf.mxu0  ;;  %v2644_v26 = vpop.f32.mrf.mxu1 }
 0x635   :  { %v2735_v40 = vadd.f32 %v2644_v26, %v10488_v60  ;;  %v2733_v49 = vadd.f32 %v2603_v61, %v10489_v58  ;;  %v10493_v58 = vld [vmem:[#allocation152_spill] sm:$0xff] }
 0x636   :  { %v2605_v53 = vpop.f32.mrf.mxu0  ;;  %v2646_v4 = vpop.f32.mrf.mxu1 }
 0x637   :  { %v2736_v30 = vadd.f32 %v2646_v4, %v10490_v15  ;;  %v2749_v3 = vmul.f32 0.5, %v2735_v40  ;;  %v2734_v19 = vadd.f32 %v2605_v53, %v10491_v35  ;;  %v2741_v45 = vmul.f32 0.5, %v2733_v49 }
 0x638   :  { %v2607_v47 = vpop.f32.mrf.mxu0  ;;  %v2648_v37 = vpop.f32.mrf.mxu1 }
 0x639   :  { %v2750_v28 = vmul.f32 0.5, %v2736_v30  ;;  %6795 = vtanh.f32 %v2749_v3  ;;  %v2742_v2 = vmul.f32 0.5, %v2734_v19  ;;  %v10494_v3 = vld [vmem:[#allocation182_spill] sm:$0xff] }
 0x63a   :  { %v2608_v46 = vpop.f32.mrf.mxu0  ;;  %v2649_v54 = vpop.f32.mrf.mxu1  ;;  %6797 = vtanh.f32 %v2741_v45 }
 0x63b   :  { %6799 = vtanh.f32 %v2750_v28  ;;  %v10492_v46 = vld [vmem:[#allocation150_spill] sm:$0xff]  ;;  %v10495_v28 = vld [vmem:[#allocation183_spill] sm:$0xff] }
 0x63c   :  { %6801 = vtanh.f32 %v2742_v2 }
 0x646   :  { %v6796_v40 = vpop.eup %6795 }
 0x647   :  { %v6798_v45 = vpop.eup %6797  ;;  %v2753_v30 = vmul.f32 0.5, %v6796_v40 }
 0x648   :  { %v6800_v49 = vpop.eup %6799 }
 0x649   :  { %v6802_v26 = vpop.eup %6801  ;;  %v2754_v12 = vmul.f32 0.5, %v6800_v49  ;;  %v2755_v23 = vadd.f32 0.5, %v2753_v30 }
 0x674   :  { %v2685_v47 = vpop.f32.mrf.mxu0  ;;  %v2726_v37 = vpop.f32.mrf.mxu1 }
 0x675   :  { %v2737_v54 = vadd.f32 %v2685_v47, %v10492_v46  ;;  %v2739_v19 = vadd.f32 %v2726_v37, %v10494_v3  ;;  %v2745_v47 = vmul.f32 0.5, %v6798_v45 }
 0x676   :  { %v2687_v56 = vpop.f32.mrf.mxu0  ;;  %v2728_v60 = vpop.f32.mrf.mxu1 }
 0x677   :  { %6803 = vtanh.f32 %v2737_v54  ;;  %v2738_v61 = vadd.f32 %v2687_v56, %v10493_v58  ;;  %v2740_v2 = vadd.f32 %v2728_v60, %v10495_v28  ;;  %v2759_v46 = vmul.f32 0.5, %v2739_v19 }
 0x678   :  { %v2689_v15 = vpop.f32.mrf.mxu0  ;;  %v2730_v4 = vpop.f32.mrf.mxu1  ;;  %v2746_v56 = vmul.f32 0.5, %v6802_v26  ;;  %v2747_v58 = vadd.f32 0.5, %v2745_v47 }
 0x679   :  { %6805 = vtanh.f32 %v2738_v61  ;;  %v2760_v54 = vmul.f32 0.5, %v2740_v2  ;;  %v2756_v61 = vadd.f32 0.5, %v2754_v12  ;;  %v2767_v4 = vmul.f32 %v2755_v23, %v9042_v21 }
 0x67a   :  { %v2690_v35 = vpop.f32.mrf.mxu0  ;;  %v2731_v53 = vpop.f32.mrf.mxu1  ;;  %6807 = vtanh.f32 %v2759_v46 }
 0x67b   :  { %6809 = vtanh.f32 %v2760_v54  ;;  %v2748_v35 = vadd.f32 0.5, %v2746_v56  ;;  %v2768_v40 = vmul.f32 %v2756_v61, %v9046_v63  ;;  %v10496_v63 = vld [vmem:[#allocation122_spill] sm:$0xff]  ;;  %v10500_v61 = vld [vmem:[#allocation124_spill] sm:$0xff] }
 0x67c   :  { %v10497_v56 = vld [vmem:[#allocation98_spill] sm:$0xff] }
 0x684   :  { %v6804_v15 = vpop.eup %6803 }
 0x685   :  { %v2769_v37 = vmul.f32 %v6804_v15, %v2747_v58  ;;  %v10498_v58 = vld [vmem:[#allocation123_spill] sm:$0xff]  ;;  %v10499_v15 = vld [vmem:[#allocation100_spill] sm:$0xff] }
 0x686   :  { %v6806_v53 = vpop.eup %6805 }
 0x687   :  { %v9192_v60 = vadd.f32 %v2769_v37, %v2767_v4  ;;  %v2770_v3 = vmul.f32 %v6806_v53, %v2748_v35  ;;  %v6808_v45 = vpop.eup %6807  ;;  %v10501_v4 = vld [vmem:[#allocation102_spill] sm:$0xff]  ;;  %v10502_v37 = vld [vmem:[#allocation125_spill] sm:$0xff]  ;;  %v10503_v35 = vld [vmem:[#allocation104_spill] sm:$0xff] }
 0x688   :  { %v6810_v28 = vpop.eup %6809  ;;  %v2763_v12 = vmul.f32 0.5, %v6808_v45  ;;  %v10504_v53 = vld [vmem:[#allocation126_spill] sm:$0xff]  ;;  %v10507_v45 = vld [vmem:[#allocation108_spill] sm:$0xff] }
 0x689   :  { %6811 = vtanh.f32 %v9192_v60  ;;  %v9196_v19 = vadd.f32 %v2770_v3, %v2768_v40  ;;  %v2764_v2 = vmul.f32 0.5, %v6810_v28  ;;  %v10505_v40 = vld [vmem:[#allocation106_spill] sm:$0xff]  ;;  %v10506_v3 = vld [vmem:[#allocation127_spill] sm:$0xff]  ;;  %v10508_v28 = vld [vmem:[#allocation128_spill] sm:$0xff] }
 0x68a   :  { %v2765_v21 = vadd.f32 0.5, %v2763_v12  ;;  %v10509_v12 = vld [vmem:[#allocation110_spill] sm:$0xff] }
 0x68b   :  { %6813 = vtanh.f32 %v9196_v19  ;;  %v2766_v23 = vadd.f32 0.5, %v2764_v2  ;;  %v10510_v2 = vld [vmem:[#allocation129_spill] sm:$0xff] }
 0x696   :  { %v6812_v49 = vpop.eup %6811 }
 0x697   :  { %v2775_v26 = vmul.f32 %v6812_v49, %v2765_v21  ;;  %v10511_v49 = vld [vmem:[#allocation112_spill] sm:$0xff]  ;;  %v10512_v21 = vld [vmem:[#allocation130_spill] sm:$0xff] }
 0x698   :  { %v6814_v30 = vpop.eup %6813 }
 0x699   :  { %v2776_v47 = vmul.f32 %v6814_v30, %v2766_v23  ;;  %v9199_v54 = vpack.c.bf16 %v2775_v26, %v2775_v26  ;;  %v10513_v23 = vld [vmem:[#allocation114_spill] sm:$0xff]  ;;  %v10514_v30 = vld [vmem:[#allocation131_spill] sm:$0xff]  ;;  %v10515_v26 = vld [vmem:[#allocation116_spill] sm:$0xff] }
 0x69b   :  { %v2786_v46 = vpack.c.bf16 %v2776_v47, %v2776_v47  ;;  %v10516_v47 = vld [vmem:[#allocation132_spill] sm:$0xff] }
 0x69d   :  { %2819 = vmatprep.mubr.bf16.mxu0 %v2786_v46  ;;  %2860 = vmatprep.mubr.bf16.mxu1 %v2786_v46 }
 0x69e   :  { %2820 = vmatmul.mubr.bf16.vlgmr.msra.gmra.mxu0 %v9199_v54  ;;  %2861 = vmatmul.mubr.bf16.vlgmr.msra.gmra.mxu1 %v9199_v54 }
 0x69f   :  { %2870 = vmatpush1.bf16.msra.mxu0 %v10107_v10  ;;  %2911 = vmatpush1.bf16.msra.mxu1 %v8183_v44 }
 0x6a0   :  { %2901 = vmatprep.mubr.bf16.mxu0 %v2786_v46  ;;  %2942 = vmatprep.mubr.bf16.mxu1 %v2786_v46  ;;  %v10517_v46 = vld [vmem:[#allocation118_spill] sm:$0xff] }
 0x6a1   :  { %2871 = vmatprep.subr.bf16.mxu0 %v10108_v62  ;;  %2912 = vmatprep.subr.bf16.mxu1 %v8187_v59 }
 0x6a3   :  { %2872 = vmatpush1.bf16.msra.mxu0 %v10109_v36  ;;  %2913 = vmatpush1.bf16.msra.mxu1 %v8193_v29 }
 0x6a4   :  { %2873 = vmatprep.subr.bf16.mxu0 %v10110_v5  ;;  %2914 = vmatprep.subr.bf16.mxu1 %v8196_v27 }
 0x6a7   :  { %2874 = vmatpush1.bf16.msra.mxu0 %v10111_v43  ;;  %2915 = vmatpush1.bf16.msra.mxu1 %v8202_v7 }
 0x6a8   :  { %2875 = vmatprep.subr.bf16.mxu0 %v10112_v11  ;;  %2916 = vmatprep.subr.bf16.mxu1 %v8205_v17 }
 0x6ab   :  { %2876 = vmatpush1.bf16.msra.mxu0 %v10113_v38  ;;  %2917 = vmatpush1.bf16.msra.mxu1 %v8210_v34 }
 0x6ac   :  { %2877 = vmatprep.subr.bf16.mxu0 %v10114_v55  ;;  %2918 = vmatprep.subr.bf16.mxu1 %v8213_v16 }
 0x6af   :  { %2878 = vmatpush1.bf16.msra.mxu0 %v10115_v6  ;;  %2919 = vmatpush1.bf16.msra.mxu1 %v8218_v14 }
 0x6b0   :  { %2879 = vmatprep.subr.bf16.mxu0 %v10116_v20  ;;  %2920 = vmatprep.subr.bf16.mxu1 %v8221_v24 }
 0x6b3   :  { %2880 = vmatpush1.bf16.msra.mxu0 %v10117_v9  ;;  %2921 = vmatpush1.bf16.msra.mxu1 %v8226_v22 }
 0x6b4   :  { %2881 = vmatprep.subr.bf16.mxu0 %v10118_v0  ;;  %2922 = vmatprep.subr.bf16.mxu1 %v8229_v33 }
 0x6b7   :  { %2882 = vmatpush1.bf16.msra.mxu0 %v10119_v1  ;;  %2923 = vmatpush1.bf16.msra.mxu1 %v8234_v31 }
 0x6b8   :  { %2883 = vmatprep.subr.bf16.mxu0 %v10120_v51  ;;  %2924 = vmatprep.subr.bf16.mxu1 %v8237_v41 }
 0x6bb   :  { %2884 = vmatpush1.bf16.msra.mxu0 %v10121_v32  ;;  %2925 = vmatpush1.bf16.msra.mxu1 %v8242_v39 }
 0x6bc   :  { %2885 = vmatprep.subr.bf16.mxu0 %v10122_v13  ;;  %2926 = vmatprep.subr.bf16.mxu1 %v8245_v50 }
 0x6bf   :  { %2886 = vmatpush2.bf16.msra.mxu0 %v10123_v52  ;;  %2927 = vmatpush2.bf16.msra.mxu1 %v8250_v48 }
 0x6c0   :  { %2887 = vmatprep.subr.bf16.mxu0 %v10124_v57  ;;  %2928 = vmatprep.subr.bf16.mxu1 %v10205_v25 }
 0x6c3   :  { %2888 = vmatpush2.bf16.msra.mxu0 %v10125_v42  ;;  %2929 = vmatpush2.bf16.msra.mxu1 %v10206_v18 }
 0x6c4   :  { %2889 = vmatprep.subr.bf16.mxu0 %v10126_v8  ;;  %2930 = vmatprep.subr.bf16.mxu1 %v10496_v63 }
 0x6c7   :  { %2890 = vmatpush2.bf16.msra.mxu0 %v10497_v56  ;;  %2931 = vmatpush2.bf16.msra.mxu1 %v10498_v58 }
 0x6c8   :  { %2891 = vmatprep.subr.bf16.mxu0 %v10499_v15  ;;  %2932 = vmatprep.subr.bf16.mxu1 %v10500_v61 }
 0x6cb   :  { %2892 = vmatpush2.bf16.msra.mxu0 %v10501_v4  ;;  %2933 = vmatpush2.bf16.msra.mxu1 %v10502_v37  ;;  %v10587_v37 = vld [vmem:[#allocation173_spill] sm:$0xff] }
 0x6cc   :  { %2893 = vmatprep.subr.bf16.mxu0 %v10503_v35  ;;  %2934 = vmatprep.subr.bf16.mxu1 %v10504_v53  ;;  %v10585_v53 = vld [vmem:[#allocation172_spill] sm:$0xff]  ;;  %v10586_v35 = vld [vmem:[#allocation151_spill] sm:$0xff] }
 0x6cf   :  { %2894 = vmatpush2.bf16.msra.mxu0 %v10505_v40  ;;  %2935 = vmatpush2.bf16.msra.mxu1 %v10506_v3 }
 0x6d0   :  { %2895 = vmatprep.subr.bf16.mxu0 %v10507_v45  ;;  %2936 = vmatprep.subr.bf16.mxu1 %v10508_v28  ;;  %v10518_v45 = vld [vmem:[#allocation133_spill] sm:$0xff]  ;;  %v10519_v28 = vld [vmem:[#allocation23_spill] sm:$0xff] }
 0x6d3   :  { %2896 = vmatpush2.bf16.msra.mxu0 %v10509_v12  ;;  %2937 = vmatpush2.bf16.msra.mxu1 %v10510_v2  ;;  %v10520_v12 = vld [vmem:[#allocation55_spill] sm:$0xff] }
 0x6d4   :  { %2897 = vmatprep.subr.bf16.mxu0 %v10511_v49  ;;  %2938 = vmatprep.subr.bf16.mxu1 %v10512_v21  ;;  %v10521_v21 = vld [vmem:[#allocation24_spill] sm:$0xff]  ;;  %v10530_v49 = vld [vmem:[#allocation65_spill] sm:$0xff] }
 0x6d7   :  { %2898 = vmatpush2.bf16.msra.mxu0 %v10513_v23  ;;  %2939 = vmatpush2.bf16.msra.mxu1 %v10514_v30  ;;  %v10522_v23 = vld [vmem:[#allocation57_spill] sm:$0xff] }
 0x6d8   :  { %2899 = vmatprep.subr.bf16.mxu0 %v10515_v26  ;;  %2940 = vmatprep.subr.bf16.mxu1 %v10516_v47  ;;  %v10523_v30 = vld [vmem:[#allocation25_spill] sm:$0xff]  ;;  %v10524_v26 = vld [vmem:[#allocation59_spill] sm:$0xff]  ;;  %v10525_v47 = vld [vmem:[#allocation26_spill] sm:$0xff] }
 0x6db   :  { %2900 = vmatpush2.bf16.msra.mxu0 %v10517_v46  ;;  %2941 = vmatpush2.bf16.msra.mxu1 %v10518_v45  ;;  %v10526_v46 = vld [vmem:[#allocation61_spill] sm:$0xff]  ;;  %v10527_v45 = vld [vmem:[#allocation27_spill] sm:$0xff] }
 0x6dc   :  { %3005 = vmatprep.subr.bf16.mxu0 %v10519_v28  ;;  %3046 = vmatprep.subr.bf16.mxu1 %v10520_v12  ;;  %v10528_v28 = vld [vmem:[#allocation63_spill] sm:$0xff]  ;;  %v10529_v12 = vld [vmem:[#allocation28_spill] sm:$0xff] }
 0x6de   :  { %2902 = vmatmul.mubr.bf16.vlgmr.msra.gmra.mxu0 %v9199_v54  ;;  %2943 = vmatmul.mubr.bf16.vlgmr.msra.gmra.mxu1 %v9199_v54  ;;  %v10531_v54 = vld [vmem:[#allocation29_spill] sm:$0xff] }
 0x6df   :  { %3006 = vmatpush1.bf16.msra.mxu0 %v10521_v21  ;;  %3047 = vmatpush1.bf16.msra.mxu1 %v10522_v23  ;;  %v10532_v21 = vld [vmem:[#allocation67_spill] sm:$0xff]  ;;  %v10533_v23 = vld [vmem:[#allocation30_spill] sm:$0xff] }
 0x6e0   :  { %3007 = vmatprep.subr.bf16.mxu0 %v10523_v30  ;;  %3048 = vmatprep.subr.bf16.mxu1 %v10524_v26  ;;  %v10534_v30 = vld [vmem:[#allocation69_spill] sm:$0xff]  ;;  %v10535_v26 = vld [vmem:[#allocation31_spill] sm:$0xff] }
 0x6e3   :  { %3008 = vmatpush1.bf16.msra.mxu0 %v10525_v47  ;;  %3049 = vmatpush1.bf16.msra.mxu1 %v10526_v46  ;;  %v10536_v47 = vld [vmem:[#allocation71_spill] sm:$0xff]  ;;  %v10537_v46 = vld [vmem:[#allocation32_spill] sm:$0xff] }
 0x6e4   :  { %3009 = vmatprep.subr.bf16.mxu0 %v10527_v45  ;;  %3050 = vmatprep.subr.bf16.mxu1 %v10528_v28  ;;  %v10538_v45 = vld [vmem:[#allocation73_spill] sm:$0xff] }
 0x6e5   :  { %v10539_v28 = vld [vmem:[#allocation33_spill] sm:$0xff] }
 0x6e7   :  { %3010 = vmatpush1.bf16.msra.mxu0 %v10529_v12  ;;  %3051 = vmatpush1.bf16.msra.mxu1 %v10530_v49  ;;  %v10540_v12 = vld [vmem:[#allocation75_spill] sm:$0xff]  ;;  %v10541_v49 = vld [vmem:[#allocation34_spill] sm:$0xff] }
 0x6e8   :  { %3011 = vmatprep.subr.bf16.mxu0 %v10531_v54  ;;  %3052 = vmatprep.subr.bf16.mxu1 %v10532_v21  ;;  %v10542_v54 = vld [vmem:[#allocation77_spill] sm:$0xff]  ;;  %v10543_v21 = vld [vmem:[#allocation35_spill] sm:$0xff] }
 0x6eb   :  { %3012 = vmatpush1.bf16.msra.mxu0 %v10533_v23  ;;  %3053 = vmatpush1.bf16.msra.mxu1 %v10534_v30  ;;  %v10544_v23 = vld [vmem:[#allocation79_spill] sm:$0xff]  ;;  %v10545_v30 = vld [vmem:[#allocation36_spill] sm:$0xff] }
 0x6ec   :  { %3013 = vmatprep.subr.bf16.mxu0 %v10535_v26  ;;  %3054 = vmatprep.subr.bf16.mxu1 %v10536_v47  ;;  %v10546_v26 = vld [vmem:[#allocation81_spill] sm:$0xff] }
 0x6ed   :  { %v10547_v47 = vld [vmem:[#allocation37_spill] sm:$0xff] }
 0x6ef   :  { %3014 = vmatpush1.bf16.msra.mxu0 %v10537_v46  ;;  %3055 = vmatpush1.bf16.msra.mxu1 %v10538_v45  ;;  %v10548_v46 = vld [vmem:[#allocation83_spill] sm:$0xff]  ;;  %v10549_v45 = vld [vmem:[#allocation38_spill] sm:$0xff] }
 0x6f0   :  { %3015 = vmatprep.subr.bf16.mxu0 %v10539_v28  ;;  %3056 = vmatprep.subr.bf16.mxu1 %v10540_v12  ;;  %v10550_v28 = vld [vmem:[#allocation85_spill] sm:$0xff]  ;;  %v10551_v12 = vld [vmem:[#allocation39_spill] sm:$0xff] }
 0x6f3   :  { %3016 = vmatpush1.bf16.msra.mxu0 %v10541_v49  ;;  %3057 = vmatpush1.bf16.msra.mxu1 %v10542_v54  ;;  %v10552_v49 = vld [vmem:[#allocation87_spill] sm:$0xff]  ;;  %v10553_v54 = vld [vmem:[#allocation40_spill] sm:$0xff] }
 0x6f4   :  { %3017 = vmatprep.subr.bf16.mxu0 %v10543_v21  ;;  %3058 = vmatprep.subr.bf16.mxu1 %v10544_v23  ;;  %v10554_v21 = vld [vmem:[#allocation89_spill] sm:$0xff] }
 0x6f5   :  { %v10555_v23 = vld [vmem:[#allocation41_spill] sm:$0xff] }
 0x6f7   :  { %3018 = vmatpush1.bf16.msra.mxu0 %v10545_v30  ;;  %3059 = vmatpush1.bf16.msra.mxu1 %v10546_v26  ;;  %v10556_v30 = vld [vmem:[#allocation91_spill] sm:$0xff]  ;;  %v10557_v26 = vld [vmem:[#allocation42_spill] sm:$0xff] }
 0x6f8   :  { %3019 = vmatprep.subr.bf16.mxu0 %v10547_v47  ;;  %3060 = vmatprep.subr.bf16.mxu1 %v10548_v46  ;;  %v10558_v47 = vld [vmem:[#allocation93_spill] sm:$0xff]  ;;  %v10559_v46 = vld [vmem:[#allocation43_spill] sm:$0xff] }
 0x6fb   :  { %3020 = vmatpush1.bf16.msra.mxu0 %v10549_v45  ;;  %3061 = vmatpush1.bf16.msra.mxu1 %v10550_v28  ;;  %v10560_v45 = vld [vmem:[#allocation95_spill] sm:$0xff]  ;;  %v10561_v28 = vld [vmem:[#allocation44_spill] sm:$0xff] }
 0x6fc   :  { %3021 = vmatprep.subr.bf16.mxu0 %v10551_v12  ;;  %3062 = vmatprep.subr.bf16.mxu1 %v10552_v49  ;;  %v10562_v12 = vld [vmem:[#allocation97_spill] sm:$0xff] }
 0x6fd   :  { %v10563_v49 = vld [vmem:[#allocation45_spill] sm:$0xff] }
 0x6ff   :  { %3022 = vmatpush2.bf16.msra.mxu0 %v10553_v54  ;;  %3063 = vmatpush2.bf16.msra.mxu1 %v10554_v21  ;;  %v10564_v54 = vld [vmem:[#allocation99_spill] sm:$0xff]  ;;  %v10565_v21 = vld [vmem:[#allocation46_spill] sm:$0xff] }
 0x700   :  { %3023 = vmatprep.subr.bf16.mxu0 %v10555_v23  ;;  %3064 = vmatprep.subr.bf16.mxu1 %v10556_v30  ;;  %v10566_v23 = vld [vmem:[#allocation101_spill] sm:$0xff]  ;;  %v10567_v30 = vld [vmem:[#allocation47_spill] sm:$0xff] }
 0x703   :  { %3024 = vmatpush2.bf16.msra.mxu0 %v10557_v26  ;;  %3065 = vmatpush2.bf16.msra.mxu1 %v10558_v47  ;;  %v10568_v26 = vld [vmem:[#allocation103_spill] sm:$0xff]  ;;  %v10569_v47 = vld [vmem:[#allocation48_spill] sm:$0xff] }
 0x704   :  { %3025 = vmatprep.subr.bf16.mxu0 %v10559_v46  ;;  %3066 = vmatprep.subr.bf16.mxu1 %v10560_v45  ;;  %v10570_v46 = vld [vmem:[#allocation105_spill] sm:$0xff] }
 0x705   :  { %v10571_v45 = vld [vmem:[#allocation49_spill] sm:$0xff] }
 0x707   :  { %3026 = vmatpush2.bf16.msra.mxu0 %v10561_v28  ;;  %3067 = vmatpush2.bf16.msra.mxu1 %v10562_v12  ;;  %v10572_v28 = vld [vmem:[#allocation107_spill] sm:$0xff]  ;;  %v10573_v12 = vld [vmem:[#allocation50_spill] sm:$0xff] }
 0x708   :  { %3027 = vmatprep.subr.bf16.mxu0 %v10563_v49  ;;  %3068 = vmatprep.subr.bf16.mxu1 %v10564_v54  ;;  %v10574_v49 = vld [vmem:[#allocation109_spill] sm:$0xff]  ;;  %v10575_v54 = vld [vmem:[#allocation51_spill] sm:$0xff] }
 0x70b   :  { %3028 = vmatpush2.bf16.msra.mxu0 %v10565_v21  ;;  %3069 = vmatpush2.bf16.msra.mxu1 %v10566_v23  ;;  %v10576_v21 = vld [vmem:[#allocation111_spill] sm:$0xff]  ;;  %v10577_v23 = vld [vmem:[#allocation52_spill] sm:$0xff] }
 0x70c   :  { %3029 = vmatprep.subr.bf16.mxu0 %v10567_v30  ;;  %3070 = vmatprep.subr.bf16.mxu1 %v10568_v26  ;;  %v10578_v30 = vld [vmem:[#allocation113_spill] sm:$0xff] }
 0x70d   :  { %v10579_v26 = vld [vmem:[#allocation53_spill] sm:$0xff] }
 0x70f   :  { %3030 = vmatpush2.bf16.msra.mxu0 %v10569_v47  ;;  %3071 = vmatpush2.bf16.msra.mxu1 %v10570_v46  ;;  %v10580_v47 = vld [vmem:[#allocation115_spill] sm:$0xff]  ;;  %v10581_v46 = vld [vmem:[#allocation54_spill] sm:$0xff] }
 0x710   :  { %3031 = vmatprep.subr.bf16.mxu0 %v10571_v45  ;;  %3072 = vmatprep.subr.bf16.mxu1 %v10572_v28  ;;  %v10582_v45 = vld [vmem:[#allocation117_spill] sm:$0xff]  ;;  %v10583_v28 = vld [vmem:[#allocation56_spill] sm:$0xff] }
 0x713   :  { %3032 = vmatpush2.bf16.msra.mxu0 %v10573_v12  ;;  %3073 = vmatpush2.bf16.msra.mxu1 %v10574_v49  ;;  %v10584_v12 = vld [vmem:[#allocation119_spill] sm:$0xff] }
 0x714   :  { %3033 = vmatprep.subr.bf16.mxu0 %v10575_v54  ;;  %3074 = vmatprep.subr.bf16.mxu1 %v10576_v21 }
 0x717   :  { %3034 = vmatpush2.bf16.msra.mxu0 %v10577_v23  ;;  %3075 = vmatpush2.bf16.msra.mxu1 %v10578_v30 }
 0x718   :  { %3035 = vmatprep.subr.bf16.mxu0 %v10579_v26  ;;  %3076 = vmatprep.subr.bf16.mxu1 %v10580_v47 }
 0x71b   :  { %3036 = vmatpush2.bf16.msra.mxu0 %v10581_v46  ;;  %3077 = vmatpush2.bf16.msra.mxu1 %v10582_v45  ;;  %v10588_v45 = vld [vmem:[#allocation153_spill] sm:$0xff] }
 0x71c   :  { %3087 = vmatprep.subr.bf16.mxu0 %v10583_v28  ;;  %3128 = vmatprep.subr.bf16.mxu1 %v10584_v12 }
 0x75e   :  { %v2821_v49 = vpop.f32.mrf.mxu0  ;;  %v2862_v54 = vpop.f32.mrf.mxu1 }
 0x75f   :  { %v2953_v26 = vadd.f32 %v2862_v54, %v10585_v53  ;;  %v2951_v47 = vadd.f32 %v2821_v49, %v10586_v35  ;;  %v10590_v35 = vld [vmem:[#allocation156_spill] sm:$0xff] }
 0x760   :  { %v2823_v2 = vpop.f32.mrf.mxu0  ;;  %v2864_v21 = vpop.f32.mrf.mxu1 }
 0x761   :  { %v2954_v46 = vadd.f32 %v2864_v21, %v10587_v37  ;;  %v2967_v4 = vmul.f32 0.5, %v2953_v26  ;;  %v2952_v61 = vadd.f32 %v2823_v2, %v10588_v45  ;;  %v2959_v28 = vmul.f32 0.5, %v2951_v47 }
 0x762   :  { %v2825_v3 = vpop.f32.mrf.mxu0  ;;  %v2866_v23 = vpop.f32.mrf.mxu1 }
 0x763   :  { %v2968_v15 = vmul.f32 0.5, %v2954_v46  ;;  %6815 = vtanh.f32 %v2967_v4  ;;  %v2960_v12 = vmul.f32 0.5, %v2952_v61  ;;  %v10591_v4 = vld [vmem:[#allocation184_spill] sm:$0xff] }
 0x764   :  { %v2826_v40 = vpop.f32.mrf.mxu0  ;;  %v2867_v30 = vpop.f32.mrf.mxu1  ;;  %6817 = vtanh.f32 %v2959_v28 }
 0x765   :  { %6819 = vtanh.f32 %v2968_v15  ;;  %v10589_v40 = vld [vmem:[#allocation154_spill] sm:$0xff]  ;;  %v10592_v15 = vld [vmem:[#allocation185_spill] sm:$0xff] }
 0x766   :  { %6821 = vtanh.f32 %v2960_v12 }
 0x770   :  { %v6816_v26 = vpop.eup %6815 }
 0x771   :  { %v6818_v28 = vpop.eup %6817  ;;  %v2971_v46 = vmul.f32 0.5, %v6816_v26 }
 0x772   :  { %v6820_v47 = vpop.eup %6819 }
 0x773   :  { %v6822_v54 = vpop.eup %6821  ;;  %v2972_v56 = vmul.f32 0.5, %v6820_v47  ;;  %v2973_v63 = vadd.f32 0.5, %v2971_v46 }
 0x79e   :  { %v2903_v3 = vpop.f32.mrf.mxu0  ;;  %v2944_v23 = vpop.f32.mrf.mxu1 }
 0x79f   :  { %v2955_v30 = vadd.f32 %v2903_v3, %v10589_v40  ;;  %v2957_v61 = vadd.f32 %v2944_v23, %v10591_v4  ;;  %v2963_v3 = vmul.f32 0.5, %v6818_v28 }
 0x7a0   :  { %v2905_v58 = vpop.f32.mrf.mxu0  ;;  %v2946_v53 = vpop.f32.mrf.mxu1 }
 0x7a1   :  { %6823 = vtanh.f32 %v2955_v30  ;;  %v2956_v49 = vadd.f32 %v2905_v58, %v10590_v35  ;;  %v2958_v12 = vadd.f32 %v2946_v53, %v10592_v15  ;;  %v2977_v40 = vmul.f32 0.5, %v2957_v61 }
 0x7a2   :  { %v2907_v37 = vpop.f32.mrf.mxu0  ;;  %v2948_v21 = vpop.f32.mrf.mxu1  ;;  %v2964_v58 = vmul.f32 0.5, %v6822_v54  ;;  %v2965_v35 = vadd.f32 0.5, %v2963_v3 }
 0x7a3   :  { %6825 = vtanh.f32 %v2956_v49  ;;  %v2978_v30 = vmul.f32 0.5, %v2958_v12  ;;  %v2974_v49 = vadd.f32 0.5, %v2972_v56  ;;  %v2985_v21 = vmul.f32 %v2973_v63, %v9192_v60 }
 0x7a4   :  { %v2908_v45 = vpop.f32.mrf.mxu0  ;;  %v2949_v2 = vpop.f32.mrf.mxu1  ;;  %6827 = vtanh.f32 %v2977_v40 }
 0x7a5   :  { %6829 = vtanh.f32 %v2978_v30  ;;  %v2966_v45 = vadd.f32 0.5, %v2964_v58  ;;  %v2986_v26 = vmul.f32 %v2974_v49, %v9196_v19  ;;  %v10593_v19 = vld [vmem:[#allocation122_spill] sm:$0xff]  ;;  %v10597_v49 = vld [vmem:[#allocation124_spill] sm:$0xff] }
 0x7a6   :  { %v10594_v58 = vld [vmem:[#allocation98_spill] sm:$0xff] }
 0x7ae   :  { %v6824_v37 = vpop.eup %6823 }
 0x7af   :  { %v2987_v23 = vmul.f32 %v6824_v37, %v2965_v35  ;;  %v10595_v35 = vld [vmem:[#allocation123_spill] sm:$0xff]  ;;  %v10596_v37 = vld [vmem:[#allocation100_spill] sm:$0xff] }
 0x7b0   :  { %v6826_v2 = vpop.eup %6825 }
 0x7b1   :  { %v9342_v53 = vadd.f32 %v2987_v23, %v2985_v21  ;;  %v2988_v4 = vmul.f32 %v6826_v2, %v2966_v45  ;;  %v6828_v28 = vpop.eup %6827  ;;  %v10598_v21 = vld [vmem:[#allocation102_spill] sm:$0xff]  ;;  %v10599_v23 = vld [vmem:[#allocation125_spill] sm:$0xff]  ;;  %v10600_v45 = vld [vmem:[#allocation104_spill] sm:$0xff] }
 0x7b2   :  { %v6830_v15 = vpop.eup %6829  ;;  %v2981_v56 = vmul.f32 0.5, %v6828_v28  ;;  %v10601_v2 = vld [vmem:[#allocation126_spill] sm:$0xff]  ;;  %v10604_v28 = vld [vmem:[#allocation108_spill] sm:$0xff] }
 0x7b3   :  { %6831 = vtanh.f32 %v9342_v53  ;;  %v9346_v61 = vadd.f32 %v2988_v4, %v2986_v26  ;;  %v2982_v12 = vmul.f32 0.5, %v6830_v15  ;;  %v10602_v26 = vld [vmem:[#allocation106_spill] sm:$0xff]  ;;  %v10603_v4 = vld [vmem:[#allocation127_spill] sm:$0xff]  ;;  %v10605_v15 = vld [vmem:[#allocation128_spill] sm:$0xff] }
 0x7b4   :  { %v2983_v60 = vadd.f32 0.5, %v2981_v56  ;;  %v10606_v56 = vld [vmem:[#allocation110_spill] sm:$0xff] }
 0x7b5   :  { %6833 = vtanh.f32 %v9346_v61  ;;  %v2984_v63 = vadd.f32 0.5, %v2982_v12  ;;  %v10607_v12 = vld [vmem:[#allocation129_spill] sm:$0xff] }
 0x7c0   :  { %v6832_v47 = vpop.eup %6831 }
 0x7c1   :  { %v2993_v54 = vmul.f32 %v6832_v47, %v2983_v60  ;;  %v10608_v47 = vld [vmem:[#allocation112_spill] sm:$0xff]  ;;  %v10609_v60 = vld [vmem:[#allocation130_spill] sm:$0xff] }
 0x7c2   :  { %v6834_v46 = vpop.eup %6833 }
 0x7c3   :  { %v2994_v3 = vmul.f32 %v6834_v46, %v2984_v63  ;;  %v9349_v30 = vpack.c.bf16 %v2993_v54, %v2993_v54  ;;  %v10610_v63 = vld [vmem:[#allocation114_spill] sm:$0xff]  ;;  %v10611_v46 = vld [vmem:[#allocation131_spill] sm:$0xff]  ;;  %v10612_v54 = vld [vmem:[#allocation116_spill] sm:$0xff] }
 0x7c5   :  { %v3004_v40 = vpack.c.bf16 %v2994_v3, %v2994_v3  ;;  %v10613_v3 = vld [vmem:[#allocation132_spill] sm:$0xff] }
 0x7c7   :  { %3037 = vmatprep.mubr.bf16.mxu0 %v3004_v40  ;;  %3078 = vmatprep.mubr.bf16.mxu1 %v3004_v40 }
 0x7c8   :  { %3038 = vmatmul.mubr.bf16.vlgmr.msra.gmra.mxu0 %v9349_v30  ;;  %3079 = vmatmul.mubr.bf16.vlgmr.msra.gmra.mxu1 %v9349_v30 }
 0x7c9   :  { %3088 = vmatpush1.bf16.msra.mxu0 %v10107_v10  ;;  %3129 = vmatpush1.bf16.msra.mxu1 %v8183_v44 }
 0x7ca   :  { %3119 = vmatprep.mubr.bf16.mxu0 %v3004_v40  ;;  %3160 = vmatprep.mubr.bf16.mxu1 %v3004_v40  ;;  %v10614_v40 = vld [vmem:[#allocation118_spill] sm:$0xff] }
 0x7cb   :  { %3089 = vmatprep.subr.bf16.mxu0 %v10108_v62  ;;  %3130 = vmatprep.subr.bf16.mxu1 %v8187_v59 }
 0x7cd   :  { %3090 = vmatpush1.bf16.msra.mxu0 %v10109_v36  ;;  %3131 = vmatpush1.bf16.msra.mxu1 %v8193_v29 }
 0x7ce   :  { %3091 = vmatprep.subr.bf16.mxu0 %v10110_v5  ;;  %3132 = vmatprep.subr.bf16.mxu1 %v8196_v27 }
 0x7d1   :  { %3092 = vmatpush1.bf16.msra.mxu0 %v10111_v43  ;;  %3133 = vmatpush1.bf16.msra.mxu1 %v8202_v7 }
 0x7d2   :  { %3093 = vmatprep.subr.bf16.mxu0 %v10112_v11  ;;  %3134 = vmatprep.subr.bf16.mxu1 %v8205_v17 }
 0x7d5   :  { %3094 = vmatpush1.bf16.msra.mxu0 %v10113_v38  ;;  %3135 = vmatpush1.bf16.msra.mxu1 %v8210_v34 }
 0x7d6   :  { %3095 = vmatprep.subr.bf16.mxu0 %v10114_v55  ;;  %3136 = vmatprep.subr.bf16.mxu1 %v8213_v16 }
 0x7d9   :  { %3096 = vmatpush1.bf16.msra.mxu0 %v10115_v6  ;;  %3137 = vmatpush1.bf16.msra.mxu1 %v8218_v14 }
 0x7da   :  { %3097 = vmatprep.subr.bf16.mxu0 %v10116_v20  ;;  %3138 = vmatprep.subr.bf16.mxu1 %v8221_v24 }
 0x7dd   :  { %3098 = vmatpush1.bf16.msra.mxu0 %v10117_v9  ;;  %3139 = vmatpush1.bf16.msra.mxu1 %v8226_v22 }
 0x7de   :  { %3099 = vmatprep.subr.bf16.mxu0 %v10118_v0  ;;  %3140 = vmatprep.subr.bf16.mxu1 %v8229_v33 }
 0x7e1   :  { %3100 = vmatpush1.bf16.msra.mxu0 %v10119_v1  ;;  %3141 = vmatpush1.bf16.msra.mxu1 %v8234_v31 }
 0x7e2   :  { %3101 = vmatprep.subr.bf16.mxu0 %v10120_v51  ;;  %3142 = vmatprep.subr.bf16.mxu1 %v8237_v41 }
 0x7e5   :  { %3102 = vmatpush1.bf16.msra.mxu0 %v10121_v32  ;;  %3143 = vmatpush1.bf16.msra.mxu1 %v8242_v39 }
 0x7e6   :  { %3103 = vmatprep.subr.bf16.mxu0 %v10122_v13  ;;  %3144 = vmatprep.subr.bf16.mxu1 %v8245_v50 }
 0x7e9   :  { %3104 = vmatpush2.bf16.msra.mxu0 %v10123_v52  ;;  %3145 = vmatpush2.bf16.msra.mxu1 %v8250_v48 }
 0x7ea   :  { %3105 = vmatprep.subr.bf16.mxu0 %v10124_v57  ;;  %3146 = vmatprep.subr.bf16.mxu1 %v10205_v25 }
 0x7ed   :  { %3106 = vmatpush2.bf16.msra.mxu0 %v10125_v42  ;;  %3147 = vmatpush2.bf16.msra.mxu1 %v10206_v18 }
 0x7ee   :  { %3107 = vmatprep.subr.bf16.mxu0 %v10126_v8  ;;  %3148 = vmatprep.subr.bf16.mxu1 %v10593_v19 }
 0x7f1   :  { %3108 = vmatpush2.bf16.msra.mxu0 %v10594_v58  ;;  %3149 = vmatpush2.bf16.msra.mxu1 %v10595_v35 }
 0x7f2   :  { %3109 = vmatprep.subr.bf16.mxu0 %v10596_v37  ;;  %3150 = vmatprep.subr.bf16.mxu1 %v10597_v49 }
 0x7f5   :  { %3110 = vmatpush2.bf16.msra.mxu0 %v10598_v21  ;;  %3151 = vmatpush2.bf16.msra.mxu1 %v10599_v23  ;;  %v10684_v23 = vld [vmem:[#allocation175_spill] sm:$0xff] }
 0x7f6   :  { %3111 = vmatprep.subr.bf16.mxu0 %v10600_v45  ;;  %3152 = vmatprep.subr.bf16.mxu1 %v10601_v2  ;;  %v10682_v2 = vld [vmem:[#allocation174_spill] sm:$0xff]  ;;  %v10683_v45 = vld [vmem:[#allocation155_spill] sm:$0xff] }
 0x7f9   :  { %3112 = vmatpush2.bf16.msra.mxu0 %v10602_v26  ;;  %3153 = vmatpush2.bf16.msra.mxu1 %v10603_v4 }
 0x7fa   :  { %3113 = vmatprep.subr.bf16.mxu0 %v10604_v28  ;;  %3154 = vmatprep.subr.bf16.mxu1 %v10605_v15  ;;  %v10615_v28 = vld [vmem:[#allocation133_spill] sm:$0xff]  ;;  %v10616_v15 = vld [vmem:[#allocation23_spill] sm:$0xff] }
 0x7fd   :  { %3114 = vmatpush2.bf16.msra.mxu0 %v10606_v56  ;;  %3155 = vmatpush2.bf16.msra.mxu1 %v10607_v12  ;;  %v10617_v56 = vld [vmem:[#allocation55_spill] sm:$0xff] }
 0x7fe   :  { %3115 = vmatprep.subr.bf16.mxu0 %v10608_v47  ;;  %3156 = vmatprep.subr.bf16.mxu1 %v10609_v60  ;;  %v10618_v60 = vld [vmem:[#allocation24_spill] sm:$0xff]  ;;  %v10627_v47 = vld [vmem:[#allocation65_spill] sm:$0xff] }
 0x801   :  { %3116 = vmatpush2.bf16.msra.mxu0 %v10610_v63  ;;  %3157 = vmatpush2.bf16.msra.mxu1 %v10611_v46  ;;  %v10619_v63 = vld [vmem:[#allocation57_spill] sm:$0xff] }
 0x802   :  { %3117 = vmatprep.subr.bf16.mxu0 %v10612_v54  ;;  %3158 = vmatprep.subr.bf16.mxu1 %v10613_v3  ;;  %v10620_v46 = vld [vmem:[#allocation25_spill] sm:$0xff]  ;;  %v10621_v54 = vld [vmem:[#allocation59_spill] sm:$0xff]  ;;  %v10622_v3 = vld [vmem:[#allocation26_spill] sm:$0xff] }
 0x805   :  { %3118 = vmatpush2.bf16.msra.mxu0 %v10614_v40  ;;  %3159 = vmatpush2.bf16.msra.mxu1 %v10615_v28  ;;  %v10623_v40 = vld [vmem:[#allocation61_spill] sm:$0xff]  ;;  %v10624_v28 = vld [vmem:[#allocation27_spill] sm:$0xff] }
 0x806   :  { %3223 = vmatprep.subr.bf16.mxu0 %v10616_v15  ;;  %3264 = vmatprep.subr.bf16.mxu1 %v10617_v56  ;;  %v10625_v15 = vld [vmem:[#allocation63_spill] sm:$0xff]  ;;  %v10626_v56 = vld [vmem:[#allocation28_spill] sm:$0xff] }
 0x808   :  { %3120 = vmatmul.mubr.bf16.vlgmr.msra.gmra.mxu0 %v9349_v30  ;;  %3161 = vmatmul.mubr.bf16.vlgmr.msra.gmra.mxu1 %v9349_v30  ;;  %v10628_v30 = vld [vmem:[#allocation29_spill] sm:$0xff] }
 0x809   :  { %3224 = vmatpush1.bf16.msra.mxu0 %v10618_v60  ;;  %3265 = vmatpush1.bf16.msra.mxu1 %v10619_v63  ;;  %v10629_v60 = vld [vmem:[#allocation67_spill] sm:$0xff]  ;;  %v10630_v63 = vld [vmem:[#allocation30_spill] sm:$0xff] }
 0x80a   :  { %3225 = vmatprep.subr.bf16.mxu0 %v10620_v46  ;;  %3266 = vmatprep.subr.bf16.mxu1 %v10621_v54  ;;  %v10631_v46 = vld [vmem:[#allocation69_spill] sm:$0xff]  ;;  %v10632_v54 = vld [vmem:[#allocation31_spill] sm:$0xff] }
 0x80d   :  { %3226 = vmatpush1.bf16.msra.mxu0 %v10622_v3  ;;  %3267 = vmatpush1.bf16.msra.mxu1 %v10623_v40  ;;  %v10633_v3 = vld [vmem:[#allocation71_spill] sm:$0xff]  ;;  %v10634_v40 = vld [vmem:[#allocation32_spill] sm:$0xff] }
 0x80e   :  { %3227 = vmatprep.subr.bf16.mxu0 %v10624_v28  ;;  %3268 = vmatprep.subr.bf16.mxu1 %v10625_v15  ;;  %v10635_v28 = vld [vmem:[#allocation73_spill] sm:$0xff] }
 0x80f   :  { %v10636_v15 = vld [vmem:[#allocation33_spill] sm:$0xff] }
 0x811   :  { %3228 = vmatpush1.bf16.msra.mxu0 %v10626_v56  ;;  %3269 = vmatpush1.bf16.msra.mxu1 %v10627_v47  ;;  %v10637_v56 = vld [vmem:[#allocation75_spill] sm:$0xff]  ;;  %v10638_v47 = vld [vmem:[#allocation34_spill] sm:$0xff] }
 0x812   :  { %3229 = vmatprep.subr.bf16.mxu0 %v10628_v30  ;;  %3270 = vmatprep.subr.bf16.mxu1 %v10629_v60  ;;  %v10639_v30 = vld [vmem:[#allocation77_spill] sm:$0xff]  ;;  %v10640_v60 = vld [vmem:[#allocation35_spill] sm:$0xff] }
 0x815   :  { %3230 = vmatpush1.bf16.msra.mxu0 %v10630_v63  ;;  %3271 = vmatpush1.bf16.msra.mxu1 %v10631_v46  ;;  %v10641_v63 = vld [vmem:[#allocation79_spill] sm:$0xff]  ;;  %v10642_v46 = vld [vmem:[#allocation36_spill] sm:$0xff] }
 0x816   :  { %3231 = vmatprep.subr.bf16.mxu0 %v10632_v54  ;;  %3272 = vmatprep.subr.bf16.mxu1 %v10633_v3  ;;  %v10643_v54 = vld [vmem:[#allocation81_spill] sm:$0xff] }
 0x817   :  { %v10644_v3 = vld [vmem:[#allocation37_spill] sm:$0xff] }
 0x819   :  { %3232 = vmatpush1.bf16.msra.mxu0 %v10634_v40  ;;  %3273 = vmatpush1.bf16.msra.mxu1 %v10635_v28  ;;  %v10645_v40 = vld [vmem:[#allocation83_spill] sm:$0xff]  ;;  %v10646_v28 = vld [vmem:[#allocation38_spill] sm:$0xff] }
 0x81a   :  { %3233 = vmatprep.subr.bf16.mxu0 %v10636_v15  ;;  %3274 = vmatprep.subr.bf16.mxu1 %v10637_v56  ;;  %v10647_v15 = vld [vmem:[#allocation85_spill] sm:$0xff]  ;;  %v10648_v56 = vld [vmem:[#allocation39_spill] sm:$0xff] }
 0x81d   :  { %3234 = vmatpush1.bf16.msra.mxu0 %v10638_v47  ;;  %3275 = vmatpush1.bf16.msra.mxu1 %v10639_v30  ;;  %v10649_v47 = vld [vmem:[#allocation87_spill] sm:$0xff]  ;;  %v10650_v30 = vld [vmem:[#allocation40_spill] sm:$0xff] }
 0x81e   :  { %3235 = vmatprep.subr.bf16.mxu0 %v10640_v60  ;;  %3276 = vmatprep.subr.bf16.mxu1 %v10641_v63  ;;  %v10651_v60 = vld [vmem:[#allocation89_spill] sm:$0xff] }
 0x81f   :  { %v10652_v63 = vld [vmem:[#allocation41_spill] sm:$0xff] }
 0x821   :  { %3236 = vmatpush1.bf16.msra.mxu0 %v10642_v46  ;;  %3277 = vmatpush1.bf16.msra.mxu1 %v10643_v54  ;;  %v10653_v46 = vld [vmem:[#allocation91_spill] sm:$0xff]  ;;  %v10654_v54 = vld [vmem:[#allocation42_spill] sm:$0xff] }
 0x822   :  { %3237 = vmatprep.subr.bf16.mxu0 %v10644_v3  ;;  %3278 = vmatprep.subr.bf16.mxu1 %v10645_v40  ;;  %v10655_v3 = vld [vmem:[#allocation93_spill] sm:$0xff]  ;;  %v10656_v40 = vld [vmem:[#allocation43_spill] sm:$0xff] }
 0x825   :  { %3238 = vmatpush1.bf16.msra.mxu0 %v10646_v28  ;;  %3279 = vmatpush1.bf16.msra.mxu1 %v10647_v15  ;;  %v10657_v28 = vld [vmem:[#allocation95_spill] sm:$0xff]  ;;  %v10658_v15 = vld [vmem:[#allocation44_spill] sm:$0xff] }
 0x826   :  { %3239 = vmatprep.subr.bf16.mxu0 %v10648_v56  ;;  %3280 = vmatprep.subr.bf16.mxu1 %v10649_v47  ;;  %v10659_v56 = vld [vmem:[#allocation97_spill] sm:$0xff] }
 0x827   :  { %v10660_v47 = vld [vmem:[#allocation45_spill] sm:$0xff] }
 0x829   :  { %3240 = vmatpush2.bf16.msra.mxu0 %v10650_v30  ;;  %3281 = vmatpush2.bf16.msra.mxu1 %v10651_v60  ;;  %v10661_v30 = vld [vmem:[#allocation99_spill] sm:$0xff]  ;;  %v10662_v60 = vld [vmem:[#allocation46_spill] sm:$0xff] }
 0x82a   :  { %3241 = vmatprep.subr.bf16.mxu0 %v10652_v63  ;;  %3282 = vmatprep.subr.bf16.mxu1 %v10653_v46  ;;  %v10663_v63 = vld [vmem:[#allocation101_spill] sm:$0xff]  ;;  %v10664_v46 = vld [vmem:[#allocation47_spill] sm:$0xff] }
 0x82d   :  { %3242 = vmatpush2.bf16.msra.mxu0 %v10654_v54  ;;  %3283 = vmatpush2.bf16.msra.mxu1 %v10655_v3  ;;  %v10665_v54 = vld [vmem:[#allocation103_spill] sm:$0xff]  ;;  %v10666_v3 = vld [vmem:[#allocation48_spill] sm:$0xff] }
 0x82e   :  { %3243 = vmatprep.subr.bf16.mxu0 %v10656_v40  ;;  %3284 = vmatprep.subr.bf16.mxu1 %v10657_v28  ;;  %v10667_v40 = vld [vmem:[#allocation105_spill] sm:$0xff] }
 0x82f   :  { %v10668_v28 = vld [vmem:[#allocation49_spill] sm:$0xff] }
 0x831   :  { %3244 = vmatpush2.bf16.msra.mxu0 %v10658_v15  ;;  %3285 = vmatpush2.bf16.msra.mxu1 %v10659_v56  ;;  %v10669_v15 = vld [vmem:[#allocation107_spill] sm:$0xff]  ;;  %v10670_v56 = vld [vmem:[#allocation50_spill] sm:$0xff] }
 0x832   :  { %3245 = vmatprep.subr.bf16.mxu0 %v10660_v47  ;;  %3286 = vmatprep.subr.bf16.mxu1 %v10661_v30  ;;  %v10671_v47 = vld [vmem:[#allocation109_spill] sm:$0xff]  ;;  %v10672_v30 = vld [vmem:[#allocation51_spill] sm:$0xff] }
 0x835   :  { %3246 = vmatpush2.bf16.msra.mxu0 %v10662_v60  ;;  %3287 = vmatpush2.bf16.msra.mxu1 %v10663_v63  ;;  %v10673_v60 = vld [vmem:[#allocation111_spill] sm:$0xff]  ;;  %v10674_v63 = vld [vmem:[#allocation52_spill] sm:$0xff] }
 0x836   :  { %3247 = vmatprep.subr.bf16.mxu0 %v10664_v46  ;;  %3288 = vmatprep.subr.bf16.mxu1 %v10665_v54  ;;  %v10675_v46 = vld [vmem:[#allocation113_spill] sm:$0xff] }
 0x837   :  { %v10676_v54 = vld [vmem:[#allocation53_spill] sm:$0xff] }
 0x839   :  { %3248 = vmatpush2.bf16.msra.mxu0 %v10666_v3  ;;  %3289 = vmatpush2.bf16.msra.mxu1 %v10667_v40  ;;  %v10677_v3 = vld [vmem:[#allocation115_spill] sm:$0xff]  ;;  %v10678_v40 = vld [vmem:[#allocation54_spill] sm:$0xff] }
 0x83a   :  { %3249 = vmatprep.subr.bf16.mxu0 %v10668_v28  ;;  %3290 = vmatprep.subr.bf16.mxu1 %v10669_v15  ;;  %v10679_v28 = vld [vmem:[#allocation117_spill] sm:$0xff]  ;;  %v10680_v15 = vld [vmem:[#allocation56_spill] sm:$0xff] }
 0x83d   :  { %3250 = vmatpush2.bf16.msra.mxu0 %v10670_v56  ;;  %3291 = vmatpush2.bf16.msra.mxu1 %v10671_v47  ;;  %v10681_v56 = vld [vmem:[#allocation119_spill] sm:$0xff] }
 0x83e   :  { %3251 = vmatprep.subr.bf16.mxu0 %v10672_v30  ;;  %3292 = vmatprep.subr.bf16.mxu1 %v10673_v60 }
 0x841   :  { %3252 = vmatpush2.bf16.msra.mxu0 %v10674_v63  ;;  %3293 = vmatpush2.bf16.msra.mxu1 %v10675_v46 }
 0x842   :  { %3253 = vmatprep.subr.bf16.mxu0 %v10676_v54  ;;  %3294 = vmatprep.subr.bf16.mxu1 %v10677_v3 }
 0x845   :  { %3254 = vmatpush2.bf16.msra.mxu0 %v10678_v40  ;;  %3295 = vmatpush2.bf16.msra.mxu1 %v10679_v28  ;;  %v10685_v28 = vld [vmem:[#allocation157_spill] sm:$0xff] }
 0x846   :  { %3305 = vmatprep.subr.bf16.mxu0 %v10680_v15  ;;  %3346 = vmatprep.subr.bf16.mxu1 %v10681_v56 }
 0x888   :  { %v3039_v47 = vpop.f32.mrf.mxu0  ;;  %v3080_v30 = vpop.f32.mrf.mxu1 }
 0x889   :  { %v3171_v54 = vadd.f32 %v3080_v30, %v10682_v2  ;;  %v3169_v3 = vadd.f32 %v3039_v47, %v10683_v45  ;;  %v10687_v45 = vld [vmem:[#allocation160_spill] sm:$0xff] }
 0x88a   :  { %v3041_v12 = vpop.f32.mrf.mxu0  ;;  %v3082_v60 = vpop.f32.mrf.mxu1 }
 0x88b   :  { %v3172_v40 = vadd.f32 %v3082_v60, %v10684_v23  ;;  %v3185_v21 = vmul.f32 0.5, %v3171_v54  ;;  %v3170_v49 = vadd.f32 %v3041_v12, %v10685_v28  ;;  %v3177_v15 = vmul.f32 0.5, %v3169_v3 }
 0x88c   :  { %v3043_v4 = vpop.f32.mrf.mxu0  ;;  %v3084_v63 = vpop.f32.mrf.mxu1 }
 0x88d   :  { %v3186_v37 = vmul.f32 0.5, %v3172_v40  ;;  %6835 = vtanh.f32 %v3185_v21  ;;  %v3178_v56 = vmul.f32 0.5, %v3170_v49  ;;  %v10688_v21 = vld [vmem:[#allocation186_spill] sm:$0xff] }
 0x88e   :  { %v3044_v26 = vpop.f32.mrf.mxu0  ;;  %v3085_v46 = vpop.f32.mrf.mxu1  ;;  %6837 = vtanh.f32 %v3177_v15 }
 0x88f   :  { %6839 = vtanh.f32 %v3186_v37  ;;  %v10686_v26 = vld [vmem:[#allocation158_spill] sm:$0xff]  ;;  %v10689_v37 = vld [vmem:[#allocation187_spill] sm:$0xff] }
 0x890   :  { %6841 = vtanh.f32 %v3178_v56 }
 0x89a   :  { %v6836_v60 = vpop.eup %6835 }
 0x89b   :  { %v6838_v3 = vpop.eup %6837  ;;  %v3189_v15 = vmul.f32 0.5, %v6836_v60 }
 0x89c   :  { %v6840_v28 = vpop.eup %6839 }
 0x89d   :  { %v6842_v56 = vpop.eup %6841  ;;  %v3190_v58 = vmul.f32 0.5, %v6840_v28  ;;  %v3191_v19 = vadd.f32 0.5, %v3189_v15 }
 0x8c8   :  { %v3121_v4 = vpop.f32.mrf.mxu0  ;;  %v3162_v63 = vpop.f32.mrf.mxu1 }
 0x8c9   :  { %v3173_v46 = vadd.f32 %v3121_v4, %v10686_v26  ;;  %v3175_v49 = vadd.f32 %v3162_v63, %v10688_v21  ;;  %v3181_v4 = vmul.f32 0.5, %v6838_v3 }
 0x8ca   :  { %v3123_v35 = vpop.f32.mrf.mxu0  ;;  %v3164_v2 = vpop.f32.mrf.mxu1 }
 0x8cb   :  { %6843 = vtanh.f32 %v3173_v46  ;;  %v3174_v47 = vadd.f32 %v3123_v35, %v10687_v45  ;;  %v3176_v40 = vadd.f32 %v3164_v2, %v10689_v37  ;;  %v3195_v26 = vmul.f32 0.5, %v3175_v49 }
 0x8cc   :  { %v3125_v23 = vpop.f32.mrf.mxu0  ;;  %v3166_v30 = vpop.f32.mrf.mxu1  ;;  %v3182_v35 = vmul.f32 0.5, %v6842_v56  ;;  %v3183_v45 = vadd.f32 0.5, %v3181_v4 }
 0x8cd   :  { %6845 = vtanh.f32 %v3174_v47  ;;  %v3196_v46 = vmul.f32 0.5, %v3176_v40  ;;  %v3192_v47 = vadd.f32 0.5, %v3190_v58  ;;  %v3203_v30 = vmul.f32 %v3191_v19, %v9342_v53 }
 0x8ce   :  { %v3126_v12 = vpop.f32.mrf.mxu0  ;;  %v3167_v54 = vpop.f32.mrf.mxu1  ;;  %6847 = vtanh.f32 %v3195_v26 }
 0x8cf   :  { %6849 = vtanh.f32 %v3196_v46  ;;  %v3184_v12 = vadd.f32 0.5, %v3182_v35  ;;  %v3204_v60 = vmul.f32 %v3192_v47, %v9346_v61 }
 0x8d8   :  { %v6844_v23 = vpop.eup %6843 }
 0x8d9   :  { %v3205_v63 = vmul.f32 %v6844_v23, %v3183_v45 }
 0x8da   :  { %v6846_v54 = vpop.eup %6845 }
 0x8db   :  { %v9492_v2 = vadd.f32 %v3205_v63, %v3203_v30  ;;  %v3206_v21 = vmul.f32 %v6846_v54, %v3184_v12  ;;  %v6848_v3 = vpop.eup %6847 }
 0x8dc   :  { %v6850_v37 = vpop.eup %6849  ;;  %v3199_v58 = vmul.f32 0.5, %v6848_v3 }
 0x8dd   :  { %6851 = vtanh.f32 %v9492_v2  ;;  %v9496_v49 = vadd.f32 %v3206_v21, %v3204_v60  ;;  %v3200_v40 = vmul.f32 0.5, %v6850_v37 }
 0x8de   :  { %v3201_v53 = vadd.f32 0.5, %v3199_v58 }
 0x8df   :  { %6853 = vtanh.f32 %v9496_v49  ;;  %v3202_v19 = vadd.f32 0.5, %v3200_v40 }
 0x8ea   :  { %v6852_v28 = vpop.eup %6851 }
 0x8eb   :  { %v3211_v56 = vmul.f32 %v6852_v28, %v3201_v53 }
 0x8ec   :  { %v6854_v15 = vpop.eup %6853 }
 0x8ed   :  { %v3212_v4 = vmul.f32 %v6854_v15, %v3202_v19  ;;  %v9499_v46 = vpack.c.bf16 %v3211_v56, %v3211_v56 }
 0x8ef   :  { %v3222_v26 = vpack.c.bf16 %v3212_v4, %v3212_v4 }
 0x8f1   :  { %3255 = vmatprep.mubr.bf16.mxu0 %v3222_v26  ;;  %3296 = vmatprep.mubr.bf16.mxu1 %v3222_v26 }
 0x8f2   :  { %3256 = vmatmul.mubr.bf16.vlgmr.msra.gmra.mxu0 %v9499_v46  ;;  %3297 = vmatmul.mubr.bf16.vlgmr.msra.gmra.mxu1 %v9499_v46 }
 0x8f3   :  { %3306 = vmatpush1.bf16.msra.mxu0 %v10107_v10  ;;  %3347 = vmatpush1.bf16.msra.mxu1 %v8183_v44  ;;  %v10701_v44 = vld [vmem:[#allocation108_spill] sm:$0xff]  ;;  %v10707_v10 = vld [vmem:[#allocation114_spill] sm:$0xff] }
 0x8f4   :  { %3337 = vmatprep.mubr.bf16.mxu0 %v3222_v26  ;;  %3378 = vmatprep.mubr.bf16.mxu1 %v3222_v26 }
 0x8f5   :  { %3307 = vmatprep.subr.bf16.mxu0 %v10108_v62  ;;  %3348 = vmatprep.subr.bf16.mxu1 %v8187_v59  ;;  %v10703_v59 = vld [vmem:[#allocation110_spill] sm:$0xff]  ;;  %v10708_v62 = vld [vmem:[#allocation131_spill] sm:$0xff] }
 0x8f7   :  { %3308 = vmatpush1.bf16.msra.mxu0 %v10109_v36  ;;  %3349 = vmatpush1.bf16.msra.mxu1 %v8193_v29  ;;  %v10704_v29 = vld [vmem:[#allocation129_spill] sm:$0xff]  ;;  %v10709_v36 = vld [vmem:[#allocation116_spill] sm:$0xff] }
 0x8f8   :  { %3309 = vmatprep.subr.bf16.mxu0 %v10110_v5  ;;  %3350 = vmatprep.subr.bf16.mxu1 %v8196_v27  ;;  %v10705_v27 = vld [vmem:[#allocation112_spill] sm:$0xff] }
 0x8f9   :  { %v10710_v5 = vld [vmem:[#allocation132_spill] sm:$0xff] }
 0x8fb   :  { %3310 = vmatpush1.bf16.msra.mxu0 %v10111_v43  ;;  %3351 = vmatpush1.bf16.msra.mxu1 %v8202_v7  ;;  %v10690_v7 = vld [vmem:[#allocation122_spill] sm:$0xff] }
 0x8fc   :  { %3311 = vmatprep.subr.bf16.mxu0 %v10112_v11  ;;  %3352 = vmatprep.subr.bf16.mxu1 %v8205_v17  ;;  %v10706_v17 = vld [vmem:[#allocation130_spill] sm:$0xff]  ;;  %v10712_v11 = vld [vmem:[#allocation133_spill] sm:$0xff] }
 0x8fd   :  { %v10711_v43 = vld [vmem:[#allocation118_spill] sm:$0xff] }
 0x8ff   :  { %3312 = vmatpush1.bf16.msra.mxu0 %v10113_v38  ;;  %3353 = vmatpush1.bf16.msra.mxu1 %v8210_v34  ;;  %v10702_v34 = vld [vmem:[#allocation128_spill] sm:$0xff] }
 0x900   :  { %3313 = vmatprep.subr.bf16.mxu0 %v10114_v55  ;;  %3354 = vmatprep.subr.bf16.mxu1 %v8213_v16  ;;  %v10692_v16 = vld [vmem:[#allocation123_spill] sm:$0xff] }
 0x903   :  { %3314 = vmatpush1.bf16.msra.mxu0 %v10115_v6  ;;  %3355 = vmatpush1.bf16.msra.mxu1 %v8218_v14  ;;  %v10691_v14 = vld [vmem:[#allocation98_spill] sm:$0xff] }
 0x904   :  { %3315 = vmatprep.subr.bf16.mxu0 %v10116_v20  ;;  %3356 = vmatprep.subr.bf16.mxu1 %v8221_v24  ;;  %v10694_v24 = vld [vmem:[#allocation124_spill] sm:$0xff] }
 0x907   :  { %3316 = vmatpush1.bf16.msra.mxu0 %v10117_v9  ;;  %3357 = vmatpush1.bf16.msra.mxu1 %v8226_v22  ;;  %v10693_v22 = vld [vmem:[#allocation100_spill] sm:$0xff] }
 0x908   :  { %3317 = vmatprep.subr.bf16.mxu0 %v10118_v0  ;;  %3358 = vmatprep.subr.bf16.mxu1 %v8229_v33  ;;  %v10696_v33 = vld [vmem:[#allocation125_spill] sm:$0xff] }
 0x90b   :  { %3318 = vmatpush1.bf16.msra.mxu0 %v10119_v1  ;;  %3359 = vmatpush1.bf16.msra.mxu1 %v8234_v31  ;;  %v10695_v31 = vld [vmem:[#allocation102_spill] sm:$0xff] }
 0x90c   :  { %3319 = vmatprep.subr.bf16.mxu0 %v10120_v51  ;;  %3360 = vmatprep.subr.bf16.mxu1 %v8237_v41  ;;  %v10698_v41 = vld [vmem:[#allocation126_spill] sm:$0xff] }
 0x90f   :  { %3320 = vmatpush1.bf16.msra.mxu0 %v10121_v32  ;;  %3361 = vmatpush1.bf16.msra.mxu1 %v8242_v39  ;;  %v10697_v39 = vld [vmem:[#allocation104_spill] sm:$0xff] }
 0x910   :  { %3321 = vmatprep.subr.bf16.mxu0 %v10122_v13  ;;  %3362 = vmatprep.subr.bf16.mxu1 %v8245_v50  ;;  %v10700_v50 = vld [vmem:[#allocation127_spill] sm:$0xff] }
 0x913   :  { %3322 = vmatpush2.bf16.msra.mxu0 %v10123_v52  ;;  %3363 = vmatpush2.bf16.msra.mxu1 %v8250_v48  ;;  %v10699_v48 = vld [vmem:[#allocation106_spill] sm:$0xff] }
 0x914   :  { %3323 = vmatprep.subr.bf16.mxu0 %v10124_v57  ;;  %3364 = vmatprep.subr.bf16.mxu1 %v10205_v25 }
 0x917   :  { %3324 = vmatpush2.bf16.msra.mxu0 %v10125_v42  ;;  %3365 = vmatpush2.bf16.msra.mxu1 %v10206_v18 }
 0x918   :  { %3325 = vmatprep.subr.bf16.mxu0 %v10126_v8  ;;  %3366 = vmatprep.subr.bf16.mxu1 %v10690_v7 }
 0x91b   :  { %3326 = vmatpush2.bf16.msra.mxu0 %v10691_v14  ;;  %3367 = vmatpush2.bf16.msra.mxu1 %v10692_v16 }
 0x91c   :  { %3327 = vmatprep.subr.bf16.mxu0 %v10693_v22  ;;  %3368 = vmatprep.subr.bf16.mxu1 %v10694_v24 }
 0x91f   :  { %3328 = vmatpush2.bf16.msra.mxu0 %v10695_v31  ;;  %3369 = vmatpush2.bf16.msra.mxu1 %v10696_v33 }
 0x920   :  { %3329 = vmatprep.subr.bf16.mxu0 %v10697_v39  ;;  %3370 = vmatprep.subr.bf16.mxu1 %v10698_v41 }
 0x923   :  { %3330 = vmatpush2.bf16.msra.mxu0 %v10699_v48  ;;  %3371 = vmatpush2.bf16.msra.mxu1 %v10700_v50 }
 0x924   :  { %3331 = vmatprep.subr.bf16.mxu0 %v10701_v44  ;;  %3372 = vmatprep.subr.bf16.mxu1 %v10702_v34 }
 0x927   :  { %3332 = vmatpush2.bf16.msra.mxu0 %v10703_v59  ;;  %3373 = vmatpush2.bf16.msra.mxu1 %v10704_v29 }
 0x928   :  { %3333 = vmatprep.subr.bf16.mxu0 %v10705_v27  ;;  %3374 = vmatprep.subr.bf16.mxu1 %v10706_v17 }
 0x92b   :  { %3334 = vmatpush2.bf16.msra.mxu0 %v10707_v10  ;;  %3375 = vmatpush2.bf16.msra.mxu1 %v10708_v62 }
 0x92c   :  { %3335 = vmatprep.subr.bf16.mxu0 %v10709_v36  ;;  %3376 = vmatprep.subr.bf16.mxu1 %v10710_v5 }
 0x92f   :  { %3336 = vmatpush2.bf16.msra.mxu0 %v10711_v43  ;;  %3377 = vmatpush2.bf16.msra.mxu1 %v10712_v11 }
 0x932   :  { %3338 = vmatmul.mubr.bf16.vlgmr.msra.gmra.mxu0 %v9499_v46  ;;  %3379 = vmatmul.mubr.bf16.vlgmr.msra.gmra.mxu1 %v9499_v46 }
 0x933   :  { %7518 = shalt.err (!%p7515_p10)  }
 0x934   :  { %106 = dma.hbm_to_vmem [thread:$0]  %s9680_s2, 32768, %s104_s29, [#allocation4]  ;;  %v10713_v32 = vld [vmem:[#allocation176_spill] sm:$0xff]  ;;  %v10714_v52 = vld [vmem:[#allocation159_spill] sm:$0xff]  ;;  %v10715_v42 = vld [vmem:[#allocation177_spill] sm:$0xff] }
 0x935   :  { %v10716_v18 = vld [vmem:[#allocation161_spill] sm:$0xff]  ;;  %v10717_v63 = vld [vmem:[#allocation162_spill] sm:$0xff]  ;;  %v10718_v21 = vld [vmem:[#allocation163_spill] sm:$0xff] }
 0x936   :  { %v10719_v40 = vld [vmem:[#allocation188_spill] sm:$0xff]  ;;  %v10720_v4 = vld [vmem:[#allocation189_spill] sm:$0xff] }
 0x9b2   :  { %v3257_v38 = vpop.f32.mrf.mxu0  ;;  %v3298_v55 = vpop.f32.mrf.mxu1 }
 0x9b3   :  { %v3389_v13 = vadd.f32 %v3298_v55, %v10713_v32  ;;  %v3387_v57 = vadd.f32 %v3257_v38, %v10714_v52 }
 0x9b4   :  { %v3259_v6 = vpop.f32.mrf.mxu0  ;;  %v3300_v20 = vpop.f32.mrf.mxu1 }
 0x9b5   :  { %v3390_v8 = vadd.f32 %v3300_v20, %v10715_v42  ;;  %v3403_v25 = vmul.f32 0.5, %v3389_v13  ;;  %v3388_v61 = vadd.f32 %v3259_v6, %v10716_v18  ;;  %v3395_v35 = vmul.f32 0.5, %v3387_v57 }
 0x9b6   :  { %v3261_v9 = vpop.f32.mrf.mxu0  ;;  %v3302_v0 = vpop.f32.mrf.mxu1 }
 0x9b7   :  { %v3404_v45 = vmul.f32 0.5, %v3390_v8  ;;  %6855 = vtanh.f32 %v3403_v25  ;;  %v3396_v23 = vmul.f32 0.5, %v3388_v61 }
 0x9b8   :  { %v3262_v1 = vpop.f32.mrf.mxu0  ;;  %v3303_v51 = vpop.f32.mrf.mxu1  ;;  %6857 = vtanh.f32 %v3395_v35 }
 0x9b9   :  { %6859 = vtanh.f32 %v3404_v45 }
 0x9ba   :  { %6861 = vtanh.f32 %v3396_v23 }
 0x9c4   :  { %v6856_v53 = vpop.eup %6855 }
 0x9c5   :  { %v6858_v56 = vpop.eup %6857  ;;  %v3407_v7 = vmul.f32 0.5, %v6856_v53 }
 0x9c6   :  { %v6860_v46 = vpop.eup %6859  ;;  %v3399_v22 = vmul.f32 0.5, %v6858_v56 }
 0x9c7   :  { %v6862_v16 = vpop.eup %6861  ;;  %v3408_v24 = vmul.f32 0.5, %v6860_v46  ;;  %v3409_v33 = vadd.f32 0.5, %v3407_v7 }
 0x9c8   :  { %v3400_v39 = vmul.f32 0.5, %v6862_v16  ;;  %v3401_v41 = vadd.f32 0.5, %v3399_v22 }
 0x9c9   :  { %v3410_v50 = vadd.f32 0.5, %v3408_v24  ;;  %v3421_v44 = vmul.f32 %v3409_v33, %v9492_v2 }
 0x9ca   :  { %v3402_v59 = vadd.f32 0.5, %v3400_v39 }
 0x9cb   :  { %v3422_v17 = vmul.f32 %v3410_v50, %v9496_v49 }
 0x9f2   :  { %v3339_v47 = vpop.f32.mrf.mxu0  ;;  %v3380_v30 = vpop.f32.mrf.mxu1 }
 0x9f3   :  { %v3391_v12 = vadd.f32 %v3339_v47, %v10717_v63  ;;  %v3393_v28 = vadd.f32 %v3380_v30, %v10719_v40 }
 0x9f4   :  { %v3341_v54 = vpop.f32.mrf.mxu0  ;;  %v3382_v60 = vpop.f32.mrf.mxu1 }
 0x9f5   :  { %6863 = vtanh.f32 %v3391_v12  ;;  %v3392_v3 = vadd.f32 %v3341_v54, %v10718_v21  ;;  %v3394_v26 = vadd.f32 %v3382_v60, %v10720_v4  ;;  %v3413_v14 = vmul.f32 0.5, %v3393_v28 }
 0x9f6   :  { %v3343_v37 = vpop.f32.mrf.mxu0  ;;  %v3384_v58 = vpop.f32.mrf.mxu1 }
 0x9f7   :  { %6865 = vtanh.f32 %v3392_v3  ;;  %v3414_v31 = vmul.f32 0.5, %v3394_v26 }
 0x9f8   :  { %v3344_v19 = vpop.f32.mrf.mxu0  ;;  %v3385_v15 = vpop.f32.mrf.mxu1  ;;  %6867 = vtanh.f32 %v3413_v14 }
 0x9f9   :  { %6869 = vtanh.f32 %v3414_v31 }
 0xa02   :  { %v6864_v48 = vpop.eup %6863 }
 0xa03   :  { %v3423_v34 = vmul.f32 %v6864_v48, %v3401_v41 }
 0xa04   :  { %v6866_v29 = vpop.eup %6865 }
 0xa05   :  { %v3425_v27 = vadd.f32 %v3423_v34, %v3421_v44  ;;  %v3424_v10 = vmul.f32 %v6866_v29, %v3402_v59  ;;  %v6868_v36 = vpop.eup %6867 }
 0xa06   :  { %v6870_v5 = vpop.eup %6869  ;;  %v3417_v43 = vmul.f32 0.5, %v6868_v36 }
 0xa07   :  { %6871 = vtanh.f32 %v3425_v27  ;;  %v3426_v62 = vadd.f32 %v3424_v10, %v3422_v17  ;;  %v3418_v11 = vmul.f32 0.5, %v6870_v5 }
 0xa08   :  { %v3419_v38 = vadd.f32 0.5, %v3417_v43 }
 0xa09   :  { %6873 = vtanh.f32 %v3426_v62  ;;  %v3420_v20 = vadd.f32 0.5, %v3418_v11 }
 0xa14   :  { %v6872_v55 = vpop.eup %6871 }
 0xa15   :  { %v9580_v6 = vmul.f32 %v6872_v55, %v3419_v38 }
 0xa16   :  { %v6874_v2 = vpop.eup %6873 }
 0xa17   :  { %v9582_v9 = vmul.f32 %v6874_v2, %v3420_v20 }
 0xa18   :  { %7545 = dma.done.wait [#allocation4], 32768 }
 0xa19   :  { %7546 = vsyncadd [#allocation4], 4294934528  ;;  %v6875_v0 = vld [vmem:[#allocation2 + $0x74] ss:$8 sps:$4 sm:$0xff]   ;;  %v6879_v1 = vld [vmem:[#allocation2 + $0x70] ss:$8 sps:$4 sm:$0xff]  }
 0xa1a   :  { %v6877_v49 = vld [vmem:[#allocation2 + $0x174] ss:$8 sps:$4 sm:$0xff]   ;;  %5047 = vmatprep.subr.bf16.mxu0 %v6875_v0  ;;  %v6880_v51 = vld [vmem:[#allocation2 + $0x170] ss:$8 sps:$4 sm:$0xff]   ;;  %v6881_v32 = vld [vmem:[#allocation2 + $0x64] ss:$8 sps:$4 sm:$0xff]  }
 0xa1b   :  { %5088 = vmatprep.subr.bf16.mxu1 %v6877_v49  ;;  %5048 = vmatpush1.bf16.msra.mxu0 %v6879_v1  ;;  %v6883_v13 = vld [vmem:[#allocation2 + $0x164] ss:$8 sps:$4 sm:$0xff]   ;;  %v6885_v52 = vld [vmem:[#allocation2 + $0x60] ss:$8 sps:$4 sm:$0xff]   ;;  %v6887_v42 = vld [vmem:[#allocation2 + $0x54] ss:$8 sps:$4 sm:$0xff]  }
 0xa1c   :  { %5089 = vmatpush1.bf16.msra.mxu1 %v6880_v51  ;;  %5049 = vmatprep.subr.bf16.mxu0 %v6881_v32  ;;  %v6886_v57 = vld [vmem:[#allocation2 + $0x160] ss:$8 sps:$4 sm:$0xff]   ;;  %v6889_v8 = vld [vmem:[#allocation2 + $0x154] ss:$8 sps:$4 sm:$0xff]   ;;  %v6891_v25 = vld [vmem:[#allocation2 + $0x50] ss:$8 sps:$4 sm:$0xff]  }
 0xa1d   :  { %5090 = vmatprep.subr.bf16.mxu1 %v6883_v13  ;;  %v6892_v18 = vld [vmem:[#allocation2 + $0x150] ss:$8 sps:$4 sm:$0xff]   ;;  %v6893_v61 = vld [vmem:[#allocation2 + $0x44] ss:$8 sps:$4 sm:$0xff]   ;;  %v6897_v45 = vld [vmem:[#allocation2 + $0x40] ss:$8 sps:$4 sm:$0xff]  }
 0xa1e   :  { %v6895_v35 = vld [vmem:[#allocation2 + $0x144] ss:$8 sps:$4 sm:$0xff]   ;;  %v6898_v23 = vld [vmem:[#allocation2 + $0x140] ss:$8 sps:$4 sm:$0xff]   ;;  %v6899_v47 = vld [vmem:[#allocation2 + $0x34] ss:$8 sps:$4 sm:$0xff]  }
 0xa1f   :  { %5050 = vmatpush1.bf16.msra.mxu0 %v6885_v52  ;;  %v6901_v30 = vld [vmem:[#allocation2 + $0x134] ss:$8 sps:$4 sm:$0xff]   ;;  %v6903_v63 = vld [vmem:[#allocation2 + $0x30] ss:$8 sps:$4 sm:$0xff]   ;;  %v6905_v54 = vld [vmem:[#allocation2 + $0x24] ss:$8 sps:$4 sm:$0xff]  }
 0xa20   :  { %5091 = vmatpush1.bf16.msra.mxu1 %v6886_v57  ;;  %5051 = vmatprep.subr.bf16.mxu0 %v6887_v42  ;;  %v6904_v12 = vld [vmem:[#allocation2 + $0x130] ss:$8 sps:$4 sm:$0xff]   ;;  %v6907_v60 = vld [vmem:[#allocation2 + $0x124] ss:$8 sps:$4 sm:$0xff]   ;;  %v6909_v21 = vld [vmem:[#allocation2 + $0x20] ss:$8 sps:$4 sm:$0xff]  }
 0xa21   :  { %5092 = vmatprep.subr.bf16.mxu1 %v6889_v8  ;;  %v6910_v3 = vld [vmem:[#allocation2 + $0x120] ss:$8 sps:$4 sm:$0xff]   ;;  %v6911_v37 = vld [vmem:[#allocation2 + $0x14] ss:$8 sps:$4 sm:$0xff]   ;;  %v6915_v40 = vld [vmem:[#allocation2 + $0x10] ss:$8 sps:$4 sm:$0xff]  }
 0xa22   :  { %v6913_v58 = vld [vmem:[#allocation2 + $0x114] ss:$8 sps:$4 sm:$0xff]   ;;  %v6916_v28 = vld [vmem:[#allocation2 + $0x110] ss:$8 sps:$4 sm:$0xff]   ;;  %v6917_v53 = vld [vmem:[#allocation2 + $0x4] ss:$8 sps:$4 sm:$0xff]  }
 0xa23   :  { %5052 = vmatpush1.bf16.msra.mxu0 %v6891_v25  ;;  %v6919_v19 = vld [vmem:[#allocation2 + $0x104] ss:$8 sps:$4 sm:$0xff]   ;;  %v6921_v15 = vld [vmem:[#allocation2] ss:$8 sps:$4 sm:$0xff]   ;;  %v6923_v4 = vld [vmem:[#allocation2 + $0xf4] ss:$8 sps:$4 sm:$0xff]  }
 0xa24   :  { %5093 = vmatpush1.bf16.msra.mxu1 %v6892_v18  ;;  %5053 = vmatprep.subr.bf16.mxu0 %v6893_v61  ;;  %v6922_v56 = vld [vmem:[#allocation2 + $0x100] ss:$8 sps:$4 sm:$0xff]   ;;  %v6925_v26 = vld [vmem:[#allocation2 + $0x1f4] ss:$8 sps:$4 sm:$0xff]   ;;  %v6927_v46 = vld [vmem:[#allocation2 + $0xf0] ss:$8 sps:$4 sm:$0xff]  }
 0xa25   :  { %5094 = vmatprep.subr.bf16.mxu1 %v6895_v35  ;;  %v6928_v7 = vld [vmem:[#allocation2 + $0x1f0] ss:$8 sps:$4 sm:$0xff]   ;;  %v6929_v14 = vld [vmem:[#allocation2 + $0xe4] ss:$8 sps:$4 sm:$0xff]   ;;  %v6933_v22 = vld [vmem:[#allocation2 + $0xe0] ss:$8 sps:$4 sm:$0xff]  }
 0xa26   :  { %v6931_v16 = vld [vmem:[#allocation2 + $0x1e4] ss:$8 sps:$4 sm:$0xff]   ;;  %v6934_v24 = vld [vmem:[#allocation2 + $0x1e0] ss:$8 sps:$4 sm:$0xff]   ;;  %v6935_v31 = vld [vmem:[#allocation2 + $0xd4] ss:$8 sps:$4 sm:$0xff]  }
 0xa27   :  { %5054 = vmatpush1.bf16.msra.mxu0 %v6897_v45  ;;  %v6937_v33 = vld [vmem:[#allocation2 + $0x1d4] ss:$8 sps:$4 sm:$0xff]   ;;  %v6939_v39 = vld [vmem:[#allocation2 + $0xd0] ss:$8 sps:$4 sm:$0xff]   ;;  %v6941_v48 = vld [vmem:[#allocation2 + $0xc4] ss:$8 sps:$4 sm:$0xff]  }
 0xa28   :  { %5095 = vmatpush1.bf16.msra.mxu1 %v6898_v23  ;;  %5055 = vmatprep.subr.bf16.mxu0 %v6899_v47  ;;  %v6940_v41 = vld [vmem:[#allocation2 + $0x1d0] ss:$8 sps:$4 sm:$0xff]   ;;  %v6943_v50 = vld [vmem:[#allocation2 + $0x1c4] ss:$8 sps:$4 sm:$0xff]   ;;  %v6945_v29 = vld [vmem:[#allocation2 + $0xc0] ss:$8 sps:$4 sm:$0xff]  }
 0xa29   :  { %5096 = vmatprep.subr.bf16.mxu1 %v6901_v30  ;;  %v3435_v44 = vld [vmem:[%s9678_s0] sm:$0xff]  ;;  %v3436_v59 = vld [vmem:[%s9678_s0 + $0x8] sm:$0xff]  ;;  %v6947_v10 = vld [vmem:[#allocation2 + $0xb4] ss:$8 sps:$4 sm:$0xff]   ;;  %s7559_s4 = smov [#allocation13]  }
 0xa2a   :  { %v6332_v34 = vcombine.high %v3435_v44, %v3435_v44  ;;  %v6946_v27 = vld [vmem:[#allocation2 + $0x1c0] ss:$8 sps:$4 sm:$0xff]   ;;  %v6334_v17 = vcombine.high %v3436_v59, %v3436_v59  ;;  %v6949_v62 = vld [vmem:[#allocation2 + $0x1b4] ss:$8 sps:$4 sm:$0xff]   ;;  %v6951_v36 = vld [vmem:[#allocation2 + $0xb0] ss:$8 sps:$4 sm:$0xff]   ;;  %v6331_v42 = vcombine.low %v3435_v44, %v3435_v44  ;;  %v6333_v8 = vcombine.low %v3436_v59, %v3436_v59 }
 0xa2b   :  { %5056 = vmatpush1.bf16.msra.mxu0 %v6903_v63  ;;  %v6952_v5 = vld [vmem:[#allocation2 + $0x1b0] ss:$8 sps:$4 sm:$0xff]   ;;  %v6953_v43 = vld [vmem:[#allocation2 + $0xa4] ss:$8 sps:$4 sm:$0xff]   ;;  %v6957_v38 = vld [vmem:[#allocation2 + $0xa0] ss:$8 sps:$4 sm:$0xff]  }
 0xa2c   :  { %5097 = vmatpush1.bf16.msra.mxu1 %v6904_v12  ;;  %5057 = vmatprep.subr.bf16.mxu0 %v6905_v54  ;;  %v6955_v11 = vld [vmem:[#allocation2 + $0x1a4] ss:$8 sps:$4 sm:$0xff]   ;;  %v6958_v55 = vld [vmem:[#allocation2 + $0x1a0] ss:$8 sps:$4 sm:$0xff]   ;;  %v6959_v20 = vld [vmem:[#allocation2 + $0x94] ss:$8 sps:$4 sm:$0xff]  }
 0xa2d   :  { %5098 = vmatprep.subr.bf16.mxu1 %v6907_v60  ;;  %5079 = vmatprep.mubr.bf16.mxu0 %v6332_v34  ;;  %v6961_v2 = vld [vmem:[#allocation2 + $0x194] ss:$8 sps:$4 sm:$0xff]   ;;  %v6963_v0 = vld [vmem:[#allocation2 + $0x90] ss:$8 sps:$4 sm:$0xff]   ;;  %v6965_v1 = vld [vmem:[#allocation2 + $0x84] ss:$8 sps:$4 sm:$0xff]  }
 0xa2e   :  { %5120 = vmatprep.mubr.bf16.mxu1 %v6334_v17  ;;  %v6964_v49 = vld [vmem:[#allocation2 + $0x190] ss:$8 sps:$4 sm:$0xff]   ;;  %v6967_v51 = vld [vmem:[#allocation2 + $0x184] ss:$8 sps:$4 sm:$0xff]   ;;  %v6969_v32 = vld [vmem:[#allocation2 + $0x80] ss:$8 sps:$4 sm:$0xff]  }
 0xa2f   :  { %5058 = vmatpush1.bf16.msra.mxu0 %v6909_v21  ;;  %v6970_v13 = vld [vmem:[#allocation2 + $0x180] ss:$8 sps:$4 sm:$0xff]   ;;  %v6977_v52 = vld [vmem:[#allocation2 + $0x274] ss:$8 sps:$4 sm:$0xff]   ;;  %v6975_v25 = vld [vmem:[#allocation2 + $0x270] ss:$8 sps:$4 sm:$0xff]  }
 0xa30   :  { %5099 = vmatpush1.bf16.msra.mxu1 %v6910_v3  ;;  %5059 = vmatprep.subr.bf16.mxu0 %v6911_v37  ;;  %v6980_v57 = vld [vmem:[#allocation2 + $0x374] ss:$8 sps:$4 sm:$0xff]   ;;  %v6978_v18 = vld [vmem:[#allocation2 + $0x370] ss:$8 sps:$4 sm:$0xff]   ;;  %v6983_v61 = vld [vmem:[#allocation2 + $0x264] ss:$8 sps:$4 sm:$0xff]  }
 0xa31   :  { %5100 = vmatprep.subr.bf16.mxu1 %v6913_v58  ;;  %v6986_v35 = vld [vmem:[#allocation2 + $0x364] ss:$8 sps:$4 sm:$0xff]   ;;  %v6981_v45 = vld [vmem:[#allocation2 + $0x260] ss:$8 sps:$4 sm:$0xff]   ;;  %v6989_v47 = vld [vmem:[#allocation2 + $0x254] ss:$8 sps:$4 sm:$0xff]  }
 0xa32   :  { %v6984_v23 = vld [vmem:[#allocation2 + $0x360] ss:$8 sps:$4 sm:$0xff]   ;;  %v6992_v30 = vld [vmem:[#allocation2 + $0x354] ss:$8 sps:$4 sm:$0xff]   ;;  %v6987_v63 = vld [vmem:[#allocation2 + $0x250] ss:$8 sps:$4 sm:$0xff]  }
 0xa33   :  { %5060 = vmatpush1.bf16.msra.mxu0 %v6915_v40  ;;  %v6990_v12 = vld [vmem:[#allocation2 + $0x350] ss:$8 sps:$4 sm:$0xff]   ;;  %v6995_v54 = vld [vmem:[#allocation2 + $0x244] ss:$8 sps:$4 sm:$0xff]   ;;  %v6993_v21 = vld [vmem:[#allocation2 + $0x240] ss:$8 sps:$4 sm:$0xff]  }
 0xa34   :  { %5101 = vmatpush1.bf16.msra.mxu1 %v6916_v28  ;;  %5061 = vmatprep.subr.bf16.mxu0 %v6917_v53  ;;  %v6998_v60 = vld [vmem:[#allocation2 + $0x344] ss:$8 sps:$4 sm:$0xff]   ;;  %v6996_v3 = vld [vmem:[#allocation2 + $0x340] ss:$8 sps:$4 sm:$0xff]   ;;  %v7001_v37 = vld [vmem:[#allocation2 + $0x234] ss:$8 sps:$4 sm:$0xff]  }
 0xa35   :  { %5102 = vmatprep.subr.bf16.mxu1 %v6919_v19  ;;  %v7004_v58 = vld [vmem:[#allocation2 + $0x334] ss:$8 sps:$4 sm:$0xff]   ;;  %v6999_v40 = vld [vmem:[#allocation2 + $0x230] ss:$8 sps:$4 sm:$0xff]   ;;  %v7007_v53 = vld [vmem:[#allocation2 + $0x224] ss:$8 sps:$4 sm:$0xff]  }
 0xa36   :  { %v7002_v28 = vld [vmem:[#allocation2 + $0x330] ss:$8 sps:$4 sm:$0xff]   ;;  %v7010_v19 = vld [vmem:[#allocation2 + $0x324] ss:$8 sps:$4 sm:$0xff]   ;;  %v7032_v17 = vld [vmem:[#allocation2 + $0x3e0] ss:$8 sps:$4 sm:$0xff]  }
 0xa37   :  { %5062 = vmatpush1.bf16.msra.mxu0 %v6921_v15  ;;  %v7005_v15 = vld [vmem:[#allocation2 + $0x220] ss:$8 sps:$4 sm:$0xff]   ;;  %v7023_v44 = vld [vmem:[#allocation2 + $0x2f0] ss:$8 sps:$4 sm:$0xff]   ;;  %v7031_v59 = vld [vmem:[#allocation2 + $0x2e4] ss:$8 sps:$4 sm:$0xff]  }
 0xa38   :  { %5103 = vmatpush1.bf16.msra.mxu1 %v6922_v56  ;;  %5063 = vmatprep.subr.bf16.mxu0 %v6923_v4  ;;  %v7008_v56 = vld [vmem:[#allocation2 + $0x320] ss:$8 sps:$4 sm:$0xff]   ;;  %v7013_v4 = vld [vmem:[#allocation2 + $0x214] ss:$8 sps:$4 sm:$0xff]   ;;  %v7026_v34 = vld [vmem:[#allocation2 + $0x3f0] ss:$8 sps:$4 sm:$0xff]  }
 0xa39   :  { %5104 = vmatprep.subr.bf16.mxu1 %v6925_v26  ;;  %v7016_v26 = vld [vmem:[#allocation2 + $0x314] ss:$8 sps:$4 sm:$0xff]   ;;  %s6118_s28 = sshll.u32 %s7559_s4, 4  ;;  %s6119_s28 = int_to_ptr.vmem [resolvable:$true] %s6118_s28 }
 0xa3a   :  { %s7519_s6 = scalar_lea.vmem %s6119_s28, 256  ;;  %p7524_p12 = scmp.lt.s32.totalorder %s6119_s28, %s6119_s28 }
 0xa3b   :  { %5064 = vmatpush2.bf16.msra.mxu0 %v6927_v46  ;;  %v9593_v46 = vld [vmem:[%s9678_s0 + $0x10] sm:$0xff]  ;;  %p7520_p11 = scmp.ne.s32.totalorder %s6119_s28, %s7519_s6  ;;  %p7525_p13 = scmp.lt.s32.totalorder %s7519_s6, %s7519_s6 }
 0xa3c   :  { %5105 = vmatpush2.bf16.msra.mxu1 %v6928_v7  ;;  %5065 = vmatprep.subr.bf16.mxu0 %v6929_v14  ;;  %v9598_v7 = vld [vmem:[%s9678_s0 + $0x18] sm:$0xff] }
 0xa3d   :  { %5106 = vmatprep.subr.bf16.mxu1 %v6931_v16  ;;  %v7011_v14 = vld [vmem:[#allocation2 + $0x210] ss:$8 sps:$4 sm:$0xff]   ;;  %p7526_p0 = por %p7525_p13, %p7524_p12 }
 0xa3e   :  { %v7014_v16 = vld [vmem:[#allocation2 + $0x310] ss:$8 sps:$4 sm:$0xff]  }
 0xa3f   :  { %5066 = vmatpush2.bf16.msra.mxu0 %v6933_v22  ;;  %v6336_v22 = vcombine.high %v9593_v46, %v9593_v46  ;;  %p7527_p1 = pnand %p7526_p0, %p7520_p11 }
 0xa40   :  { %5107 = vmatpush2.bf16.msra.mxu1 %v6934_v24  ;;  %5067 = vmatprep.subr.bf16.mxu0 %v6935_v31  ;;  %v6338_v24 = vcombine.high %v9598_v7, %v9598_v7  ;;  %v7019_v31 = vld [vmem:[#allocation2 + $0x204] ss:$8 sps:$4 sm:$0xff]  }
 0xa41   :  { %5108 = vmatprep.subr.bf16.mxu1 %v6937_v33  ;;  %v7022_v33 = vld [vmem:[#allocation2 + $0x304] ss:$8 sps:$4 sm:$0xff]  }
 0xa43   :  { %5068 = vmatpush2.bf16.msra.mxu0 %v6939_v39  ;;  %v7017_v39 = vld [vmem:[#allocation2 + $0x200] ss:$8 sps:$4 sm:$0xff]  }
 0xa44   :  { %5109 = vmatpush2.bf16.msra.mxu1 %v6940_v41  ;;  %5069 = vmatprep.subr.bf16.mxu0 %v6941_v48  ;;  %v7020_v41 = vld [vmem:[#allocation2 + $0x300] ss:$8 sps:$4 sm:$0xff]   ;;  %v7025_v48 = vld [vmem:[#allocation2 + $0x2f4] ss:$8 sps:$4 sm:$0xff]  }
 0xa45   :  { %5110 = vmatprep.subr.bf16.mxu1 %v6943_v50  ;;  %v7028_v50 = vld [vmem:[#allocation2 + $0x3f4] ss:$8 sps:$4 sm:$0xff]  }
 0xa47   :  { %5070 = vmatpush2.bf16.msra.mxu0 %v6945_v29  ;;  %v7034_v29 = vld [vmem:[#allocation2 + $0x3e4] ss:$8 sps:$4 sm:$0xff]  }
 0xa48   :  { %5111 = vmatpush2.bf16.msra.mxu1 %v6946_v27  ;;  %5071 = vmatprep.subr.bf16.mxu0 %v6947_v10  ;;  %v7029_v27 = vld [vmem:[#allocation2 + $0x2e0] ss:$8 sps:$4 sm:$0xff]   ;;  %v7037_v10 = vld [vmem:[#allocation2 + $0x2d4] ss:$8 sps:$4 sm:$0xff]  }
 0xa49   :  { %5112 = vmatprep.subr.bf16.mxu1 %v6949_v62  ;;  %v7040_v62 = vld [vmem:[#allocation2 + $0x3d4] ss:$8 sps:$4 sm:$0xff]  }
 0xa4b   :  { %5072 = vmatpush2.bf16.msra.mxu0 %v6951_v36  ;;  %v7035_v36 = vld [vmem:[#allocation2 + $0x2d0] ss:$8 sps:$4 sm:$0xff]  }
 0xa4c   :  { %5113 = vmatpush2.bf16.msra.mxu1 %v6952_v5  ;;  %5073 = vmatprep.subr.bf16.mxu0 %v6953_v43  ;;  %v7038_v5 = vld [vmem:[#allocation2 + $0x3d0] ss:$8 sps:$4 sm:$0xff]   ;;  %v7043_v43 = vld [vmem:[#allocation2 + $0x2c4] ss:$8 sps:$4 sm:$0xff]  }
 0xa4d   :  { %5114 = vmatprep.subr.bf16.mxu1 %v6955_v11  ;;  %v7046_v11 = vld [vmem:[#allocation2 + $0x3c4] ss:$8 sps:$4 sm:$0xff]  }
 0xa4f   :  { %5074 = vmatpush2.bf16.msra.mxu0 %v6957_v38  ;;  %v7041_v38 = vld [vmem:[#allocation2 + $0x2c0] ss:$8 sps:$4 sm:$0xff]  }
 0xa50   :  { %5115 = vmatpush2.bf16.msra.mxu1 %v6958_v55  ;;  %5075 = vmatprep.subr.bf16.mxu0 %v6959_v20  ;;  %v7044_v55 = vld [vmem:[#allocation2 + $0x3c0] ss:$8 sps:$4 sm:$0xff]   ;;  %v7049_v20 = vld [vmem:[#allocation2 + $0x2b4] ss:$8 sps:$4 sm:$0xff]  }
 0xa51   :  { %5116 = vmatprep.subr.bf16.mxu1 %v6961_v2  ;;  %v7052_v2 = vld [vmem:[#allocation2 + $0x3b4] ss:$8 sps:$4 sm:$0xff]  }
 0xa53   :  { %5076 = vmatpush2.bf16.msra.mxu0 %v6963_v0  ;;  %v7047_v0 = vld [vmem:[#allocation2 + $0x2b0] ss:$8 sps:$4 sm:$0xff]  }
 0xa54   :  { %5117 = vmatpush2.bf16.msra.mxu1 %v6964_v49  ;;  %5077 = vmatprep.subr.bf16.mxu0 %v6965_v1  ;;  %v7050_v49 = vld [vmem:[#allocation2 + $0x3b0] ss:$8 sps:$4 sm:$0xff]   ;;  %v7055_v1 = vld [vmem:[#allocation2 + $0x2a4] ss:$8 sps:$4 sm:$0xff]  }
 0xa55   :  { %5118 = vmatprep.subr.bf16.mxu1 %v6967_v51  ;;  %v7058_v51 = vld [vmem:[#allocation2 + $0x3a4] ss:$8 sps:$4 sm:$0xff]  }
 0xa57   :  { %5078 = vmatpush2.bf16.msra.mxu0 %v6969_v32  ;;  %v7053_v32 = vld [vmem:[#allocation2 + $0x2a0] ss:$8 sps:$4 sm:$0xff]  }
 0xa58   :  { %5119 = vmatpush2.bf16.msra.mxu1 %v6970_v13  ;;  %5129 = vmatprep.subr.bf16.mxu0 %v6977_v52  ;;  %v7056_v13 = vld [vmem:[#allocation2 + $0x3a0] ss:$8 sps:$4 sm:$0xff]   ;;  %v7061_v52 = vld [vmem:[#allocation2 + $0x294] ss:$8 sps:$4 sm:$0xff]  }
 0xa59   :  { %5170 = vmatprep.subr.bf16.mxu1 %v6980_v57  ;;  %v7064_v57 = vld [vmem:[#allocation2 + $0x394] ss:$8 sps:$4 sm:$0xff]  }
 0xa5a   :  { %5080 = vmatmul.mubr.bf16.vlgmr.msra.gmra.mxu0 %v6331_v42  ;;  %v7059_v42 = vld [vmem:[#allocation2 + $0x290] ss:$8 sps:$4 sm:$0xff]  }
 0xa5b   :  { %5121 = vmatmul.mubr.bf16.vlgmr.msra.gmra.mxu1 %v6333_v8  ;;  %5130 = vmatpush1.bf16.msra.mxu0 %v6975_v25  ;;  %v7062_v8 = vld [vmem:[#allocation2 + $0x390] ss:$8 sps:$4 sm:$0xff]   ;;  %v7067_v25 = vld [vmem:[#allocation2 + $0x284] ss:$8 sps:$4 sm:$0xff]  }
 0xa5c   :  { %5171 = vmatpush1.bf16.msra.mxu1 %v6978_v18  ;;  %5131 = vmatprep.subr.bf16.mxu0 %v6983_v61  ;;  %v7070_v18 = vld [vmem:[#allocation2 + $0x384] ss:$8 sps:$4 sm:$0xff]   ;;  %v7065_v61 = vld [vmem:[#allocation2 + $0x280] ss:$8 sps:$4 sm:$0xff]  }
 0xa5d   :  { %5172 = vmatprep.subr.bf16.mxu1 %v6986_v35  ;;  %5161 = vmatprep.mubr.bf16.mxu0 %v6336_v22  ;;  %v7068_v35 = vld [vmem:[#allocation2 + $0x380] ss:$8 sps:$4 sm:$0xff]   ;;  %v7099_v22 = vld [vmem:[#allocation2 + $0x430] ss:$8 sps:$4 sm:$0xff]  }
 0xa5e   :  { %5202 = vmatprep.mubr.bf16.mxu1 %v6338_v24  ;;  %v7102_v24 = vld [vmem:[#allocation2 + $0x530] ss:$8 sps:$4 sm:$0xff]  }
 0xa5f   :  { %5132 = vmatpush1.bf16.msra.mxu0 %v6981_v45  ;;  %v7077_v45 = vld [vmem:[#allocation2 + $0x474] ss:$8 sps:$4 sm:$0xff]  }
 0xa60   :  { %5173 = vmatpush1.bf16.msra.mxu1 %v6984_v23  ;;  %5133 = vmatprep.subr.bf16.mxu0 %v6989_v47  ;;  %v7080_v23 = vld [vmem:[#allocation2 + $0x574] ss:$8 sps:$4 sm:$0xff]   ;;  %v6335_v47 = vcombine.low %v9593_v46, %v9593_v46  ;;  %v7093_v46 = vld [vmem:[#allocation2 + $0x440] ss:$8 sps:$4 sm:$0xff]  }
 0xa61   :  { %5174 = vmatprep.subr.bf16.mxu1 %v6992_v30  ;;  %v6337_v30 = vcombine.low %v9598_v7, %v9598_v7  ;;  %v7096_v7 = vld [vmem:[#allocation2 + $0x540] ss:$8 sps:$4 sm:$0xff]  }
 0xa63   :  { %5134 = vmatpush1.bf16.msra.mxu0 %v6987_v63  ;;  %v7075_v63 = vld [vmem:[#allocation2 + $0x470] ss:$8 sps:$4 sm:$0xff]  }
 0xa64   :  { %5175 = vmatpush1.bf16.msra.mxu1 %v6990_v12  ;;  %5135 = vmatprep.subr.bf16.mxu0 %v6995_v54  ;;  %v7078_v12 = vld [vmem:[#allocation2 + $0x570] ss:$8 sps:$4 sm:$0xff]   ;;  %v7083_v54 = vld [vmem:[#allocation2 + $0x464] ss:$8 sps:$4 sm:$0xff]  }
 0xa65   :  { %5176 = vmatprep.subr.bf16.mxu1 %v6998_v60  ;;  %v7086_v60 = vld [vmem:[#allocation2 + $0x564] ss:$8 sps:$4 sm:$0xff]  }
 0xa67   :  { %5136 = vmatpush1.bf16.msra.mxu0 %v6993_v21  ;;  %v9611_v21 = vld [vmem:[%s9678_s0 + $0x20] sm:$0xff] }
 0xa68   :  { %5177 = vmatpush1.bf16.msra.mxu1 %v6996_v3  ;;  %5137 = vmatprep.subr.bf16.mxu0 %v7001_v37  ;;  %v9616_v3 = vld [vmem:[%s9678_s0 + $0x28] sm:$0xff]  ;;  %v6340_v37 = vcombine.high %v9611_v21, %v9611_v21 }
 0xa69   :  { %5178 = vmatprep.subr.bf16.mxu1 %v7004_v58  ;;  %v6342_v58 = vcombine.high %v9616_v3, %v9616_v3 }
 0xa6b   :  { %5138 = vmatpush1.bf16.msra.mxu0 %v6999_v40  ;;  %v7081_v40 = vld [vmem:[#allocation2 + $0x460] ss:$8 sps:$4 sm:$0xff]  }
 0xa6c   :  { %5179 = vmatpush1.bf16.msra.mxu1 %v7002_v28  ;;  %5139 = vmatprep.subr.bf16.mxu0 %v7007_v53  ;;  %v7084_v28 = vld [vmem:[#allocation2 + $0x560] ss:$8 sps:$4 sm:$0xff]   ;;  %v7089_v53 = vld [vmem:[#allocation2 + $0x454] ss:$8 sps:$4 sm:$0xff]  }
 0xa6d   :  { %5180 = vmatprep.subr.bf16.mxu1 %v7010_v19  ;;  %v7092_v19 = vld [vmem:[#allocation2 + $0x554] ss:$8 sps:$4 sm:$0xff]  }
 0xa6f   :  { %5140 = vmatpush1.bf16.msra.mxu0 %v7005_v15  ;;  %v7087_v15 = vld [vmem:[#allocation2 + $0x450] ss:$8 sps:$4 sm:$0xff]  }
 0xa70   :  { %5181 = vmatpush1.bf16.msra.mxu1 %v7008_v56  ;;  %5141 = vmatprep.subr.bf16.mxu0 %v7013_v4  ;;  %v7090_v56 = vld [vmem:[#allocation2 + $0x550] ss:$8 sps:$4 sm:$0xff]   ;;  %v7095_v4 = vld [vmem:[#allocation2 + $0x444] ss:$8 sps:$4 sm:$0xff]  }
 0xa71   :  { %5182 = vmatprep.subr.bf16.mxu1 %v7016_v26  ;;  %v7098_v26 = vld [vmem:[#allocation2 + $0x544] ss:$8 sps:$4 sm:$0xff]  }
 0xa73   :  { %5142 = vmatpush1.bf16.msra.mxu0 %v7011_v14  ;;  %v7101_v14 = vld [vmem:[#allocation2 + $0x434] ss:$8 sps:$4 sm:$0xff]  }
 0xa74   :  { %5183 = vmatpush1.bf16.msra.mxu1 %v7014_v16  ;;  %5143 = vmatprep.subr.bf16.mxu0 %v7019_v31  ;;  %v7104_v16 = vld [vmem:[#allocation2 + $0x534] ss:$8 sps:$4 sm:$0xff]   ;;  %v7107_v31 = vld [vmem:[#allocation2 + $0x424] ss:$8 sps:$4 sm:$0xff]  }
 0xa75   :  { %5184 = vmatprep.subr.bf16.mxu1 %v7022_v33  ;;  %v7110_v33 = vld [vmem:[#allocation2 + $0x524] ss:$8 sps:$4 sm:$0xff]  }
 0xa77   :  { %5144 = vmatpush1.bf16.msra.mxu0 %v7017_v39  ;;  %v7105_v39 = vld [vmem:[#allocation2 + $0x420] ss:$8 sps:$4 sm:$0xff]  }
 0xa78   :  { %5185 = vmatpush1.bf16.msra.mxu1 %v7020_v41  ;;  %5145 = vmatprep.subr.bf16.mxu0 %v7025_v48  ;;  %v7108_v41 = vld [vmem:[#allocation2 + $0x520] ss:$8 sps:$4 sm:$0xff]   ;;  %v7113_v48 = vld [vmem:[#allocation2 + $0x414] ss:$8 sps:$4 sm:$0xff]  }
 0xa79   :  { %5186 = vmatprep.subr.bf16.mxu1 %v7028_v50  ;;  %v7116_v50 = vld [vmem:[#allocation2 + $0x514] ss:$8 sps:$4 sm:$0xff]  }
 0xa7b   :  { %5146 = vmatpush2.bf16.msra.mxu0 %v7023_v44  ;;  %v7111_v44 = vld [vmem:[#allocation2 + $0x410] ss:$8 sps:$4 sm:$0xff]  }
 0xa7c   :  { %5187 = vmatpush2.bf16.msra.mxu1 %v7026_v34  ;;  %5147 = vmatprep.subr.bf16.mxu0 %v7031_v59  ;;  %v7114_v34 = vld [vmem:[#allocation2 + $0x510] ss:$8 sps:$4 sm:$0xff]   ;;  %v7119_v59 = vld [vmem:[#allocation2 + $0x404] ss:$8 sps:$4 sm:$0xff]  }
 0xa7d   :  { %5188 = vmatprep.subr.bf16.mxu1 %v7034_v29  ;;  %v7122_v29 = vld [vmem:[#allocation2 + $0x504] ss:$8 sps:$4 sm:$0xff]  }
 0xa7f   :  { %5148 = vmatpush2.bf16.msra.mxu0 %v7029_v27  ;;  %v7117_v27 = vld [vmem:[#allocation2 + $0x400] ss:$8 sps:$4 sm:$0xff]  }
 0xa80   :  { %5189 = vmatpush2.bf16.msra.mxu1 %v7032_v17  ;;  %5149 = vmatprep.subr.bf16.mxu0 %v7037_v10  ;;  %v7120_v17 = vld [vmem:[#allocation2 + $0x500] ss:$8 sps:$4 sm:$0xff]   ;;  %v7125_v10 = vld [vmem:[#allocation2 + $0x4f4] ss:$8 sps:$4 sm:$0xff]  }
 0xa81   :  { %5190 = vmatprep.subr.bf16.mxu1 %v7040_v62  ;;  %v7128_v62 = vld [vmem:[#allocation2 + $0x5f4] ss:$8 sps:$4 sm:$0xff]  }
 0xa83   :  { %5150 = vmatpush2.bf16.msra.mxu0 %v7035_v36  ;;  %v7123_v36 = vld [vmem:[#allocation2 + $0x4f0] ss:$8 sps:$4 sm:$0xff]  }
 0xa84   :  { %5191 = vmatpush2.bf16.msra.mxu1 %v7038_v5  ;;  %5151 = vmatprep.subr.bf16.mxu0 %v7043_v43  ;;  %v7126_v5 = vld [vmem:[#allocation2 + $0x5f0] ss:$8 sps:$4 sm:$0xff]   ;;  %v7131_v43 = vld [vmem:[#allocation2 + $0x4e4] ss:$8 sps:$4 sm:$0xff]  }
 0xa85   :  { %5192 = vmatprep.subr.bf16.mxu1 %v7046_v11  ;;  %v7134_v11 = vld [vmem:[#allocation2 + $0x5e4] ss:$8 sps:$4 sm:$0xff]  }
 0xa87   :  { %5152 = vmatpush2.bf16.msra.mxu0 %v7041_v38  ;;  %v7129_v38 = vld [vmem:[#allocation2 + $0x4e0] ss:$8 sps:$4 sm:$0xff]  }
 0xa88   :  { %5193 = vmatpush2.bf16.msra.mxu1 %v7044_v55  ;;  %5153 = vmatprep.subr.bf16.mxu0 %v7049_v20  ;;  %v7132_v55 = vld [vmem:[#allocation2 + $0x5e0] ss:$8 sps:$4 sm:$0xff]   ;;  %v7137_v20 = vld [vmem:[#allocation2 + $0x4d4] ss:$8 sps:$4 sm:$0xff]  }
 0xa89   :  { %5194 = vmatprep.subr.bf16.mxu1 %v7052_v2  ;;  %v7140_v2 = vld [vmem:[#allocation2 + $0x5d4] ss:$8 sps:$4 sm:$0xff]  }
 0xa8b   :  { %5154 = vmatpush2.bf16.msra.mxu0 %v7047_v0  ;;  %v7135_v0 = vld [vmem:[#allocation2 + $0x4d0] ss:$8 sps:$4 sm:$0xff]  }
 0xa8c   :  { %5195 = vmatpush2.bf16.msra.mxu1 %v7050_v49  ;;  %5155 = vmatprep.subr.bf16.mxu0 %v7055_v1  ;;  %v7138_v49 = vld [vmem:[#allocation2 + $0x5d0] ss:$8 sps:$4 sm:$0xff]   ;;  %v7143_v1 = vld [vmem:[#allocation2 + $0x4c4] ss:$8 sps:$4 sm:$0xff]  }
 0xa8d   :  { %5196 = vmatprep.subr.bf16.mxu1 %v7058_v51  ;;  %v7146_v51 = vld [vmem:[#allocation2 + $0x5c4] ss:$8 sps:$4 sm:$0xff]  }
 0xa8f   :  { %5156 = vmatpush2.bf16.msra.mxu0 %v7053_v32  ;;  %v7141_v32 = vld [vmem:[#allocation2 + $0x4c0] ss:$8 sps:$4 sm:$0xff]  }
 0xa90   :  { %5197 = vmatpush2.bf16.msra.mxu1 %v7056_v13  ;;  %5157 = vmatprep.subr.bf16.mxu0 %v7061_v52  ;;  %v7144_v13 = vld [vmem:[#allocation2 + $0x5c0] ss:$8 sps:$4 sm:$0xff]   ;;  %v7149_v52 = vld [vmem:[#allocation2 + $0x4b4] ss:$8 sps:$4 sm:$0xff]  }
 0xa91   :  { %5198 = vmatprep.subr.bf16.mxu1 %v7064_v57  ;;  %v7152_v57 = vld [vmem:[#allocation2 + $0x5b4] ss:$8 sps:$4 sm:$0xff]  }
 0xa93   :  { %5158 = vmatpush2.bf16.msra.mxu0 %v7059_v42  ;;  %v7147_v42 = vld [vmem:[#allocation2 + $0x4b0] ss:$8 sps:$4 sm:$0xff]  }
 0xa94   :  { %5199 = vmatpush2.bf16.msra.mxu1 %v7062_v8  ;;  %5159 = vmatprep.subr.bf16.mxu0 %v7067_v25  ;;  %v7150_v8 = vld [vmem:[#allocation2 + $0x5b0] ss:$8 sps:$4 sm:$0xff]   ;;  %v7155_v25 = vld [vmem:[#allocation2 + $0x4a4] ss:$8 sps:$4 sm:$0xff]  }
 0xa95   :  { %5200 = vmatprep.subr.bf16.mxu1 %v7070_v18  ;;  %v7158_v18 = vld [vmem:[#allocation2 + $0x5a4] ss:$8 sps:$4 sm:$0xff]  }
 0xa97   :  { %5160 = vmatpush2.bf16.msra.mxu0 %v7065_v61  ;;  %v7153_v61 = vld [vmem:[#allocation2 + $0x4a0] ss:$8 sps:$4 sm:$0xff]  }
 0xa98   :  { %5201 = vmatpush2.bf16.msra.mxu1 %v7068_v35  ;;  %5211 = vmatprep.subr.bf16.mxu0 %v7077_v45  ;;  %v7156_v35 = vld [vmem:[#allocation2 + $0x5a0] ss:$8 sps:$4 sm:$0xff]   ;;  %v7161_v45 = vld [vmem:[#allocation2 + $0x494] ss:$8 sps:$4 sm:$0xff]  }
 0xa99   :  { %5252 = vmatprep.subr.bf16.mxu1 %v7080_v23  ;;  %v7164_v23 = vld [vmem:[#allocation2 + $0x594] ss:$8 sps:$4 sm:$0xff]  }
 0xa9a   :  { %5162 = vmatmul.mubr.bf16.vlgmr.msra.gmra.mxu0 %v6335_v47  ;;  %v7159_v47 = vld [vmem:[#allocation2 + $0x490] ss:$8 sps:$4 sm:$0xff]  }
 0xa9b   :  { %5203 = vmatmul.mubr.bf16.vlgmr.msra.gmra.mxu1 %v6337_v30  ;;  %5212 = vmatpush1.bf16.msra.mxu0 %v7075_v63  ;;  %v7162_v30 = vld [vmem:[#allocation2 + $0x590] ss:$8 sps:$4 sm:$0xff]   ;;  %v7167_v63 = vld [vmem:[#allocation2 + $0x484] ss:$8 sps:$4 sm:$0xff]  }
 0xa9c   :  { %5253 = vmatpush1.bf16.msra.mxu1 %v7078_v12  ;;  %5213 = vmatprep.subr.bf16.mxu0 %v7083_v54  ;;  %v7170_v12 = vld [vmem:[#allocation2 + $0x584] ss:$8 sps:$4 sm:$0xff]   ;;  %v7165_v54 = vld [vmem:[#allocation2 + $0x480] ss:$8 sps:$4 sm:$0xff]  }
 0xa9d   :  { %5254 = vmatprep.subr.bf16.mxu1 %v7086_v60  ;;  %5243 = vmatprep.mubr.bf16.mxu0 %v6340_v37  ;;  %v7168_v60 = vld [vmem:[#allocation2 + $0x580] ss:$8 sps:$4 sm:$0xff]   ;;  %v7177_v37 = vld [vmem:[#allocation2 + $0x674] ss:$8 sps:$4 sm:$0xff]  }
 0xa9e   :  { %5284 = vmatprep.mubr.bf16.mxu1 %v6342_v58  ;;  %v7180_v58 = vld [vmem:[#allocation2 + $0x774] ss:$8 sps:$4 sm:$0xff]  }
 0xa9f   :  { %5214 = vmatpush1.bf16.msra.mxu0 %v7081_v40  ;;  %v9625_v40 = vld [vmem:[%s9678_s0 + $0x30] sm:$0xff] }
 0xaa0   :  { %5255 = vmatpush1.bf16.msra.mxu1 %v7084_v28  ;;  %5215 = vmatprep.subr.bf16.mxu0 %v7089_v53  ;;  %v9630_v28 = vld [vmem:[%s9678_s0 + $0x38] sm:$0xff] }
 0xaa1   :  { %5256 = vmatprep.subr.bf16.mxu1 %v7092_v19  ;;  %v7175_v53 = vld [vmem:[#allocation2 + $0x670] ss:$8 sps:$4 sm:$0xff]  }
 0xaa2   :  { %v7178_v19 = vld [vmem:[#allocation2 + $0x770] ss:$8 sps:$4 sm:$0xff]  }
 0xaa3   :  { %5216 = vmatpush1.bf16.msra.mxu0 %v7087_v15  ;;  %v6339_v15 = vcombine.low %v9611_v21, %v9611_v21  ;;  %v7189_v21 = vld [vmem:[#allocation2 + $0x654] ss:$8 sps:$4 sm:$0xff]  }
 0xaa4   :  { %5257 = vmatpush1.bf16.msra.mxu1 %v7090_v56  ;;  %5217 = vmatprep.subr.bf16.mxu0 %v7095_v4  ;;  %v6341_v56 = vcombine.low %v9616_v3, %v9616_v3  ;;  %v7183_v4 = vld [vmem:[#allocation2 + $0x664] ss:$8 sps:$4 sm:$0xff]   ;;  %v7187_v3 = vld [vmem:[#allocation2 + $0x650] ss:$8 sps:$4 sm:$0xff]  }
 0xaa5   :  { %5258 = vmatprep.subr.bf16.mxu1 %v7098_v26  ;;  %v7186_v26 = vld [vmem:[#allocation2 + $0x764] ss:$8 sps:$4 sm:$0xff]  }
 0xaa7   :  { %5218 = vmatpush1.bf16.msra.mxu0 %v7093_v46  ;;  %v7181_v46 = vld [vmem:[#allocation2 + $0x660] ss:$8 sps:$4 sm:$0xff]  }
 0xaa8   :  { %5259 = vmatpush1.bf16.msra.mxu1 %v7096_v7  ;;  %5219 = vmatprep.subr.bf16.mxu0 %v7101_v14  ;;  %v7184_v7 = vld [vmem:[#allocation2 + $0x760] ss:$8 sps:$4 sm:$0xff]   ;;  %v6344_v14 = vcombine.high %v9625_v40, %v9625_v40 }
 0xaa9   :  { %5260 = vmatprep.subr.bf16.mxu1 %v7104_v16  ;;  %v6346_v16 = vcombine.high %v9630_v28, %v9630_v28 }
 0xaab   :  { %5220 = vmatpush1.bf16.msra.mxu0 %v7099_v22  ;;  %v7192_v22 = vld [vmem:[#allocation2 + $0x754] ss:$8 sps:$4 sm:$0xff]  }
 0xaac   :  { %5261 = vmatpush1.bf16.msra.mxu1 %v7102_v24  ;;  %5221 = vmatprep.subr.bf16.mxu0 %v7107_v31  ;;  %v7190_v24 = vld [vmem:[#allocation2 + $0x750] ss:$8 sps:$4 sm:$0xff]   ;;  %v7195_v31 = vld [vmem:[#allocation2 + $0x644] ss:$8 sps:$4 sm:$0xff]  }
 0xaad   :  { %5262 = vmatprep.subr.bf16.mxu1 %v7110_v33  ;;  %v7198_v33 = vld [vmem:[#allocation2 + $0x744] ss:$8 sps:$4 sm:$0xff]  }
 0xaaf   :  { %5222 = vmatpush1.bf16.msra.mxu0 %v7105_v39  ;;  %v7193_v39 = vld [vmem:[#allocation2 + $0x640] ss:$8 sps:$4 sm:$0xff]  }
 0xab0   :  { %5263 = vmatpush1.bf16.msra.mxu1 %v7108_v41  ;;  %5223 = vmatprep.subr.bf16.mxu0 %v7113_v48  ;;  %v7196_v41 = vld [vmem:[#allocation2 + $0x740] ss:$8 sps:$4 sm:$0xff]   ;;  %v7201_v48 = vld [vmem:[#allocation2 + $0x634] ss:$8 sps:$4 sm:$0xff]  }
 0xab1   :  { %5264 = vmatprep.subr.bf16.mxu1 %v7116_v50  ;;  %v7204_v50 = vld [vmem:[#allocation2 + $0x734] ss:$8 sps:$4 sm:$0xff]  }
 0xab3   :  { %5224 = vmatpush1.bf16.msra.mxu0 %v7111_v44  ;;  %v7199_v44 = vld [vmem:[#allocation2 + $0x630] ss:$8 sps:$4 sm:$0xff]  }
 0xab4   :  { %5265 = vmatpush1.bf16.msra.mxu1 %v7114_v34  ;;  %5225 = vmatprep.subr.bf16.mxu0 %v7119_v59  ;;  %v7202_v34 = vld [vmem:[#allocation2 + $0x730] ss:$8 sps:$4 sm:$0xff]   ;;  %v7207_v59 = vld [vmem:[#allocation2 + $0x624] ss:$8 sps:$4 sm:$0xff]  }
 0xab5   :  { %5266 = vmatprep.subr.bf16.mxu1 %v7122_v29  ;;  %v7210_v29 = vld [vmem:[#allocation2 + $0x724] ss:$8 sps:$4 sm:$0xff]  }
 0xab7   :  { %5226 = vmatpush1.bf16.msra.mxu0 %v7117_v27  ;;  %v7205_v27 = vld [vmem:[#allocation2 + $0x620] ss:$8 sps:$4 sm:$0xff]  }
 0xab8   :  { %5267 = vmatpush1.bf16.msra.mxu1 %v7120_v17  ;;  %5227 = vmatprep.subr.bf16.mxu0 %v7125_v10  ;;  %v7208_v17 = vld [vmem:[#allocation2 + $0x720] ss:$8 sps:$4 sm:$0xff]   ;;  %v7213_v10 = vld [vmem:[#allocation2 + $0x614] ss:$8 sps:$4 sm:$0xff]  }
 0xab9   :  { %5268 = vmatprep.subr.bf16.mxu1 %v7128_v62  ;;  %v7216_v62 = vld [vmem:[#allocation2 + $0x714] ss:$8 sps:$4 sm:$0xff]  }
 0xabb   :  { %5228 = vmatpush2.bf16.msra.mxu0 %v7123_v36  ;;  %v7211_v36 = vld [vmem:[#allocation2 + $0x610] ss:$8 sps:$4 sm:$0xff]  }
 0xabc   :  { %5269 = vmatpush2.bf16.msra.mxu1 %v7126_v5  ;;  %5229 = vmatprep.subr.bf16.mxu0 %v7131_v43  ;;  %v7214_v5 = vld [vmem:[#allocation2 + $0x710] ss:$8 sps:$4 sm:$0xff]   ;;  %v7219_v43 = vld [vmem:[#allocation2 + $0x604] ss:$8 sps:$4 sm:$0xff]  }
 0xabd   :  { %5270 = vmatprep.subr.bf16.mxu1 %v7134_v11  ;;  %v7222_v11 = vld [vmem:[#allocation2 + $0x704] ss:$8 sps:$4 sm:$0xff]  }
 0xabf   :  { %5230 = vmatpush2.bf16.msra.mxu0 %v7129_v38  ;;  %v7217_v38 = vld [vmem:[#allocation2 + $0x600] ss:$8 sps:$4 sm:$0xff]  }
 0xac0   :  { %5271 = vmatpush2.bf16.msra.mxu1 %v7132_v55  ;;  %5231 = vmatprep.subr.bf16.mxu0 %v7137_v20  ;;  %v7220_v55 = vld [vmem:[#allocation2 + $0x700] ss:$8 sps:$4 sm:$0xff]   ;;  %v7225_v20 = vld [vmem:[#allocation2 + $0x6f4] ss:$8 sps:$4 sm:$0xff]  }
 0xac1   :  { %5272 = vmatprep.subr.bf16.mxu1 %v7140_v2  ;;  %v7228_v2 = vld [vmem:[#allocation2 + $0x7f4] ss:$8 sps:$4 sm:$0xff]  }
 0xac3   :  { %5232 = vmatpush2.bf16.msra.mxu0 %v7135_v0  ;;  %v7223_v0 = vld [vmem:[#allocation2 + $0x6f0] ss:$8 sps:$4 sm:$0xff]  }
 0xac4   :  { %5273 = vmatpush2.bf16.msra.mxu1 %v7138_v49  ;;  %5233 = vmatprep.subr.bf16.mxu0 %v7143_v1  ;;  %v7226_v49 = vld [vmem:[#allocation2 + $0x7f0] ss:$8 sps:$4 sm:$0xff]   ;;  %v7231_v1 = vld [vmem:[#allocation2 + $0x6e4] ss:$8 sps:$4 sm:$0xff]  }
 0xac5   :  { %5274 = vmatprep.subr.bf16.mxu1 %v7146_v51  ;;  %v7234_v51 = vld [vmem:[#allocation2 + $0x7e4] ss:$8 sps:$4 sm:$0xff]  }
 0xac7   :  { %5234 = vmatpush2.bf16.msra.mxu0 %v7141_v32  ;;  %v7229_v32 = vld [vmem:[#allocation2 + $0x6e0] ss:$8 sps:$4 sm:$0xff]  }
 0xac8   :  { %5275 = vmatpush2.bf16.msra.mxu1 %v7144_v13  ;;  %5235 = vmatprep.subr.bf16.mxu0 %v7149_v52  ;;  %v7232_v13 = vld [vmem:[#allocation2 + $0x7e0] ss:$8 sps:$4 sm:$0xff]   ;;  %v7237_v52 = vld [vmem:[#allocation2 + $0x6d4] ss:$8 sps:$4 sm:$0xff]  }
 0xac9   :  { %5276 = vmatprep.subr.bf16.mxu1 %v7152_v57  ;;  %v7240_v57 = vld [vmem:[#allocation2 + $0x7d4] ss:$8 sps:$4 sm:$0xff]  }
 0xacb   :  { %5236 = vmatpush2.bf16.msra.mxu0 %v7147_v42  ;;  %v7235_v42 = vld [vmem:[#allocation2 + $0x6d0] ss:$8 sps:$4 sm:$0xff]  }
 0xacc   :  { %5277 = vmatpush2.bf16.msra.mxu1 %v7150_v8  ;;  %5237 = vmatprep.subr.bf16.mxu0 %v7155_v25  ;;  %v7238_v8 = vld [vmem:[#allocation2 + $0x7d0] ss:$8 sps:$4 sm:$0xff]   ;;  %v7243_v25 = vld [vmem:[#allocation2 + $0x6c4] ss:$8 sps:$4 sm:$0xff]  }
 0xacd   :  { %5278 = vmatprep.subr.bf16.mxu1 %v7158_v18  ;;  %v7246_v18 = vld [vmem:[#allocation2 + $0x7c4] ss:$8 sps:$4 sm:$0xff]  }
 0xacf   :  { %5238 = vmatpush2.bf16.msra.mxu0 %v7153_v61  ;;  %v7241_v61 = vld [vmem:[#allocation2 + $0x6c0] ss:$8 sps:$4 sm:$0xff]  }
 0xad0   :  { %5279 = vmatpush2.bf16.msra.mxu1 %v7156_v35  ;;  %5239 = vmatprep.subr.bf16.mxu0 %v7161_v45  ;;  %v7244_v35 = vld [vmem:[#allocation2 + $0x7c0] ss:$8 sps:$4 sm:$0xff]   ;;  %v7249_v45 = vld [vmem:[#allocation2 + $0x6b4] ss:$8 sps:$4 sm:$0xff]  }
 0xad1   :  { %5280 = vmatprep.subr.bf16.mxu1 %v7164_v23  ;;  %v7252_v23 = vld [vmem:[#allocation2 + $0x7b4] ss:$8 sps:$4 sm:$0xff]  }
 0xad3   :  { %5240 = vmatpush2.bf16.msra.mxu0 %v7159_v47  ;;  %v7247_v47 = vld [vmem:[#allocation2 + $0x6b0] ss:$8 sps:$4 sm:$0xff]  }
 0xad4   :  { %5281 = vmatpush2.bf16.msra.mxu1 %v7162_v30  ;;  %5241 = vmatprep.subr.bf16.mxu0 %v7167_v63  ;;  %v7250_v30 = vld [vmem:[#allocation2 + $0x7b0] ss:$8 sps:$4 sm:$0xff]   ;;  %v7255_v63 = vld [vmem:[#allocation2 + $0x6a4] ss:$8 sps:$4 sm:$0xff]  }
 0xad5   :  { %5282 = vmatprep.subr.bf16.mxu1 %v7170_v12  ;;  %v7258_v12 = vld [vmem:[#allocation2 + $0x7a4] ss:$8 sps:$4 sm:$0xff]  }
 0xad7   :  { %5242 = vmatpush2.bf16.msra.mxu0 %v7165_v54  ;;  %v7253_v54 = vld [vmem:[#allocation2 + $0x6a0] ss:$8 sps:$4 sm:$0xff]  }
 0xad8   :  { %5283 = vmatpush2.bf16.msra.mxu1 %v7168_v60  ;;  %5293 = vmatprep.subr.bf16.mxu0 %v7177_v37  ;;  %v7256_v60 = vld [vmem:[#allocation2 + $0x7a0] ss:$8 sps:$4 sm:$0xff]   ;;  %v7261_v37 = vld [vmem:[#allocation2 + $0x694] ss:$8 sps:$4 sm:$0xff]  }
 0xad9   :  { %5334 = vmatprep.subr.bf16.mxu1 %v7180_v58  ;;  %v7264_v58 = vld [vmem:[#allocation2 + $0x794] ss:$8 sps:$4 sm:$0xff]  }
 0xada   :  { %5244 = vmatmul.mubr.bf16.vlgmr.msra.gmra.mxu0 %v6339_v15  ;;  %v7267_v15 = vld [vmem:[#allocation2 + $0x684] ss:$8 sps:$4 sm:$0xff]  }
 0xadb   :  { %5285 = vmatmul.mubr.bf16.vlgmr.msra.gmra.mxu1 %v6341_v56  ;;  %5294 = vmatpush1.bf16.msra.mxu0 %v7175_v53  ;;  %v7259_v53 = vld [vmem:[#allocation2 + $0x690] ss:$8 sps:$4 sm:$0xff]   ;;  %v7270_v56 = vld [vmem:[#allocation2 + $0x784] ss:$8 sps:$4 sm:$0xff]  }
 0xadc   :  { %5335 = vmatpush1.bf16.msra.mxu1 %v7178_v19  ;;  %5295 = vmatprep.subr.bf16.mxu0 %v7183_v4  ;;  %v7262_v19 = vld [vmem:[#allocation2 + $0x790] ss:$8 sps:$4 sm:$0xff]   ;;  %v7265_v4 = vld [vmem:[#allocation2 + $0x680] ss:$8 sps:$4 sm:$0xff]  }
 0xadd   :  { %5336 = vmatprep.subr.bf16.mxu1 %v7186_v26  ;;  %5325 = vmatprep.mubr.bf16.mxu0 %v6344_v14  ;;  %v7268_v26 = vld [vmem:[#allocation2 + $0x780] ss:$8 sps:$4 sm:$0xff]   ;;  %v6345_v14 = vcombine.low %v9630_v28, %v9630_v28 }
 0xade   :  { %5366 = vmatprep.mubr.bf16.mxu1 %v6346_v16  ;;  %v10721_v16 = vld [vmem:[#allocation134_spill] sm:$0xff] }
 0xadf   :  { %5296 = vmatpush1.bf16.msra.mxu0 %v7181_v46  ;;  %v3699_v46 = vld [vmem:[%s9681_s3] sm:$0x3] }
 0xae0   :  { %5337 = vmatpush1.bf16.msra.mxu1 %v7184_v7  ;;  %5297 = vmatprep.subr.bf16.mxu0 %v7189_v21  ;;  %v6343_v7 = vcombine.low %v9625_v40, %v9625_v40  ;;  %v3704_v21 = vrot.slane %v3699_v46, %v10721_v16 }
 0xae1   :  { %5338 = vmatprep.subr.bf16.mxu1 %v7192_v22  ;;  %v10722_v22 = vld [vmem:[#allocation135_spill] sm:$0xff] }
 0xae3   :  { %5298 = vmatpush1.bf16.msra.mxu0 %v7187_v3  ;;  %v3708_v3 = vrot.slane %v3699_v46, %v10722_v22  ;;  %v7340_v46 = vld [vmem:[#allocation10 + $0xc4] ss:$8 sps:$4 sm:$0xff]  }
 0xae4   :  { %5339 = vmatpush1.bf16.msra.mxu1 %v7190_v24  ;;  %5299 = vmatprep.subr.bf16.mxu0 %v7195_v31 }
 0xae5   :  { %5340 = vmatprep.subr.bf16.mxu1 %v7198_v33 }
 0xae7   :  { %5300 = vmatpush1.bf16.msra.mxu0 %v7193_v39 }
 0xae8   :  { %5341 = vmatpush1.bf16.msra.mxu1 %v7196_v41  ;;  %5301 = vmatprep.subr.bf16.mxu0 %v7201_v48 }
 0xae9   :  { %5342 = vmatprep.subr.bf16.mxu1 %v7204_v50 }
 0xaeb   :  { %5302 = vmatpush1.bf16.msra.mxu0 %v7199_v44 }
 0xaec   :  { %5343 = vmatpush1.bf16.msra.mxu1 %v7202_v34  ;;  %5303 = vmatprep.subr.bf16.mxu0 %v7207_v59  ;;  %v7277_v34 = vld [vmem:[#allocation10 + $0x74] ss:$8 sps:$4 sm:$0xff]   ;;  %v7275_v59 = vld [vmem:[#allocation10 + $0x70] ss:$8 sps:$4 sm:$0xff]  }
 0xaed   :  { %5344 = vmatprep.subr.bf16.mxu1 %v7210_v29 }
 0xaef   :  { %5304 = vmatpush1.bf16.msra.mxu0 %v7205_v27 }
 0xaf0   :  { %5345 = vmatpush1.bf16.msra.mxu1 %v7208_v17  ;;  %5305 = vmatprep.subr.bf16.mxu0 %v7213_v10  ;;  %v7280_v17 = vld [vmem:[#allocation10 + $0x64] ss:$8 sps:$4 sm:$0xff]   ;;  %v7281_v10 = vld [vmem:[#allocation8 + $0x70] ss:$8 sps:$4 sm:$0xff]  }
 0xaf1   :  { %5346 = vmatprep.subr.bf16.mxu1 %v7216_v62  ;;  %v7278_v62 = vld [vmem:[#allocation10 + $0x60] ss:$8 sps:$4 sm:$0xff]  }
 0xaf3   :  { %5306 = vmatpush1.bf16.msra.mxu0 %v7211_v36  ;;  %v7283_v36 = vld [vmem:[#allocation8 + $0x74] ss:$8 sps:$4 sm:$0xff]  }
 0xaf4   :  { %5347 = vmatpush1.bf16.msra.mxu1 %v7214_v5  ;;  %5307 = vmatprep.subr.bf16.mxu0 %v7219_v43  ;;  %v7286_v5 = vld [vmem:[#allocation10 + $0x54] ss:$8 sps:$4 sm:$0xff]   ;;  %v7289_v43 = vld [vmem:[#allocation8 + $0x64] ss:$8 sps:$4 sm:$0xff]  }
 0xaf5   :  { %5348 = vmatprep.subr.bf16.mxu1 %v7222_v11  ;;  %v7287_v11 = vld [vmem:[#allocation8 + $0x60] ss:$8 sps:$4 sm:$0xff]  }
 0xaf7   :  { %5308 = vmatpush1.bf16.msra.mxu0 %v7217_v38  ;;  %v7284_v38 = vld [vmem:[#allocation10 + $0x50] ss:$8 sps:$4 sm:$0xff]  }
 0xaf8   :  { %5349 = vmatpush1.bf16.msra.mxu1 %v7220_v55  ;;  %5309 = vmatprep.subr.bf16.mxu0 %v7225_v20  ;;  %v7295_v55 = vld [vmem:[#allocation8 + $0x54] ss:$8 sps:$4 sm:$0xff]   ;;  %v7292_v20 = vld [vmem:[#allocation10 + $0x44] ss:$8 sps:$4 sm:$0xff]  }
 0xaf9   :  { %5350 = vmatprep.subr.bf16.mxu1 %v7228_v2  ;;  %v7293_v2 = vld [vmem:[#allocation8 + $0x50] ss:$8 sps:$4 sm:$0xff]  }
 0xafb   :  { %5310 = vmatpush2.bf16.msra.mxu0 %v7223_v0  ;;  %v7290_v0 = vld [vmem:[#allocation10 + $0x40] ss:$8 sps:$4 sm:$0xff]  }
 0xafc   :  { %5351 = vmatpush2.bf16.msra.mxu1 %v7226_v49  ;;  %5311 = vmatprep.subr.bf16.mxu0 %v7231_v1  ;;  %v7301_v49 = vld [vmem:[#allocation8 + $0x44] ss:$8 sps:$4 sm:$0xff]   ;;  %v7298_v1 = vld [vmem:[#allocation10 + $0x34] ss:$8 sps:$4 sm:$0xff]  }
 0xafd   :  { %5352 = vmatprep.subr.bf16.mxu1 %v7234_v51  ;;  %v7299_v51 = vld [vmem:[#allocation8 + $0x40] ss:$8 sps:$4 sm:$0xff]  }
 0xaff   :  { %5312 = vmatpush2.bf16.msra.mxu0 %v7229_v32  ;;  %v7296_v32 = vld [vmem:[#allocation10 + $0x30] ss:$8 sps:$4 sm:$0xff]  }
 0xb00   :  { %5353 = vmatpush2.bf16.msra.mxu1 %v7232_v13  ;;  %5313 = vmatprep.subr.bf16.mxu0 %v7237_v52  ;;  %v7307_v13 = vld [vmem:[#allocation8 + $0x34] ss:$8 sps:$4 sm:$0xff]   ;;  %v7304_v52 = vld [vmem:[#allocation10 + $0x24] ss:$8 sps:$4 sm:$0xff]  }
 0xb01   :  { %5354 = vmatprep.subr.bf16.mxu1 %v7240_v57  ;;  %v7305_v57 = vld [vmem:[#allocation8 + $0x30] ss:$8 sps:$4 sm:$0xff]  }
 0xb03   :  { %5314 = vmatpush2.bf16.msra.mxu0 %v7235_v42  ;;  %v7302_v42 = vld [vmem:[#allocation10 + $0x20] ss:$8 sps:$4 sm:$0xff]  }
 0xb04   :  { %5355 = vmatpush2.bf16.msra.mxu1 %v7238_v8  ;;  %5315 = vmatprep.subr.bf16.mxu0 %v7243_v25  ;;  %v7313_v8 = vld [vmem:[#allocation8 + $0x24] ss:$8 sps:$4 sm:$0xff]   ;;  %v7310_v25 = vld [vmem:[#allocation10 + $0x14] ss:$8 sps:$4 sm:$0xff]  }
 0xb05   :  { %5356 = vmatprep.subr.bf16.mxu1 %v7246_v18  ;;  %v7311_v18 = vld [vmem:[#allocation8 + $0x20] ss:$8 sps:$4 sm:$0xff]  }
 0xb07   :  { %5316 = vmatpush2.bf16.msra.mxu0 %v7241_v61  ;;  %v7308_v61 = vld [vmem:[#allocation10 + $0x10] ss:$8 sps:$4 sm:$0xff]  }
 0xb08   :  { %5357 = vmatpush2.bf16.msra.mxu1 %v7244_v35  ;;  %5317 = vmatprep.subr.bf16.mxu0 %v7249_v45  ;;  %v7319_v35 = vld [vmem:[#allocation8 + $0x14] ss:$8 sps:$4 sm:$0xff]   ;;  %v7316_v45 = vld [vmem:[#allocation10 + $0x4] ss:$8 sps:$4 sm:$0xff]  }
 0xb09   :  { %5358 = vmatprep.subr.bf16.mxu1 %v7252_v23  ;;  %v7317_v23 = vld [vmem:[#allocation8 + $0x10] ss:$8 sps:$4 sm:$0xff]  }
 0xb0b   :  { %5318 = vmatpush2.bf16.msra.mxu0 %v7247_v47  ;;  %v7314_v47 = vld [vmem:[#allocation10] ss:$8 sps:$4 sm:$0xff]  }
 0xb0c   :  { %5359 = vmatpush2.bf16.msra.mxu1 %v7250_v30  ;;  %5319 = vmatprep.subr.bf16.mxu0 %v7255_v63  ;;  %v7325_v30 = vld [vmem:[#allocation8 + $0x4] ss:$8 sps:$4 sm:$0xff]   ;;  %v7322_v63 = vld [vmem:[#allocation10 + $0xf4] ss:$8 sps:$4 sm:$0xff]  }
 0xb0d   :  { %5360 = vmatprep.subr.bf16.mxu1 %v7258_v12  ;;  %v7323_v12 = vld [vmem:[#allocation8] ss:$8 sps:$4 sm:$0xff]  }
 0xb0f   :  { %5320 = vmatpush2.bf16.msra.mxu0 %v7253_v54  ;;  %v7320_v54 = vld [vmem:[#allocation10 + $0xf0] ss:$8 sps:$4 sm:$0xff]  }
 0xb10   :  { %5361 = vmatpush2.bf16.msra.mxu1 %v7256_v60  ;;  %5321 = vmatprep.subr.bf16.mxu0 %v7261_v37  ;;  %v7331_v60 = vld [vmem:[#allocation8 + $0xf4] ss:$8 sps:$4 sm:$0xff]   ;;  %v7328_v37 = vld [vmem:[#allocation10 + $0xe4] ss:$8 sps:$4 sm:$0xff]  }
 0xb11   :  { %5362 = vmatprep.subr.bf16.mxu1 %v7264_v58  ;;  %v7329_v58 = vld [vmem:[#allocation8 + $0xf0] ss:$8 sps:$4 sm:$0xff]  }
 0xb13   :  { %5322 = vmatpush2.bf16.msra.mxu0 %v7259_v53  ;;  %v7326_v53 = vld [vmem:[#allocation10 + $0xe0] ss:$8 sps:$4 sm:$0xff]  }
 0xb14   :  { %5363 = vmatpush2.bf16.msra.mxu1 %v7262_v19  ;;  %5323 = vmatprep.subr.bf16.mxu0 %v7267_v15  ;;  %v7337_v19 = vld [vmem:[#allocation8 + $0xe4] ss:$8 sps:$4 sm:$0xff]   ;;  %v7334_v15 = vld [vmem:[#allocation10 + $0xd4] ss:$8 sps:$4 sm:$0xff]  }
 0xb15   :  { %5364 = vmatprep.subr.bf16.mxu1 %v7270_v56  ;;  %v7335_v56 = vld [vmem:[#allocation8 + $0xe0] ss:$8 sps:$4 sm:$0xff]  }
 0xb17   :  { %5324 = vmatpush2.bf16.msra.mxu0 %v7265_v4  ;;  %v7332_v4 = vld [vmem:[#allocation10 + $0xd0] ss:$8 sps:$4 sm:$0xff]  }
 0xb18   :  { %5365 = vmatpush2.bf16.msra.mxu1 %v7268_v26  ;;  %5605 = vmatprep.subr.bf16.mxu0 %v7277_v34  ;;  %v7343_v26 = vld [vmem:[#allocation8 + $0xd4] ss:$8 sps:$4 sm:$0xff]   ;;  %v7361_v34 = vld [vmem:[#allocation8 + $0xa4] ss:$8 sps:$4 sm:$0xff]  }
 0xb19   :  { %5806 = vmatprep.subr.bf16.mxu1 %v7283_v36 }
 0xb1a   :  { %v5081_v24 = vpop.f32.mrf.mxu0  ;;  %5326 = vmatmul.mubr.bf16.vlgmr.msra.gmra.mxu0 %v6343_v7  ;;  %v7341_v7 = vld [vmem:[#allocation8 + $0xd0] ss:$8 sps:$4 sm:$0xff]  }
 0xb1b   :  { %v5122_v31 = vpop.f32.mrf.mxu1  ;;  %5367 = vmatmul.mubr.bf16.vlgmr.msra.gmra.mxu1 %v6345_v14  ;;  %v5082_v33 = vadd.f32 %v5081_v24, %v3704_v21  ;;  %5606 = vmatpush1.bf16.msra.mxu0 %v7275_v59  ;;  %v7338_v14 = vld [vmem:[#allocation10 + $0xc0] ss:$8 sps:$4 sm:$0xff]   ;;  %v7349_v21 = vld [vmem:[#allocation8 + $0xc4] ss:$8 sps:$4 sm:$0xff]  }
 0xb1c   :  { %v5083_v39 = vpop.f32.mrf.mxu0  ;;  %5607 = vmatprep.subr.bf16.mxu0 %v7280_v17  ;;  %5807 = vmatpush1.bf16.msra.mxu1 %v7281_v10  ;;  %v7347_v24 = vld [vmem:[#allocation8 + $0xc0] ss:$8 sps:$4 sm:$0xff]   ;;  %v7364_v17 = vld [vmem:[#allocation10 + $0x84] ss:$8 sps:$4 sm:$0xff]  }
 0xb1d   :  { %v5124_v41 = vpop.f32.mrf.mxu1  ;;  %v9649_v48 = vadd.f32 %v5122_v31, %v5082_v33  ;;  %v5084_v50 = vadd.f32 %v5083_v39, %v3708_v3  ;;  %5808 = vmatprep.subr.bf16.mxu1 %v7289_v43  ;;  %v7346_v3 = vld [vmem:[#allocation10 + $0xb4] ss:$8 sps:$4 sm:$0xff]   ;;  %v7344_v31 = vld [vmem:[#allocation10 + $0xb0] ss:$8 sps:$4 sm:$0xff]   ;;  %v7352_v39 = vld [vmem:[#allocation10 + $0xa4] ss:$8 sps:$4 sm:$0xff]  }
 0xb1e   :  { %v5085_v40 = vpop.f32.mrf.mxu0  ;;  %v7355_v33 = vld [vmem:[#allocation8 + $0xb4] ss:$8 sps:$4 sm:$0xff]   ;;  %v7359_v59 = vld [vmem:[#allocation8 + $0xa0] ss:$8 sps:$4 sm:$0xff]  }
 0xb1f   :  { %v5126_v44 = vpop.f32.mrf.mxu1  ;;  %v9651_v28 = vadd.f32 %v5124_v41, %v5084_v50  ;;  %5608 = vmatpush1.bf16.msra.mxu0 %v7278_v62  ;;  %v7353_v41 = vld [vmem:[#allocation8 + $0xb0] ss:$8 sps:$4 sm:$0xff]   ;;  %v7350_v50 = vld [vmem:[#allocation10 + $0xa0] ss:$8 sps:$4 sm:$0xff]   ;;  %v7358_v40 = vld [vmem:[#allocation10 + $0x94] ss:$8 sps:$4 sm:$0xff]  }
 0xb20   :  { %v5086_v29 = vpop.f32.mrf.mxu0  ;;  %5609 = vmatprep.subr.bf16.mxu0 %v7286_v5  ;;  %5809 = vmatpush1.bf16.msra.mxu1 %v7287_v11  ;;  %v7356_v44 = vld [vmem:[#allocation10 + $0x90] ss:$8 sps:$4 sm:$0xff]   ;;  %v7362_v62 = vld [vmem:[#allocation10 + $0x80] ss:$8 sps:$4 sm:$0xff]   ;;  %v7367_v43 = vld [vmem:[#allocation8 + $0x94] ss:$8 sps:$4 sm:$0xff]  }
 0xb21   :  { %v5127_v27 = vpop.f32.mrf.mxu1  ;;  %5810 = vmatprep.subr.bf16.mxu1 %v7295_v55  ;;  %v7365_v55 = vld [vmem:[#allocation8 + $0x90] ss:$8 sps:$4 sm:$0xff]  }
 0xb23   :  { %5610 = vmatpush1.bf16.msra.mxu0 %v7284_v38 }
 0xb24   :  { %5611 = vmatprep.subr.bf16.mxu0 %v7292_v20  ;;  %5811 = vmatpush1.bf16.msra.mxu1 %v7293_v2  ;;  %v5412_v20 = vpack.c.bf16 %v9582_v9, %v9582_v9  ;;  %v7376_v9 = vld [vmem:[#allocation11 + $0x64] ss:$8 sps:$4 sm:$0xff]  }
 0xb25   :  { %5812 = vmatprep.subr.bf16.mxu1 %v7301_v49 }
 0xb26   :  { %5637 = vmatprep.mubr.bf16.mxu0 %v5412_v20 }
 0xb27   :  { %5612 = vmatpush1.bf16.msra.mxu0 %v7290_v0 }
 0xb28   :  { %5613 = vmatprep.subr.bf16.mxu0 %v7298_v1  ;;  %5813 = vmatpush1.bf16.msra.mxu1 %v7299_v51 }
 0xb29   :  { %5814 = vmatprep.subr.bf16.mxu1 %v7307_v13  ;;  %v7371_v13 = vld [vmem:[#allocation11 + $0x70] ss:$8 sps:$4 sm:$0xff]  }
 0xb2b   :  { %5614 = vmatpush1.bf16.msra.mxu0 %v7296_v32  ;;  %v7370_v32 = vld [vmem:[#allocation8 + $0x84] ss:$8 sps:$4 sm:$0xff]  }
 0xb2c   :  { %5615 = vmatprep.subr.bf16.mxu0 %v7304_v52  ;;  %5815 = vmatpush1.bf16.msra.mxu1 %v7305_v57  ;;  %v7373_v52 = vld [vmem:[#allocation11 + $0x74] ss:$8 sps:$4 sm:$0xff]   ;;  %v7374_v57 = vld [vmem:[#allocation11 + $0x60] ss:$8 sps:$4 sm:$0xff]  }
 0xb2d   :  { %5816 = vmatprep.subr.bf16.mxu1 %v7313_v8  ;;  %v7382_v8 = vld [vmem:[#allocation11 + $0x44] ss:$8 sps:$4 sm:$0xff]  }
 0xb2f   :  { %5616 = vmatpush1.bf16.msra.mxu0 %v7302_v42  ;;  %v7379_v42 = vld [vmem:[#allocation11 + $0x54] ss:$8 sps:$4 sm:$0xff]  }
 0xb30   :  { %5617 = vmatprep.subr.bf16.mxu0 %v7310_v25  ;;  %5817 = vmatpush1.bf16.msra.mxu1 %v7311_v18  ;;  %v7380_v25 = vld [vmem:[#allocation11 + $0x40] ss:$8 sps:$4 sm:$0xff]   ;;  %v7385_v18 = vld [vmem:[#allocation11 + $0x34] ss:$8 sps:$4 sm:$0xff]  }
 0xb31   :  { %5818 = vmatprep.subr.bf16.mxu1 %v7319_v35  ;;  %v7388_v35 = vld [vmem:[#allocation11 + $0x24] ss:$8 sps:$4 sm:$0xff]  }
 0xb33   :  { %5618 = vmatpush1.bf16.msra.mxu0 %v7308_v61  ;;  %v7383_v61 = vld [vmem:[#allocation11 + $0x30] ss:$8 sps:$4 sm:$0xff]  }
 0xb34   :  { %5619 = vmatprep.subr.bf16.mxu0 %v7316_v45  ;;  %5819 = vmatpush1.bf16.msra.mxu1 %v7317_v23  ;;  %v7386_v45 = vld [vmem:[#allocation11 + $0x20] ss:$8 sps:$4 sm:$0xff]   ;;  %v7391_v23 = vld [vmem:[#allocation11 + $0x14] ss:$8 sps:$4 sm:$0xff]  }
 0xb35   :  { %5820 = vmatprep.subr.bf16.mxu1 %v7325_v30  ;;  %v7394_v30 = vld [vmem:[#allocation11 + $0x4] ss:$8 sps:$4 sm:$0xff]  }
 0xb37   :  { %5620 = vmatpush1.bf16.msra.mxu0 %v7314_v47  ;;  %v7389_v47 = vld [vmem:[#allocation11 + $0x10] ss:$8 sps:$4 sm:$0xff]  }
 0xb38   :  { %5621 = vmatprep.subr.bf16.mxu0 %v7322_v63  ;;  %5821 = vmatpush1.bf16.msra.mxu1 %v7323_v12  ;;  %v7392_v63 = vld [vmem:[#allocation11] ss:$8 sps:$4 sm:$0xff]   ;;  %v7397_v12 = vld [vmem:[#allocation11 + $0xf4] ss:$8 sps:$4 sm:$0xff]  }
 0xb39   :  { %5822 = vmatprep.subr.bf16.mxu1 %v7331_v60  ;;  %v7400_v60 = vld [vmem:[#allocation11 + $0xe4] ss:$8 sps:$4 sm:$0xff]  }
 0xb3b   :  { %5622 = vmatpush2.bf16.msra.mxu0 %v7320_v54  ;;  %v7395_v54 = vld [vmem:[#allocation11 + $0xf0] ss:$8 sps:$4 sm:$0xff]  }
 0xb3c   :  { %5623 = vmatprep.subr.bf16.mxu0 %v7328_v37  ;;  %5823 = vmatpush2.bf16.msra.mxu1 %v7329_v58  ;;  %v7398_v37 = vld [vmem:[#allocation11 + $0xe0] ss:$8 sps:$4 sm:$0xff]   ;;  %v7403_v58 = vld [vmem:[#allocation11 + $0xd4] ss:$8 sps:$4 sm:$0xff]  }
 0xb3d   :  { %5824 = vmatprep.subr.bf16.mxu1 %v7337_v19  ;;  %v7406_v19 = vld [vmem:[#allocation11 + $0xc4] ss:$8 sps:$4 sm:$0xff]  }
 0xb3f   :  { %5624 = vmatpush2.bf16.msra.mxu0 %v7326_v53  ;;  %v7401_v53 = vld [vmem:[#allocation11 + $0xd0] ss:$8 sps:$4 sm:$0xff]  }
 0xb40   :  { %5625 = vmatprep.subr.bf16.mxu0 %v7334_v15  ;;  %5825 = vmatpush2.bf16.msra.mxu1 %v7335_v56  ;;  %v7404_v15 = vld [vmem:[#allocation11 + $0xc0] ss:$8 sps:$4 sm:$0xff]  }
 0xb41   :  { %5826 = vmatprep.subr.bf16.mxu1 %v7343_v26 }
 0xb43   :  { %5626 = vmatpush2.bf16.msra.mxu0 %v7332_v4 }
 0xb44   :  { %5627 = vmatprep.subr.bf16.mxu0 %v7340_v46  ;;  %5827 = vmatpush2.bf16.msra.mxu1 %v7341_v7 }
 0xb45   :  { %5828 = vmatprep.subr.bf16.mxu1 %v7349_v21 }
 0xb47   :  { %5628 = vmatpush2.bf16.msra.mxu0 %v7338_v14 }
 0xb48   :  { %5629 = vmatprep.subr.bf16.mxu0 %v7346_v3  ;;  %5829 = vmatpush2.bf16.msra.mxu1 %v7347_v24 }
 0xb49   :  { %5830 = vmatprep.subr.bf16.mxu1 %v7355_v33  ;;  %v7407_v33 = vld [vmem:[#allocation11 + $0xb0] ss:$8 sps:$4 sm:$0xff]  }
 0xb4b   :  { %5630 = vmatpush2.bf16.msra.mxu0 %v7344_v31 }
 0xb4c   :  { %5631 = vmatprep.subr.bf16.mxu0 %v7352_v39  ;;  %5831 = vmatpush2.bf16.msra.mxu1 %v7353_v41  ;;  %v7409_v39 = vld [vmem:[#allocation11 + $0xb4] ss:$8 sps:$4 sm:$0xff]  }
 0xb4d   :  { %5832 = vmatprep.subr.bf16.mxu1 %v7361_v34 }
 0xb4f   :  { %5632 = vmatpush2.bf16.msra.mxu0 %v7350_v50 }
 0xb50   :  { %5633 = vmatprep.subr.bf16.mxu0 %v7358_v40  ;;  %5833 = vmatpush2.bf16.msra.mxu1 %v7359_v59 }
 0xb51   :  { %5834 = vmatprep.subr.bf16.mxu1 %v7367_v43 }
 0xb53   :  { %5634 = vmatpush2.bf16.msra.mxu0 %v7356_v44 }
 0xb54   :  { %5635 = vmatprep.subr.bf16.mxu0 %v7364_v17  ;;  %5835 = vmatpush2.bf16.msra.mxu1 %v7365_v55 }
 0xb55   :  { %5836 = vmatprep.subr.bf16.mxu1 %v7370_v32  ;;  %v7415_v32 = vld [vmem:[#allocation11 + $0x94] ss:$8 sps:$4 sm:$0xff]  }
 0xb57   :  { %5636 = vmatpush2.bf16.msra.mxu0 %v7362_v62 }
 0xb58   :  { %6069 = vmatprep.subr.bf16.mxu0 %v7373_v52  ;;  %v7416_v52 = vld [vmem:[#allocation11 + $0x80] ss:$8 sps:$4 sm:$0xff]  }
 0xb5a   :  { %v5163_v29 = vpop.f32.mrf.mxu0 }
 0xb5b   :  { %v5204_v27 = vpop.f32.mrf.mxu1  ;;  %v5164_v10 = vadd.f32 %v5163_v29, %v9649_v48  ;;  %v5411_v48 = vpack.c.bf16 %v9580_v6, %v9580_v6  ;;  %v7377_v6 = vld [vmem:[#allocation11 + $0x50] ss:$8 sps:$4 sm:$0xff]  }
 0xb5c   :  { %v5165_v36 = vpop.f32.mrf.mxu0 }
 0xb5d   :  { %v5206_v5 = vpop.f32.mrf.mxu1  ;;  %v9654_v11 = vadd.f32 %v5204_v27, %v5164_v10  ;;  %v5166_v38 = vadd.f32 %v5165_v36, %v9651_v28  ;;  %5638 = vmatmul.mubr.bf16.vlgmr.msra.gmra.mxu0 %v5411_v48  ;;  %v7368_v28 = vld [vmem:[#allocation8 + $0x80] ss:$8 sps:$4 sm:$0xff]  }
 0xb5e   :  { %v5167_v2 = vpop.f32.mrf.mxu0  ;;  %5837 = vmatpush2.bf16.msra.mxu1 %v7368_v28  ;;  %6070 = vmatpush1.bf16.msra.mxu0 %v7371_v13  ;;  %v7413_v28 = vld [vmem:[#allocation11 + $0x90] ss:$8 sps:$4 sm:$0xff]   ;;  %v7418_v13 = vld [vmem:[#allocation11 + $0x84] ss:$8 sps:$4 sm:$0xff]  }
 0xb5f   :  { %v5208_v0 = vpop.f32.mrf.mxu1  ;;  %v9661_v49 = vadd.f32 %v5206_v5, %v5166_v38  ;;  %6071 = vmatprep.subr.bf16.mxu0 %v7376_v9  ;;  %v5847_v9 = vld [vmem:[%s9687_s9] sm:$0x3] }
 0xb60   :  { %v5168_v1 = vpop.f32.mrf.mxu0 }
 0xb61   :  { %v5209_v51 = vpop.f32.mrf.mxu1  ;;  %v7410_v1 = vld [vmem:[#allocation11 + $0xa0] ss:$8 sps:$4 sm:$0xff]  }
 0xb62   :  { %6072 = vmatpush1.bf16.msra.mxu0 %v7374_v57  ;;  %v5852_v57 = vrot.slane %v5847_v9, %v10721_v16 }
 0xb63   :  { %6073 = vmatprep.subr.bf16.mxu0 %v7379_v42 }
 0xb66   :  { %6074 = vmatpush1.bf16.msra.mxu0 %v7377_v6 }
 0xb67   :  { %6075 = vmatprep.subr.bf16.mxu0 %v7382_v8  ;;  %v5856_v8 = vrot.slane %v5847_v9, %v10722_v22 }
 0xb6a   :  { %6076 = vmatpush1.bf16.msra.mxu0 %v7380_v25 }
 0xb6b   :  { %6077 = vmatprep.subr.bf16.mxu0 %v7385_v18 }
 0xb6e   :  { %6078 = vmatpush1.bf16.msra.mxu0 %v7383_v61 }
 0xb6f   :  { %6079 = vmatprep.subr.bf16.mxu0 %v7388_v35 }
 0xb72   :  { %6080 = vmatpush1.bf16.msra.mxu0 %v7386_v45 }
 0xb73   :  { %6081 = vmatprep.subr.bf16.mxu0 %v7391_v23 }
 0xb76   :  { %6082 = vmatpush1.bf16.msra.mxu0 %v7389_v47 }
 0xb77   :  { %6083 = vmatprep.subr.bf16.mxu0 %v7394_v30 }
 0xb7a   :  { %6084 = vmatpush1.bf16.msra.mxu0 %v7392_v63 }
 0xb7b   :  { %6085 = vmatprep.subr.bf16.mxu0 %v7397_v12 }
 0xb7e   :  { %6086 = vmatpush2.bf16.msra.mxu0 %v7395_v54  ;;  %v5897_v54 = vld [vmem:[%s9689_s11] sm:$0x3] }
 0xb7f   :  { %6087 = vmatprep.subr.bf16.mxu0 %v7400_v60  ;;  %v5902_v60 = vrot.slane %v5897_v54, %v10721_v16 }
 0xb82   :  { %6088 = vmatpush2.bf16.msra.mxu0 %v7398_v37  ;;  %v5906_v37 = vrot.slane %v5897_v54, %v10722_v22 }
 0xb83   :  { %6089 = vmatprep.subr.bf16.mxu0 %v7403_v58 }
 0xb86   :  { %6090 = vmatpush2.bf16.msra.mxu0 %v7401_v53 }
 0xb87   :  { %6091 = vmatprep.subr.bf16.mxu0 %v7406_v19 }
 0xb8a   :  { %6092 = vmatpush2.bf16.msra.mxu0 %v7404_v15 }
 0xb8b   :  { %6093 = vmatprep.subr.bf16.mxu0 %v7409_v39 }
 0xb8e   :  { %6094 = vmatpush2.bf16.msra.mxu0 %v7407_v33 }
 0xb9a   :  { %v5245_v56 = vpop.f32.mrf.mxu0 }
 0xb9b   :  { %v5286_v4 = vpop.f32.mrf.mxu1  ;;  %v5246_v26 = vadd.f32 %v5245_v56, %v9654_v11 }
 0xb9c   :  { %v5247_v46 = vpop.f32.mrf.mxu0 }
 0xb9d   :  { %v5288_v7 = vpop.f32.mrf.mxu1  ;;  %v5287_v14 = vadd.f32 %v5286_v4, %v5246_v26  ;;  %v5248_v41 = vadd.f32 %v5247_v46, %v9661_v49  ;;  %v7412_v49 = vld [vmem:[#allocation11 + $0xa4] ss:$8 sps:$4 sm:$0xff]  }
 0xb9e   :  { %v5249_v21 = vpop.f32.mrf.mxu0  ;;  %6095 = vmatprep.subr.bf16.mxu0 %v7412_v49 }
 0xb9f   :  { %v5290_v3 = vpop.f32.mrf.mxu1  ;;  %v5289_v44 = vadd.f32 %v5288_v7, %v5248_v41  ;;  %6096 = vmatpush2.bf16.msra.mxu0 %v7410_v1 }
 0xba0   :  { %v5250_v24 = vpop.f32.mrf.mxu0  ;;  %6097 = vmatprep.subr.bf16.mxu0 %v7415_v32 }
 0xba1   :  { %v5291_v31 = vpop.f32.mrf.mxu1 }
 0xba3   :  { %6098 = vmatpush2.bf16.msra.mxu0 %v7413_v28 }
 0xba4   :  { %6099 = vmatprep.subr.bf16.mxu0 %v7418_v13 }
 0xba7   :  { %6100 = vmatpush2.bf16.msra.mxu0 %v7416_v52 }
 0xbda   :  { %v5327_v50 = vpop.f32.mrf.mxu0 }
 0xbdb   :  { %v5368_v40 = vpop.f32.mrf.mxu1  ;;  %v5328_v34 = vadd.f32 %v5327_v50, %v5287_v14 }
 0xbdc   :  { %v5329_v59 = vpop.f32.mrf.mxu0 }
 0xbdd   :  { %v5370_v29 = vpop.f32.mrf.mxu1  ;;  %v5369_v27 = vadd.f32 %v5368_v40, %v5328_v34  ;;  %v5330_v17 = vadd.f32 %v5329_v59, %v5289_v44 }
 0xbde   :  { %v5331_v10 = vpop.f32.mrf.mxu0 }
 0xbdf   :  { %v5372_v62 = vpop.f32.mrf.mxu1  ;;  %v5371_v36 = vadd.f32 %v5370_v29, %v5330_v17  ;;  %v5375_v5 = vmax.f32 %v5369_v27, 0.0 }
 0xbe0   :  { %v5332_v43 = vpop.f32.mrf.mxu0 }
 0xbe1   :  { %v5373_v11 = vpop.f32.mrf.mxu1  ;;  %v5376_v38 = vmax.f32 %v5371_v36, 0.0  ;;  %v5377_v20 = vpack.c.bf16 %v5375_v5, %v5375_v5 }
 0xbe3   :  { %v5378_v55 = vpack.c.bf16 %v5376_v38, %v5376_v38 }
 0xbe5   :  { %5838 = vmatprep.mubr.bf16.mxu1 %v5378_v55 }
 0xbe6   :  { %5839 = vmatmul.mubr.bf16.vlgmr.msra.gmra.mxu1 %v5377_v20 }
 0xc1d   :  { %v5639_v2 = vpop.f32.mrf.mxu0 }
 0xc1f   :  { %v5641_v0 = vpop.f32.mrf.mxu0 }
 0xc21   :  { %v5643_v48 = vpop.f32.mrf.mxu0 }
 0xc23   :  { %v5644_v51 = vpop.f32.mrf.mxu0 }
 0xca6   :  { %v5840_v42 = vpop.f32.mrf.mxu1 }
 0xca7   :  { %v5841_v6 = vadd.f32 %v5840_v42, %v5639_v2 }
 0xca8   :  { %v5842_v25 = vpop.f32.mrf.mxu1 }
 0xca9   :  { %v5859_v18 = vadd.f32 %v5852_v57, %v5841_v6  ;;  %v5843_v61 = vadd.f32 %v5842_v25, %v5641_v0 }
 0xcaa   :  { %v5844_v35 = vpop.f32.mrf.mxu1 }
 0xcab   :  { %v5860_v45 = vadd.f32 %v5856_v8, %v5843_v61  ;;  %v5861_v23 = vmax.f32 %v5859_v18, 0.0 }
 0xcac   :  { %v5845_v47 = vpop.f32.mrf.mxu1 }
 0xcad   :  { %v5862_v30 = vmax.f32 %v5860_v45, 0.0  ;;  %v5863_v12 = vpack.c.bf16 %v5861_v23, %v5861_v23 }
 0xcaf   :  { %v5864_v63 = vpack.c.bf16 %v5862_v30, %v5862_v30 }
 0xcb1   :  { %6101 = vmatprep.mubr.bf16.mxu0 %v5864_v63 }
 0xcb2   :  { %6102 = vmatmul.mubr.bf16.vlgmr.msra.gmra.mxu0 %v5863_v12 }
 0xd72   :  { %v6103_v58 = vpop.f32.mrf.mxu0 }
 0xd73   :  { %v6104_v53 = vadd.f32 %v6103_v58, %v5902_v60 }
 0xd74   :  { %v6105_v19 = vpop.f32.mrf.mxu0 }
 0xd75   :  { %6110 = vst [vmem:[#allocation13] sm:$0xff] %v6104_v53  ;;  %v6106_v15 = vadd.f32 %v6105_v19, %v5906_v37 }
 0xd76   :  { %v6107_v56 = vpop.f32.mrf.mxu0 }
 0xd77   :  { %6111 = vst [vmem:[#allocation13 + $0x8] sm:$0xff] %v6106_v15 }
 0xd78   :  { %v6108_v4 = vpop.f32.mrf.mxu0 }
 0xd79   :  { %7530 = shalt.err (!%p7527_p1)
}
 0xd7a   :  { %6121 = dma.vmem_to_hbm [thread:$0]  %s6119_s28, 256, %s9690_s12, [#allocation7]  }
 0xd7b   :  { %7547 = dma.done.wait [#allocation7], 256  }
 0xd7c   :  { %7548 = vsyncadd [#allocation7], 4294967040 }
 0xd7d   :  { %6125 = vsyncpa [#allocation6], 1 }
 0xd7e   :  { %6126 = vsyncpa [#allocation9], 1 }
 0xd7f   :  { %6127 = vsyncpa [#allocation12], 1 }
 0xd80   :  { %6128 = vsyncpa [#allocation7], 1 }
 0xd81   :  { %6129 = vsyncmov [#allocation4] }
 0xd84   :  { %s6130_s10 = vpop.sfrf %6129 }
 0xd85   :  { %p6699_p2 = scmp.ne.s32.totalorder %s6130_s10, 0 }
 0xd87   :  { %6134 = shalt.err (%p6699_p2)  }

</bundles_post_ra>
